<compile_context>
chip_gen: v5e
topology: v5e:2x2
jax: 0.10.0
libtpu: 0.0.40
codegen_flags: <defaults>
</compile_context>

<pallas_src>
import jax
import jax.numpy as jnp
from jax import lax
from jax.experimental import pallas as pl
from jax.experimental.pallas import tpu as pltpu

_NUM_BI_LAYERS = 4
_NUM_UNI_LAYERS = 4
_H_BI = 16          # hidden size of the bidirectional stack
_SUB_STRIDE = 8     # _p = p[:, 7::8, :]


# --------------------------------------------------------------------------
# Fused Pallas kernel
# --------------------------------------------------------------------------
def _pitch_kernel(*refs):
    """Fused forward pass.

    refs layout (all VMEM, full-array):
      [x2d (T*B, 24)]
      + 4 x [wihf (D, 8H), wihb (D, 8H), whh (2H, 8H), b (1, 8H)]   (bi stack)
      + 4 x [wih (D, 4),  whh (1, 4),  b (1, 4)]                    (uni stack)
      + [out (B, T//8)]
    """
    f32 = jnp.float32
    x_ref = refs[0]
    bi = [refs[1 + 4 * l: 1 + 4 * (l + 1)] for l in range(_NUM_BI_LAYERS)]
    off = 1 + 4 * _NUM_BI_LAYERS
    uni = [refs[off + 3 * l: off + 3 * (l + 1)] for l in range(_NUM_UNI_LAYERS)]
    out_ref = refs[off + 3 * _NUM_UNI_LAYERS]

    B = out_ref.shape[0]
    T = x_ref.shape[0] // B
    H = _H_BI
    H2 = 2 * H                      # 32: concatenated [fwd | bwd] state width
    n_sub = T // _SUB_STRIDE

    # ---------------- bidirectional stack (4 layers, dirs fused) ----------
    # Layer input as a time-major 2-D slab (T*B, D); row t*B + b = (time t, batch b)
    xin2d = x_ref[...]
    hf_t = [None] * T               # fwd hidden, indexed by actual time
    hb_t = [None] * T               # bwd hidden, indexed by actual time
    for li, (wihf_ref, wihb_ref, whh_ref, b_ref) in enumerate(bi):
        if li > 0:
            xin2d = jnp.concatenate(
                [jnp.concatenate(hf_t, axis=0), jnp.concatenate(hb_t, axis=0)],
                axis=-1)                                            # (T*B, 2H)
        wihf = wihf_ref[...]                                        # (D, 8H)
        wihb = wihb_ref[...]                                        # (D, 8H)
        whh = whh_ref[...]                                          # (2H, 8H) block-diag
        b = b_ref[...]                                              # (1, 8H)

        # Hoisted input projections: one batched matmul per direction covers
        # every timestep. Biases are added exactly once (here, not per step).
        proj_f = jnp.dot(xin2d, wihf, preferred_element_type=f32) + b   # (T*B, 8H)
        proj_b = jnp.dot(xin2d, wihb, preferred_element_type=f32)       # (T*B, 8H)

        h = jnp.zeros((B, H2), f32)                                 # [h_fwd | h_bwd]
        c = jnp.zeros((B, H2), f32)
        for s in range(T):                                          # fully unrolled
            # fwd half consumes time s, bwd half consumes time T-1-s
            pre = (proj_f[s * B:(s + 1) * B, :]
                   + proj_b[(T - 1 - s) * B:(T - s) * B, :])
            gates = pre + jnp.dot(h, whh, preferred_element_type=f32)   # (B, 8H)
            sg = jax.nn.sigmoid(gates[:, :3 * H2])                  # i|f|o, both dirs
            i_g = sg[:, 0:H2]
            f_g = sg[:, H2:2 * H2]
            o_g = sg[:, 2 * H2:3 * H2]
            g_g = jnp.tanh(gates[:, 3 * H2:4 * H2])
            c = f_g * c + i_g * g_g
            h = o_g * jnp.tanh(c)
            hf_t[s] = h[:, :H]
            hb_t[T - 1 - s] = h[:, H:]

    # ---------------- _p = p[:, 7::8, :] ----------------------------------
    # (hidden=16 => the torch "backward" slice p[:, :, 32:] is empty, so _p is
    #  just the full bidirectional output sub-sampled in time)
    u_rows = [jnp.concatenate([hf_t[_SUB_STRIDE - 1 + _SUB_STRIDE * j],
                               hb_t[_SUB_STRIDE - 1 + _SUB_STRIDE * j]], axis=-1)
              for j in range(n_sub)]
    uin2d = jnp.concatenate(u_rows, axis=0)                         # (n_sub*B, 2H)

    # ---------------- unidirectional stack (4 layers, hidden = 1) ---------
    outs = None
    for (wih_ref, whh_ref, b_ref) in uni:
        wih = wih_ref[...]                                          # (D, 4), D in {32, 1}
        whh = whh_ref[...]                                          # (1, 4)
        b = b_ref[...]                                              # (1, 4)
        if wih.shape[0] == 1:
            proj = uin2d * wih + b          # K=1: VPU broadcast, no MXU needed
        else:
            proj = jnp.dot(uin2d, wih, preferred_element_type=f32) + b
        h = jnp.zeros((B, 1), f32)
        c = jnp.zeros((B, 1), f32)
        outs = [None] * n_sub
        for j in range(n_sub):                                      # fully unrolled
            gates = proj[j * B:(j + 1) * B, :] + h * whh            # recurrence on VPU
            sg = jax.nn.sigmoid(gates[:, 0:3])
            i_g = sg[:, 0:1]
            f_g = sg[:, 1:2]
            o_g = sg[:, 2:3]
            g_g = jnp.tanh(gates[:, 3:4])
            c = f_g * c + i_g * g_g
            h = o_g * jnp.tanh(c)
            outs[j] = h
        uin2d = jnp.concatenate(outs, axis=0)                       # (n_sub*B, 1)

    # single lane-packed store of the final result
    out_ref[...] = jnp.concatenate(outs, axis=-1)                   # (B, n_sub)


# --------------------------------------------------------------------------
# Wrapper
# --------------------------------------------------------------------------
def pitch_predictor_pallas(r_c_s, packed):
    """Fused Pallas forward. r_c_s: (B, T, 24), T multiple of 8 -> (B, T//8, 1)."""
    # TODO(synk): the original torch.tensor(...) cast accepts arbitrary host
    # input; here we accept a jnp array and cast dtype.
    x = jnp.transpose(r_c_s.astype(jnp.float32), (1, 0, 2))         # (T, B, 24)
    T, B, D = x.shape
    n_sub = T // _SUB_STRIDE
    x2d = x.reshape(T * B, D)                                       # time-major slab
    flat = [x2d] + list(packed["bid_flat"]) + list(packed["uni_flat"])
    vmem = pl.BlockSpec(memory_space=pltpu.MemorySpace.VMEM)
    out = pl.pallas_call(
        _pitch_kernel,
        out_shape=jax.ShapeDtypeStruct((B, n_sub), jnp.float32),
        in_specs=[vmem] * len(flat),
        out_specs=vmem,
    )(*flat)
    return out[:, :, None]                                          # (B, T//8, 1)


# --------------------------------------------------------------------------
# Parameter packing (torch-layout params -> kernel-layout params)
# --------------------------------------------------------------------------
def _scatter_gate_cols(w, direction, H):
    """w: (rows, 4H), columns in torch gate order [i, f, g, o] for ONE direction.

    Returns (rows, 8H) with column groups [i_f i_b | f_f f_b | o_f o_b | g_f g_b],
    this direction's columns filled, the other direction zeroed."""
    i = w[:, 0 * H:1 * H]
    f = w[:, 1 * H:2 * H]
    g = w[:, 2 * H:3 * H]
    o = w[:, 3 * H:4 * H]
    z = jnp.zeros_like(i)
    if direction == 0:
        return jnp.concatenate([i, z, f, z, o, z, g, z], axis=-1)
    return jnp.concatenate([z, i, z, f, z, o, z, g], axis=-1)


def _pack_bi_layer(layer, H=_H_BI):
    (wif, whf, bif, bhf), (wib, whb, bib, bhb) = layer
    wihf = _scatter_gate_cols(wif.T, 0, H)                          # (D, 8H)
    wihb = _scatter_gate_cols(wib.T, 1, H)                          # (D, 8H)
    whh = jnp.concatenate([_scatter_gate_cols(whf.T, 0, H),
                           _scatter_gate_cols(whb.T, 1, H)], axis=0)  # (2H, 8H)
    b = (_scatter_gate_cols((bif + bhf)[None, :], 0, H)
         + _scatter_gate_cols((bib + bhb)[None, :], 1, H))          # (1, 8H)
    return [wihf, wihb, whh, b]


def _reorder_ifog(w):
    """(rows, 4) torch gate order [i, f, g, o] -> kernel order [i, f, o, g] (H=1)."""
    return jnp.concatenate([w[:, 0:1], w[:, 1:2], w[:, 3:4], w[:, 2:3]], axis=-1)


def _pack_uni_layer(layer):
    (wih, whh, bih, bhh), = layer
    return [_reorder_ifog(wih.T), _reorder_ifog(whh.T),
            _reorder_ifog((bih + bhh)[None, :])]


def pack_params(raw):
    bid_flat = []
    for layer in raw["bid"]:
        bid_flat += _pack_bi_layer(layer)
    uni_flat = []
    for layer in raw["uni"]:
        uni_flat += _pack_uni_layer(layer)
    return {"bid_flat": bid_flat, "uni_flat": uni_flat}


# --------------------------------------------------------------------------
# Deterministic init (PyTorch nn.LSTM shapes & U(-1/sqrt(H), 1/sqrt(H)) init)
# --------------------------------------------------------------------------
def _init_lstm_raw(key, input_size, hidden_size, num_layers, bidirectional):
    H = hidden_size
    nd = 2 if bidirectional else 1
    bound = 1.0 / (H ** 0.5)
    params = []
    for layer in range(num_layers):
        d_in = input_size if layer == 0 else H * nd
        dirs = []
        for _ in range(nd):
            key, k1, k2, k3, k4 = jax.random.split(key, 5)
            w_ih = jax.random.uniform(k1, (4 * H, d_in), jnp.float32, -bound, bound)
            w_hh = jax.random.uniform(k2, (4 * H, H), jnp.float32, -bound, bound)
            b_ih = jax.random.uniform(k3, (4 * H,), jnp.float32, -bound, bound)
            b_hh = jax.random.uniform(k4, (4 * H,), jnp.float32, -bound, bound)
            dirs.append((w_ih, w_hh, b_ih, b_hh))
        params.append(dirs)
    return params, key


# --------------------------------------------------------------------------
# Pure-JAX reference (torch semantics, validates packing + kernel)
# --------------------------------------------------------------------------
def _lstm_dir_ref(x_tm, w_ih, w_hh, b_ih, b_hh):
    H = w_hh.shape[1]
    B = x_tm.shape[1]
    wt_i = w_ih.T
    wt_h = w_hh.T
    b = (b_ih + b_hh)[None, :]

    def step(carry, x_t):
        h, c = carry
        gates = x_t @ wt_i + h @ wt_h + b
        i = jax.nn.sigmoid(gates[:, 0 * H:1 * H])
        f = jax.nn.sigmoid(gates[:, 1 * H:2 * H])
        g = jnp.tanh(gates[:, 2 * H:3 * H])
        o = jax.nn.sigmoid(gates[:, 3 * H:4 * H])
        c2 = f * c + i * g
        h2 = o * jnp.tanh(c2)
        return (h2, c2), h2

    init = (jnp.zeros((B, H), jnp.float32), jnp.zeros((B, H), jnp.float32))
    _, hs = lax.scan(step, init, x_tm)
    return hs


def pitch_predictor_ref(r_c_s, raw_params):
    x = jnp.transpose(r_c_s.astype(jnp.float32), (1, 0, 2))
    h = x
    for layer in raw_params["bid"]:
        fwd = _lstm_dir_ref(h, *layer[0])
        bwd = _lstm_dir_ref(h[::-1], *layer[1])[::-1]
        h = jnp.concatenate([fwd, bwd], axis=-1)
    p = jnp.transpose(h, (1, 0, 2))                                 # (B, T, 32)
    # Reproduce the module's hidden-size-32 assumption exactly: the "backward"
    # slice is empty, so _p == p[:, 7::8, :].
    p_forward = p[:, :, :32]
    p_backward = p[:, :, 32:]
    _p = jnp.concatenate([p_forward[:, 7::8, :], p_backward[:, ::8, :]], axis=-1)
    u = jnp.transpose(_p, (1, 0, 2))
    for layer in raw_params["uni"]:
        u = _lstm_dir_ref(u, *layer[0])
    return jnp.transpose(u, (1, 0, 2))                              # (B, T//8, 1)


# --------------------------------------------------------------------------
if __name__ == "__main__":
    key = jax.random.PRNGKey(0)

    # pitch_bid_LSTM: input 24, hidden 16, 4 layers, bidirectional
    raw_bid, key = _init_lstm_raw(key, input_size=24, hidden_size=16,
                                  num_layers=4, bidirectional=True)
    # pitch_LSTM: input 32, hidden 1, 4 layers, unidirectional
    raw_uni, key = _init_lstm_raw(key, input_size=32, hidden_size=1,
                                  num_layers=4, bidirectional=False)
    raw = {"bid": raw_bid, "uni": raw_uni}
    packed = pack_params(raw)

    B, T, D_IN = 2, 16, 24
    key, kx = jax.random.split(key)
    r_c_s = jax.random.normal(kx, (B, T, D_IN), jnp.float32)

    fwd = jax.jit(pitch_predictor_pallas)
    out = jax.block_until_ready(fwd(r_c_s, packed))
    ref = jax.block_until_ready(pitch_predictor_ref(r_c_s, raw))

    assert out.shape == (B, T // 8, 1), out.shape
    assert jnp.allclose(out, ref, atol=2e-3, rtol=1e-3), (out, ref)
    print("KERNEL_OK")
</pallas_src>

<mosaic_0001>
module attributes {stable_mosaic.version = 11 : i64} {
  func.func @_pitch_kernel(%arg0: memref<32x24xf32, #tpu.memory_space<vmem>>, %arg1: memref<24x128xf32, #tpu.memory_space<vmem>>, %arg2: memref<24x128xf32, #tpu.memory_space<vmem>>, %arg3: memref<32x128xf32, #tpu.memory_space<vmem>>, %arg4: memref<1x128xf32, #tpu.memory_space<vmem>>, %arg5: memref<32x128xf32, #tpu.memory_space<vmem>>, %arg6: memref<32x128xf32, #tpu.memory_space<vmem>>, %arg7: memref<32x128xf32, #tpu.memory_space<vmem>>, %arg8: memref<1x128xf32, #tpu.memory_space<vmem>>, %arg9: memref<32x128xf32, #tpu.memory_space<vmem>>, %arg10: memref<32x128xf32, #tpu.memory_space<vmem>>, %arg11: memref<32x128xf32, #tpu.memory_space<vmem>>, %arg12: memref<1x128xf32, #tpu.memory_space<vmem>>, %arg13: memref<32x128xf32, #tpu.memory_space<vmem>>, %arg14: memref<32x128xf32, #tpu.memory_space<vmem>>, %arg15: memref<32x128xf32, #tpu.memory_space<vmem>>, %arg16: memref<1x128xf32, #tpu.memory_space<vmem>>, %arg17: memref<32x4xf32, #tpu.memory_space<vmem>>, %arg18: memref<1x4xf32, #tpu.memory_space<vmem>>, %arg19: memref<1x4xf32, #tpu.memory_space<vmem>>, %arg20: memref<1x4xf32, #tpu.memory_space<vmem>>, %arg21: memref<1x4xf32, #tpu.memory_space<vmem>>, %arg22: memref<1x4xf32, #tpu.memory_space<vmem>>, %arg23: memref<1x4xf32, #tpu.memory_space<vmem>>, %arg24: memref<1x4xf32, #tpu.memory_space<vmem>>, %arg25: memref<1x4xf32, #tpu.memory_space<vmem>>, %arg26: memref<1x4xf32, #tpu.memory_space<vmem>>, %arg27: memref<1x4xf32, #tpu.memory_space<vmem>>, %arg28: memref<1x4xf32, #tpu.memory_space<vmem>>, %arg29: memref<2x2xf32, #tpu.memory_space<vmem>>) attributes {dimension_semantics = [], scalar_prefetch = 0 : i64, scratch_operands = 0 : i64, tpu.core_type = #tpu.core_type<tc>} {
    %c0 = arith.constant 0 : index
    %c0_0 = arith.constant 0 : index
    %0 = vector.load %arg0[%c0, %c0_0] : memref<32x24xf32, #tpu.memory_space<vmem>>, vector<32x24xf32>
    %c0_1 = arith.constant 0 : index
    %c0_2 = arith.constant 0 : index
    %1 = vector.load %arg1[%c0_1, %c0_2] : memref<24x128xf32, #tpu.memory_space<vmem>>, vector<24x128xf32>
    %c0_3 = arith.constant 0 : index
    %c0_4 = arith.constant 0 : index
    %2 = vector.load %arg2[%c0_3, %c0_4] : memref<24x128xf32, #tpu.memory_space<vmem>>, vector<24x128xf32>
    %c0_5 = arith.constant 0 : index
    %c0_6 = arith.constant 0 : index
    %3 = vector.load %arg3[%c0_5, %c0_6] : memref<32x128xf32, #tpu.memory_space<vmem>>, vector<32x128xf32>
    %c0_7 = arith.constant 0 : index
    %c0_8 = arith.constant 0 : index
    %4 = vector.load %arg4[%c0_7, %c0_8] : memref<1x128xf32, #tpu.memory_space<vmem>>, vector<1x128xf32>
    %cst = arith.constant dense<0.000000e+00> : vector<32x128xf32>
    %5 = tpu.matmul %0, %1, %cst {dimension_numbers = #tpu.dot_dimension_numbers<[1], [0], [0], [1], [0, 0, 1, 1], [], []>} : vector<32x24xf32>, vector<24x128xf32>, vector<32x128xf32> -> vector<32x128xf32>
    %6 = vector.broadcast %4 : vector<1x128xf32> to vector<32x128xf32>
    %7 = arith.addf %5, %6 : vector<32x128xf32>
    %cst_9 = arith.constant dense<0.000000e+00> : vector<32x128xf32>
    %8 = tpu.matmul %0, %2, %cst_9 {dimension_numbers = #tpu.dot_dimension_numbers<[1], [0], [0], [1], [0, 0, 1, 1], [], []>} : vector<32x24xf32>, vector<24x128xf32>, vector<32x128xf32> -> vector<32x128xf32>
    %cst_10 = arith.constant 0.000000e+00 : f32
    %9 = vector.broadcast %cst_10 : f32 to vector<2x32xf32>
    %cst_11 = arith.constant 0.000000e+00 : f32
    %10 = vector.broadcast %cst_11 : f32 to vector<2x32xf32>
    %11 = vector.extract_strided_slice %7 {offsets = [0, 0], sizes = [2, 128], strides = [1, 1]} : vector<32x128xf32> to vector<2x128xf32>
    %12 = vector.extract_strided_slice %8 {offsets = [30, 0], sizes = [2, 128], strides = [1, 1]} : vector<32x128xf32> to vector<2x128xf32>
    %13 = arith.addf %11, %12 : vector<2x128xf32>
    %cst_12 = arith.constant dense<0.000000e+00> : vector<2x128xf32>
    %14 = tpu.matmul %9, %3, %cst_12 {dimension_numbers = #tpu.dot_dimension_numbers<[1], [0], [0], [1], [0, 0, 1, 1], [], []>} : vector<2x32xf32>, vector<32x128xf32>, vector<2x128xf32> -> vector<2x128xf32>
    %15 = arith.addf %13, %14 : vector<2x128xf32>
    %16 = vector.extract_strided_slice %15 {offsets = [0, 0], sizes = [2, 96], strides = [1, 1]} : vector<2x128xf32> to vector<2x96xf32>
    %17 = arith.negf %16 : vector<2x96xf32>
    %18 = math.exp %17 : vector<2x96xf32>
    %cst_13 = arith.constant 1.000000e+00 : f32
    %19 = vector.broadcast %cst_13 : f32 to vector<2x96xf32>
    %20 = arith.addf %19, %18 : vector<2x96xf32>
    %21 = arith.divf %19, %20 : vector<2x96xf32>
    %22 = vector.extract_strided_slice %21 {offsets = [0, 0], sizes = [2, 32], strides = [1, 1]} : vector<2x96xf32> to vector<2x32xf32>
    %23 = vector.extract_strided_slice %21 {offsets = [0, 32], sizes = [2, 32], strides = [1, 1]} : vector<2x96xf32> to vector<2x32xf32>
    %24 = vector.extract_strided_slice %21 {offsets = [0, 64], sizes = [2, 32], strides = [1, 1]} : vector<2x96xf32> to vector<2x32xf32>
    %25 = vector.extract_strided_slice %15 {offsets = [0, 96], sizes = [2, 32], strides = [1, 1]} : vector<2x128xf32> to vector<2x32xf32>
    %26 = math.tanh %25 : vector<2x32xf32>
    %27 = arith.mulf %23, %10 : vector<2x32xf32>
    %28 = arith.mulf %22, %26 : vector<2x32xf32>
    %29 = arith.addf %27, %28 : vector<2x32xf32>
    %30 = math.tanh %29 : vector<2x32xf32>
    %31 = arith.mulf %24, %30 : vector<2x32xf32>
    %32 = vector.extract_strided_slice %31 {offsets = [0, 0], sizes = [2, 16], strides = [1, 1]} : vector<2x32xf32> to vector<2x16xf32>
    %33 = vector.extract_strided_slice %31 {offsets = [0, 16], sizes = [2, 16], strides = [1, 1]} : vector<2x32xf32> to vector<2x16xf32>
    %34 = vector.extract_strided_slice %7 {offsets = [2, 0], sizes = [2, 128], strides = [1, 1]} : vector<32x128xf32> to vector<2x128xf32>
    %35 = vector.extract_strided_slice %8 {offsets = [28, 0], sizes = [2, 128], strides = [1, 1]} : vector<32x128xf32> to vector<2x128xf32>
    %36 = arith.addf %34, %35 : vector<2x128xf32>
    %cst_14 = arith.constant dense<0.000000e+00> : vector<2x128xf32>
    %37 = tpu.matmul %31, %3, %cst_14 {dimension_numbers = #tpu.dot_dimension_numbers<[1], [0], [0], [1], [0, 0, 1, 1], [], []>} : vector<2x32xf32>, vector<32x128xf32>, vector<2x128xf32> -> vector<2x128xf32>
    %38 = arith.addf %36, %37 : vector<2x128xf32>
    %39 = vector.extract_strided_slice %38 {offsets = [0, 0], sizes = [2, 96], strides = [1, 1]} : vector<2x128xf32> to vector<2x96xf32>
    %40 = arith.negf %39 : vector<2x96xf32>
    %41 = math.exp %40 : vector<2x96xf32>
    %cst_15 = arith.constant 1.000000e+00 : f32
    %42 = vector.broadcast %cst_15 : f32 to vector<2x96xf32>
    %43 = arith.addf %42, %41 : vector<2x96xf32>
    %44 = arith.divf %42, %43 : vector<2x96xf32>
    %45 = vector.extract_strided_slice %44 {offsets = [0, 0], sizes = [2, 32], strides = [1, 1]} : vector<2x96xf32> to vector<2x32xf32>
    %46 = vector.extract_strided_slice %44 {offsets = [0, 32], sizes = [2, 32], strides = [1, 1]} : vector<2x96xf32> to vector<2x32xf32>
    %47 = vector.extract_strided_slice %44 {offsets = [0, 64], sizes = [2, 32], strides = [1, 1]} : vector<2x96xf32> to vector<2x32xf32>
    %48 = vector.extract_strided_slice %38 {offsets = [0, 96], sizes = [2, 32], strides = [1, 1]} : vector<2x128xf32> to vector<2x32xf32>
    %49 = math.tanh %48 : vector<2x32xf32>
    %50 = arith.mulf %46, %29 : vector<2x32xf32>
    %51 = arith.mulf %45, %49 : vector<2x32xf32>
    %52 = arith.addf %50, %51 : vector<2x32xf32>
    %53 = math.tanh %52 : vector<2x32xf32>
    %54 = arith.mulf %47, %53 : vector<2x32xf32>
    %55 = vector.extract_strided_slice %54 {offsets = [0, 0], sizes = [2, 16], strides = [1, 1]} : vector<2x32xf32> to vector<2x16xf32>
    %56 = vector.extract_strided_slice %54 {offsets = [0, 16], sizes = [2, 16], strides = [1, 1]} : vector<2x32xf32> to vector<2x16xf32>
    %57 = vector.extract_strided_slice %7 {offsets = [4, 0], sizes = [2, 128], strides = [1, 1]} : vector<32x128xf32> to vector<2x128xf32>
    %58 = vector.extract_strided_slice %8 {offsets = [26, 0], sizes = [2, 128], strides = [1, 1]} : vector<32x128xf32> to vector<2x128xf32>
    %59 = arith.addf %57, %58 : vector<2x128xf32>
    %cst_16 = arith.constant dense<0.000000e+00> : vector<2x128xf32>
    %60 = tpu.matmul %54, %3, %cst_16 {dimension_numbers = #tpu.dot_dimension_numbers<[1], [0], [0], [1], [0, 0, 1, 1], [], []>} : vector<2x32xf32>, vector<32x128xf32>, vector<2x128xf32> -> vector<2x128xf32>
    %61 = arith.addf %59, %60 : vector<2x128xf32>
    %62 = vector.extract_strided_slice %61 {offsets = [0, 0], sizes = [2, 96], strides = [1, 1]} : vector<2x128xf32> to vector<2x96xf32>
    %63 = arith.negf %62 : vector<2x96xf32>
    %64 = math.exp %63 : vector<2x96xf32>
    %cst_17 = arith.constant 1.000000e+00 : f32
    %65 = vector.broadcast %cst_17 : f32 to vector<2x96xf32>
    %66 = arith.addf %65, %64 : vector<2x96xf32>
    %67 = arith.divf %65, %66 : vector<2x96xf32>
    %68 = vector.extract_strided_slice %67 {offsets = [0, 0], sizes = [2, 32], strides = [1, 1]} : vector<2x96xf32> to vector<2x32xf32>
    %69 = vector.extract_strided_slice %67 {offsets = [0, 32], sizes = [2, 32], strides = [1, 1]} : vector<2x96xf32> to vector<2x32xf32>
    %70 = vector.extract_strided_slice %67 {offsets = [0, 64], sizes = [2, 32], strides = [1, 1]} : vector<2x96xf32> to vector<2x32xf32>
    %71 = vector.extract_strided_slice %61 {offsets = [0, 96], sizes = [2, 32], strides = [1, 1]} : vector<2x128xf32> to vector<2x32xf32>
    %72 = math.tanh %71 : vector<2x32xf32>
    %73 = arith.mulf %69, %52 : vector<2x32xf32>
    %74 = arith.mulf %68, %72 : vector<2x32xf32>
    %75 = arith.addf %73, %74 : vector<2x32xf32>
    %76 = math.tanh %75 : vector<2x32xf32>
    %77 = arith.mulf %70, %76 : vector<2x32xf32>
    %78 = vector.extract_strided_slice %77 {offsets = [0, 0], sizes = [2, 16], strides = [1, 1]} : vector<2x32xf32> to vector<2x16xf32>
    %79 = vector.extract_strided_slice %77 {offsets = [0, 16], sizes = [2, 16], strides = [1, 1]} : vector<2x32xf32> to vector<2x16xf32>
    %80 = vector.extract_strided_slice %7 {offsets = [6, 0], sizes = [2, 128], strides = [1, 1]} : vector<32x128xf32> to vector<2x128xf32>
    %81 = vector.extract_strided_slice %8 {offsets = [24, 0], sizes = [2, 128], strides = [1, 1]} : vector<32x128xf32> to vector<2x128xf32>
    %82 = arith.addf %80, %81 : vector<2x128xf32>
    %cst_18 = arith.constant dense<0.000000e+00> : vector<2x128xf32>
    %83 = tpu.matmul %77, %3, %cst_18 {dimension_numbers = #tpu.dot_dimension_numbers<[1], [0], [0], [1], [0, 0, 1, 1], [], []>} : vector<2x32xf32>, vector<32x128xf32>, vector<2x128xf32> -> vector<2x128xf32>
    %84 = arith.addf %82, %83 : vector<2x128xf32>
    %85 = vector.extract_strided_slice %84 {offsets = [0, 0], sizes = [2, 96], strides = [1, 1]} : vector<2x128xf32> to vector<2x96xf32>
    %86 = arith.negf %85 : vector<2x96xf32>
    %87 = math.exp %86 : vector<2x96xf32>
    %cst_19 = arith.constant 1.000000e+00 : f32
    %88 = vector.broadcast %cst_19 : f32 to vector<2x96xf32>
    %89 = arith.addf %88, %87 : vector<2x96xf32>
    %90 = arith.divf %88, %89 : vector<2x96xf32>
    %91 = vector.extract_strided_slice %90 {offsets = [0, 0], sizes = [2, 32], strides = [1, 1]} : vector<2x96xf32> to vector<2x32xf32>
    %92 = vector.extract_strided_slice %90 {offsets = [0, 32], sizes = [2, 32], strides = [1, 1]} : vector<2x96xf32> to vector<2x32xf32>
    %93 = vector.extract_strided_slice %90 {offsets = [0, 64], sizes = [2, 32], strides = [1, 1]} : vector<2x96xf32> to vector<2x32xf32>
    %94 = vector.extract_strided_slice %84 {offsets = [0, 96], sizes = [2, 32], strides = [1, 1]} : vector<2x128xf32> to vector<2x32xf32>
    %95 = math.tanh %94 : vector<2x32xf32>
    %96 = arith.mulf %92, %75 : vector<2x32xf32>
    %97 = arith.mulf %91, %95 : vector<2x32xf32>
    %98 = arith.addf %96, %97 : vector<2x32xf32>
    %99 = math.tanh %98 : vector<2x32xf32>
    %100 = arith.mulf %93, %99 : vector<2x32xf32>
    %101 = vector.extract_strided_slice %100 {offsets = [0, 0], sizes = [2, 16], strides = [1, 1]} : vector<2x32xf32> to vector<2x16xf32>
    %102 = vector.extract_strided_slice %100 {offsets = [0, 16], sizes = [2, 16], strides = [1, 1]} : vector<2x32xf32> to vector<2x16xf32>
    %103 = vector.extract_strided_slice %7 {offsets = [8, 0], sizes = [2, 128], strides = [1, 1]} : vector<32x128xf32> to vector<2x128xf32>
    %104 = vector.extract_strided_slice %8 {offsets = [22, 0], sizes = [2, 128], strides = [1, 1]} : vector<32x128xf32> to vector<2x128xf32>
    %105 = arith.addf %103, %104 : vector<2x128xf32>
    %cst_20 = arith.constant dense<0.000000e+00> : vector<2x128xf32>
    %106 = tpu.matmul %100, %3, %cst_20 {dimension_numbers = #tpu.dot_dimension_numbers<[1], [0], [0], [1], [0, 0, 1, 1], [], []>} : vector<2x32xf32>, vector<32x128xf32>, vector<2x128xf32> -> vector<2x128xf32>
    %107 = arith.addf %105, %106 : vector<2x128xf32>
    %108 = vector.extract_strided_slice %107 {offsets = [0, 0], sizes = [2, 96], strides = [1, 1]} : vector<2x128xf32> to vector<2x96xf32>
    %109 = arith.negf %108 : vector<2x96xf32>
    %110 = math.exp %109 : vector<2x96xf32>
    %cst_21 = arith.constant 1.000000e+00 : f32
    %111 = vector.broadcast %cst_21 : f32 to vector<2x96xf32>
    %112 = arith.addf %111, %110 : vector<2x96xf32>
    %113 = arith.divf %111, %112 : vector<2x96xf32>
    %114 = vector.extract_strided_slice %113 {offsets = [0, 0], sizes = [2, 32], strides = [1, 1]} : vector<2x96xf32> to vector<2x32xf32>
    %115 = vector.extract_strided_slice %113 {offsets = [0, 32], sizes = [2, 32], strides = [1, 1]} : vector<2x96xf32> to vector<2x32xf32>
    %116 = vector.extract_strided_slice %113 {offsets = [0, 64], sizes = [2, 32], strides = [1, 1]} : vector<2x96xf32> to vector<2x32xf32>
    %117 = vector.extract_strided_slice %107 {offsets = [0, 96], sizes = [2, 32], strides = [1, 1]} : vector<2x128xf32> to vector<2x32xf32>
    %118 = math.tanh %117 : vector<2x32xf32>
    %119 = arith.mulf %115, %98 : vector<2x32xf32>
    %120 = arith.mulf %114, %118 : vector<2x32xf32>
    %121 = arith.addf %119, %120 : vector<2x32xf32>
    %122 = math.tanh %121 : vector<2x32xf32>
    %123 = arith.mulf %116, %122 : vector<2x32xf32>
    %124 = vector.extract_strided_slice %123 {offsets = [0, 0], sizes = [2, 16], strides = [1, 1]} : vector<2x32xf32> to vector<2x16xf32>
    %125 = vector.extract_strided_slice %123 {offsets = [0, 16], sizes = [2, 16], strides = [1, 1]} : vector<2x32xf32> to vector<2x16xf32>
    %126 = vector.extract_strided_slice %7 {offsets = [10, 0], sizes = [2, 128], strides = [1, 1]} : vector<32x128xf32> to vector<2x128xf32>
    %127 = vector.extract_strided_slice %8 {offsets = [20, 0], sizes = [2, 128], strides = [1, 1]} : vector<32x128xf32> to vector<2x128xf32>
    %128 = arith.addf %126, %127 : vector<2x128xf32>
    %cst_22 = arith.constant dense<0.000000e+00> : vector<2x128xf32>
    %129 = tpu.matmul %123, %3, %cst_22 {dimension_numbers = #tpu.dot_dimension_numbers<[1], [0], [0], [1], [0, 0, 1, 1], [], []>} : vector<2x32xf32>, vector<32x128xf32>, vector<2x128xf32> -> vector<2x128xf32>
    %130 = arith.addf %128, %129 : vector<2x128xf32>
    %131 = vector.extract_strided_slice %130 {offsets = [0, 0], sizes = [2, 96], strides = [1, 1]} : vector<2x128xf32> to vector<2x96xf32>
    %132 = arith.negf %131 : vector<2x96xf32>
    %133 = math.exp %132 : vector<2x96xf32>
    %cst_23 = arith.constant 1.000000e+00 : f32
    %134 = vector.broadcast %cst_23 : f32 to vector<2x96xf32>
    %135 = arith.addf %134, %133 : vector<2x96xf32>
    %136 = arith.divf %134, %135 : vector<2x96xf32>
    %137 = vector.extract_strided_slice %136 {offsets = [0, 0], sizes = [2, 32], strides = [1, 1]} : vector<2x96xf32> to vector<2x32xf32>
    %138 = vector.extract_strided_slice %136 {offsets = [0, 32], sizes = [2, 32], strides = [1, 1]} : vector<2x96xf32> to vector<2x32xf32>
    %139 = vector.extract_strided_slice %136 {offsets = [0, 64], sizes = [2, 32], strides = [1, 1]} : vector<2x96xf32> to vector<2x32xf32>
    %140 = vector.extract_strided_slice %130 {offsets = [0, 96], sizes = [2, 32], strides = [1, 1]} : vector<2x128xf32> to vector<2x32xf32>
    %141 = math.tanh %140 : vector<2x32xf32>
    %142 = arith.mulf %138, %121 : vector<2x32xf32>
    %143 = arith.mulf %137, %141 : vector<2x32xf32>
    %144 = arith.addf %142, %143 : vector<2x32xf32>
    %145 = math.tanh %144 : vector<2x32xf32>
    %146 = arith.mulf %139, %145 : vector<2x32xf32>
    %147 = vector.extract_strided_slice %146 {offsets = [0, 0], sizes = [2, 16], strides = [1, 1]} : vector<2x32xf32> to vector<2x16xf32>
    %148 = vector.extract_strided_slice %146 {offsets = [0, 16], sizes = [2, 16], strides = [1, 1]} : vector<2x32xf32> to vector<2x16xf32>
    %149 = vector.extract_strided_slice %7 {offsets = [12, 0], sizes = [2, 128], strides = [1, 1]} : vector<32x128xf32> to vector<2x128xf32>
    %150 = vector.extract_strided_slice %8 {offsets = [18, 0], sizes = [2, 128], strides = [1, 1]} : vector<32x128xf32> to vector<2x128xf32>
    %151 = arith.addf %149, %150 : vector<2x128xf32>
    %cst_24 = arith.constant dense<0.000000e+00> : vector<2x128xf32>
    %152 = tpu.matmul %146, %3, %cst_24 {dimension_numbers = #tpu.dot_dimension_numbers<[1], [0], [0], [1], [0, 0, 1, 1], [], []>} : vector<2x32xf32>, vector<32x128xf32>, vector<2x128xf32> -> vector<2x128xf32>
    %153 = arith.addf %151, %152 : vector<2x128xf32>
    %154 = vector.extract_strided_slice %153 {offsets = [0, 0], sizes = [2, 96], strides = [1, 1]} : vector<2x128xf32> to vector<2x96xf32>
    %155 = arith.negf %154 : vector<2x96xf32>
    %156 = math.exp %155 : vector<2x96xf32>
    %cst_25 = arith.constant 1.000000e+00 : f32
    %157 = vector.broadcast %cst_25 : f32 to vector<2x96xf32>
    %158 = arith.addf %157, %156 : vector<2x96xf32>
    %159 = arith.divf %157, %158 : vector<2x96xf32>
    %160 = vector.extract_strided_slice %159 {offsets = [0, 0], sizes = [2, 32], strides = [1, 1]} : vector<2x96xf32> to vector<2x32xf32>
    %161 = vector.extract_strided_slice %159 {offsets = [0, 32], sizes = [2, 32], strides = [1, 1]} : vector<2x96xf32> to vector<2x32xf32>
    %162 = vector.extract_strided_slice %159 {offsets = [0, 64], sizes = [2, 32], strides = [1, 1]} : vector<2x96xf32> to vector<2x32xf32>
    %163 = vector.extract_strided_slice %153 {offsets = [0, 96], sizes = [2, 32], strides = [1, 1]} : vector<2x128xf32> to vector<2x32xf32>
    %164 = math.tanh %163 : vector<2x32xf32>
    %165 = arith.mulf %161, %144 : vector<2x32xf32>
    %166 = arith.mulf %160, %164 : vector<2x32xf32>
    %167 = arith.addf %165, %166 : vector<2x32xf32>
    %168 = math.tanh %167 : vector<2x32xf32>
    %169 = arith.mulf %162, %168 : vector<2x32xf32>
    %170 = vector.extract_strided_slice %169 {offsets = [0, 0], sizes = [2, 16], strides = [1, 1]} : vector<2x32xf32> to vector<2x16xf32>
    %171 = vector.extract_strided_slice %169 {offsets = [0, 16], sizes = [2, 16], strides = [1, 1]} : vector<2x32xf32> to vector<2x16xf32>
    %172 = vector.extract_strided_slice %7 {offsets = [14, 0], sizes = [2, 128], strides = [1, 1]} : vector<32x128xf32> to vector<2x128xf32>
    %173 = vector.extract_strided_slice %8 {offsets = [16, 0], sizes = [2, 128], strides = [1, 1]} : vector<32x128xf32> to vector<2x128xf32>
    %174 = arith.addf %172, %173 : vector<2x128xf32>
    %cst_26 = arith.constant dense<0.000000e+00> : vector<2x128xf32>
    %175 = tpu.matmul %169, %3, %cst_26 {dimension_numbers = #tpu.dot_dimension_numbers<[1], [0], [0], [1], [0, 0, 1, 1], [], []>} : vector<2x32xf32>, vector<32x128xf32>, vector<2x128xf32> -> vector<2x128xf32>
    %176 = arith.addf %174, %175 : vector<2x128xf32>
    %177 = vector.extract_strided_slice %176 {offsets = [0, 0], sizes = [2, 96], strides = [1, 1]} : vector<2x128xf32> to vector<2x96xf32>
    %178 = arith.negf %177 : vector<2x96xf32>
    %179 = math.exp %178 : vector<2x96xf32>
    %cst_27 = arith.constant 1.000000e+00 : f32
    %180 = vector.broadcast %cst_27 : f32 to vector<2x96xf32>
    %181 = arith.addf %180, %179 : vector<2x96xf32>
    %182 = arith.divf %180, %181 : vector<2x96xf32>
    %183 = vector.extract_strided_slice %182 {offsets = [0, 0], sizes = [2, 32], strides = [1, 1]} : vector<2x96xf32> to vector<2x32xf32>
    %184 = vector.extract_strided_slice %182 {offsets = [0, 32], sizes = [2, 32], strides = [1, 1]} : vector<2x96xf32> to vector<2x32xf32>
    %185 = vector.extract_strided_slice %182 {offsets = [0, 64], sizes = [2, 32], strides = [1, 1]} : vector<2x96xf32> to vector<2x32xf32>
    %186 = vector.extract_strided_slice %176 {offsets = [0, 96], sizes = [2, 32], strides = [1, 1]} : vector<2x128xf32> to vector<2x32xf32>
    %187 = math.tanh %186 : vector<2x32xf32>
    %188 = arith.mulf %184, %167 : vector<2x32xf32>
    %189 = arith.mulf %183, %187 : vector<2x32xf32>
    %190 = arith.addf %188, %189 : vector<2x32xf32>
    %191 = math.tanh %190 : vector<2x32xf32>
    %192 = arith.mulf %185, %191 : vector<2x32xf32>
    %193 = vector.extract_strided_slice %192 {offsets = [0, 0], sizes = [2, 16], strides = [1, 1]} : vector<2x32xf32> to vector<2x16xf32>
    %194 = vector.extract_strided_slice %192 {offsets = [0, 16], sizes = [2, 16], strides = [1, 1]} : vector<2x32xf32> to vector<2x16xf32>
    %195 = vector.extract_strided_slice %7 {offsets = [16, 0], sizes = [2, 128], strides = [1, 1]} : vector<32x128xf32> to vector<2x128xf32>
    %196 = vector.extract_strided_slice %8 {offsets = [14, 0], sizes = [2, 128], strides = [1, 1]} : vector<32x128xf32> to vector<2x128xf32>
    %197 = arith.addf %195, %196 : vector<2x128xf32>
    %cst_28 = arith.constant dense<0.000000e+00> : vector<2x128xf32>
    %198 = tpu.matmul %192, %3, %cst_28 {dimension_numbers = #tpu.dot_dimension_numbers<[1], [0], [0], [1], [0, 0, 1, 1], [], []>} : vector<2x32xf32>, vector<32x128xf32>, vector<2x128xf32> -> vector<2x128xf32>
    %199 = arith.addf %197, %198 : vector<2x128xf32>
    %200 = vector.extract_strided_slice %199 {offsets = [0, 0], sizes = [2, 96], strides = [1, 1]} : vector<2x128xf32> to vector<2x96xf32>
    %201 = arith.negf %200 : vector<2x96xf32>
    %202 = math.exp %201 : vector<2x96xf32>
    %cst_29 = arith.constant 1.000000e+00 : f32
    %203 = vector.broadcast %cst_29 : f32 to vector<2x96xf32>
    %204 = arith.addf %203, %202 : vector<2x96xf32>
    %205 = arith.divf %203, %204 : vector<2x96xf32>
    %206 = vector.extract_strided_slice %205 {offsets = [0, 0], sizes = [2, 32], strides = [1, 1]} : vector<2x96xf32> to vector<2x32xf32>
    %207 = vector.extract_strided_slice %205 {offsets = [0, 32], sizes = [2, 32], strides = [1, 1]} : vector<2x96xf32> to vector<2x32xf32>
    %208 = vector.extract_strided_slice %205 {offsets = [0, 64], sizes = [2, 32], strides = [1, 1]} : vector<2x96xf32> to vector<2x32xf32>
    %209 = vector.extract_strided_slice %199 {offsets = [0, 96], sizes = [2, 32], strides = [1, 1]} : vector<2x128xf32> to vector<2x32xf32>
    %210 = math.tanh %209 : vector<2x32xf32>
    %211 = arith.mulf %207, %190 : vector<2x32xf32>
    %212 = arith.mulf %206, %210 : vector<2x32xf32>
    %213 = arith.addf %211, %212 : vector<2x32xf32>
    %214 = math.tanh %213 : vector<2x32xf32>
    %215 = arith.mulf %208, %214 : vector<2x32xf32>
    %216 = vector.extract_strided_slice %215 {offsets = [0, 0], sizes = [2, 16], strides = [1, 1]} : vector<2x32xf32> to vector<2x16xf32>
    %217 = vector.extract_strided_slice %215 {offsets = [0, 16], sizes = [2, 16], strides = [1, 1]} : vector<2x32xf32> to vector<2x16xf32>
    %218 = vector.extract_strided_slice %7 {offsets = [18, 0], sizes = [2, 128], strides = [1, 1]} : vector<32x128xf32> to vector<2x128xf32>
    %219 = vector.extract_strided_slice %8 {offsets = [12, 0], sizes = [2, 128], strides = [1, 1]} : vector<32x128xf32> to vector<2x128xf32>
    %220 = arith.addf %218, %219 : vector<2x128xf32>
    %cst_30 = arith.constant dense<0.000000e+00> : vector<2x128xf32>
    %221 = tpu.matmul %215, %3, %cst_30 {dimension_numbers = #tpu.dot_dimension_numbers<[1], [0], [0], [1], [0, 0, 1, 1], [], []>} : vector<2x32xf32>, vector<32x128xf32>, vector<2x128xf32> -> vector<2x128xf32>
    %222 = arith.addf %220, %221 : vector<2x128xf32>
    %223 = vector.extract_strided_slice %222 {offsets = [0, 0], sizes = [2, 96], strides = [1, 1]} : vector<2x128xf32> to vector<2x96xf32>
    %224 = arith.negf %223 : vector<2x96xf32>
    %225 = math.exp %224 : vector<2x96xf32>
    %cst_31 = arith.constant 1.000000e+00 : f32
    %226 = vector.broadcast %cst_31 : f32 to vector<2x96xf32>
    %227 = arith.addf %226, %225 : vector<2x96xf32>
    %228 = arith.divf %226, %227 : vector<2x96xf32>
    %229 = vector.extract_strided_slice %228 {offsets = [0, 0], sizes = [2, 32], strides = [1, 1]} : vector<2x96xf32> to vector<2x32xf32>
    %230 = vector.extract_strided_slice %228 {offsets = [0, 32], sizes = [2, 32], strides = [1, 1]} : vector<2x96xf32> to vector<2x32xf32>
    %231 = vector.extract_strided_slice %228 {offsets = [0, 64], sizes = [2, 32], strides = [1, 1]} : vector<2x96xf32> to vector<2x32xf32>
    %232 = vector.extract_strided_slice %222 {offsets = [0, 96], sizes = [2, 32], strides = [1, 1]} : vector<2x128xf32> to vector<2x32xf32>
    %233 = math.tanh %232 : vector<2x32xf32>
    %234 = arith.mulf %230, %213 : vector<2x32xf32>
    %235 = arith.mulf %229, %233 : vector<2x32xf32>
    %236 = arith.addf %234, %235 : vector<2x32xf32>
    %237 = math.tanh %236 : vector<2x32xf32>
    %238 = arith.mulf %231, %237 : vector<2x32xf32>
    %239 = vector.extract_strided_slice %238 {offsets = [0, 0], sizes = [2, 16], strides = [1, 1]} : vector<2x32xf32> to vector<2x16xf32>
    %240 = vector.extract_strided_slice %238 {offsets = [0, 16], sizes = [2, 16], strides = [1, 1]} : vector<2x32xf32> to vector<2x16xf32>
    %241 = vector.extract_strided_slice %7 {offsets = [20, 0], sizes = [2, 128], strides = [1, 1]} : vector<32x128xf32> to vector<2x128xf32>
    %242 = vector.extract_strided_slice %8 {offsets = [10, 0], sizes = [2, 128], strides = [1, 1]} : vector<32x128xf32> to vector<2x128xf32>
    %243 = arith.addf %241, %242 : vector<2x128xf32>
    %cst_32 = arith.constant dense<0.000000e+00> : vector<2x128xf32>
    %244 = tpu.matmul %238, %3, %cst_32 {dimension_numbers = #tpu.dot_dimension_numbers<[1], [0], [0], [1], [0, 0, 1, 1], [], []>} : vector<2x32xf32>, vector<32x128xf32>, vector<2x128xf32> -> vector<2x128xf32>
    %245 = arith.addf %243, %244 : vector<2x128xf32>
    %246 = vector.extract_strided_slice %245 {offsets = [0, 0], sizes = [2, 96], strides = [1, 1]} : vector<2x128xf32> to vector<2x96xf32>
    %247 = arith.negf %246 : vector<2x96xf32>
    %248 = math.exp %247 : vector<2x96xf32>
    %cst_33 = arith.constant 1.000000e+00 : f32
    %249 = vector.broadcast %cst_33 : f32 to vector<2x96xf32>
    %250 = arith.addf %249, %248 : vector<2x96xf32>
    %251 = arith.divf %249, %250 : vector<2x96xf32>
    %252 = vector.extract_strided_slice %251 {offsets = [0, 0], sizes = [2, 32], strides = [1, 1]} : vector<2x96xf32> to vector<2x32xf32>
    %253 = vector.extract_strided_slice %251 {offsets = [0, 32], sizes = [2, 32], strides = [1, 1]} : vector<2x96xf32> to vector<2x32xf32>
    %254 = vector.extract_strided_slice %251 {offsets = [0, 64], sizes = [2, 32], strides = [1, 1]} : vector<2x96xf32> to vector<2x32xf32>
    %255 = vector.extract_strided_slice %245 {offsets = [0, 96], sizes = [2, 32], strides = [1, 1]} : vector<2x128xf32> to vector<2x32xf32>
    %256 = math.tanh %255 : vector<2x32xf32>
    %257 = arith.mulf %253, %236 : vector<2x32xf32>
    %258 = arith.mulf %252, %256 : vector<2x32xf32>
    %259 = arith.addf %257, %258 : vector<2x32xf32>
    %260 = math.tanh %259 : vector<2x32xf32>
    %261 = arith.mulf %254, %260 : vector<2x32xf32>
    %262 = vector.extract_strided_slice %261 {offsets = [0, 0], sizes = [2, 16], strides = [1, 1]} : vector<2x32xf32> to vector<2x16xf32>
    %263 = vector.extract_strided_slice %261 {offsets = [0, 16], sizes = [2, 16], strides = [1, 1]} : vector<2x32xf32> to vector<2x16xf32>
    %264 = vector.extract_strided_slice %7 {offsets = [22, 0], sizes = [2, 128], strides = [1, 1]} : vector<32x128xf32> to vector<2x128xf32>
    %265 = vector.extract_strided_slice %8 {offsets = [8, 0], sizes = [2, 128], strides = [1, 1]} : vector<32x128xf32> to vector<2x128xf32>
    %266 = arith.addf %264, %265 : vector<2x128xf32>
    %cst_34 = arith.constant dense<0.000000e+00> : vector<2x128xf32>
    %267 = tpu.matmul %261, %3, %cst_34 {dimension_numbers = #tpu.dot_dimension_numbers<[1], [0], [0], [1], [0, 0, 1, 1], [], []>} : vector<2x32xf32>, vector<32x128xf32>, vector<2x128xf32> -> vector<2x128xf32>
    %268 = arith.addf %266, %267 : vector<2x128xf32>
    %269 = vector.extract_strided_slice %268 {offsets = [0, 0], sizes = [2, 96], strides = [1, 1]} : vector<2x128xf32> to vector<2x96xf32>
    %270 = arith.negf %269 : vector<2x96xf32>
    %271 = math.exp %270 : vector<2x96xf32>
    %cst_35 = arith.constant 1.000000e+00 : f32
    %272 = vector.broadcast %cst_35 : f32 to vector<2x96xf32>
    %273 = arith.addf %272, %271 : vector<2x96xf32>
    %274 = arith.divf %272, %273 : vector<2x96xf32>
    %275 = vector.extract_strided_slice %274 {offsets = [0, 0], sizes = [2, 32], strides = [1, 1]} : vector<2x96xf32> to vector<2x32xf32>
    %276 = vector.extract_strided_slice %274 {offsets = [0, 32], sizes = [2, 32], strides = [1, 1]} : vector<2x96xf32> to vector<2x32xf32>
    %277 = vector.extract_strided_slice %274 {offsets = [0, 64], sizes = [2, 32], strides = [1, 1]} : vector<2x96xf32> to vector<2x32xf32>
    %278 = vector.extract_strided_slice %268 {offsets = [0, 96], sizes = [2, 32], strides = [1, 1]} : vector<2x128xf32> to vector<2x32xf32>
    %279 = math.tanh %278 : vector<2x32xf32>
    %280 = arith.mulf %276, %259 : vector<2x32xf32>
    %281 = arith.mulf %275, %279 : vector<2x32xf32>
    %282 = arith.addf %280, %281 : vector<2x32xf32>
    %283 = math.tanh %282 : vector<2x32xf32>
    %284 = arith.mulf %277, %283 : vector<2x32xf32>
    %285 = vector.extract_strided_slice %284 {offsets = [0, 0], sizes = [2, 16], strides = [1, 1]} : vector<2x32xf32> to vector<2x16xf32>
    %286 = vector.extract_strided_slice %284 {offsets = [0, 16], sizes = [2, 16], strides = [1, 1]} : vector<2x32xf32> to vector<2x16xf32>
    %287 = vector.extract_strided_slice %7 {offsets = [24, 0], sizes = [2, 128], strides = [1, 1]} : vector<32x128xf32> to vector<2x128xf32>
    %288 = vector.extract_strided_slice %8 {offsets = [6, 0], sizes = [2, 128], strides = [1, 1]} : vector<32x128xf32> to vector<2x128xf32>
    %289 = arith.addf %287, %288 : vector<2x128xf32>
    %cst_36 = arith.constant dense<0.000000e+00> : vector<2x128xf32>
    %290 = tpu.matmul %284, %3, %cst_36 {dimension_numbers = #tpu.dot_dimension_numbers<[1], [0], [0], [1], [0, 0, 1, 1], [], []>} : vector<2x32xf32>, vector<32x128xf32>, vector<2x128xf32> -> vector<2x128xf32>
    %291 = arith.addf %289, %290 : vector<2x128xf32>
    %292 = vector.extract_strided_slice %291 {offsets = [0, 0], sizes = [2, 96], strides = [1, 1]} : vector<2x128xf32> to vector<2x96xf32>
    %293 = arith.negf %292 : vector<2x96xf32>
    %294 = math.exp %293 : vector<2x96xf32>
    %cst_37 = arith.constant 1.000000e+00 : f32
    %295 = vector.broadcast %cst_37 : f32 to vector<2x96xf32>
    %296 = arith.addf %295, %294 : vector<2x96xf32>
    %297 = arith.divf %295, %296 : vector<2x96xf32>
    %298 = vector.extract_strided_slice %297 {offsets = [0, 0], sizes = [2, 32], strides = [1, 1]} : vector<2x96xf32> to vector<2x32xf32>
    %299 = vector.extract_strided_slice %297 {offsets = [0, 32], sizes = [2, 32], strides = [1, 1]} : vector<2x96xf32> to vector<2x32xf32>
    %300 = vector.extract_strided_slice %297 {offsets = [0, 64], sizes = [2, 32], strides = [1, 1]} : vector<2x96xf32> to vector<2x32xf32>
    %301 = vector.extract_strided_slice %291 {offsets = [0, 96], sizes = [2, 32], strides = [1, 1]} : vector<2x128xf32> to vector<2x32xf32>
    %302 = math.tanh %301 : vector<2x32xf32>
    %303 = arith.mulf %299, %282 : vector<2x32xf32>
    %304 = arith.mulf %298, %302 : vector<2x32xf32>
    %305 = arith.addf %303, %304 : vector<2x32xf32>
    %306 = math.tanh %305 : vector<2x32xf32>
    %307 = arith.mulf %300, %306 : vector<2x32xf32>
    %308 = vector.extract_strided_slice %307 {offsets = [0, 0], sizes = [2, 16], strides = [1, 1]} : vector<2x32xf32> to vector<2x16xf32>
    %309 = vector.extract_strided_slice %307 {offsets = [0, 16], sizes = [2, 16], strides = [1, 1]} : vector<2x32xf32> to vector<2x16xf32>
    %310 = vector.extract_strided_slice %7 {offsets = [26, 0], sizes = [2, 128], strides = [1, 1]} : vector<32x128xf32> to vector<2x128xf32>
    %311 = vector.extract_strided_slice %8 {offsets = [4, 0], sizes = [2, 128], strides = [1, 1]} : vector<32x128xf32> to vector<2x128xf32>
    %312 = arith.addf %310, %311 : vector<2x128xf32>
    %cst_38 = arith.constant dense<0.000000e+00> : vector<2x128xf32>
    %313 = tpu.matmul %307, %3, %cst_38 {dimension_numbers = #tpu.dot_dimension_numbers<[1], [0], [0], [1], [0, 0, 1, 1], [], []>} : vector<2x32xf32>, vector<32x128xf32>, vector<2x128xf32> -> vector<2x128xf32>
    %314 = arith.addf %312, %313 : vector<2x128xf32>
    %315 = vector.extract_strided_slice %314 {offsets = [0, 0], sizes = [2, 96], strides = [1, 1]} : vector<2x128xf32> to vector<2x96xf32>
    %316 = arith.negf %315 : vector<2x96xf32>
    %317 = math.exp %316 : vector<2x96xf32>
    %cst_39 = arith.constant 1.000000e+00 : f32
    %318 = vector.broadcast %cst_39 : f32 to vector<2x96xf32>
    %319 = arith.addf %318, %317 : vector<2x96xf32>
    %320 = arith.divf %318, %319 : vector<2x96xf32>
    %321 = vector.extract_strided_slice %320 {offsets = [0, 0], sizes = [2, 32], strides = [1, 1]} : vector<2x96xf32> to vector<2x32xf32>
    %322 = vector.extract_strided_slice %320 {offsets = [0, 32], sizes = [2, 32], strides = [1, 1]} : vector<2x96xf32> to vector<2x32xf32>
    %323 = vector.extract_strided_slice %320 {offsets = [0, 64], sizes = [2, 32], strides = [1, 1]} : vector<2x96xf32> to vector<2x32xf32>
    %324 = vector.extract_strided_slice %314 {offsets = [0, 96], sizes = [2, 32], strides = [1, 1]} : vector<2x128xf32> to vector<2x32xf32>
    %325 = math.tanh %324 : vector<2x32xf32>
    %326 = arith.mulf %322, %305 : vector<2x32xf32>
    %327 = arith.mulf %321, %325 : vector<2x32xf32>
    %328 = arith.addf %326, %327 : vector<2x32xf32>
    %329 = math.tanh %328 : vector<2x32xf32>
    %330 = arith.mulf %323, %329 : vector<2x32xf32>
    %331 = vector.extract_strided_slice %330 {offsets = [0, 0], sizes = [2, 16], strides = [1, 1]} : vector<2x32xf32> to vector<2x16xf32>
    %332 = vector.extract_strided_slice %330 {offsets = [0, 16], sizes = [2, 16], strides = [1, 1]} : vector<2x32xf32> to vector<2x16xf32>
    %333 = vector.extract_strided_slice %7 {offsets = [28, 0], sizes = [2, 128], strides = [1, 1]} : vector<32x128xf32> to vector<2x128xf32>
    %334 = vector.extract_strided_slice %8 {offsets = [2, 0], sizes = [2, 128], strides = [1, 1]} : vector<32x128xf32> to vector<2x128xf32>
    %335 = arith.addf %333, %334 : vector<2x128xf32>
    %cst_40 = arith.constant dense<0.000000e+00> : vector<2x128xf32>
    %336 = tpu.matmul %330, %3, %cst_40 {dimension_numbers = #tpu.dot_dimension_numbers<[1], [0], [0], [1], [0, 0, 1, 1], [], []>} : vector<2x32xf32>, vector<32x128xf32>, vector<2x128xf32> -> vector<2x128xf32>
    %337 = arith.addf %335, %336 : vector<2x128xf32>
    %338 = vector.extract_strided_slice %337 {offsets = [0, 0], sizes = [2, 96], strides = [1, 1]} : vector<2x128xf32> to vector<2x96xf32>
    %339 = arith.negf %338 : vector<2x96xf32>
    %340 = math.exp %339 : vector<2x96xf32>
    %cst_41 = arith.constant 1.000000e+00 : f32
    %341 = vector.broadcast %cst_41 : f32 to vector<2x96xf32>
    %342 = arith.addf %341, %340 : vector<2x96xf32>
    %343 = arith.divf %341, %342 : vector<2x96xf32>
    %344 = vector.extract_strided_slice %343 {offsets = [0, 0], sizes = [2, 32], strides = [1, 1]} : vector<2x96xf32> to vector<2x32xf32>
    %345 = vector.extract_strided_slice %343 {offsets = [0, 32], sizes = [2, 32], strides = [1, 1]} : vector<2x96xf32> to vector<2x32xf32>
    %346 = vector.extract_strided_slice %343 {offsets = [0, 64], sizes = [2, 32], strides = [1, 1]} : vector<2x96xf32> to vector<2x32xf32>
    %347 = vector.extract_strided_slice %337 {offsets = [0, 96], sizes = [2, 32], strides = [1, 1]} : vector<2x128xf32> to vector<2x32xf32>
    %348 = math.tanh %347 : vector<2x32xf32>
    %349 = arith.mulf %345, %328 : vector<2x32xf32>
    %350 = arith.mulf %344, %348 : vector<2x32xf32>
    %351 = arith.addf %349, %350 : vector<2x32xf32>
    %352 = math.tanh %351 : vector<2x32xf32>
    %353 = arith.mulf %346, %352 : vector<2x32xf32>
    %354 = vector.extract_strided_slice %353 {offsets = [0, 0], sizes = [2, 16], strides = [1, 1]} : vector<2x32xf32> to vector<2x16xf32>
    %355 = vector.extract_strided_slice %353 {offsets = [0, 16], sizes = [2, 16], strides = [1, 1]} : vector<2x32xf32> to vector<2x16xf32>
    %356 = vector.extract_strided_slice %7 {offsets = [30, 0], sizes = [2, 128], strides = [1, 1]} : vector<32x128xf32> to vector<2x128xf32>
    %357 = vector.extract_strided_slice %8 {offsets = [0, 0], sizes = [2, 128], strides = [1, 1]} : vector<32x128xf32> to vector<2x128xf32>
    %358 = arith.addf %356, %357 : vector<2x128xf32>
    %cst_42 = arith.constant dense<0.000000e+00> : vector<2x128xf32>
    %359 = tpu.matmul %353, %3, %cst_42 {dimension_numbers = #tpu.dot_dimension_numbers<[1], [0], [0], [1], [0, 0, 1, 1], [], []>} : vector<2x32xf32>, vector<32x128xf32>, vector<2x128xf32> -> vector<2x128xf32>
    %360 = arith.addf %358, %359 : vector<2x128xf32>
    %361 = vector.extract_strided_slice %360 {offsets = [0, 0], sizes = [2, 96], strides = [1, 1]} : vector<2x128xf32> to vector<2x96xf32>
    %362 = arith.negf %361 : vector<2x96xf32>
    %363 = math.exp %362 : vector<2x96xf32>
    %cst_43 = arith.constant 1.000000e+00 : f32
    %364 = vector.broadcast %cst_43 : f32 to vector<2x96xf32>
    %365 = arith.addf %364, %363 : vector<2x96xf32>
    %366 = arith.divf %364, %365 : vector<2x96xf32>
    %367 = vector.extract_strided_slice %366 {offsets = [0, 0], sizes = [2, 32], strides = [1, 1]} : vector<2x96xf32> to vector<2x32xf32>
    %368 = vector.extract_strided_slice %366 {offsets = [0, 32], sizes = [2, 32], strides = [1, 1]} : vector<2x96xf32> to vector<2x32xf32>
    %369 = vector.extract_strided_slice %366 {offsets = [0, 64], sizes = [2, 32], strides = [1, 1]} : vector<2x96xf32> to vector<2x32xf32>
    %370 = vector.extract_strided_slice %360 {offsets = [0, 96], sizes = [2, 32], strides = [1, 1]} : vector<2x128xf32> to vector<2x32xf32>
    %371 = math.tanh %370 : vector<2x32xf32>
    %372 = arith.mulf %368, %351 : vector<2x32xf32>
    %373 = arith.mulf %367, %371 : vector<2x32xf32>
    %374 = arith.addf %372, %373 : vector<2x32xf32>
    %375 = math.tanh %374 : vector<2x32xf32>
    %376 = arith.mulf %369, %375 : vector<2x32xf32>
    %377 = vector.extract_strided_slice %376 {offsets = [0, 0], sizes = [2, 16], strides = [1, 1]} : vector<2x32xf32> to vector<2x16xf32>
    %378 = vector.extract_strided_slice %376 {offsets = [0, 16], sizes = [2, 16], strides = [1, 1]} : vector<2x32xf32> to vector<2x16xf32>
    %379 = tpu.concatenate %32, %55, %78, %101, %124, %147, %170, %193, %216, %239, %262, %285, %308, %331, %354, %377 in 0 : vector<2x16xf32>, vector<2x16xf32>, vector<2x16xf32>, vector<2x16xf32>, vector<2x16xf32>, vector<2x16xf32>, vector<2x16xf32>, vector<2x16xf32>, vector<2x16xf32>, vector<2x16xf32>, vector<2x16xf32>, vector<2x16xf32>, vector<2x16xf32>, vector<2x16xf32>, vector<2x16xf32>, vector<2x16xf32> -> vector<32x16xf32>
    %380 = tpu.concatenate %378, %355, %332, %309, %286, %263, %240, %217, %194, %171, %148, %125, %102, %79, %56, %33 in 0 : vector<2x16xf32>, vector<2x16xf32>, vector<2x16xf32>, vector<2x16xf32>, vector<2x16xf32>, vector<2x16xf32>, vector<2x16xf32>, vector<2x16xf32>, vector<2x16xf32>, vector<2x16xf32>, vector<2x16xf32>, vector<2x16xf32>, vector<2x16xf32>, vector<2x16xf32>, vector<2x16xf32>, vector<2x16xf32> -> vector<32x16xf32>
    %381 = tpu.concatenate %379, %380 in 1 : vector<32x16xf32>, vector<32x16xf32> -> vector<32x32xf32>
    %c0_44 = arith.constant 0 : index
    %c0_45 = arith.constant 0 : index
    %382 = vector.load %arg5[%c0_44, %c0_45] : memref<32x128xf32, #tpu.memory_space<vmem>>, vector<32x128xf32>
    %c0_46 = arith.constant 0 : index
    %c0_47 = arith.constant 0 : index
    %383 = vector.load %arg6[%c0_46, %c0_47] : memref<32x128xf32, #tpu.memory_space<vmem>>, vector<32x128xf32>
    %c0_48 = arith.constant 0 : index
    %c0_49 = arith.constant 0 : index
    %384 = vector.load %arg7[%c0_48, %c0_49] : memref<32x128xf32, #tpu.memory_space<vmem>>, vector<32x128xf32>
    %c0_50 = arith.constant 0 : index
    %c0_51 = arith.constant 0 : index
    %385 = vector.load %arg8[%c0_50, %c0_51] : memref<1x128xf32, #tpu.memory_space<vmem>>, vector<1x128xf32>
    %cst_52 = arith.constant dense<0.000000e+00> : vector<32x128xf32>
    %386 = tpu.matmul %381, %382, %cst_52 {dimension_numbers = #tpu.dot_dimension_numbers<[1], [0], [0], [1], [0, 0, 1, 1], [], []>} : vector<32x32xf32>, vector<32x128xf32>, vector<32x128xf32> -> vector<32x128xf32>
    %387 = vector.broadcast %385 : vector<1x128xf32> to vector<32x128xf32>
    %388 = arith.addf %386, %387 : vector<32x128xf32>
    %cst_53 = arith.constant dense<0.000000e+00> : vector<32x128xf32>
    %389 = tpu.matmul %381, %383, %cst_53 {dimension_numbers = #tpu.dot_dimension_numbers<[1], [0], [0], [1], [0, 0, 1, 1], [], []>} : vector<32x32xf32>, vector<32x128xf32>, vector<32x128xf32> -> vector<32x128xf32>
    %cst_54 = arith.constant 0.000000e+00 : f32
    %390 = vector.broadcast %cst_54 : f32 to vector<2x32xf32>
    %cst_55 = arith.constant 0.000000e+00 : f32
    %391 = vector.broadcast %cst_55 : f32 to vector<2x32xf32>
    %392 = vector.extract_strided_slice %388 {offsets = [0, 0], sizes = [2, 128], strides = [1, 1]} : vector<32x128xf32> to vector<2x128xf32>
    %393 = vector.extract_strided_slice %389 {offsets = [30, 0], sizes = [2, 128], strides = [1, 1]} : vector<32x128xf32> to vector<2x128xf32>
    %394 = arith.addf %392, %393 : vector<2x128xf32>
    %cst_56 = arith.constant dense<0.000000e+00> : vector<2x128xf32>
    %395 = tpu.matmul %390, %384, %cst_56 {dimension_numbers = #tpu.dot_dimension_numbers<[1], [0], [0], [1], [0, 0, 1, 1], [], []>} : vector<2x32xf32>, vector<32x128xf32>, vector<2x128xf32> -> vector<2x128xf32>
    %396 = arith.addf %394, %395 : vector<2x128xf32>
    %397 = vector.extract_strided_slice %396 {offsets = [0, 0], sizes = [2, 96], strides = [1, 1]} : vector<2x128xf32> to vector<2x96xf32>
    %398 = arith.negf %397 : vector<2x96xf32>
    %399 = math.exp %398 : vector<2x96xf32>
    %cst_57 = arith.constant 1.000000e+00 : f32
    %400 = vector.broadcast %cst_57 : f32 to vector<2x96xf32>
    %401 = arith.addf %400, %399 : vector<2x96xf32>
    %402 = arith.divf %400, %401 : vector<2x96xf32>
    %403 = vector.extract_strided_slice %402 {offsets = [0, 0], sizes = [2, 32], strides = [1, 1]} : vector<2x96xf32> to vector<2x32xf32>
    %404 = vector.extract_strided_slice %402 {offsets = [0, 32], sizes = [2, 32], strides = [1, 1]} : vector<2x96xf32> to vector<2x32xf32>
    %405 = vector.extract_strided_slice %402 {offsets = [0, 64], sizes = [2, 32], strides = [1, 1]} : vector<2x96xf32> to vector<2x32xf32>
    %406 = vector.extract_strided_slice %396 {offsets = [0, 96], sizes = [2, 32], strides = [1, 1]} : vector<2x128xf32> to vector<2x32xf32>
    %407 = math.tanh %406 : vector<2x32xf32>
    %408 = arith.mulf %404, %391 : vector<2x32xf32>
    %409 = arith.mulf %403, %407 : vector<2x32xf32>
    %410 = arith.addf %408, %409 : vector<2x32xf32>
    %411 = math.tanh %410 : vector<2x32xf32>
    %412 = arith.mulf %405, %411 : vector<2x32xf32>
    %413 = vector.extract_strided_slice %412 {offsets = [0, 0], sizes = [2, 16], strides = [1, 1]} : vector<2x32xf32> to vector<2x16xf32>
    %414 = vector.extract_strided_slice %412 {offsets = [0, 16], sizes = [2, 16], strides = [1, 1]} : vector<2x32xf32> to vector<2x16xf32>
    %415 = vector.extract_strided_slice %388 {offsets = [2, 0], sizes = [2, 128], strides = [1, 1]} : vector<32x128xf32> to vector<2x128xf32>
    %416 = vector.extract_strided_slice %389 {offsets = [28, 0], sizes = [2, 128], strides = [1, 1]} : vector<32x128xf32> to vector<2x128xf32>
    %417 = arith.addf %415, %416 : vector<2x128xf32>
    %cst_58 = arith.constant dense<0.000000e+00> : vector<2x128xf32>
    %418 = tpu.matmul %412, %384, %cst_58 {dimension_numbers = #tpu.dot_dimension_numbers<[1], [0], [0], [1], [0, 0, 1, 1], [], []>} : vector<2x32xf32>, vector<32x128xf32>, vector<2x128xf32> -> vector<2x128xf32>
    %419 = arith.addf %417, %418 : vector<2x128xf32>
    %420 = vector.extract_strided_slice %419 {offsets = [0, 0], sizes = [2, 96], strides = [1, 1]} : vector<2x128xf32> to vector<2x96xf32>
    %421 = arith.negf %420 : vector<2x96xf32>
    %422 = math.exp %421 : vector<2x96xf32>
    %cst_59 = arith.constant 1.000000e+00 : f32
    %423 = vector.broadcast %cst_59 : f32 to vector<2x96xf32>
    %424 = arith.addf %423, %422 : vector<2x96xf32>
    %425 = arith.divf %423, %424 : vector<2x96xf32>
    %426 = vector.extract_strided_slice %425 {offsets = [0, 0], sizes = [2, 32], strides = [1, 1]} : vector<2x96xf32> to vector<2x32xf32>
    %427 = vector.extract_strided_slice %425 {offsets = [0, 32], sizes = [2, 32], strides = [1, 1]} : vector<2x96xf32> to vector<2x32xf32>
    %428 = vector.extract_strided_slice %425 {offsets = [0, 64], sizes = [2, 32], strides = [1, 1]} : vector<2x96xf32> to vector<2x32xf32>
    %429 = vector.extract_strided_slice %419 {offsets = [0, 96], sizes = [2, 32], strides = [1, 1]} : vector<2x128xf32> to vector<2x32xf32>
    %430 = math.tanh %429 : vector<2x32xf32>
    %431 = arith.mulf %427, %410 : vector<2x32xf32>
    %432 = arith.mulf %426, %430 : vector<2x32xf32>
    %433 = arith.addf %431, %432 : vector<2x32xf32>
    %434 = math.tanh %433 : vector<2x32xf32>
    %435 = arith.mulf %428, %434 : vector<2x32xf32>
    %436 = vector.extract_strided_slice %435 {offsets = [0, 0], sizes = [2, 16], strides = [1, 1]} : vector<2x32xf32> to vector<2x16xf32>
    %437 = vector.extract_strided_slice %435 {offsets = [0, 16], sizes = [2, 16], strides = [1, 1]} : vector<2x32xf32> to vector<2x16xf32>
    %438 = vector.extract_strided_slice %388 {offsets = [4, 0], sizes = [2, 128], strides = [1, 1]} : vector<32x128xf32> to vector<2x128xf32>
    %439 = vector.extract_strided_slice %389 {offsets = [26, 0], sizes = [2, 128], strides = [1, 1]} : vector<32x128xf32> to vector<2x128xf32>
    %440 = arith.addf %438, %439 : vector<2x128xf32>
    %cst_60 = arith.constant dense<0.000000e+00> : vector<2x128xf32>
    %441 = tpu.matmul %435, %384, %cst_60 {dimension_numbers = #tpu.dot_dimension_numbers<[1], [0], [0], [1], [0, 0, 1, 1], [], []>} : vector<2x32xf32>, vector<32x128xf32>, vector<2x128xf32> -> vector<2x128xf32>
    %442 = arith.addf %440, %441 : vector<2x128xf32>
    %443 = vector.extract_strided_slice %442 {offsets = [0, 0], sizes = [2, 96], strides = [1, 1]} : vector<2x128xf32> to vector<2x96xf32>
    %444 = arith.negf %443 : vector<2x96xf32>
    %445 = math.exp %444 : vector<2x96xf32>
    %cst_61 = arith.constant 1.000000e+00 : f32
    %446 = vector.broadcast %cst_61 : f32 to vector<2x96xf32>
    %447 = arith.addf %446, %445 : vector<2x96xf32>
    %448 = arith.divf %446, %447 : vector<2x96xf32>
    %449 = vector.extract_strided_slice %448 {offsets = [0, 0], sizes = [2, 32], strides = [1, 1]} : vector<2x96xf32> to vector<2x32xf32>
    %450 = vector.extract_strided_slice %448 {offsets = [0, 32], sizes = [2, 32], strides = [1, 1]} : vector<2x96xf32> to vector<2x32xf32>
    %451 = vector.extract_strided_slice %448 {offsets = [0, 64], sizes = [2, 32], strides = [1, 1]} : vector<2x96xf32> to vector<2x32xf32>
    %452 = vector.extract_strided_slice %442 {offsets = [0, 96], sizes = [2, 32], strides = [1, 1]} : vector<2x128xf32> to vector<2x32xf32>
    %453 = math.tanh %452 : vector<2x32xf32>
    %454 = arith.mulf %450, %433 : vector<2x32xf32>
    %455 = arith.mulf %449, %453 : vector<2x32xf32>
    %456 = arith.addf %454, %455 : vector<2x32xf32>
    %457 = math.tanh %456 : vector<2x32xf32>
    %458 = arith.mulf %451, %457 : vector<2x32xf32>
    %459 = vector.extract_strided_slice %458 {offsets = [0, 0], sizes = [2, 16], strides = [1, 1]} : vector<2x32xf32> to vector<2x16xf32>
    %460 = vector.extract_strided_slice %458 {offsets = [0, 16], sizes = [2, 16], strides = [1, 1]} : vector<2x32xf32> to vector<2x16xf32>
    %461 = vector.extract_strided_slice %388 {offsets = [6, 0], sizes = [2, 128], strides = [1, 1]} : vector<32x128xf32> to vector<2x128xf32>
    %462 = vector.extract_strided_slice %389 {offsets = [24, 0], sizes = [2, 128], strides = [1, 1]} : vector<32x128xf32> to vector<2x128xf32>
    %463 = arith.addf %461, %462 : vector<2x128xf32>
    %cst_62 = arith.constant dense<0.000000e+00> : vector<2x128xf32>
    %464 = tpu.matmul %458, %384, %cst_62 {dimension_numbers = #tpu.dot_dimension_numbers<[1], [0], [0], [1], [0, 0, 1, 1], [], []>} : vector<2x32xf32>, vector<32x128xf32>, vector<2x128xf32> -> vector<2x128xf32>
    %465 = arith.addf %463, %464 : vector<2x128xf32>
    %466 = vector.extract_strided_slice %465 {offsets = [0, 0], sizes = [2, 96], strides = [1, 1]} : vector<2x128xf32> to vector<2x96xf32>
    %467 = arith.negf %466 : vector<2x96xf32>
    %468 = math.exp %467 : vector<2x96xf32>
    %cst_63 = arith.constant 1.000000e+00 : f32
    %469 = vector.broadcast %cst_63 : f32 to vector<2x96xf32>
    %470 = arith.addf %469, %468 : vector<2x96xf32>
    %471 = arith.divf %469, %470 : vector<2x96xf32>
    %472 = vector.extract_strided_slice %471 {offsets = [0, 0], sizes = [2, 32], strides = [1, 1]} : vector<2x96xf32> to vector<2x32xf32>
    %473 = vector.extract_strided_slice %471 {offsets = [0, 32], sizes = [2, 32], strides = [1, 1]} : vector<2x96xf32> to vector<2x32xf32>
    %474 = vector.extract_strided_slice %471 {offsets = [0, 64], sizes = [2, 32], strides = [1, 1]} : vector<2x96xf32> to vector<2x32xf32>
    %475 = vector.extract_strided_slice %465 {offsets = [0, 96], sizes = [2, 32], strides = [1, 1]} : vector<2x128xf32> to vector<2x32xf32>
    %476 = math.tanh %475 : vector<2x32xf32>
    %477 = arith.mulf %473, %456 : vector<2x32xf32>
    %478 = arith.mulf %472, %476 : vector<2x32xf32>
    %479 = arith.addf %477, %478 : vector<2x32xf32>
    %480 = math.tanh %479 : vector<2x32xf32>
    %481 = arith.mulf %474, %480 : vector<2x32xf32>
    %482 = vector.extract_strided_slice %481 {offsets = [0, 0], sizes = [2, 16], strides = [1, 1]} : vector<2x32xf32> to vector<2x16xf32>
    %483 = vector.extract_strided_slice %481 {offsets = [0, 16], sizes = [2, 16], strides = [1, 1]} : vector<2x32xf32> to vector<2x16xf32>
    %484 = vector.extract_strided_slice %388 {offsets = [8, 0], sizes = [2, 128], strides = [1, 1]} : vector<32x128xf32> to vector<2x128xf32>
    %485 = vector.extract_strided_slice %389 {offsets = [22, 0], sizes = [2, 128], strides = [1, 1]} : vector<32x128xf32> to vector<2x128xf32>
    %486 = arith.addf %484, %485 : vector<2x128xf32>
    %cst_64 = arith.constant dense<0.000000e+00> : vector<2x128xf32>
    %487 = tpu.matmul %481, %384, %cst_64 {dimension_numbers = #tpu.dot_dimension_numbers<[1], [0], [0], [1], [0, 0, 1, 1], [], []>} : vector<2x32xf32>, vector<32x128xf32>, vector<2x128xf32> -> vector<2x128xf32>
    %488 = arith.addf %486, %487 : vector<2x128xf32>
    %489 = vector.extract_strided_slice %488 {offsets = [0, 0], sizes = [2, 96], strides = [1, 1]} : vector<2x128xf32> to vector<2x96xf32>
    %490 = arith.negf %489 : vector<2x96xf32>
    %491 = math.exp %490 : vector<2x96xf32>
    %cst_65 = arith.constant 1.000000e+00 : f32
    %492 = vector.broadcast %cst_65 : f32 to vector<2x96xf32>
    %493 = arith.addf %492, %491 : vector<2x96xf32>
    %494 = arith.divf %492, %493 : vector<2x96xf32>
    %495 = vector.extract_strided_slice %494 {offsets = [0, 0], sizes = [2, 32], strides = [1, 1]} : vector<2x96xf32> to vector<2x32xf32>
    %496 = vector.extract_strided_slice %494 {offsets = [0, 32], sizes = [2, 32], strides = [1, 1]} : vector<2x96xf32> to vector<2x32xf32>
    %497 = vector.extract_strided_slice %494 {offsets = [0, 64], sizes = [2, 32], strides = [1, 1]} : vector<2x96xf32> to vector<2x32xf32>
    %498 = vector.extract_strided_slice %488 {offsets = [0, 96], sizes = [2, 32], strides = [1, 1]} : vector<2x128xf32> to vector<2x32xf32>
    %499 = math.tanh %498 : vector<2x32xf32>
    %500 = arith.mulf %496, %479 : vector<2x32xf32>
    %501 = arith.mulf %495, %499 : vector<2x32xf32>
    %502 = arith.addf %500, %501 : vector<2x32xf32>
    %503 = math.tanh %502 : vector<2x32xf32>
    %504 = arith.mulf %497, %503 : vector<2x32xf32>
    %505 = vector.extract_strided_slice %504 {offsets = [0, 0], sizes = [2, 16], strides = [1, 1]} : vector<2x32xf32> to vector<2x16xf32>
    %506 = vector.extract_strided_slice %504 {offsets = [0, 16], sizes = [2, 16], strides = [1, 1]} : vector<2x32xf32> to vector<2x16xf32>
    %507 = vector.extract_strided_slice %388 {offsets = [10, 0], sizes = [2, 128], strides = [1, 1]} : vector<32x128xf32> to vector<2x128xf32>
    %508 = vector.extract_strided_slice %389 {offsets = [20, 0], sizes = [2, 128], strides = [1, 1]} : vector<32x128xf32> to vector<2x128xf32>
    %509 = arith.addf %507, %508 : vector<2x128xf32>
    %cst_66 = arith.constant dense<0.000000e+00> : vector<2x128xf32>
    %510 = tpu.matmul %504, %384, %cst_66 {dimension_numbers = #tpu.dot_dimension_numbers<[1], [0], [0], [1], [0, 0, 1, 1], [], []>} : vector<2x32xf32>, vector<32x128xf32>, vector<2x128xf32> -> vector<2x128xf32>
    %511 = arith.addf %509, %510 : vector<2x128xf32>
    %512 = vector.extract_strided_slice %511 {offsets = [0, 0], sizes = [2, 96], strides = [1, 1]} : vector<2x128xf32> to vector<2x96xf32>
    %513 = arith.negf %512 : vector<2x96xf32>
    %514 = math.exp %513 : vector<2x96xf32>
    %cst_67 = arith.constant 1.000000e+00 : f32
    %515 = vector.broadcast %cst_67 : f32 to vector<2x96xf32>
    %516 = arith.addf %515, %514 : vector<2x96xf32>
    %517 = arith.divf %515, %516 : vector<2x96xf32>
    %518 = vector.extract_strided_slice %517 {offsets = [0, 0], sizes = [2, 32], strides = [1, 1]} : vector<2x96xf32> to vector<2x32xf32>
    %519 = vector.extract_strided_slice %517 {offsets = [0, 32], sizes = [2, 32], strides = [1, 1]} : vector<2x96xf32> to vector<2x32xf32>
    %520 = vector.extract_strided_slice %517 {offsets = [0, 64], sizes = [2, 32], strides = [1, 1]} : vector<2x96xf32> to vector<2x32xf32>
    %521 = vector.extract_strided_slice %511 {offsets = [0, 96], sizes = [2, 32], strides = [1, 1]} : vector<2x128xf32> to vector<2x32xf32>
    %522 = math.tanh %521 : vector<2x32xf32>
    %523 = arith.mulf %519, %502 : vector<2x32xf32>
    %524 = arith.mulf %518, %522 : vector<2x32xf32>
    %525 = arith.addf %523, %524 : vector<2x32xf32>
    %526 = math.tanh %525 : vector<2x32xf32>
    %527 = arith.mulf %520, %526 : vector<2x32xf32>
    %528 = vector.extract_strided_slice %527 {offsets = [0, 0], sizes = [2, 16], strides = [1, 1]} : vector<2x32xf32> to vector<2x16xf32>
    %529 = vector.extract_strided_slice %527 {offsets = [0, 16], sizes = [2, 16], strides = [1, 1]} : vector<2x32xf32> to vector<2x16xf32>
    %530 = vector.extract_strided_slice %388 {offsets = [12, 0], sizes = [2, 128], strides = [1, 1]} : vector<32x128xf32> to vector<2x128xf32>
    %531 = vector.extract_strided_slice %389 {offsets = [18, 0], sizes = [2, 128], strides = [1, 1]} : vector<32x128xf32> to vector<2x128xf32>
    %532 = arith.addf %530, %531 : vector<2x128xf32>
    %cst_68 = arith.constant dense<0.000000e+00> : vector<2x128xf32>
    %533 = tpu.matmul %527, %384, %cst_68 {dimension_numbers = #tpu.dot_dimension_numbers<[1], [0], [0], [1], [0, 0, 1, 1], [], []>} : vector<2x32xf32>, vector<32x128xf32>, vector<2x128xf32> -> vector<2x128xf32>
    %534 = arith.addf %532, %533 : vector<2x128xf32>
    %535 = vector.extract_strided_slice %534 {offsets = [0, 0], sizes = [2, 96], strides = [1, 1]} : vector<2x128xf32> to vector<2x96xf32>
    %536 = arith.negf %535 : vector<2x96xf32>
    %537 = math.exp %536 : vector<2x96xf32>
    %cst_69 = arith.constant 1.000000e+00 : f32
    %538 = vector.broadcast %cst_69 : f32 to vector<2x96xf32>
    %539 = arith.addf %538, %537 : vector<2x96xf32>
    %540 = arith.divf %538, %539 : vector<2x96xf32>
    %541 = vector.extract_strided_slice %540 {offsets = [0, 0], sizes = [2, 32], strides = [1, 1]} : vector<2x96xf32> to vector<2x32xf32>
    %542 = vector.extract_strided_slice %540 {offsets = [0, 32], sizes = [2, 32], strides = [1, 1]} : vector<2x96xf32> to vector<2x32xf32>
    %543 = vector.extract_strided_slice %540 {offsets = [0, 64], sizes = [2, 32], strides = [1, 1]} : vector<2x96xf32> to vector<2x32xf32>
    %544 = vector.extract_strided_slice %534 {offsets = [0, 96], sizes = [2, 32], strides = [1, 1]} : vector<2x128xf32> to vector<2x32xf32>
    %545 = math.tanh %544 : vector<2x32xf32>
    %546 = arith.mulf %542, %525 : vector<2x32xf32>
    %547 = arith.mulf %541, %545 : vector<2x32xf32>
    %548 = arith.addf %546, %547 : vector<2x32xf32>
    %549 = math.tanh %548 : vector<2x32xf32>
    %550 = arith.mulf %543, %549 : vector<2x32xf32>
    %551 = vector.extract_strided_slice %550 {offsets = [0, 0], sizes = [2, 16], strides = [1, 1]} : vector<2x32xf32> to vector<2x16xf32>
    %552 = vector.extract_strided_slice %550 {offsets = [0, 16], sizes = [2, 16], strides = [1, 1]} : vector<2x32xf32> to vector<2x16xf32>
    %553 = vector.extract_strided_slice %388 {offsets = [14, 0], sizes = [2, 128], strides = [1, 1]} : vector<32x128xf32> to vector<2x128xf32>
    %554 = vector.extract_strided_slice %389 {offsets = [16, 0], sizes = [2, 128], strides = [1, 1]} : vector<32x128xf32> to vector<2x128xf32>
    %555 = arith.addf %553, %554 : vector<2x128xf32>
    %cst_70 = arith.constant dense<0.000000e+00> : vector<2x128xf32>
    %556 = tpu.matmul %550, %384, %cst_70 {dimension_numbers = #tpu.dot_dimension_numbers<[1], [0], [0], [1], [0, 0, 1, 1], [], []>} : vector<2x32xf32>, vector<32x128xf32>, vector<2x128xf32> -> vector<2x128xf32>
    %557 = arith.addf %555, %556 : vector<2x128xf32>
    %558 = vector.extract_strided_slice %557 {offsets = [0, 0], sizes = [2, 96], strides = [1, 1]} : vector<2x128xf32> to vector<2x96xf32>
    %559 = arith.negf %558 : vector<2x96xf32>
    %560 = math.exp %559 : vector<2x96xf32>
    %cst_71 = arith.constant 1.000000e+00 : f32
    %561 = vector.broadcast %cst_71 : f32 to vector<2x96xf32>
    %562 = arith.addf %561, %560 : vector<2x96xf32>
    %563 = arith.divf %561, %562 : vector<2x96xf32>
    %564 = vector.extract_strided_slice %563 {offsets = [0, 0], sizes = [2, 32], strides = [1, 1]} : vector<2x96xf32> to vector<2x32xf32>
    %565 = vector.extract_strided_slice %563 {offsets = [0, 32], sizes = [2, 32], strides = [1, 1]} : vector<2x96xf32> to vector<2x32xf32>
    %566 = vector.extract_strided_slice %563 {offsets = [0, 64], sizes = [2, 32], strides = [1, 1]} : vector<2x96xf32> to vector<2x32xf32>
    %567 = vector.extract_strided_slice %557 {offsets = [0, 96], sizes = [2, 32], strides = [1, 1]} : vector<2x128xf32> to vector<2x32xf32>
    %568 = math.tanh %567 : vector<2x32xf32>
    %569 = arith.mulf %565, %548 : vector<2x32xf32>
    %570 = arith.mulf %564, %568 : vector<2x32xf32>
    %571 = arith.addf %569, %570 : vector<2x32xf32>
    %572 = math.tanh %571 : vector<2x32xf32>
    %573 = arith.mulf %566, %572 : vector<2x32xf32>
    %574 = vector.extract_strided_slice %573 {offsets = [0, 0], sizes = [2, 16], strides = [1, 1]} : vector<2x32xf32> to vector<2x16xf32>
    %575 = vector.extract_strided_slice %573 {offsets = [0, 16], sizes = [2, 16], strides = [1, 1]} : vector<2x32xf32> to vector<2x16xf32>
    %576 = vector.extract_strided_slice %388 {offsets = [16, 0], sizes = [2, 128], strides = [1, 1]} : vector<32x128xf32> to vector<2x128xf32>
    %577 = vector.extract_strided_slice %389 {offsets = [14, 0], sizes = [2, 128], strides = [1, 1]} : vector<32x128xf32> to vector<2x128xf32>
    %578 = arith.addf %576, %577 : vector<2x128xf32>
    %cst_72 = arith.constant dense<0.000000e+00> : vector<2x128xf32>
    %579 = tpu.matmul %573, %384, %cst_72 {dimension_numbers = #tpu.dot_dimension_numbers<[1], [0], [0], [1], [0, 0, 1, 1], [], []>} : vector<2x32xf32>, vector<32x128xf32>, vector<2x128xf32> -> vector<2x128xf32>
    %580 = arith.addf %578, %579 : vector<2x128xf32>
    %581 = vector.extract_strided_slice %580 {offsets = [0, 0], sizes = [2, 96], strides = [1, 1]} : vector<2x128xf32> to vector<2x96xf32>
    %582 = arith.negf %581 : vector<2x96xf32>
    %583 = math.exp %582 : vector<2x96xf32>
    %cst_73 = arith.constant 1.000000e+00 : f32
    %584 = vector.broadcast %cst_73 : f32 to vector<2x96xf32>
    %585 = arith.addf %584, %583 : vector<2x96xf32>
    %586 = arith.divf %584, %585 : vector<2x96xf32>
    %587 = vector.extract_strided_slice %586 {offsets = [0, 0], sizes = [2, 32], strides = [1, 1]} : vector<2x96xf32> to vector<2x32xf32>
    %588 = vector.extract_strided_slice %586 {offsets = [0, 32], sizes = [2, 32], strides = [1, 1]} : vector<2x96xf32> to vector<2x32xf32>
    %589 = vector.extract_strided_slice %586 {offsets = [0, 64], sizes = [2, 32], strides = [1, 1]} : vector<2x96xf32> to vector<2x32xf32>
    %590 = vector.extract_strided_slice %580 {offsets = [0, 96], sizes = [2, 32], strides = [1, 1]} : vector<2x128xf32> to vector<2x32xf32>
    %591 = math.tanh %590 : vector<2x32xf32>
    %592 = arith.mulf %588, %571 : vector<2x32xf32>
    %593 = arith.mulf %587, %591 : vector<2x32xf32>
    %594 = arith.addf %592, %593 : vector<2x32xf32>
    %595 = math.tanh %594 : vector<2x32xf32>
    %596 = arith.mulf %589, %595 : vector<2x32xf32>
    %597 = vector.extract_strided_slice %596 {offsets = [0, 0], sizes = [2, 16], strides = [1, 1]} : vector<2x32xf32> to vector<2x16xf32>
    %598 = vector.extract_strided_slice %596 {offsets = [0, 16], sizes = [2, 16], strides = [1, 1]} : vector<2x32xf32> to vector<2x16xf32>
    %599 = vector.extract_strided_slice %388 {offsets = [18, 0], sizes = [2, 128], strides = [1, 1]} : vector<32x128xf32> to vector<2x128xf32>
    %600 = vector.extract_strided_slice %389 {offsets = [12, 0], sizes = [2, 128], strides = [1, 1]} : vector<32x128xf32> to vector<2x128xf32>
    %601 = arith.addf %599, %600 : vector<2x128xf32>
    %cst_74 = arith.constant dense<0.000000e+00> : vector<2x128xf32>
    %602 = tpu.matmul %596, %384, %cst_74 {dimension_numbers = #tpu.dot_dimension_numbers<[1], [0], [0], [1], [0, 0, 1, 1], [], []>} : vector<2x32xf32>, vector<32x128xf32>, vector<2x128xf32> -> vector<2x128xf32>
    %603 = arith.addf %601, %602 : vector<2x128xf32>
    %604 = vector.extract_strided_slice %603 {offsets = [0, 0], sizes = [2, 96], strides = [1, 1]} : vector<2x128xf32> to vector<2x96xf32>
    %605 = arith.negf %604 : vector<2x96xf32>
    %606 = math.exp %605 : vector<2x96xf32>
    %cst_75 = arith.constant 1.000000e+00 : f32
    %607 = vector.broadcast %cst_75 : f32 to vector<2x96xf32>
    %608 = arith.addf %607, %606 : vector<2x96xf32>
    %609 = arith.divf %607, %608 : vector<2x96xf32>
    %610 = vector.extract_strided_slice %609 {offsets = [0, 0], sizes = [2, 32], strides = [1, 1]} : vector<2x96xf32> to vector<2x32xf32>
    %611 = vector.extract_strided_slice %609 {offsets = [0, 32], sizes = [2, 32], strides = [1, 1]} : vector<2x96xf32> to vector<2x32xf32>
    %612 = vector.extract_strided_slice %609 {offsets = [0, 64], sizes = [2, 32], strides = [1, 1]} : vector<2x96xf32> to vector<2x32xf32>
    %613 = vector.extract_strided_slice %603 {offsets = [0, 96], sizes = [2, 32], strides = [1, 1]} : vector<2x128xf32> to vector<2x32xf32>
    %614 = math.tanh %613 : vector<2x32xf32>
    %615 = arith.mulf %611, %594 : vector<2x32xf32>
    %616 = arith.mulf %610, %614 : vector<2x32xf32>
    %617 = arith.addf %615, %616 : vector<2x32xf32>
    %618 = math.tanh %617 : vector<2x32xf32>
    %619 = arith.mulf %612, %618 : vector<2x32xf32>
    %620 = vector.extract_strided_slice %619 {offsets = [0, 0], sizes = [2, 16], strides = [1, 1]} : vector<2x32xf32> to vector<2x16xf32>
    %621 = vector.extract_strided_slice %619 {offsets = [0, 16], sizes = [2, 16], strides = [1, 1]} : vector<2x32xf32> to vector<2x16xf32>
    %622 = vector.extract_strided_slice %388 {offsets = [20, 0], sizes = [2, 128], strides = [1, 1]} : vector<32x128xf32> to vector<2x128xf32>
    %623 = vector.extract_strided_slice %389 {offsets = [10, 0], sizes = [2, 128], strides = [1, 1]} : vector<32x128xf32> to vector<2x128xf32>
    %624 = arith.addf %622, %623 : vector<2x128xf32>
    %cst_76 = arith.constant dense<0.000000e+00> : vector<2x128xf32>
    %625 = tpu.matmul %619, %384, %cst_76 {dimension_numbers = #tpu.dot_dimension_numbers<[1], [0], [0], [1], [0, 0, 1, 1], [], []>} : vector<2x32xf32>, vector<32x128xf32>, vector<2x128xf32> -> vector<2x128xf32>
    %626 = arith.addf %624, %625 : vector<2x128xf32>
    %627 = vector.extract_strided_slice %626 {offsets = [0, 0], sizes = [2, 96], strides = [1, 1]} : vector<2x128xf32> to vector<2x96xf32>
    %628 = arith.negf %627 : vector<2x96xf32>
    %629 = math.exp %628 : vector<2x96xf32>
    %cst_77 = arith.constant 1.000000e+00 : f32
    %630 = vector.broadcast %cst_77 : f32 to vector<2x96xf32>
    %631 = arith.addf %630, %629 : vector<2x96xf32>
    %632 = arith.divf %630, %631 : vector<2x96xf32>
    %633 = vector.extract_strided_slice %632 {offsets = [0, 0], sizes = [2, 32], strides = [1, 1]} : vector<2x96xf32> to vector<2x32xf32>
    %634 = vector.extract_strided_slice %632 {offsets = [0, 32], sizes = [2, 32], strides = [1, 1]} : vector<2x96xf32> to vector<2x32xf32>
    %635 = vector.extract_strided_slice %632 {offsets = [0, 64], sizes = [2, 32], strides = [1, 1]} : vector<2x96xf32> to vector<2x32xf32>
    %636 = vector.extract_strided_slice %626 {offsets = [0, 96], sizes = [2, 32], strides = [1, 1]} : vector<2x128xf32> to vector<2x32xf32>
    %637 = math.tanh %636 : vector<2x32xf32>
    %638 = arith.mulf %634, %617 : vector<2x32xf32>
    %639 = arith.mulf %633, %637 : vector<2x32xf32>
    %640 = arith.addf %638, %639 : vector<2x32xf32>
    %641 = math.tanh %640 : vector<2x32xf32>
    %642 = arith.mulf %635, %641 : vector<2x32xf32>
    %643 = vector.extract_strided_slice %642 {offsets = [0, 0], sizes = [2, 16], strides = [1, 1]} : vector<2x32xf32> to vector<2x16xf32>
    %644 = vector.extract_strided_slice %642 {offsets = [0, 16], sizes = [2, 16], strides = [1, 1]} : vector<2x32xf32> to vector<2x16xf32>
    %645 = vector.extract_strided_slice %388 {offsets = [22, 0], sizes = [2, 128], strides = [1, 1]} : vector<32x128xf32> to vector<2x128xf32>
    %646 = vector.extract_strided_slice %389 {offsets = [8, 0], sizes = [2, 128], strides = [1, 1]} : vector<32x128xf32> to vector<2x128xf32>
    %647 = arith.addf %645, %646 : vector<2x128xf32>
    %cst_78 = arith.constant dense<0.000000e+00> : vector<2x128xf32>
    %648 = tpu.matmul %642, %384, %cst_78 {dimension_numbers = #tpu.dot_dimension_numbers<[1], [0], [0], [1], [0, 0, 1, 1], [], []>} : vector<2x32xf32>, vector<32x128xf32>, vector<2x128xf32> -> vector<2x128xf32>
    %649 = arith.addf %647, %648 : vector<2x128xf32>
    %650 = vector.extract_strided_slice %649 {offsets = [0, 0], sizes = [2, 96], strides = [1, 1]} : vector<2x128xf32> to vector<2x96xf32>
    %651 = arith.negf %650 : vector<2x96xf32>
    %652 = math.exp %651 : vector<2x96xf32>
    %cst_79 = arith.constant 1.000000e+00 : f32
    %653 = vector.broadcast %cst_79 : f32 to vector<2x96xf32>
    %654 = arith.addf %653, %652 : vector<2x96xf32>
    %655 = arith.divf %653, %654 : vector<2x96xf32>
    %656 = vector.extract_strided_slice %655 {offsets = [0, 0], sizes = [2, 32], strides = [1, 1]} : vector<2x96xf32> to vector<2x32xf32>
    %657 = vector.extract_strided_slice %655 {offsets = [0, 32], sizes = [2, 32], strides = [1, 1]} : vector<2x96xf32> to vector<2x32xf32>
    %658 = vector.extract_strided_slice %655 {offsets = [0, 64], sizes = [2, 32], strides = [1, 1]} : vector<2x96xf32> to vector<2x32xf32>
    %659 = vector.extract_strided_slice %649 {offsets = [0, 96], sizes = [2, 32], strides = [1, 1]} : vector<2x128xf32> to vector<2x32xf32>
    %660 = math.tanh %659 : vector<2x32xf32>
    %661 = arith.mulf %657, %640 : vector<2x32xf32>
    %662 = arith.mulf %656, %660 : vector<2x32xf32>
    %663 = arith.addf %661, %662 : vector<2x32xf32>
    %664 = math.tanh %663 : vector<2x32xf32>
    %665 = arith.mulf %658, %664 : vector<2x32xf32>
    %666 = vector.extract_strided_slice %665 {offsets = [0, 0], sizes = [2, 16], strides = [1, 1]} : vector<2x32xf32> to vector<2x16xf32>
    %667 = vector.extract_strided_slice %665 {offsets = [0, 16], sizes = [2, 16], strides = [1, 1]} : vector<2x32xf32> to vector<2x16xf32>
    %668 = vector.extract_strided_slice %388 {offsets = [24, 0], sizes = [2, 128], strides = [1, 1]} : vector<32x128xf32> to vector<2x128xf32>
    %669 = vector.extract_strided_slice %389 {offsets = [6, 0], sizes = [2, 128], strides = [1, 1]} : vector<32x128xf32> to vector<2x128xf32>
    %670 = arith.addf %668, %669 : vector<2x128xf32>
    %cst_80 = arith.constant dense<0.000000e+00> : vector<2x128xf32>
    %671 = tpu.matmul %665, %384, %cst_80 {dimension_numbers = #tpu.dot_dimension_numbers<[1], [0], [0], [1], [0, 0, 1, 1], [], []>} : vector<2x32xf32>, vector<32x128xf32>, vector<2x128xf32> -> vector<2x128xf32>
    %672 = arith.addf %670, %671 : vector<2x128xf32>
    %673 = vector.extract_strided_slice %672 {offsets = [0, 0], sizes = [2, 96], strides = [1, 1]} : vector<2x128xf32> to vector<2x96xf32>
    %674 = arith.negf %673 : vector<2x96xf32>
    %675 = math.exp %674 : vector<2x96xf32>
    %cst_81 = arith.constant 1.000000e+00 : f32
    %676 = vector.broadcast %cst_81 : f32 to vector<2x96xf32>
    %677 = arith.addf %676, %675 : vector<2x96xf32>
    %678 = arith.divf %676, %677 : vector<2x96xf32>
    %679 = vector.extract_strided_slice %678 {offsets = [0, 0], sizes = [2, 32], strides = [1, 1]} : vector<2x96xf32> to vector<2x32xf32>
    %680 = vector.extract_strided_slice %678 {offsets = [0, 32], sizes = [2, 32], strides = [1, 1]} : vector<2x96xf32> to vector<2x32xf32>
    %681 = vector.extract_strided_slice %678 {offsets = [0, 64], sizes = [2, 32], strides = [1, 1]} : vector<2x96xf32> to vector<2x32xf32>
    %682 = vector.extract_strided_slice %672 {offsets = [0, 96], sizes = [2, 32], strides = [1, 1]} : vector<2x128xf32> to vector<2x32xf32>
    %683 = math.tanh %682 : vector<2x32xf32>
    %684 = arith.mulf %680, %663 : vector<2x32xf32>
    %685 = arith.mulf %679, %683 : vector<2x32xf32>
    %686 = arith.addf %684, %685 : vector<2x32xf32>
    %687 = math.tanh %686 : vector<2x32xf32>
    %688 = arith.mulf %681, %687 : vector<2x32xf32>
    %689 = vector.extract_strided_slice %688 {offsets = [0, 0], sizes = [2, 16], strides = [1, 1]} : vector<2x32xf32> to vector<2x16xf32>
    %690 = vector.extract_strided_slice %688 {offsets = [0, 16], sizes = [2, 16], strides = [1, 1]} : vector<2x32xf32> to vector<2x16xf32>
    %691 = vector.extract_strided_slice %388 {offsets = [26, 0], sizes = [2, 128], strides = [1, 1]} : vector<32x128xf32> to vector<2x128xf32>
    %692 = vector.extract_strided_slice %389 {offsets = [4, 0], sizes = [2, 128], strides = [1, 1]} : vector<32x128xf32> to vector<2x128xf32>
    %693 = arith.addf %691, %692 : vector<2x128xf32>
    %cst_82 = arith.constant dense<0.000000e+00> : vector<2x128xf32>
    %694 = tpu.matmul %688, %384, %cst_82 {dimension_numbers = #tpu.dot_dimension_numbers<[1], [0], [0], [1], [0, 0, 1, 1], [], []>} : vector<2x32xf32>, vector<32x128xf32>, vector<2x128xf32> -> vector<2x128xf32>
    %695 = arith.addf %693, %694 : vector<2x128xf32>
    %696 = vector.extract_strided_slice %695 {offsets = [0, 0], sizes = [2, 96], strides = [1, 1]} : vector<2x128xf32> to vector<2x96xf32>
    %697 = arith.negf %696 : vector<2x96xf32>
    %698 = math.exp %697 : vector<2x96xf32>
    %cst_83 = arith.constant 1.000000e+00 : f32
    %699 = vector.broadcast %cst_83 : f32 to vector<2x96xf32>
    %700 = arith.addf %699, %698 : vector<2x96xf32>
    %701 = arith.divf %699, %700 : vector<2x96xf32>
    %702 = vector.extract_strided_slice %701 {offsets = [0, 0], sizes = [2, 32], strides = [1, 1]} : vector<2x96xf32> to vector<2x32xf32>
    %703 = vector.extract_strided_slice %701 {offsets = [0, 32], sizes = [2, 32], strides = [1, 1]} : vector<2x96xf32> to vector<2x32xf32>
    %704 = vector.extract_strided_slice %701 {offsets = [0, 64], sizes = [2, 32], strides = [1, 1]} : vector<2x96xf32> to vector<2x32xf32>
    %705 = vector.extract_strided_slice %695 {offsets = [0, 96], sizes = [2, 32], strides = [1, 1]} : vector<2x128xf32> to vector<2x32xf32>
    %706 = math.tanh %705 : vector<2x32xf32>
    %707 = arith.mulf %703, %686 : vector<2x32xf32>
    %708 = arith.mulf %702, %706 : vector<2x32xf32>
    %709 = arith.addf %707, %708 : vector<2x32xf32>
    %710 = math.tanh %709 : vector<2x32xf32>
    %711 = arith.mulf %704, %710 : vector<2x32xf32>
    %712 = vector.extract_strided_slice %711 {offsets = [0, 0], sizes = [2, 16], strides = [1, 1]} : vector<2x32xf32> to vector<2x16xf32>
    %713 = vector.extract_strided_slice %711 {offsets = [0, 16], sizes = [2, 16], strides = [1, 1]} : vector<2x32xf32> to vector<2x16xf32>
    %714 = vector.extract_strided_slice %388 {offsets = [28, 0], sizes = [2, 128], strides = [1, 1]} : vector<32x128xf32> to vector<2x128xf32>
    %715 = vector.extract_strided_slice %389 {offsets = [2, 0], sizes = [2, 128], strides = [1, 1]} : vector<32x128xf32> to vector<2x128xf32>
    %716 = arith.addf %714, %715 : vector<2x128xf32>
    %cst_84 = arith.constant dense<0.000000e+00> : vector<2x128xf32>
    %717 = tpu.matmul %711, %384, %cst_84 {dimension_numbers = #tpu.dot_dimension_numbers<[1], [0], [0], [1], [0, 0, 1, 1], [], []>} : vector<2x32xf32>, vector<32x128xf32>, vector<2x128xf32> -> vector<2x128xf32>
    %718 = arith.addf %716, %717 : vector<2x128xf32>
    %719 = vector.extract_strided_slice %718 {offsets = [0, 0], sizes = [2, 96], strides = [1, 1]} : vector<2x128xf32> to vector<2x96xf32>
    %720 = arith.negf %719 : vector<2x96xf32>
    %721 = math.exp %720 : vector<2x96xf32>
    %cst_85 = arith.constant 1.000000e+00 : f32
    %722 = vector.broadcast %cst_85 : f32 to vector<2x96xf32>
    %723 = arith.addf %722, %721 : vector<2x96xf32>
    %724 = arith.divf %722, %723 : vector<2x96xf32>
    %725 = vector.extract_strided_slice %724 {offsets = [0, 0], sizes = [2, 32], strides = [1, 1]} : vector<2x96xf32> to vector<2x32xf32>
    %726 = vector.extract_strided_slice %724 {offsets = [0, 32], sizes = [2, 32], strides = [1, 1]} : vector<2x96xf32> to vector<2x32xf32>
    %727 = vector.extract_strided_slice %724 {offsets = [0, 64], sizes = [2, 32], strides = [1, 1]} : vector<2x96xf32> to vector<2x32xf32>
    %728 = vector.extract_strided_slice %718 {offsets = [0, 96], sizes = [2, 32], strides = [1, 1]} : vector<2x128xf32> to vector<2x32xf32>
    %729 = math.tanh %728 : vector<2x32xf32>
    %730 = arith.mulf %726, %709 : vector<2x32xf32>
    %731 = arith.mulf %725, %729 : vector<2x32xf32>
    %732 = arith.addf %730, %731 : vector<2x32xf32>
    %733 = math.tanh %732 : vector<2x32xf32>
    %734 = arith.mulf %727, %733 : vector<2x32xf32>
    %735 = vector.extract_strided_slice %734 {offsets = [0, 0], sizes = [2, 16], strides = [1, 1]} : vector<2x32xf32> to vector<2x16xf32>
    %736 = vector.extract_strided_slice %734 {offsets = [0, 16], sizes = [2, 16], strides = [1, 1]} : vector<2x32xf32> to vector<2x16xf32>
    %737 = vector.extract_strided_slice %388 {offsets = [30, 0], sizes = [2, 128], strides = [1, 1]} : vector<32x128xf32> to vector<2x128xf32>
    %738 = vector.extract_strided_slice %389 {offsets = [0, 0], sizes = [2, 128], strides = [1, 1]} : vector<32x128xf32> to vector<2x128xf32>
    %739 = arith.addf %737, %738 : vector<2x128xf32>
    %cst_86 = arith.constant dense<0.000000e+00> : vector<2x128xf32>
    %740 = tpu.matmul %734, %384, %cst_86 {dimension_numbers = #tpu.dot_dimension_numbers<[1], [0], [0], [1], [0, 0, 1, 1], [], []>} : vector<2x32xf32>, vector<32x128xf32>, vector<2x128xf32> -> vector<2x128xf32>
    %741 = arith.addf %739, %740 : vector<2x128xf32>
    %742 = vector.extract_strided_slice %741 {offsets = [0, 0], sizes = [2, 96], strides = [1, 1]} : vector<2x128xf32> to vector<2x96xf32>
    %743 = arith.negf %742 : vector<2x96xf32>
    %744 = math.exp %743 : vector<2x96xf32>
    %cst_87 = arith.constant 1.000000e+00 : f32
    %745 = vector.broadcast %cst_87 : f32 to vector<2x96xf32>
    %746 = arith.addf %745, %744 : vector<2x96xf32>
    %747 = arith.divf %745, %746 : vector<2x96xf32>
    %748 = vector.extract_strided_slice %747 {offsets = [0, 0], sizes = [2, 32], strides = [1, 1]} : vector<2x96xf32> to vector<2x32xf32>
    %749 = vector.extract_strided_slice %747 {offsets = [0, 32], sizes = [2, 32], strides = [1, 1]} : vector<2x96xf32> to vector<2x32xf32>
    %750 = vector.extract_strided_slice %747 {offsets = [0, 64], sizes = [2, 32], strides = [1, 1]} : vector<2x96xf32> to vector<2x32xf32>
    %751 = vector.extract_strided_slice %741 {offsets = [0, 96], sizes = [2, 32], strides = [1, 1]} : vector<2x128xf32> to vector<2x32xf32>
    %752 = math.tanh %751 : vector<2x32xf32>
    %753 = arith.mulf %749, %732 : vector<2x32xf32>
    %754 = arith.mulf %748, %752 : vector<2x32xf32>
    %755 = arith.addf %753, %754 : vector<2x32xf32>
    %756 = math.tanh %755 : vector<2x32xf32>
    %757 = arith.mulf %750, %756 : vector<2x32xf32>
    %758 = vector.extract_strided_slice %757 {offsets = [0, 0], sizes = [2, 16], strides = [1, 1]} : vector<2x32xf32> to vector<2x16xf32>
    %759 = vector.extract_strided_slice %757 {offsets = [0, 16], sizes = [2, 16], strides = [1, 1]} : vector<2x32xf32> to vector<2x16xf32>
    %760 = tpu.concatenate %413, %436, %459, %482, %505, %528, %551, %574, %597, %620, %643, %666, %689, %712, %735, %758 in 0 : vector<2x16xf32>, vector<2x16xf32>, vector<2x16xf32>, vector<2x16xf32>, vector<2x16xf32>, vector<2x16xf32>, vector<2x16xf32>, vector<2x16xf32>, vector<2x16xf32>, vector<2x16xf32>, vector<2x16xf32>, vector<2x16xf32>, vector<2x16xf32>, vector<2x16xf32>, vector<2x16xf32>, vector<2x16xf32> -> vector<32x16xf32>
    %761 = tpu.concatenate %759, %736, %713, %690, %667, %644, %621, %598, %575, %552, %529, %506, %483, %460, %437, %414 in 0 : vector<2x16xf32>, vector<2x16xf32>, vector<2x16xf32>, vector<2x16xf32>, vector<2x16xf32>, vector<2x16xf32>, vector<2x16xf32>, vector<2x16xf32>, vector<2x16xf32>, vector<2x16xf32>, vector<2x16xf32>, vector<2x16xf32>, vector<2x16xf32>, vector<2x16xf32>, vector<2x16xf32>, vector<2x16xf32> -> vector<32x16xf32>
    %762 = tpu.concatenate %760, %761 in 1 : vector<32x16xf32>, vector<32x16xf32> -> vector<32x32xf32>
    %c0_88 = arith.constant 0 : index
    %c0_89 = arith.constant 0 : index
    %763 = vector.load %arg9[%c0_88, %c0_89] : memref<32x128xf32, #tpu.memory_space<vmem>>, vector<32x128xf32>
    %c0_90 = arith.constant 0 : index
    %c0_91 = arith.constant 0 : index
    %764 = vector.load %arg10[%c0_90, %c0_91] : memref<32x128xf32, #tpu.memory_space<vmem>>, vector<32x128xf32>
    %c0_92 = arith.constant 0 : index
    %c0_93 = arith.constant 0 : index
    %765 = vector.load %arg11[%c0_92, %c0_93] : memref<32x128xf32, #tpu.memory_space<vmem>>, vector<32x128xf32>
    %c0_94 = arith.constant 0 : index
    %c0_95 = arith.constant 0 : index
    %766 = vector.load %arg12[%c0_94, %c0_95] : memref<1x128xf32, #tpu.memory_space<vmem>>, vector<1x128xf32>
    %cst_96 = arith.constant dense<0.000000e+00> : vector<32x128xf32>
    %767 = tpu.matmul %762, %763, %cst_96 {dimension_numbers = #tpu.dot_dimension_numbers<[1], [0], [0], [1], [0, 0, 1, 1], [], []>} : vector<32x32xf32>, vector<32x128xf32>, vector<32x128xf32> -> vector<32x128xf32>
    %768 = vector.broadcast %766 : vector<1x128xf32> to vector<32x128xf32>
    %769 = arith.addf %767, %768 : vector<32x128xf32>
    %cst_97 = arith.constant dense<0.000000e+00> : vector<32x128xf32>
    %770 = tpu.matmul %762, %764, %cst_97 {dimension_numbers = #tpu.dot_dimension_numbers<[1], [0], [0], [1], [0, 0, 1, 1], [], []>} : vector<32x32xf32>, vector<32x128xf32>, vector<32x128xf32> -> vector<32x128xf32>
    %cst_98 = arith.constant 0.000000e+00 : f32
    %771 = vector.broadcast %cst_98 : f32 to vector<2x32xf32>
    %cst_99 = arith.constant 0.000000e+00 : f32
    %772 = vector.broadcast %cst_99 : f32 to vector<2x32xf32>
    %773 = vector.extract_strided_slice %769 {offsets = [0, 0], sizes = [2, 128], strides = [1, 1]} : vector<32x128xf32> to vector<2x128xf32>
    %774 = vector.extract_strided_slice %770 {offsets = [30, 0], sizes = [2, 128], strides = [1, 1]} : vector<32x128xf32> to vector<2x128xf32>
    %775 = arith.addf %773, %774 : vector<2x128xf32>
    %cst_100 = arith.constant dense<0.000000e+00> : vector<2x128xf32>
    %776 = tpu.matmul %771, %765, %cst_100 {dimension_numbers = #tpu.dot_dimension_numbers<[1], [0], [0], [1], [0, 0, 1, 1], [], []>} : vector<2x32xf32>, vector<32x128xf32>, vector<2x128xf32> -> vector<2x128xf32>
    %777 = arith.addf %775, %776 : vector<2x128xf32>
    %778 = vector.extract_strided_slice %777 {offsets = [0, 0], sizes = [2, 96], strides = [1, 1]} : vector<2x128xf32> to vector<2x96xf32>
    %779 = arith.negf %778 : vector<2x96xf32>
    %780 = math.exp %779 : vector<2x96xf32>
    %cst_101 = arith.constant 1.000000e+00 : f32
    %781 = vector.broadcast %cst_101 : f32 to vector<2x96xf32>
    %782 = arith.addf %781, %780 : vector<2x96xf32>
    %783 = arith.divf %781, %782 : vector<2x96xf32>
    %784 = vector.extract_strided_slice %783 {offsets = [0, 0], sizes = [2, 32], strides = [1, 1]} : vector<2x96xf32> to vector<2x32xf32>
    %785 = vector.extract_strided_slice %783 {offsets = [0, 32], sizes = [2, 32], strides = [1, 1]} : vector<2x96xf32> to vector<2x32xf32>
    %786 = vector.extract_strided_slice %783 {offsets = [0, 64], sizes = [2, 32], strides = [1, 1]} : vector<2x96xf32> to vector<2x32xf32>
    %787 = vector.extract_strided_slice %777 {offsets = [0, 96], sizes = [2, 32], strides = [1, 1]} : vector<2x128xf32> to vector<2x32xf32>
    %788 = math.tanh %787 : vector<2x32xf32>
    %789 = arith.mulf %785, %772 : vector<2x32xf32>
    %790 = arith.mulf %784, %788 : vector<2x32xf32>
    %791 = arith.addf %789, %790 : vector<2x32xf32>
    %792 = math.tanh %791 : vector<2x32xf32>
    %793 = arith.mulf %786, %792 : vector<2x32xf32>
    %794 = vector.extract_strided_slice %793 {offsets = [0, 0], sizes = [2, 16], strides = [1, 1]} : vector<2x32xf32> to vector<2x16xf32>
    %795 = vector.extract_strided_slice %793 {offsets = [0, 16], sizes = [2, 16], strides = [1, 1]} : vector<2x32xf32> to vector<2x16xf32>
    %796 = vector.extract_strided_slice %769 {offsets = [2, 0], sizes = [2, 128], strides = [1, 1]} : vector<32x128xf32> to vector<2x128xf32>
    %797 = vector.extract_strided_slice %770 {offsets = [28, 0], sizes = [2, 128], strides = [1, 1]} : vector<32x128xf32> to vector<2x128xf32>
    %798 = arith.addf %796, %797 : vector<2x128xf32>
    %cst_102 = arith.constant dense<0.000000e+00> : vector<2x128xf32>
    %799 = tpu.matmul %793, %765, %cst_102 {dimension_numbers = #tpu.dot_dimension_numbers<[1], [0], [0], [1], [0, 0, 1, 1], [], []>} : vector<2x32xf32>, vector<32x128xf32>, vector<2x128xf32> -> vector<2x128xf32>
    %800 = arith.addf %798, %799 : vector<2x128xf32>
    %801 = vector.extract_strided_slice %800 {offsets = [0, 0], sizes = [2, 96], strides = [1, 1]} : vector<2x128xf32> to vector<2x96xf32>
    %802 = arith.negf %801 : vector<2x96xf32>
    %803 = math.exp %802 : vector<2x96xf32>
    %cst_103 = arith.constant 1.000000e+00 : f32
    %804 = vector.broadcast %cst_103 : f32 to vector<2x96xf32>
    %805 = arith.addf %804, %803 : vector<2x96xf32>
    %806 = arith.divf %804, %805 : vector<2x96xf32>
    %807 = vector.extract_strided_slice %806 {offsets = [0, 0], sizes = [2, 32], strides = [1, 1]} : vector<2x96xf32> to vector<2x32xf32>
    %808 = vector.extract_strided_slice %806 {offsets = [0, 32], sizes = [2, 32], strides = [1, 1]} : vector<2x96xf32> to vector<2x32xf32>
    %809 = vector.extract_strided_slice %806 {offsets = [0, 64], sizes = [2, 32], strides = [1, 1]} : vector<2x96xf32> to vector<2x32xf32>
    %810 = vector.extract_strided_slice %800 {offsets = [0, 96], sizes = [2, 32], strides = [1, 1]} : vector<2x128xf32> to vector<2x32xf32>
    %811 = math.tanh %810 : vector<2x32xf32>
    %812 = arith.mulf %808, %791 : vector<2x32xf32>
    %813 = arith.mulf %807, %811 : vector<2x32xf32>
    %814 = arith.addf %812, %813 : vector<2x32xf32>
    %815 = math.tanh %814 : vector<2x32xf32>
    %816 = arith.mulf %809, %815 : vector<2x32xf32>
    %817 = vector.extract_strided_slice %816 {offsets = [0, 0], sizes = [2, 16], strides = [1, 1]} : vector<2x32xf32> to vector<2x16xf32>
    %818 = vector.extract_strided_slice %816 {offsets = [0, 16], sizes = [2, 16], strides = [1, 1]} : vector<2x32xf32> to vector<2x16xf32>
    %819 = vector.extract_strided_slice %769 {offsets = [4, 0], sizes = [2, 128], strides = [1, 1]} : vector<32x128xf32> to vector<2x128xf32>
    %820 = vector.extract_strided_slice %770 {offsets = [26, 0], sizes = [2, 128], strides = [1, 1]} : vector<32x128xf32> to vector<2x128xf32>
    %821 = arith.addf %819, %820 : vector<2x128xf32>
    %cst_104 = arith.constant dense<0.000000e+00> : vector<2x128xf32>
    %822 = tpu.matmul %816, %765, %cst_104 {dimension_numbers = #tpu.dot_dimension_numbers<[1], [0], [0], [1], [0, 0, 1, 1], [], []>} : vector<2x32xf32>, vector<32x128xf32>, vector<2x128xf32> -> vector<2x128xf32>
    %823 = arith.addf %821, %822 : vector<2x128xf32>
    %824 = vector.extract_strided_slice %823 {offsets = [0, 0], sizes = [2, 96], strides = [1, 1]} : vector<2x128xf32> to vector<2x96xf32>
    %825 = arith.negf %824 : vector<2x96xf32>
    %826 = math.exp %825 : vector<2x96xf32>
    %cst_105 = arith.constant 1.000000e+00 : f32
    %827 = vector.broadcast %cst_105 : f32 to vector<2x96xf32>
    %828 = arith.addf %827, %826 : vector<2x96xf32>
    %829 = arith.divf %827, %828 : vector<2x96xf32>
    %830 = vector.extract_strided_slice %829 {offsets = [0, 0], sizes = [2, 32], strides = [1, 1]} : vector<2x96xf32> to vector<2x32xf32>
    %831 = vector.extract_strided_slice %829 {offsets = [0, 32], sizes = [2, 32], strides = [1, 1]} : vector<2x96xf32> to vector<2x32xf32>
    %832 = vector.extract_strided_slice %829 {offsets = [0, 64], sizes = [2, 32], strides = [1, 1]} : vector<2x96xf32> to vector<2x32xf32>
    %833 = vector.extract_strided_slice %823 {offsets = [0, 96], sizes = [2, 32], strides = [1, 1]} : vector<2x128xf32> to vector<2x32xf32>
    %834 = math.tanh %833 : vector<2x32xf32>
    %835 = arith.mulf %831, %814 : vector<2x32xf32>
    %836 = arith.mulf %830, %834 : vector<2x32xf32>
    %837 = arith.addf %835, %836 : vector<2x32xf32>
    %838 = math.tanh %837 : vector<2x32xf32>
    %839 = arith.mulf %832, %838 : vector<2x32xf32>
    %840 = vector.extract_strided_slice %839 {offsets = [0, 0], sizes = [2, 16], strides = [1, 1]} : vector<2x32xf32> to vector<2x16xf32>
    %841 = vector.extract_strided_slice %839 {offsets = [0, 16], sizes = [2, 16], strides = [1, 1]} : vector<2x32xf32> to vector<2x16xf32>
    %842 = vector.extract_strided_slice %769 {offsets = [6, 0], sizes = [2, 128], strides = [1, 1]} : vector<32x128xf32> to vector<2x128xf32>
    %843 = vector.extract_strided_slice %770 {offsets = [24, 0], sizes = [2, 128], strides = [1, 1]} : vector<32x128xf32> to vector<2x128xf32>
    %844 = arith.addf %842, %843 : vector<2x128xf32>
    %cst_106 = arith.constant dense<0.000000e+00> : vector<2x128xf32>
    %845 = tpu.matmul %839, %765, %cst_106 {dimension_numbers = #tpu.dot_dimension_numbers<[1], [0], [0], [1], [0, 0, 1, 1], [], []>} : vector<2x32xf32>, vector<32x128xf32>, vector<2x128xf32> -> vector<2x128xf32>
    %846 = arith.addf %844, %845 : vector<2x128xf32>
    %847 = vector.extract_strided_slice %846 {offsets = [0, 0], sizes = [2, 96], strides = [1, 1]} : vector<2x128xf32> to vector<2x96xf32>
    %848 = arith.negf %847 : vector<2x96xf32>
    %849 = math.exp %848 : vector<2x96xf32>
    %cst_107 = arith.constant 1.000000e+00 : f32
    %850 = vector.broadcast %cst_107 : f32 to vector<2x96xf32>
    %851 = arith.addf %850, %849 : vector<2x96xf32>
    %852 = arith.divf %850, %851 : vector<2x96xf32>
    %853 = vector.extract_strided_slice %852 {offsets = [0, 0], sizes = [2, 32], strides = [1, 1]} : vector<2x96xf32> to vector<2x32xf32>
    %854 = vector.extract_strided_slice %852 {offsets = [0, 32], sizes = [2, 32], strides = [1, 1]} : vector<2x96xf32> to vector<2x32xf32>
    %855 = vector.extract_strided_slice %852 {offsets = [0, 64], sizes = [2, 32], strides = [1, 1]} : vector<2x96xf32> to vector<2x32xf32>
    %856 = vector.extract_strided_slice %846 {offsets = [0, 96], sizes = [2, 32], strides = [1, 1]} : vector<2x128xf32> to vector<2x32xf32>
    %857 = math.tanh %856 : vector<2x32xf32>
    %858 = arith.mulf %854, %837 : vector<2x32xf32>
    %859 = arith.mulf %853, %857 : vector<2x32xf32>
    %860 = arith.addf %858, %859 : vector<2x32xf32>
    %861 = math.tanh %860 : vector<2x32xf32>
    %862 = arith.mulf %855, %861 : vector<2x32xf32>
    %863 = vector.extract_strided_slice %862 {offsets = [0, 0], sizes = [2, 16], strides = [1, 1]} : vector<2x32xf32> to vector<2x16xf32>
    %864 = vector.extract_strided_slice %862 {offsets = [0, 16], sizes = [2, 16], strides = [1, 1]} : vector<2x32xf32> to vector<2x16xf32>
    %865 = vector.extract_strided_slice %769 {offsets = [8, 0], sizes = [2, 128], strides = [1, 1]} : vector<32x128xf32> to vector<2x128xf32>
    %866 = vector.extract_strided_slice %770 {offsets = [22, 0], sizes = [2, 128], strides = [1, 1]} : vector<32x128xf32> to vector<2x128xf32>
    %867 = arith.addf %865, %866 : vector<2x128xf32>
    %cst_108 = arith.constant dense<0.000000e+00> : vector<2x128xf32>
    %868 = tpu.matmul %862, %765, %cst_108 {dimension_numbers = #tpu.dot_dimension_numbers<[1], [0], [0], [1], [0, 0, 1, 1], [], []>} : vector<2x32xf32>, vector<32x128xf32>, vector<2x128xf32> -> vector<2x128xf32>
    %869 = arith.addf %867, %868 : vector<2x128xf32>
    %870 = vector.extract_strided_slice %869 {offsets = [0, 0], sizes = [2, 96], strides = [1, 1]} : vector<2x128xf32> to vector<2x96xf32>
    %871 = arith.negf %870 : vector<2x96xf32>
    %872 = math.exp %871 : vector<2x96xf32>
    %cst_109 = arith.constant 1.000000e+00 : f32
    %873 = vector.broadcast %cst_109 : f32 to vector<2x96xf32>
    %874 = arith.addf %873, %872 : vector<2x96xf32>
    %875 = arith.divf %873, %874 : vector<2x96xf32>
    %876 = vector.extract_strided_slice %875 {offsets = [0, 0], sizes = [2, 32], strides = [1, 1]} : vector<2x96xf32> to vector<2x32xf32>
    %877 = vector.extract_strided_slice %875 {offsets = [0, 32], sizes = [2, 32], strides = [1, 1]} : vector<2x96xf32> to vector<2x32xf32>
    %878 = vector.extract_strided_slice %875 {offsets = [0, 64], sizes = [2, 32], strides = [1, 1]} : vector<2x96xf32> to vector<2x32xf32>
    %879 = vector.extract_strided_slice %869 {offsets = [0, 96], sizes = [2, 32], strides = [1, 1]} : vector<2x128xf32> to vector<2x32xf32>
    %880 = math.tanh %879 : vector<2x32xf32>
    %881 = arith.mulf %877, %860 : vector<2x32xf32>
    %882 = arith.mulf %876, %880 : vector<2x32xf32>
    %883 = arith.addf %881, %882 : vector<2x32xf32>
    %884 = math.tanh %883 : vector<2x32xf32>
    %885 = arith.mulf %878, %884 : vector<2x32xf32>
    %886 = vector.extract_strided_slice %885 {offsets = [0, 0], sizes = [2, 16], strides = [1, 1]} : vector<2x32xf32> to vector<2x16xf32>
    %887 = vector.extract_strided_slice %885 {offsets = [0, 16], sizes = [2, 16], strides = [1, 1]} : vector<2x32xf32> to vector<2x16xf32>
    %888 = vector.extract_strided_slice %769 {offsets = [10, 0], sizes = [2, 128], strides = [1, 1]} : vector<32x128xf32> to vector<2x128xf32>
    %889 = vector.extract_strided_slice %770 {offsets = [20, 0], sizes = [2, 128], strides = [1, 1]} : vector<32x128xf32> to vector<2x128xf32>
    %890 = arith.addf %888, %889 : vector<2x128xf32>
    %cst_110 = arith.constant dense<0.000000e+00> : vector<2x128xf32>
    %891 = tpu.matmul %885, %765, %cst_110 {dimension_numbers = #tpu.dot_dimension_numbers<[1], [0], [0], [1], [0, 0, 1, 1], [], []>} : vector<2x32xf32>, vector<32x128xf32>, vector<2x128xf32> -> vector<2x128xf32>
    %892 = arith.addf %890, %891 : vector<2x128xf32>
    %893 = vector.extract_strided_slice %892 {offsets = [0, 0], sizes = [2, 96], strides = [1, 1]} : vector<2x128xf32> to vector<2x96xf32>
    %894 = arith.negf %893 : vector<2x96xf32>
    %895 = math.exp %894 : vector<2x96xf32>
    %cst_111 = arith.constant 1.000000e+00 : f32
    %896 = vector.broadcast %cst_111 : f32 to vector<2x96xf32>
    %897 = arith.addf %896, %895 : vector<2x96xf32>
    %898 = arith.divf %896, %897 : vector<2x96xf32>
    %899 = vector.extract_strided_slice %898 {offsets = [0, 0], sizes = [2, 32], strides = [1, 1]} : vector<2x96xf32> to vector<2x32xf32>
    %900 = vector.extract_strided_slice %898 {offsets = [0, 32], sizes = [2, 32], strides = [1, 1]} : vector<2x96xf32> to vector<2x32xf32>
    %901 = vector.extract_strided_slice %898 {offsets = [0, 64], sizes = [2, 32], strides = [1, 1]} : vector<2x96xf32> to vector<2x32xf32>
    %902 = vector.extract_strided_slice %892 {offsets = [0, 96], sizes = [2, 32], strides = [1, 1]} : vector<2x128xf32> to vector<2x32xf32>
    %903 = math.tanh %902 : vector<2x32xf32>
    %904 = arith.mulf %900, %883 : vector<2x32xf32>
    %905 = arith.mulf %899, %903 : vector<2x32xf32>
    %906 = arith.addf %904, %905 : vector<2x32xf32>
    %907 = math.tanh %906 : vector<2x32xf32>
    %908 = arith.mulf %901, %907 : vector<2x32xf32>
    %909 = vector.extract_strided_slice %908 {offsets = [0, 0], sizes = [2, 16], strides = [1, 1]} : vector<2x32xf32> to vector<2x16xf32>
    %910 = vector.extract_strided_slice %908 {offsets = [0, 16], sizes = [2, 16], strides = [1, 1]} : vector<2x32xf32> to vector<2x16xf32>
    %911 = vector.extract_strided_slice %769 {offsets = [12, 0], sizes = [2, 128], strides = [1, 1]} : vector<32x128xf32> to vector<2x128xf32>
    %912 = vector.extract_strided_slice %770 {offsets = [18, 0], sizes = [2, 128], strides = [1, 1]} : vector<32x128xf32> to vector<2x128xf32>
    %913 = arith.addf %911, %912 : vector<2x128xf32>
    %cst_112 = arith.constant dense<0.000000e+00> : vector<2x128xf32>
    %914 = tpu.matmul %908, %765, %cst_112 {dimension_numbers = #tpu.dot_dimension_numbers<[1], [0], [0], [1], [0, 0, 1, 1], [], []>} : vector<2x32xf32>, vector<32x128xf32>, vector<2x128xf32> -> vector<2x128xf32>
    %915 = arith.addf %913, %914 : vector<2x128xf32>
    %916 = vector.extract_strided_slice %915 {offsets = [0, 0], sizes = [2, 96], strides = [1, 1]} : vector<2x128xf32> to vector<2x96xf32>
    %917 = arith.negf %916 : vector<2x96xf32>
    %918 = math.exp %917 : vector<2x96xf32>
    %cst_113 = arith.constant 1.000000e+00 : f32
    %919 = vector.broadcast %cst_113 : f32 to vector<2x96xf32>
    %920 = arith.addf %919, %918 : vector<2x96xf32>
    %921 = arith.divf %919, %920 : vector<2x96xf32>
    %922 = vector.extract_strided_slice %921 {offsets = [0, 0], sizes = [2, 32], strides = [1, 1]} : vector<2x96xf32> to vector<2x32xf32>
    %923 = vector.extract_strided_slice %921 {offsets = [0, 32], sizes = [2, 32], strides = [1, 1]} : vector<2x96xf32> to vector<2x32xf32>
    %924 = vector.extract_strided_slice %921 {offsets = [0, 64], sizes = [2, 32], strides = [1, 1]} : vector<2x96xf32> to vector<2x32xf32>
    %925 = vector.extract_strided_slice %915 {offsets = [0, 96], sizes = [2, 32], strides = [1, 1]} : vector<2x128xf32> to vector<2x32xf32>
    %926 = math.tanh %925 : vector<2x32xf32>
    %927 = arith.mulf %923, %906 : vector<2x32xf32>
    %928 = arith.mulf %922, %926 : vector<2x32xf32>
    %929 = arith.addf %927, %928 : vector<2x32xf32>
    %930 = math.tanh %929 : vector<2x32xf32>
    %931 = arith.mulf %924, %930 : vector<2x32xf32>
    %932 = vector.extract_strided_slice %931 {offsets = [0, 0], sizes = [2, 16], strides = [1, 1]} : vector<2x32xf32> to vector<2x16xf32>
    %933 = vector.extract_strided_slice %931 {offsets = [0, 16], sizes = [2, 16], strides = [1, 1]} : vector<2x32xf32> to vector<2x16xf32>
    %934 = vector.extract_strided_slice %769 {offsets = [14, 0], sizes = [2, 128], strides = [1, 1]} : vector<32x128xf32> to vector<2x128xf32>
    %935 = vector.extract_strided_slice %770 {offsets = [16, 0], sizes = [2, 128], strides = [1, 1]} : vector<32x128xf32> to vector<2x128xf32>
    %936 = arith.addf %934, %935 : vector<2x128xf32>
    %cst_114 = arith.constant dense<0.000000e+00> : vector<2x128xf32>
    %937 = tpu.matmul %931, %765, %cst_114 {dimension_numbers = #tpu.dot_dimension_numbers<[1], [0], [0], [1], [0, 0, 1, 1], [], []>} : vector<2x32xf32>, vector<32x128xf32>, vector<2x128xf32> -> vector<2x128xf32>
    %938 = arith.addf %936, %937 : vector<2x128xf32>
    %939 = vector.extract_strided_slice %938 {offsets = [0, 0], sizes = [2, 96], strides = [1, 1]} : vector<2x128xf32> to vector<2x96xf32>
    %940 = arith.negf %939 : vector<2x96xf32>
    %941 = math.exp %940 : vector<2x96xf32>
    %cst_115 = arith.constant 1.000000e+00 : f32
    %942 = vector.broadcast %cst_115 : f32 to vector<2x96xf32>
    %943 = arith.addf %942, %941 : vector<2x96xf32>
    %944 = arith.divf %942, %943 : vector<2x96xf32>
    %945 = vector.extract_strided_slice %944 {offsets = [0, 0], sizes = [2, 32], strides = [1, 1]} : vector<2x96xf32> to vector<2x32xf32>
    %946 = vector.extract_strided_slice %944 {offsets = [0, 32], sizes = [2, 32], strides = [1, 1]} : vector<2x96xf32> to vector<2x32xf32>
    %947 = vector.extract_strided_slice %944 {offsets = [0, 64], sizes = [2, 32], strides = [1, 1]} : vector<2x96xf32> to vector<2x32xf32>
    %948 = vector.extract_strided_slice %938 {offsets = [0, 96], sizes = [2, 32], strides = [1, 1]} : vector<2x128xf32> to vector<2x32xf32>
    %949 = math.tanh %948 : vector<2x32xf32>
    %950 = arith.mulf %946, %929 : vector<2x32xf32>
    %951 = arith.mulf %945, %949 : vector<2x32xf32>
    %952 = arith.addf %950, %951 : vector<2x32xf32>
    %953 = math.tanh %952 : vector<2x32xf32>
    %954 = arith.mulf %947, %953 : vector<2x32xf32>
    %955 = vector.extract_strided_slice %954 {offsets = [0, 0], sizes = [2, 16], strides = [1, 1]} : vector<2x32xf32> to vector<2x16xf32>
    %956 = vector.extract_strided_slice %954 {offsets = [0, 16], sizes = [2, 16], strides = [1, 1]} : vector<2x32xf32> to vector<2x16xf32>
    %957 = vector.extract_strided_slice %769 {offsets = [16, 0], sizes = [2, 128], strides = [1, 1]} : vector<32x128xf32> to vector<2x128xf32>
    %958 = vector.extract_strided_slice %770 {offsets = [14, 0], sizes = [2, 128], strides = [1, 1]} : vector<32x128xf32> to vector<2x128xf32>
    %959 = arith.addf %957, %958 : vector<2x128xf32>
    %cst_116 = arith.constant dense<0.000000e+00> : vector<2x128xf32>
    %960 = tpu.matmul %954, %765, %cst_116 {dimension_numbers = #tpu.dot_dimension_numbers<[1], [0], [0], [1], [0, 0, 1, 1], [], []>} : vector<2x32xf32>, vector<32x128xf32>, vector<2x128xf32> -> vector<2x128xf32>
    %961 = arith.addf %959, %960 : vector<2x128xf32>
    %962 = vector.extract_strided_slice %961 {offsets = [0, 0], sizes = [2, 96], strides = [1, 1]} : vector<2x128xf32> to vector<2x96xf32>
    %963 = arith.negf %962 : vector<2x96xf32>
    %964 = math.exp %963 : vector<2x96xf32>
    %cst_117 = arith.constant 1.000000e+00 : f32
    %965 = vector.broadcast %cst_117 : f32 to vector<2x96xf32>
    %966 = arith.addf %965, %964 : vector<2x96xf32>
    %967 = arith.divf %965, %966 : vector<2x96xf32>
    %968 = vector.extract_strided_slice %967 {offsets = [0, 0], sizes = [2, 32], strides = [1, 1]} : vector<2x96xf32> to vector<2x32xf32>
    %969 = vector.extract_strided_slice %967 {offsets = [0, 32], sizes = [2, 32], strides = [1, 1]} : vector<2x96xf32> to vector<2x32xf32>
    %970 = vector.extract_strided_slice %967 {offsets = [0, 64], sizes = [2, 32], strides = [1, 1]} : vector<2x96xf32> to vector<2x32xf32>
    %971 = vector.extract_strided_slice %961 {offsets = [0, 96], sizes = [2, 32], strides = [1, 1]} : vector<2x128xf32> to vector<2x32xf32>
    %972 = math.tanh %971 : vector<2x32xf32>
    %973 = arith.mulf %969, %952 : vector<2x32xf32>
    %974 = arith.mulf %968, %972 : vector<2x32xf32>
    %975 = arith.addf %973, %974 : vector<2x32xf32>
    %976 = math.tanh %975 : vector<2x32xf32>
    %977 = arith.mulf %970, %976 : vector<2x32xf32>
    %978 = vector.extract_strided_slice %977 {offsets = [0, 0], sizes = [2, 16], strides = [1, 1]} : vector<2x32xf32> to vector<2x16xf32>
    %979 = vector.extract_strided_slice %977 {offsets = [0, 16], sizes = [2, 16], strides = [1, 1]} : vector<2x32xf32> to vector<2x16xf32>
    %980 = vector.extract_strided_slice %769 {offsets = [18, 0], sizes = [2, 128], strides = [1, 1]} : vector<32x128xf32> to vector<2x128xf32>
    %981 = vector.extract_strided_slice %770 {offsets = [12, 0], sizes = [2, 128], strides = [1, 1]} : vector<32x128xf32> to vector<2x128xf32>
    %982 = arith.addf %980, %981 : vector<2x128xf32>
    %cst_118 = arith.constant dense<0.000000e+00> : vector<2x128xf32>
    %983 = tpu.matmul %977, %765, %cst_118 {dimension_numbers = #tpu.dot_dimension_numbers<[1], [0], [0], [1], [0, 0, 1, 1], [], []>} : vector<2x32xf32>, vector<32x128xf32>, vector<2x128xf32> -> vector<2x128xf32>
    %984 = arith.addf %982, %983 : vector<2x128xf32>
    %985 = vector.extract_strided_slice %984 {offsets = [0, 0], sizes = [2, 96], strides = [1, 1]} : vector<2x128xf32> to vector<2x96xf32>
    %986 = arith.negf %985 : vector<2x96xf32>
    %987 = math.exp %986 : vector<2x96xf32>
    %cst_119 = arith.constant 1.000000e+00 : f32
    %988 = vector.broadcast %cst_119 : f32 to vector<2x96xf32>
    %989 = arith.addf %988, %987 : vector<2x96xf32>
    %990 = arith.divf %988, %989 : vector<2x96xf32>
    %991 = vector.extract_strided_slice %990 {offsets = [0, 0], sizes = [2, 32], strides = [1, 1]} : vector<2x96xf32> to vector<2x32xf32>
    %992 = vector.extract_strided_slice %990 {offsets = [0, 32], sizes = [2, 32], strides = [1, 1]} : vector<2x96xf32> to vector<2x32xf32>
    %993 = vector.extract_strided_slice %990 {offsets = [0, 64], sizes = [2, 32], strides = [1, 1]} : vector<2x96xf32> to vector<2x32xf32>
    %994 = vector.extract_strided_slice %984 {offsets = [0, 96], sizes = [2, 32], strides = [1, 1]} : vector<2x128xf32> to vector<2x32xf32>
    %995 = math.tanh %994 : vector<2x32xf32>
    %996 = arith.mulf %992, %975 : vector<2x32xf32>
    %997 = arith.mulf %991, %995 : vector<2x32xf32>
    %998 = arith.addf %996, %997 : vector<2x32xf32>
    %999 = math.tanh %998 : vector<2x32xf32>
    %1000 = arith.mulf %993, %999 : vector<2x32xf32>
    %1001 = vector.extract_strided_slice %1000 {offsets = [0, 0], sizes = [2, 16], strides = [1, 1]} : vector<2x32xf32> to vector<2x16xf32>
    %1002 = vector.extract_strided_slice %1000 {offsets = [0, 16], sizes = [2, 16], strides = [1, 1]} : vector<2x32xf32> to vector<2x16xf32>
    %1003 = vector.extract_strided_slice %769 {offsets = [20, 0], sizes = [2, 128], strides = [1, 1]} : vector<32x128xf32> to vector<2x128xf32>
    %1004 = vector.extract_strided_slice %770 {offsets = [10, 0], sizes = [2, 128], strides = [1, 1]} : vector<32x128xf32> to vector<2x128xf32>
    %1005 = arith.addf %1003, %1004 : vector<2x128xf32>
    %cst_120 = arith.constant dense<0.000000e+00> : vector<2x128xf32>
    %1006 = tpu.matmul %1000, %765, %cst_120 {dimension_numbers = #tpu.dot_dimension_numbers<[1], [0], [0], [1], [0, 0, 1, 1], [], []>} : vector<2x32xf32>, vector<32x128xf32>, vector<2x128xf32> -> vector<2x128xf32>
    %1007 = arith.addf %1005, %1006 : vector<2x128xf32>
    %1008 = vector.extract_strided_slice %1007 {offsets = [0, 0], sizes = [2, 96], strides = [1, 1]} : vector<2x128xf32> to vector<2x96xf32>
    %1009 = arith.negf %1008 : vector<2x96xf32>
    %1010 = math.exp %1009 : vector<2x96xf32>
    %cst_121 = arith.constant 1.000000e+00 : f32
    %1011 = vector.broadcast %cst_121 : f32 to vector<2x96xf32>
    %1012 = arith.addf %1011, %1010 : vector<2x96xf32>
    %1013 = arith.divf %1011, %1012 : vector<2x96xf32>
    %1014 = vector.extract_strided_slice %1013 {offsets = [0, 0], sizes = [2, 32], strides = [1, 1]} : vector<2x96xf32> to vector<2x32xf32>
    %1015 = vector.extract_strided_slice %1013 {offsets = [0, 32], sizes = [2, 32], strides = [1, 1]} : vector<2x96xf32> to vector<2x32xf32>
    %1016 = vector.extract_strided_slice %1013 {offsets = [0, 64], sizes = [2, 32], strides = [1, 1]} : vector<2x96xf32> to vector<2x32xf32>
    %1017 = vector.extract_strided_slice %1007 {offsets = [0, 96], sizes = [2, 32], strides = [1, 1]} : vector<2x128xf32> to vector<2x32xf32>
    %1018 = math.tanh %1017 : vector<2x32xf32>
    %1019 = arith.mulf %1015, %998 : vector<2x32xf32>
    %1020 = arith.mulf %1014, %1018 : vector<2x32xf32>
    %1021 = arith.addf %1019, %1020 : vector<2x32xf32>
    %1022 = math.tanh %1021 : vector<2x32xf32>
    %1023 = arith.mulf %1016, %1022 : vector<2x32xf32>
    %1024 = vector.extract_strided_slice %1023 {offsets = [0, 0], sizes = [2, 16], strides = [1, 1]} : vector<2x32xf32> to vector<2x16xf32>
    %1025 = vector.extract_strided_slice %1023 {offsets = [0, 16], sizes = [2, 16], strides = [1, 1]} : vector<2x32xf32> to vector<2x16xf32>
    %1026 = vector.extract_strided_slice %769 {offsets = [22, 0], sizes = [2, 128], strides = [1, 1]} : vector<32x128xf32> to vector<2x128xf32>
    %1027 = vector.extract_strided_slice %770 {offsets = [8, 0], sizes = [2, 128], strides = [1, 1]} : vector<32x128xf32> to vector<2x128xf32>
    %1028 = arith.addf %1026, %1027 : vector<2x128xf32>
    %cst_122 = arith.constant dense<0.000000e+00> : vector<2x128xf32>
    %1029 = tpu.matmul %1023, %765, %cst_122 {dimension_numbers = #tpu.dot_dimension_numbers<[1], [0], [0], [1], [0, 0, 1, 1], [], []>} : vector<2x32xf32>, vector<32x128xf32>, vector<2x128xf32> -> vector<2x128xf32>
    %1030 = arith.addf %1028, %1029 : vector<2x128xf32>
    %1031 = vector.extract_strided_slice %1030 {offsets = [0, 0], sizes = [2, 96], strides = [1, 1]} : vector<2x128xf32> to vector<2x96xf32>
    %1032 = arith.negf %1031 : vector<2x96xf32>
    %1033 = math.exp %1032 : vector<2x96xf32>
    %cst_123 = arith.constant 1.000000e+00 : f32
    %1034 = vector.broadcast %cst_123 : f32 to vector<2x96xf32>
    %1035 = arith.addf %1034, %1033 : vector<2x96xf32>
    %1036 = arith.divf %1034, %1035 : vector<2x96xf32>
    %1037 = vector.extract_strided_slice %1036 {offsets = [0, 0], sizes = [2, 32], strides = [1, 1]} : vector<2x96xf32> to vector<2x32xf32>
    %1038 = vector.extract_strided_slice %1036 {offsets = [0, 32], sizes = [2, 32], strides = [1, 1]} : vector<2x96xf32> to vector<2x32xf32>
    %1039 = vector.extract_strided_slice %1036 {offsets = [0, 64], sizes = [2, 32], strides = [1, 1]} : vector<2x96xf32> to vector<2x32xf32>
    %1040 = vector.extract_strided_slice %1030 {offsets = [0, 96], sizes = [2, 32], strides = [1, 1]} : vector<2x128xf32> to vector<2x32xf32>
    %1041 = math.tanh %1040 : vector<2x32xf32>
    %1042 = arith.mulf %1038, %1021 : vector<2x32xf32>
    %1043 = arith.mulf %1037, %1041 : vector<2x32xf32>
    %1044 = arith.addf %1042, %1043 : vector<2x32xf32>
    %1045 = math.tanh %1044 : vector<2x32xf32>
    %1046 = arith.mulf %1039, %1045 : vector<2x32xf32>
    %1047 = vector.extract_strided_slice %1046 {offsets = [0, 0], sizes = [2, 16], strides = [1, 1]} : vector<2x32xf32> to vector<2x16xf32>
    %1048 = vector.extract_strided_slice %1046 {offsets = [0, 16], sizes = [2, 16], strides = [1, 1]} : vector<2x32xf32> to vector<2x16xf32>
    %1049 = vector.extract_strided_slice %769 {offsets = [24, 0], sizes = [2, 128], strides = [1, 1]} : vector<32x128xf32> to vector<2x128xf32>
    %1050 = vector.extract_strided_slice %770 {offsets = [6, 0], sizes = [2, 128], strides = [1, 1]} : vector<32x128xf32> to vector<2x128xf32>
    %1051 = arith.addf %1049, %1050 : vector<2x128xf32>
    %cst_124 = arith.constant dense<0.000000e+00> : vector<2x128xf32>
    %1052 = tpu.matmul %1046, %765, %cst_124 {dimension_numbers = #tpu.dot_dimension_numbers<[1], [0], [0], [1], [0, 0, 1, 1], [], []>} : vector<2x32xf32>, vector<32x128xf32>, vector<2x128xf32> -> vector<2x128xf32>
    %1053 = arith.addf %1051, %1052 : vector<2x128xf32>
    %1054 = vector.extract_strided_slice %1053 {offsets = [0, 0], sizes = [2, 96], strides = [1, 1]} : vector<2x128xf32> to vector<2x96xf32>
    %1055 = arith.negf %1054 : vector<2x96xf32>
    %1056 = math.exp %1055 : vector<2x96xf32>
    %cst_125 = arith.constant 1.000000e+00 : f32
    %1057 = vector.broadcast %cst_125 : f32 to vector<2x96xf32>
    %1058 = arith.addf %1057, %1056 : vector<2x96xf32>
    %1059 = arith.divf %1057, %1058 : vector<2x96xf32>
    %1060 = vector.extract_strided_slice %1059 {offsets = [0, 0], sizes = [2, 32], strides = [1, 1]} : vector<2x96xf32> to vector<2x32xf32>
    %1061 = vector.extract_strided_slice %1059 {offsets = [0, 32], sizes = [2, 32], strides = [1, 1]} : vector<2x96xf32> to vector<2x32xf32>
    %1062 = vector.extract_strided_slice %1059 {offsets = [0, 64], sizes = [2, 32], strides = [1, 1]} : vector<2x96xf32> to vector<2x32xf32>
    %1063 = vector.extract_strided_slice %1053 {offsets = [0, 96], sizes = [2, 32], strides = [1, 1]} : vector<2x128xf32> to vector<2x32xf32>
    %1064 = math.tanh %1063 : vector<2x32xf32>
    %1065 = arith.mulf %1061, %1044 : vector<2x32xf32>
    %1066 = arith.mulf %1060, %1064 : vector<2x32xf32>
    %1067 = arith.addf %1065, %1066 : vector<2x32xf32>
    %1068 = math.tanh %1067 : vector<2x32xf32>
    %1069 = arith.mulf %1062, %1068 : vector<2x32xf32>
    %1070 = vector.extract_strided_slice %1069 {offsets = [0, 0], sizes = [2, 16], strides = [1, 1]} : vector<2x32xf32> to vector<2x16xf32>
    %1071 = vector.extract_strided_slice %1069 {offsets = [0, 16], sizes = [2, 16], strides = [1, 1]} : vector<2x32xf32> to vector<2x16xf32>
    %1072 = vector.extract_strided_slice %769 {offsets = [26, 0], sizes = [2, 128], strides = [1, 1]} : vector<32x128xf32> to vector<2x128xf32>
    %1073 = vector.extract_strided_slice %770 {offsets = [4, 0], sizes = [2, 128], strides = [1, 1]} : vector<32x128xf32> to vector<2x128xf32>
    %1074 = arith.addf %1072, %1073 : vector<2x128xf32>
    %cst_126 = arith.constant dense<0.000000e+00> : vector<2x128xf32>
    %1075 = tpu.matmul %1069, %765, %cst_126 {dimension_numbers = #tpu.dot_dimension_numbers<[1], [0], [0], [1], [0, 0, 1, 1], [], []>} : vector<2x32xf32>, vector<32x128xf32>, vector<2x128xf32> -> vector<2x128xf32>
    %1076 = arith.addf %1074, %1075 : vector<2x128xf32>
    %1077 = vector.extract_strided_slice %1076 {offsets = [0, 0], sizes = [2, 96], strides = [1, 1]} : vector<2x128xf32> to vector<2x96xf32>
    %1078 = arith.negf %1077 : vector<2x96xf32>
    %1079 = math.exp %1078 : vector<2x96xf32>
    %cst_127 = arith.constant 1.000000e+00 : f32
    %1080 = vector.broadcast %cst_127 : f32 to vector<2x96xf32>
    %1081 = arith.addf %1080, %1079 : vector<2x96xf32>
    %1082 = arith.divf %1080, %1081 : vector<2x96xf32>
    %1083 = vector.extract_strided_slice %1082 {offsets = [0, 0], sizes = [2, 32], strides = [1, 1]} : vector<2x96xf32> to vector<2x32xf32>
    %1084 = vector.extract_strided_slice %1082 {offsets = [0, 32], sizes = [2, 32], strides = [1, 1]} : vector<2x96xf32> to vector<2x32xf32>
    %1085 = vector.extract_strided_slice %1082 {offsets = [0, 64], sizes = [2, 32], strides = [1, 1]} : vector<2x96xf32> to vector<2x32xf32>
    %1086 = vector.extract_strided_slice %1076 {offsets = [0, 96], sizes = [2, 32], strides = [1, 1]} : vector<2x128xf32> to vector<2x32xf32>
    %1087 = math.tanh %1086 : vector<2x32xf32>
    %1088 = arith.mulf %1084, %1067 : vector<2x32xf32>
    %1089 = arith.mulf %1083, %1087 : vector<2x32xf32>
    %1090 = arith.addf %1088, %1089 : vector<2x32xf32>
    %1091 = math.tanh %1090 : vector<2x32xf32>
    %1092 = arith.mulf %1085, %1091 : vector<2x32xf32>
    %1093 = vector.extract_strided_slice %1092 {offsets = [0, 0], sizes = [2, 16], strides = [1, 1]} : vector<2x32xf32> to vector<2x16xf32>
    %1094 = vector.extract_strided_slice %1092 {offsets = [0, 16], sizes = [2, 16], strides = [1, 1]} : vector<2x32xf32> to vector<2x16xf32>
    %1095 = vector.extract_strided_slice %769 {offsets = [28, 0], sizes = [2, 128], strides = [1, 1]} : vector<32x128xf32> to vector<2x128xf32>
    %1096 = vector.extract_strided_slice %770 {offsets = [2, 0], sizes = [2, 128], strides = [1, 1]} : vector<32x128xf32> to vector<2x128xf32>
    %1097 = arith.addf %1095, %1096 : vector<2x128xf32>
    %cst_128 = arith.constant dense<0.000000e+00> : vector<2x128xf32>
    %1098 = tpu.matmul %1092, %765, %cst_128 {dimension_numbers = #tpu.dot_dimension_numbers<[1], [0], [0], [1], [0, 0, 1, 1], [], []>} : vector<2x32xf32>, vector<32x128xf32>, vector<2x128xf32> -> vector<2x128xf32>
    %1099 = arith.addf %1097, %1098 : vector<2x128xf32>
    %1100 = vector.extract_strided_slice %1099 {offsets = [0, 0], sizes = [2, 96], strides = [1, 1]} : vector<2x128xf32> to vector<2x96xf32>
    %1101 = arith.negf %1100 : vector<2x96xf32>
    %1102 = math.exp %1101 : vector<2x96xf32>
    %cst_129 = arith.constant 1.000000e+00 : f32
    %1103 = vector.broadcast %cst_129 : f32 to vector<2x96xf32>
    %1104 = arith.addf %1103, %1102 : vector<2x96xf32>
    %1105 = arith.divf %1103, %1104 : vector<2x96xf32>
    %1106 = vector.extract_strided_slice %1105 {offsets = [0, 0], sizes = [2, 32], strides = [1, 1]} : vector<2x96xf32> to vector<2x32xf32>
    %1107 = vector.extract_strided_slice %1105 {offsets = [0, 32], sizes = [2, 32], strides = [1, 1]} : vector<2x96xf32> to vector<2x32xf32>
    %1108 = vector.extract_strided_slice %1105 {offsets = [0, 64], sizes = [2, 32], strides = [1, 1]} : vector<2x96xf32> to vector<2x32xf32>
    %1109 = vector.extract_strided_slice %1099 {offsets = [0, 96], sizes = [2, 32], strides = [1, 1]} : vector<2x128xf32> to vector<2x32xf32>
    %1110 = math.tanh %1109 : vector<2x32xf32>
    %1111 = arith.mulf %1107, %1090 : vector<2x32xf32>
    %1112 = arith.mulf %1106, %1110 : vector<2x32xf32>
    %1113 = arith.addf %1111, %1112 : vector<2x32xf32>
    %1114 = math.tanh %1113 : vector<2x32xf32>
    %1115 = arith.mulf %1108, %1114 : vector<2x32xf32>
    %1116 = vector.extract_strided_slice %1115 {offsets = [0, 0], sizes = [2, 16], strides = [1, 1]} : vector<2x32xf32> to vector<2x16xf32>
    %1117 = vector.extract_strided_slice %1115 {offsets = [0, 16], sizes = [2, 16], strides = [1, 1]} : vector<2x32xf32> to vector<2x16xf32>
    %1118 = vector.extract_strided_slice %769 {offsets = [30, 0], sizes = [2, 128], strides = [1, 1]} : vector<32x128xf32> to vector<2x128xf32>
    %1119 = vector.extract_strided_slice %770 {offsets = [0, 0], sizes = [2, 128], strides = [1, 1]} : vector<32x128xf32> to vector<2x128xf32>
    %1120 = arith.addf %1118, %1119 : vector<2x128xf32>
    %cst_130 = arith.constant dense<0.000000e+00> : vector<2x128xf32>
    %1121 = tpu.matmul %1115, %765, %cst_130 {dimension_numbers = #tpu.dot_dimension_numbers<[1], [0], [0], [1], [0, 0, 1, 1], [], []>} : vector<2x32xf32>, vector<32x128xf32>, vector<2x128xf32> -> vector<2x128xf32>
    %1122 = arith.addf %1120, %1121 : vector<2x128xf32>
    %1123 = vector.extract_strided_slice %1122 {offsets = [0, 0], sizes = [2, 96], strides = [1, 1]} : vector<2x128xf32> to vector<2x96xf32>
    %1124 = arith.negf %1123 : vector<2x96xf32>
    %1125 = math.exp %1124 : vector<2x96xf32>
    %cst_131 = arith.constant 1.000000e+00 : f32
    %1126 = vector.broadcast %cst_131 : f32 to vector<2x96xf32>
    %1127 = arith.addf %1126, %1125 : vector<2x96xf32>
    %1128 = arith.divf %1126, %1127 : vector<2x96xf32>
    %1129 = vector.extract_strided_slice %1128 {offsets = [0, 0], sizes = [2, 32], strides = [1, 1]} : vector<2x96xf32> to vector<2x32xf32>
    %1130 = vector.extract_strided_slice %1128 {offsets = [0, 32], sizes = [2, 32], strides = [1, 1]} : vector<2x96xf32> to vector<2x32xf32>
    %1131 = vector.extract_strided_slice %1128 {offsets = [0, 64], sizes = [2, 32], strides = [1, 1]} : vector<2x96xf32> to vector<2x32xf32>
    %1132 = vector.extract_strided_slice %1122 {offsets = [0, 96], sizes = [2, 32], strides = [1, 1]} : vector<2x128xf32> to vector<2x32xf32>
    %1133 = math.tanh %1132 : vector<2x32xf32>
    %1134 = arith.mulf %1130, %1113 : vector<2x32xf32>
    %1135 = arith.mulf %1129, %1133 : vector<2x32xf32>
    %1136 = arith.addf %1134, %1135 : vector<2x32xf32>
    %1137 = math.tanh %1136 : vector<2x32xf32>
    %1138 = arith.mulf %1131, %1137 : vector<2x32xf32>
    %1139 = vector.extract_strided_slice %1138 {offsets = [0, 0], sizes = [2, 16], strides = [1, 1]} : vector<2x32xf32> to vector<2x16xf32>
    %1140 = vector.extract_strided_slice %1138 {offsets = [0, 16], sizes = [2, 16], strides = [1, 1]} : vector<2x32xf32> to vector<2x16xf32>
    %1141 = tpu.concatenate %794, %817, %840, %863, %886, %909, %932, %955, %978, %1001, %1024, %1047, %1070, %1093, %1116, %1139 in 0 : vector<2x16xf32>, vector<2x16xf32>, vector<2x16xf32>, vector<2x16xf32>, vector<2x16xf32>, vector<2x16xf32>, vector<2x16xf32>, vector<2x16xf32>, vector<2x16xf32>, vector<2x16xf32>, vector<2x16xf32>, vector<2x16xf32>, vector<2x16xf32>, vector<2x16xf32>, vector<2x16xf32>, vector<2x16xf32> -> vector<32x16xf32>
    %1142 = tpu.concatenate %1140, %1117, %1094, %1071, %1048, %1025, %1002, %979, %956, %933, %910, %887, %864, %841, %818, %795 in 0 : vector<2x16xf32>, vector<2x16xf32>, vector<2x16xf32>, vector<2x16xf32>, vector<2x16xf32>, vector<2x16xf32>, vector<2x16xf32>, vector<2x16xf32>, vector<2x16xf32>, vector<2x16xf32>, vector<2x16xf32>, vector<2x16xf32>, vector<2x16xf32>, vector<2x16xf32>, vector<2x16xf32>, vector<2x16xf32> -> vector<32x16xf32>
    %1143 = tpu.concatenate %1141, %1142 in 1 : vector<32x16xf32>, vector<32x16xf32> -> vector<32x32xf32>
    %c0_132 = arith.constant 0 : index
    %c0_133 = arith.constant 0 : index
    %1144 = vector.load %arg13[%c0_132, %c0_133] : memref<32x128xf32, #tpu.memory_space<vmem>>, vector<32x128xf32>
    %c0_134 = arith.constant 0 : index
    %c0_135 = arith.constant 0 : index
    %1145 = vector.load %arg14[%c0_134, %c0_135] : memref<32x128xf32, #tpu.memory_space<vmem>>, vector<32x128xf32>
    %c0_136 = arith.constant 0 : index
    %c0_137 = arith.constant 0 : index
    %1146 = vector.load %arg15[%c0_136, %c0_137] : memref<32x128xf32, #tpu.memory_space<vmem>>, vector<32x128xf32>
    %c0_138 = arith.constant 0 : index
    %c0_139 = arith.constant 0 : index
    %1147 = vector.load %arg16[%c0_138, %c0_139] : memref<1x128xf32, #tpu.memory_space<vmem>>, vector<1x128xf32>
    %cst_140 = arith.constant dense<0.000000e+00> : vector<32x128xf32>
    %1148 = tpu.matmul %1143, %1144, %cst_140 {dimension_numbers = #tpu.dot_dimension_numbers<[1], [0], [0], [1], [0, 0, 1, 1], [], []>} : vector<32x32xf32>, vector<32x128xf32>, vector<32x128xf32> -> vector<32x128xf32>
    %1149 = vector.broadcast %1147 : vector<1x128xf32> to vector<32x128xf32>
    %1150 = arith.addf %1148, %1149 : vector<32x128xf32>
    %cst_141 = arith.constant dense<0.000000e+00> : vector<32x128xf32>
    %1151 = tpu.matmul %1143, %1145, %cst_141 {dimension_numbers = #tpu.dot_dimension_numbers<[1], [0], [0], [1], [0, 0, 1, 1], [], []>} : vector<32x32xf32>, vector<32x128xf32>, vector<32x128xf32> -> vector<32x128xf32>
    %cst_142 = arith.constant 0.000000e+00 : f32
    %1152 = vector.broadcast %cst_142 : f32 to vector<2x32xf32>
    %cst_143 = arith.constant 0.000000e+00 : f32
    %1153 = vector.broadcast %cst_143 : f32 to vector<2x32xf32>
    %1154 = vector.extract_strided_slice %1150 {offsets = [0, 0], sizes = [2, 128], strides = [1, 1]} : vector<32x128xf32> to vector<2x128xf32>
    %1155 = vector.extract_strided_slice %1151 {offsets = [30, 0], sizes = [2, 128], strides = [1, 1]} : vector<32x128xf32> to vector<2x128xf32>
    %1156 = arith.addf %1154, %1155 : vector<2x128xf32>
    %cst_144 = arith.constant dense<0.000000e+00> : vector<2x128xf32>
    %1157 = tpu.matmul %1152, %1146, %cst_144 {dimension_numbers = #tpu.dot_dimension_numbers<[1], [0], [0], [1], [0, 0, 1, 1], [], []>} : vector<2x32xf32>, vector<32x128xf32>, vector<2x128xf32> -> vector<2x128xf32>
    %1158 = arith.addf %1156, %1157 : vector<2x128xf32>
    %1159 = vector.extract_strided_slice %1158 {offsets = [0, 0], sizes = [2, 96], strides = [1, 1]} : vector<2x128xf32> to vector<2x96xf32>
    %1160 = arith.negf %1159 : vector<2x96xf32>
    %1161 = math.exp %1160 : vector<2x96xf32>
    %cst_145 = arith.constant 1.000000e+00 : f32
    %1162 = vector.broadcast %cst_145 : f32 to vector<2x96xf32>
    %1163 = arith.addf %1162, %1161 : vector<2x96xf32>
    %1164 = arith.divf %1162, %1163 : vector<2x96xf32>
    %1165 = vector.extract_strided_slice %1164 {offsets = [0, 0], sizes = [2, 32], strides = [1, 1]} : vector<2x96xf32> to vector<2x32xf32>
    %1166 = vector.extract_strided_slice %1164 {offsets = [0, 32], sizes = [2, 32], strides = [1, 1]} : vector<2x96xf32> to vector<2x32xf32>
    %1167 = vector.extract_strided_slice %1164 {offsets = [0, 64], sizes = [2, 32], strides = [1, 1]} : vector<2x96xf32> to vector<2x32xf32>
    %1168 = vector.extract_strided_slice %1158 {offsets = [0, 96], sizes = [2, 32], strides = [1, 1]} : vector<2x128xf32> to vector<2x32xf32>
    %1169 = math.tanh %1168 : vector<2x32xf32>
    %1170 = arith.mulf %1166, %1153 : vector<2x32xf32>
    %1171 = arith.mulf %1165, %1169 : vector<2x32xf32>
    %1172 = arith.addf %1170, %1171 : vector<2x32xf32>
    %1173 = math.tanh %1172 : vector<2x32xf32>
    %1174 = arith.mulf %1167, %1173 : vector<2x32xf32>
    %1175 = vector.extract_strided_slice %1174 {offsets = [0, 16], sizes = [2, 16], strides = [1, 1]} : vector<2x32xf32> to vector<2x16xf32>
    %1176 = vector.extract_strided_slice %1150 {offsets = [2, 0], sizes = [2, 128], strides = [1, 1]} : vector<32x128xf32> to vector<2x128xf32>
    %1177 = vector.extract_strided_slice %1151 {offsets = [28, 0], sizes = [2, 128], strides = [1, 1]} : vector<32x128xf32> to vector<2x128xf32>
    %1178 = arith.addf %1176, %1177 : vector<2x128xf32>
    %cst_146 = arith.constant dense<0.000000e+00> : vector<2x128xf32>
    %1179 = tpu.matmul %1174, %1146, %cst_146 {dimension_numbers = #tpu.dot_dimension_numbers<[1], [0], [0], [1], [0, 0, 1, 1], [], []>} : vector<2x32xf32>, vector<32x128xf32>, vector<2x128xf32> -> vector<2x128xf32>
    %1180 = arith.addf %1178, %1179 : vector<2x128xf32>
    %1181 = vector.extract_strided_slice %1180 {offsets = [0, 0], sizes = [2, 96], strides = [1, 1]} : vector<2x128xf32> to vector<2x96xf32>
    %1182 = arith.negf %1181 : vector<2x96xf32>
    %1183 = math.exp %1182 : vector<2x96xf32>
    %cst_147 = arith.constant 1.000000e+00 : f32
    %1184 = vector.broadcast %cst_147 : f32 to vector<2x96xf32>
    %1185 = arith.addf %1184, %1183 : vector<2x96xf32>
    %1186 = arith.divf %1184, %1185 : vector<2x96xf32>
    %1187 = vector.extract_strided_slice %1186 {offsets = [0, 0], sizes = [2, 32], strides = [1, 1]} : vector<2x96xf32> to vector<2x32xf32>
    %1188 = vector.extract_strided_slice %1186 {offsets = [0, 32], sizes = [2, 32], strides = [1, 1]} : vector<2x96xf32> to vector<2x32xf32>
    %1189 = vector.extract_strided_slice %1186 {offsets = [0, 64], sizes = [2, 32], strides = [1, 1]} : vector<2x96xf32> to vector<2x32xf32>
    %1190 = vector.extract_strided_slice %1180 {offsets = [0, 96], sizes = [2, 32], strides = [1, 1]} : vector<2x128xf32> to vector<2x32xf32>
    %1191 = math.tanh %1190 : vector<2x32xf32>
    %1192 = arith.mulf %1188, %1172 : vector<2x32xf32>
    %1193 = arith.mulf %1187, %1191 : vector<2x32xf32>
    %1194 = arith.addf %1192, %1193 : vector<2x32xf32>
    %1195 = math.tanh %1194 : vector<2x32xf32>
    %1196 = arith.mulf %1189, %1195 : vector<2x32xf32>
    %1197 = vector.extract_strided_slice %1150 {offsets = [4, 0], sizes = [2, 128], strides = [1, 1]} : vector<32x128xf32> to vector<2x128xf32>
    %1198 = vector.extract_strided_slice %1151 {offsets = [26, 0], sizes = [2, 128], strides = [1, 1]} : vector<32x128xf32> to vector<2x128xf32>
    %1199 = arith.addf %1197, %1198 : vector<2x128xf32>
    %cst_148 = arith.constant dense<0.000000e+00> : vector<2x128xf32>
    %1200 = tpu.matmul %1196, %1146, %cst_148 {dimension_numbers = #tpu.dot_dimension_numbers<[1], [0], [0], [1], [0, 0, 1, 1], [], []>} : vector<2x32xf32>, vector<32x128xf32>, vector<2x128xf32> -> vector<2x128xf32>
    %1201 = arith.addf %1199, %1200 : vector<2x128xf32>
    %1202 = vector.extract_strided_slice %1201 {offsets = [0, 0], sizes = [2, 96], strides = [1, 1]} : vector<2x128xf32> to vector<2x96xf32>
    %1203 = arith.negf %1202 : vector<2x96xf32>
    %1204 = math.exp %1203 : vector<2x96xf32>
    %cst_149 = arith.constant 1.000000e+00 : f32
    %1205 = vector.broadcast %cst_149 : f32 to vector<2x96xf32>
    %1206 = arith.addf %1205, %1204 : vector<2x96xf32>
    %1207 = arith.divf %1205, %1206 : vector<2x96xf32>
    %1208 = vector.extract_strided_slice %1207 {offsets = [0, 0], sizes = [2, 32], strides = [1, 1]} : vector<2x96xf32> to vector<2x32xf32>
    %1209 = vector.extract_strided_slice %1207 {offsets = [0, 32], sizes = [2, 32], strides = [1, 1]} : vector<2x96xf32> to vector<2x32xf32>
    %1210 = vector.extract_strided_slice %1207 {offsets = [0, 64], sizes = [2, 32], strides = [1, 1]} : vector<2x96xf32> to vector<2x32xf32>
    %1211 = vector.extract_strided_slice %1201 {offsets = [0, 96], sizes = [2, 32], strides = [1, 1]} : vector<2x128xf32> to vector<2x32xf32>
    %1212 = math.tanh %1211 : vector<2x32xf32>
    %1213 = arith.mulf %1209, %1194 : vector<2x32xf32>
    %1214 = arith.mulf %1208, %1212 : vector<2x32xf32>
    %1215 = arith.addf %1213, %1214 : vector<2x32xf32>
    %1216 = math.tanh %1215 : vector<2x32xf32>
    %1217 = arith.mulf %1210, %1216 : vector<2x32xf32>
    %1218 = vector.extract_strided_slice %1150 {offsets = [6, 0], sizes = [2, 128], strides = [1, 1]} : vector<32x128xf32> to vector<2x128xf32>
    %1219 = vector.extract_strided_slice %1151 {offsets = [24, 0], sizes = [2, 128], strides = [1, 1]} : vector<32x128xf32> to vector<2x128xf32>
    %1220 = arith.addf %1218, %1219 : vector<2x128xf32>
    %cst_150 = arith.constant dense<0.000000e+00> : vector<2x128xf32>
    %1221 = tpu.matmul %1217, %1146, %cst_150 {dimension_numbers = #tpu.dot_dimension_numbers<[1], [0], [0], [1], [0, 0, 1, 1], [], []>} : vector<2x32xf32>, vector<32x128xf32>, vector<2x128xf32> -> vector<2x128xf32>
    %1222 = arith.addf %1220, %1221 : vector<2x128xf32>
    %1223 = vector.extract_strided_slice %1222 {offsets = [0, 0], sizes = [2, 96], strides = [1, 1]} : vector<2x128xf32> to vector<2x96xf32>
    %1224 = arith.negf %1223 : vector<2x96xf32>
    %1225 = math.exp %1224 : vector<2x96xf32>
    %cst_151 = arith.constant 1.000000e+00 : f32
    %1226 = vector.broadcast %cst_151 : f32 to vector<2x96xf32>
    %1227 = arith.addf %1226, %1225 : vector<2x96xf32>
    %1228 = arith.divf %1226, %1227 : vector<2x96xf32>
    %1229 = vector.extract_strided_slice %1228 {offsets = [0, 0], sizes = [2, 32], strides = [1, 1]} : vector<2x96xf32> to vector<2x32xf32>
    %1230 = vector.extract_strided_slice %1228 {offsets = [0, 32], sizes = [2, 32], strides = [1, 1]} : vector<2x96xf32> to vector<2x32xf32>
    %1231 = vector.extract_strided_slice %1228 {offsets = [0, 64], sizes = [2, 32], strides = [1, 1]} : vector<2x96xf32> to vector<2x32xf32>
    %1232 = vector.extract_strided_slice %1222 {offsets = [0, 96], sizes = [2, 32], strides = [1, 1]} : vector<2x128xf32> to vector<2x32xf32>
    %1233 = math.tanh %1232 : vector<2x32xf32>
    %1234 = arith.mulf %1230, %1215 : vector<2x32xf32>
    %1235 = arith.mulf %1229, %1233 : vector<2x32xf32>
    %1236 = arith.addf %1234, %1235 : vector<2x32xf32>
    %1237 = math.tanh %1236 : vector<2x32xf32>
    %1238 = arith.mulf %1231, %1237 : vector<2x32xf32>
    %1239 = vector.extract_strided_slice %1150 {offsets = [8, 0], sizes = [2, 128], strides = [1, 1]} : vector<32x128xf32> to vector<2x128xf32>
    %1240 = vector.extract_strided_slice %1151 {offsets = [22, 0], sizes = [2, 128], strides = [1, 1]} : vector<32x128xf32> to vector<2x128xf32>
    %1241 = arith.addf %1239, %1240 : vector<2x128xf32>
    %cst_152 = arith.constant dense<0.000000e+00> : vector<2x128xf32>
    %1242 = tpu.matmul %1238, %1146, %cst_152 {dimension_numbers = #tpu.dot_dimension_numbers<[1], [0], [0], [1], [0, 0, 1, 1], [], []>} : vector<2x32xf32>, vector<32x128xf32>, vector<2x128xf32> -> vector<2x128xf32>
    %1243 = arith.addf %1241, %1242 : vector<2x128xf32>
    %1244 = vector.extract_strided_slice %1243 {offsets = [0, 0], sizes = [2, 96], strides = [1, 1]} : vector<2x128xf32> to vector<2x96xf32>
    %1245 = arith.negf %1244 : vector<2x96xf32>
    %1246 = math.exp %1245 : vector<2x96xf32>
    %cst_153 = arith.constant 1.000000e+00 : f32
    %1247 = vector.broadcast %cst_153 : f32 to vector<2x96xf32>
    %1248 = arith.addf %1247, %1246 : vector<2x96xf32>
    %1249 = arith.divf %1247, %1248 : vector<2x96xf32>
    %1250 = vector.extract_strided_slice %1249 {offsets = [0, 0], sizes = [2, 32], strides = [1, 1]} : vector<2x96xf32> to vector<2x32xf32>
    %1251 = vector.extract_strided_slice %1249 {offsets = [0, 32], sizes = [2, 32], strides = [1, 1]} : vector<2x96xf32> to vector<2x32xf32>
    %1252 = vector.extract_strided_slice %1249 {offsets = [0, 64], sizes = [2, 32], strides = [1, 1]} : vector<2x96xf32> to vector<2x32xf32>
    %1253 = vector.extract_strided_slice %1243 {offsets = [0, 96], sizes = [2, 32], strides = [1, 1]} : vector<2x128xf32> to vector<2x32xf32>
    %1254 = math.tanh %1253 : vector<2x32xf32>
    %1255 = arith.mulf %1251, %1236 : vector<2x32xf32>
    %1256 = arith.mulf %1250, %1254 : vector<2x32xf32>
    %1257 = arith.addf %1255, %1256 : vector<2x32xf32>
    %1258 = math.tanh %1257 : vector<2x32xf32>
    %1259 = arith.mulf %1252, %1258 : vector<2x32xf32>
    %1260 = vector.extract_strided_slice %1150 {offsets = [10, 0], sizes = [2, 128], strides = [1, 1]} : vector<32x128xf32> to vector<2x128xf32>
    %1261 = vector.extract_strided_slice %1151 {offsets = [20, 0], sizes = [2, 128], strides = [1, 1]} : vector<32x128xf32> to vector<2x128xf32>
    %1262 = arith.addf %1260, %1261 : vector<2x128xf32>
    %cst_154 = arith.constant dense<0.000000e+00> : vector<2x128xf32>
    %1263 = tpu.matmul %1259, %1146, %cst_154 {dimension_numbers = #tpu.dot_dimension_numbers<[1], [0], [0], [1], [0, 0, 1, 1], [], []>} : vector<2x32xf32>, vector<32x128xf32>, vector<2x128xf32> -> vector<2x128xf32>
    %1264 = arith.addf %1262, %1263 : vector<2x128xf32>
    %1265 = vector.extract_strided_slice %1264 {offsets = [0, 0], sizes = [2, 96], strides = [1, 1]} : vector<2x128xf32> to vector<2x96xf32>
    %1266 = arith.negf %1265 : vector<2x96xf32>
    %1267 = math.exp %1266 : vector<2x96xf32>
    %cst_155 = arith.constant 1.000000e+00 : f32
    %1268 = vector.broadcast %cst_155 : f32 to vector<2x96xf32>
    %1269 = arith.addf %1268, %1267 : vector<2x96xf32>
    %1270 = arith.divf %1268, %1269 : vector<2x96xf32>
    %1271 = vector.extract_strided_slice %1270 {offsets = [0, 0], sizes = [2, 32], strides = [1, 1]} : vector<2x96xf32> to vector<2x32xf32>
    %1272 = vector.extract_strided_slice %1270 {offsets = [0, 32], sizes = [2, 32], strides = [1, 1]} : vector<2x96xf32> to vector<2x32xf32>
    %1273 = vector.extract_strided_slice %1270 {offsets = [0, 64], sizes = [2, 32], strides = [1, 1]} : vector<2x96xf32> to vector<2x32xf32>
    %1274 = vector.extract_strided_slice %1264 {offsets = [0, 96], sizes = [2, 32], strides = [1, 1]} : vector<2x128xf32> to vector<2x32xf32>
    %1275 = math.tanh %1274 : vector<2x32xf32>
    %1276 = arith.mulf %1272, %1257 : vector<2x32xf32>
    %1277 = arith.mulf %1271, %1275 : vector<2x32xf32>
    %1278 = arith.addf %1276, %1277 : vector<2x32xf32>
    %1279 = math.tanh %1278 : vector<2x32xf32>
    %1280 = arith.mulf %1273, %1279 : vector<2x32xf32>
    %1281 = vector.extract_strided_slice %1150 {offsets = [12, 0], sizes = [2, 128], strides = [1, 1]} : vector<32x128xf32> to vector<2x128xf32>
    %1282 = vector.extract_strided_slice %1151 {offsets = [18, 0], sizes = [2, 128], strides = [1, 1]} : vector<32x128xf32> to vector<2x128xf32>
    %1283 = arith.addf %1281, %1282 : vector<2x128xf32>
    %cst_156 = arith.constant dense<0.000000e+00> : vector<2x128xf32>
    %1284 = tpu.matmul %1280, %1146, %cst_156 {dimension_numbers = #tpu.dot_dimension_numbers<[1], [0], [0], [1], [0, 0, 1, 1], [], []>} : vector<2x32xf32>, vector<32x128xf32>, vector<2x128xf32> -> vector<2x128xf32>
    %1285 = arith.addf %1283, %1284 : vector<2x128xf32>
    %1286 = vector.extract_strided_slice %1285 {offsets = [0, 0], sizes = [2, 96], strides = [1, 1]} : vector<2x128xf32> to vector<2x96xf32>
    %1287 = arith.negf %1286 : vector<2x96xf32>
    %1288 = math.exp %1287 : vector<2x96xf32>
    %cst_157 = arith.constant 1.000000e+00 : f32
    %1289 = vector.broadcast %cst_157 : f32 to vector<2x96xf32>
    %1290 = arith.addf %1289, %1288 : vector<2x96xf32>
    %1291 = arith.divf %1289, %1290 : vector<2x96xf32>
    %1292 = vector.extract_strided_slice %1291 {offsets = [0, 0], sizes = [2, 32], strides = [1, 1]} : vector<2x96xf32> to vector<2x32xf32>
    %1293 = vector.extract_strided_slice %1291 {offsets = [0, 32], sizes = [2, 32], strides = [1, 1]} : vector<2x96xf32> to vector<2x32xf32>
    %1294 = vector.extract_strided_slice %1291 {offsets = [0, 64], sizes = [2, 32], strides = [1, 1]} : vector<2x96xf32> to vector<2x32xf32>
    %1295 = vector.extract_strided_slice %1285 {offsets = [0, 96], sizes = [2, 32], strides = [1, 1]} : vector<2x128xf32> to vector<2x32xf32>
    %1296 = math.tanh %1295 : vector<2x32xf32>
    %1297 = arith.mulf %1293, %1278 : vector<2x32xf32>
    %1298 = arith.mulf %1292, %1296 : vector<2x32xf32>
    %1299 = arith.addf %1297, %1298 : vector<2x32xf32>
    %1300 = math.tanh %1299 : vector<2x32xf32>
    %1301 = arith.mulf %1294, %1300 : vector<2x32xf32>
    %1302 = vector.extract_strided_slice %1150 {offsets = [14, 0], sizes = [2, 128], strides = [1, 1]} : vector<32x128xf32> to vector<2x128xf32>
    %1303 = vector.extract_strided_slice %1151 {offsets = [16, 0], sizes = [2, 128], strides = [1, 1]} : vector<32x128xf32> to vector<2x128xf32>
    %1304 = arith.addf %1302, %1303 : vector<2x128xf32>
    %cst_158 = arith.constant dense<0.000000e+00> : vector<2x128xf32>
    %1305 = tpu.matmul %1301, %1146, %cst_158 {dimension_numbers = #tpu.dot_dimension_numbers<[1], [0], [0], [1], [0, 0, 1, 1], [], []>} : vector<2x32xf32>, vector<32x128xf32>, vector<2x128xf32> -> vector<2x128xf32>
    %1306 = arith.addf %1304, %1305 : vector<2x128xf32>
    %1307 = vector.extract_strided_slice %1306 {offsets = [0, 0], sizes = [2, 96], strides = [1, 1]} : vector<2x128xf32> to vector<2x96xf32>
    %1308 = arith.negf %1307 : vector<2x96xf32>
    %1309 = math.exp %1308 : vector<2x96xf32>
    %cst_159 = arith.constant 1.000000e+00 : f32
    %1310 = vector.broadcast %cst_159 : f32 to vector<2x96xf32>
    %1311 = arith.addf %1310, %1309 : vector<2x96xf32>
    %1312 = arith.divf %1310, %1311 : vector<2x96xf32>
    %1313 = vector.extract_strided_slice %1312 {offsets = [0, 0], sizes = [2, 32], strides = [1, 1]} : vector<2x96xf32> to vector<2x32xf32>
    %1314 = vector.extract_strided_slice %1312 {offsets = [0, 32], sizes = [2, 32], strides = [1, 1]} : vector<2x96xf32> to vector<2x32xf32>
    %1315 = vector.extract_strided_slice %1312 {offsets = [0, 64], sizes = [2, 32], strides = [1, 1]} : vector<2x96xf32> to vector<2x32xf32>
    %1316 = vector.extract_strided_slice %1306 {offsets = [0, 96], sizes = [2, 32], strides = [1, 1]} : vector<2x128xf32> to vector<2x32xf32>
    %1317 = math.tanh %1316 : vector<2x32xf32>
    %1318 = arith.mulf %1314, %1299 : vector<2x32xf32>
    %1319 = arith.mulf %1313, %1317 : vector<2x32xf32>
    %1320 = arith.addf %1318, %1319 : vector<2x32xf32>
    %1321 = math.tanh %1320 : vector<2x32xf32>
    %1322 = arith.mulf %1315, %1321 : vector<2x32xf32>
    %1323 = vector.extract_strided_slice %1322 {offsets = [0, 0], sizes = [2, 16], strides = [1, 1]} : vector<2x32xf32> to vector<2x16xf32>
    %1324 = vector.extract_strided_slice %1150 {offsets = [16, 0], sizes = [2, 128], strides = [1, 1]} : vector<32x128xf32> to vector<2x128xf32>
    %1325 = vector.extract_strided_slice %1151 {offsets = [14, 0], sizes = [2, 128], strides = [1, 1]} : vector<32x128xf32> to vector<2x128xf32>
    %1326 = arith.addf %1324, %1325 : vector<2x128xf32>
    %cst_160 = arith.constant dense<0.000000e+00> : vector<2x128xf32>
    %1327 = tpu.matmul %1322, %1146, %cst_160 {dimension_numbers = #tpu.dot_dimension_numbers<[1], [0], [0], [1], [0, 0, 1, 1], [], []>} : vector<2x32xf32>, vector<32x128xf32>, vector<2x128xf32> -> vector<2x128xf32>
    %1328 = arith.addf %1326, %1327 : vector<2x128xf32>
    %1329 = vector.extract_strided_slice %1328 {offsets = [0, 0], sizes = [2, 96], strides = [1, 1]} : vector<2x128xf32> to vector<2x96xf32>
    %1330 = arith.negf %1329 : vector<2x96xf32>
    %1331 = math.exp %1330 : vector<2x96xf32>
    %cst_161 = arith.constant 1.000000e+00 : f32
    %1332 = vector.broadcast %cst_161 : f32 to vector<2x96xf32>
    %1333 = arith.addf %1332, %1331 : vector<2x96xf32>
    %1334 = arith.divf %1332, %1333 : vector<2x96xf32>
    %1335 = vector.extract_strided_slice %1334 {offsets = [0, 0], sizes = [2, 32], strides = [1, 1]} : vector<2x96xf32> to vector<2x32xf32>
    %1336 = vector.extract_strided_slice %1334 {offsets = [0, 32], sizes = [2, 32], strides = [1, 1]} : vector<2x96xf32> to vector<2x32xf32>
    %1337 = vector.extract_strided_slice %1334 {offsets = [0, 64], sizes = [2, 32], strides = [1, 1]} : vector<2x96xf32> to vector<2x32xf32>
    %1338 = vector.extract_strided_slice %1328 {offsets = [0, 96], sizes = [2, 32], strides = [1, 1]} : vector<2x128xf32> to vector<2x32xf32>
    %1339 = math.tanh %1338 : vector<2x32xf32>
    %1340 = arith.mulf %1336, %1320 : vector<2x32xf32>
    %1341 = arith.mulf %1335, %1339 : vector<2x32xf32>
    %1342 = arith.addf %1340, %1341 : vector<2x32xf32>
    %1343 = math.tanh %1342 : vector<2x32xf32>
    %1344 = arith.mulf %1337, %1343 : vector<2x32xf32>
    %1345 = vector.extract_strided_slice %1344 {offsets = [0, 16], sizes = [2, 16], strides = [1, 1]} : vector<2x32xf32> to vector<2x16xf32>
    %1346 = vector.extract_strided_slice %1150 {offsets = [18, 0], sizes = [2, 128], strides = [1, 1]} : vector<32x128xf32> to vector<2x128xf32>
    %1347 = vector.extract_strided_slice %1151 {offsets = [12, 0], sizes = [2, 128], strides = [1, 1]} : vector<32x128xf32> to vector<2x128xf32>
    %1348 = arith.addf %1346, %1347 : vector<2x128xf32>
    %cst_162 = arith.constant dense<0.000000e+00> : vector<2x128xf32>
    %1349 = tpu.matmul %1344, %1146, %cst_162 {dimension_numbers = #tpu.dot_dimension_numbers<[1], [0], [0], [1], [0, 0, 1, 1], [], []>} : vector<2x32xf32>, vector<32x128xf32>, vector<2x128xf32> -> vector<2x128xf32>
    %1350 = arith.addf %1348, %1349 : vector<2x128xf32>
    %1351 = vector.extract_strided_slice %1350 {offsets = [0, 0], sizes = [2, 96], strides = [1, 1]} : vector<2x128xf32> to vector<2x96xf32>
    %1352 = arith.negf %1351 : vector<2x96xf32>
    %1353 = math.exp %1352 : vector<2x96xf32>
    %cst_163 = arith.constant 1.000000e+00 : f32
    %1354 = vector.broadcast %cst_163 : f32 to vector<2x96xf32>
    %1355 = arith.addf %1354, %1353 : vector<2x96xf32>
    %1356 = arith.divf %1354, %1355 : vector<2x96xf32>
    %1357 = vector.extract_strided_slice %1356 {offsets = [0, 0], sizes = [2, 32], strides = [1, 1]} : vector<2x96xf32> to vector<2x32xf32>
    %1358 = vector.extract_strided_slice %1356 {offsets = [0, 32], sizes = [2, 32], strides = [1, 1]} : vector<2x96xf32> to vector<2x32xf32>
    %1359 = vector.extract_strided_slice %1356 {offsets = [0, 64], sizes = [2, 32], strides = [1, 1]} : vector<2x96xf32> to vector<2x32xf32>
    %1360 = vector.extract_strided_slice %1350 {offsets = [0, 96], sizes = [2, 32], strides = [1, 1]} : vector<2x128xf32> to vector<2x32xf32>
    %1361 = math.tanh %1360 : vector<2x32xf32>
    %1362 = arith.mulf %1358, %1342 : vector<2x32xf32>
    %1363 = arith.mulf %1357, %1361 : vector<2x32xf32>
    %1364 = arith.addf %1362, %1363 : vector<2x32xf32>
    %1365 = math.tanh %1364 : vector<2x32xf32>
    %1366 = arith.mulf %1359, %1365 : vector<2x32xf32>
    %1367 = vector.extract_strided_slice %1150 {offsets = [20, 0], sizes = [2, 128], strides = [1, 1]} : vector<32x128xf32> to vector<2x128xf32>
    %1368 = vector.extract_strided_slice %1151 {offsets = [10, 0], sizes = [2, 128], strides = [1, 1]} : vector<32x128xf32> to vector<2x128xf32>
    %1369 = arith.addf %1367, %1368 : vector<2x128xf32>
    %cst_164 = arith.constant dense<0.000000e+00> : vector<2x128xf32>
    %1370 = tpu.matmul %1366, %1146, %cst_164 {dimension_numbers = #tpu.dot_dimension_numbers<[1], [0], [0], [1], [0, 0, 1, 1], [], []>} : vector<2x32xf32>, vector<32x128xf32>, vector<2x128xf32> -> vector<2x128xf32>
    %1371 = arith.addf %1369, %1370 : vector<2x128xf32>
    %1372 = vector.extract_strided_slice %1371 {offsets = [0, 0], sizes = [2, 96], strides = [1, 1]} : vector<2x128xf32> to vector<2x96xf32>
    %1373 = arith.negf %1372 : vector<2x96xf32>
    %1374 = math.exp %1373 : vector<2x96xf32>
    %cst_165 = arith.constant 1.000000e+00 : f32
    %1375 = vector.broadcast %cst_165 : f32 to vector<2x96xf32>
    %1376 = arith.addf %1375, %1374 : vector<2x96xf32>
    %1377 = arith.divf %1375, %1376 : vector<2x96xf32>
    %1378 = vector.extract_strided_slice %1377 {offsets = [0, 0], sizes = [2, 32], strides = [1, 1]} : vector<2x96xf32> to vector<2x32xf32>
    %1379 = vector.extract_strided_slice %1377 {offsets = [0, 32], sizes = [2, 32], strides = [1, 1]} : vector<2x96xf32> to vector<2x32xf32>
    %1380 = vector.extract_strided_slice %1377 {offsets = [0, 64], sizes = [2, 32], strides = [1, 1]} : vector<2x96xf32> to vector<2x32xf32>
    %1381 = vector.extract_strided_slice %1371 {offsets = [0, 96], sizes = [2, 32], strides = [1, 1]} : vector<2x128xf32> to vector<2x32xf32>
    %1382 = math.tanh %1381 : vector<2x32xf32>
    %1383 = arith.mulf %1379, %1364 : vector<2x32xf32>
    %1384 = arith.mulf %1378, %1382 : vector<2x32xf32>
    %1385 = arith.addf %1383, %1384 : vector<2x32xf32>
    %1386 = math.tanh %1385 : vector<2x32xf32>
    %1387 = arith.mulf %1380, %1386 : vector<2x32xf32>
    %1388 = vector.extract_strided_slice %1150 {offsets = [22, 0], sizes = [2, 128], strides = [1, 1]} : vector<32x128xf32> to vector<2x128xf32>
    %1389 = vector.extract_strided_slice %1151 {offsets = [8, 0], sizes = [2, 128], strides = [1, 1]} : vector<32x128xf32> to vector<2x128xf32>
    %1390 = arith.addf %1388, %1389 : vector<2x128xf32>
    %cst_166 = arith.constant dense<0.000000e+00> : vector<2x128xf32>
    %1391 = tpu.matmul %1387, %1146, %cst_166 {dimension_numbers = #tpu.dot_dimension_numbers<[1], [0], [0], [1], [0, 0, 1, 1], [], []>} : vector<2x32xf32>, vector<32x128xf32>, vector<2x128xf32> -> vector<2x128xf32>
    %1392 = arith.addf %1390, %1391 : vector<2x128xf32>
    %1393 = vector.extract_strided_slice %1392 {offsets = [0, 0], sizes = [2, 96], strides = [1, 1]} : vector<2x128xf32> to vector<2x96xf32>
    %1394 = arith.negf %1393 : vector<2x96xf32>
    %1395 = math.exp %1394 : vector<2x96xf32>
    %cst_167 = arith.constant 1.000000e+00 : f32
    %1396 = vector.broadcast %cst_167 : f32 to vector<2x96xf32>
    %1397 = arith.addf %1396, %1395 : vector<2x96xf32>
    %1398 = arith.divf %1396, %1397 : vector<2x96xf32>
    %1399 = vector.extract_strided_slice %1398 {offsets = [0, 0], sizes = [2, 32], strides = [1, 1]} : vector<2x96xf32> to vector<2x32xf32>
    %1400 = vector.extract_strided_slice %1398 {offsets = [0, 32], sizes = [2, 32], strides = [1, 1]} : vector<2x96xf32> to vector<2x32xf32>
    %1401 = vector.extract_strided_slice %1398 {offsets = [0, 64], sizes = [2, 32], strides = [1, 1]} : vector<2x96xf32> to vector<2x32xf32>
    %1402 = vector.extract_strided_slice %1392 {offsets = [0, 96], sizes = [2, 32], strides = [1, 1]} : vector<2x128xf32> to vector<2x32xf32>
    %1403 = math.tanh %1402 : vector<2x32xf32>
    %1404 = arith.mulf %1400, %1385 : vector<2x32xf32>
    %1405 = arith.mulf %1399, %1403 : vector<2x32xf32>
    %1406 = arith.addf %1404, %1405 : vector<2x32xf32>
    %1407 = math.tanh %1406 : vector<2x32xf32>
    %1408 = arith.mulf %1401, %1407 : vector<2x32xf32>
    %1409 = vector.extract_strided_slice %1150 {offsets = [24, 0], sizes = [2, 128], strides = [1, 1]} : vector<32x128xf32> to vector<2x128xf32>
    %1410 = vector.extract_strided_slice %1151 {offsets = [6, 0], sizes = [2, 128], strides = [1, 1]} : vector<32x128xf32> to vector<2x128xf32>
    %1411 = arith.addf %1409, %1410 : vector<2x128xf32>
    %cst_168 = arith.constant dense<0.000000e+00> : vector<2x128xf32>
    %1412 = tpu.matmul %1408, %1146, %cst_168 {dimension_numbers = #tpu.dot_dimension_numbers<[1], [0], [0], [1], [0, 0, 1, 1], [], []>} : vector<2x32xf32>, vector<32x128xf32>, vector<2x128xf32> -> vector<2x128xf32>
    %1413 = arith.addf %1411, %1412 : vector<2x128xf32>
    %1414 = vector.extract_strided_slice %1413 {offsets = [0, 0], sizes = [2, 96], strides = [1, 1]} : vector<2x128xf32> to vector<2x96xf32>
    %1415 = arith.negf %1414 : vector<2x96xf32>
    %1416 = math.exp %1415 : vector<2x96xf32>
    %cst_169 = arith.constant 1.000000e+00 : f32
    %1417 = vector.broadcast %cst_169 : f32 to vector<2x96xf32>
    %1418 = arith.addf %1417, %1416 : vector<2x96xf32>
    %1419 = arith.divf %1417, %1418 : vector<2x96xf32>
    %1420 = vector.extract_strided_slice %1419 {offsets = [0, 0], sizes = [2, 32], strides = [1, 1]} : vector<2x96xf32> to vector<2x32xf32>
    %1421 = vector.extract_strided_slice %1419 {offsets = [0, 32], sizes = [2, 32], strides = [1, 1]} : vector<2x96xf32> to vector<2x32xf32>
    %1422 = vector.extract_strided_slice %1419 {offsets = [0, 64], sizes = [2, 32], strides = [1, 1]} : vector<2x96xf32> to vector<2x32xf32>
    %1423 = vector.extract_strided_slice %1413 {offsets = [0, 96], sizes = [2, 32], strides = [1, 1]} : vector<2x128xf32> to vector<2x32xf32>
    %1424 = math.tanh %1423 : vector<2x32xf32>
    %1425 = arith.mulf %1421, %1406 : vector<2x32xf32>
    %1426 = arith.mulf %1420, %1424 : vector<2x32xf32>
    %1427 = arith.addf %1425, %1426 : vector<2x32xf32>
    %1428 = math.tanh %1427 : vector<2x32xf32>
    %1429 = arith.mulf %1422, %1428 : vector<2x32xf32>
    %1430 = vector.extract_strided_slice %1150 {offsets = [26, 0], sizes = [2, 128], strides = [1, 1]} : vector<32x128xf32> to vector<2x128xf32>
    %1431 = vector.extract_strided_slice %1151 {offsets = [4, 0], sizes = [2, 128], strides = [1, 1]} : vector<32x128xf32> to vector<2x128xf32>
    %1432 = arith.addf %1430, %1431 : vector<2x128xf32>
    %cst_170 = arith.constant dense<0.000000e+00> : vector<2x128xf32>
    %1433 = tpu.matmul %1429, %1146, %cst_170 {dimension_numbers = #tpu.dot_dimension_numbers<[1], [0], [0], [1], [0, 0, 1, 1], [], []>} : vector<2x32xf32>, vector<32x128xf32>, vector<2x128xf32> -> vector<2x128xf32>
    %1434 = arith.addf %1432, %1433 : vector<2x128xf32>
    %1435 = vector.extract_strided_slice %1434 {offsets = [0, 0], sizes = [2, 96], strides = [1, 1]} : vector<2x128xf32> to vector<2x96xf32>
    %1436 = arith.negf %1435 : vector<2x96xf32>
    %1437 = math.exp %1436 : vector<2x96xf32>
    %cst_171 = arith.constant 1.000000e+00 : f32
    %1438 = vector.broadcast %cst_171 : f32 to vector<2x96xf32>
    %1439 = arith.addf %1438, %1437 : vector<2x96xf32>
    %1440 = arith.divf %1438, %1439 : vector<2x96xf32>
    %1441 = vector.extract_strided_slice %1440 {offsets = [0, 0], sizes = [2, 32], strides = [1, 1]} : vector<2x96xf32> to vector<2x32xf32>
    %1442 = vector.extract_strided_slice %1440 {offsets = [0, 32], sizes = [2, 32], strides = [1, 1]} : vector<2x96xf32> to vector<2x32xf32>
    %1443 = vector.extract_strided_slice %1440 {offsets = [0, 64], sizes = [2, 32], strides = [1, 1]} : vector<2x96xf32> to vector<2x32xf32>
    %1444 = vector.extract_strided_slice %1434 {offsets = [0, 96], sizes = [2, 32], strides = [1, 1]} : vector<2x128xf32> to vector<2x32xf32>
    %1445 = math.tanh %1444 : vector<2x32xf32>
    %1446 = arith.mulf %1442, %1427 : vector<2x32xf32>
    %1447 = arith.mulf %1441, %1445 : vector<2x32xf32>
    %1448 = arith.addf %1446, %1447 : vector<2x32xf32>
    %1449 = math.tanh %1448 : vector<2x32xf32>
    %1450 = arith.mulf %1443, %1449 : vector<2x32xf32>
    %1451 = vector.extract_strided_slice %1150 {offsets = [28, 0], sizes = [2, 128], strides = [1, 1]} : vector<32x128xf32> to vector<2x128xf32>
    %1452 = vector.extract_strided_slice %1151 {offsets = [2, 0], sizes = [2, 128], strides = [1, 1]} : vector<32x128xf32> to vector<2x128xf32>
    %1453 = arith.addf %1451, %1452 : vector<2x128xf32>
    %cst_172 = arith.constant dense<0.000000e+00> : vector<2x128xf32>
    %1454 = tpu.matmul %1450, %1146, %cst_172 {dimension_numbers = #tpu.dot_dimension_numbers<[1], [0], [0], [1], [0, 0, 1, 1], [], []>} : vector<2x32xf32>, vector<32x128xf32>, vector<2x128xf32> -> vector<2x128xf32>
    %1455 = arith.addf %1453, %1454 : vector<2x128xf32>
    %1456 = vector.extract_strided_slice %1455 {offsets = [0, 0], sizes = [2, 96], strides = [1, 1]} : vector<2x128xf32> to vector<2x96xf32>
    %1457 = arith.negf %1456 : vector<2x96xf32>
    %1458 = math.exp %1457 : vector<2x96xf32>
    %cst_173 = arith.constant 1.000000e+00 : f32
    %1459 = vector.broadcast %cst_173 : f32 to vector<2x96xf32>
    %1460 = arith.addf %1459, %1458 : vector<2x96xf32>
    %1461 = arith.divf %1459, %1460 : vector<2x96xf32>
    %1462 = vector.extract_strided_slice %1461 {offsets = [0, 0], sizes = [2, 32], strides = [1, 1]} : vector<2x96xf32> to vector<2x32xf32>
    %1463 = vector.extract_strided_slice %1461 {offsets = [0, 32], sizes = [2, 32], strides = [1, 1]} : vector<2x96xf32> to vector<2x32xf32>
    %1464 = vector.extract_strided_slice %1461 {offsets = [0, 64], sizes = [2, 32], strides = [1, 1]} : vector<2x96xf32> to vector<2x32xf32>
    %1465 = vector.extract_strided_slice %1455 {offsets = [0, 96], sizes = [2, 32], strides = [1, 1]} : vector<2x128xf32> to vector<2x32xf32>
    %1466 = math.tanh %1465 : vector<2x32xf32>
    %1467 = arith.mulf %1463, %1448 : vector<2x32xf32>
    %1468 = arith.mulf %1462, %1466 : vector<2x32xf32>
    %1469 = arith.addf %1467, %1468 : vector<2x32xf32>
    %1470 = math.tanh %1469 : vector<2x32xf32>
    %1471 = arith.mulf %1464, %1470 : vector<2x32xf32>
    %1472 = vector.extract_strided_slice %1150 {offsets = [30, 0], sizes = [2, 128], strides = [1, 1]} : vector<32x128xf32> to vector<2x128xf32>
    %1473 = vector.extract_strided_slice %1151 {offsets = [0, 0], sizes = [2, 128], strides = [1, 1]} : vector<32x128xf32> to vector<2x128xf32>
    %1474 = arith.addf %1472, %1473 : vector<2x128xf32>
    %cst_174 = arith.constant dense<0.000000e+00> : vector<2x128xf32>
    %1475 = tpu.matmul %1471, %1146, %cst_174 {dimension_numbers = #tpu.dot_dimension_numbers<[1], [0], [0], [1], [0, 0, 1, 1], [], []>} : vector<2x32xf32>, vector<32x128xf32>, vector<2x128xf32> -> vector<2x128xf32>
    %1476 = arith.addf %1474, %1475 : vector<2x128xf32>
    %1477 = vector.extract_strided_slice %1476 {offsets = [0, 0], sizes = [2, 96], strides = [1, 1]} : vector<2x128xf32> to vector<2x96xf32>
    %1478 = arith.negf %1477 : vector<2x96xf32>
    %1479 = math.exp %1478 : vector<2x96xf32>
    %cst_175 = arith.constant 1.000000e+00 : f32
    %1480 = vector.broadcast %cst_175 : f32 to vector<2x96xf32>
    %1481 = arith.addf %1480, %1479 : vector<2x96xf32>
    %1482 = arith.divf %1480, %1481 : vector<2x96xf32>
    %1483 = vector.extract_strided_slice %1482 {offsets = [0, 0], sizes = [2, 32], strides = [1, 1]} : vector<2x96xf32> to vector<2x32xf32>
    %1484 = vector.extract_strided_slice %1482 {offsets = [0, 32], sizes = [2, 32], strides = [1, 1]} : vector<2x96xf32> to vector<2x32xf32>
    %1485 = vector.extract_strided_slice %1482 {offsets = [0, 64], sizes = [2, 32], strides = [1, 1]} : vector<2x96xf32> to vector<2x32xf32>
    %1486 = vector.extract_strided_slice %1476 {offsets = [0, 96], sizes = [2, 32], strides = [1, 1]} : vector<2x128xf32> to vector<2x32xf32>
    %1487 = math.tanh %1486 : vector<2x32xf32>
    %1488 = arith.mulf %1484, %1469 : vector<2x32xf32>
    %1489 = arith.mulf %1483, %1487 : vector<2x32xf32>
    %1490 = arith.addf %1488, %1489 : vector<2x32xf32>
    %1491 = math.tanh %1490 : vector<2x32xf32>
    %1492 = arith.mulf %1485, %1491 : vector<2x32xf32>
    %1493 = vector.extract_strided_slice %1492 {offsets = [0, 0], sizes = [2, 16], strides = [1, 1]} : vector<2x32xf32> to vector<2x16xf32>
    %1494 = tpu.concatenate %1323, %1345 in 1 : vector<2x16xf32>, vector<2x16xf32> -> vector<2x32xf32>
    %1495 = tpu.concatenate %1493, %1175 in 1 : vector<2x16xf32>, vector<2x16xf32> -> vector<2x32xf32>
    %1496 = tpu.concatenate %1494, %1495 in 0 : vector<2x32xf32>, vector<2x32xf32> -> vector<4x32xf32>
    %c0_176 = arith.constant 0 : index
    %c0_177 = arith.constant 0 : index
    %1497 = vector.load %arg17[%c0_176, %c0_177] : memref<32x4xf32, #tpu.memory_space<vmem>>, vector<32x4xf32>
    %c0_178 = arith.constant 0 : index
    %c0_179 = arith.constant 0 : index
    %1498 = vector.load %arg18[%c0_178, %c0_179] : memref<1x4xf32, #tpu.memory_space<vmem>>, vector<1x4xf32>
    %c0_180 = arith.constant 0 : index
    %c0_181 = arith.constant 0 : index
    %1499 = vector.load %arg19[%c0_180, %c0_181] : memref<1x4xf32, #tpu.memory_space<vmem>>, vector<1x4xf32>
    %cst_182 = arith.constant dense<0.000000e+00> : vector<4x4xf32>
    %1500 = tpu.matmul %1496, %1497, %cst_182 {dimension_numbers = #tpu.dot_dimension_numbers<[1], [0], [0], [1], [0, 0, 1, 1], [], []>} : vector<4x32xf32>, vector<32x4xf32>, vector<4x4xf32> -> vector<4x4xf32>
    %1501 = vector.broadcast %1499 : vector<1x4xf32> to vector<4x4xf32>
    %1502 = arith.addf %1500, %1501 : vector<4x4xf32>
    %cst_183 = arith.constant 0.000000e+00 : f32
    %1503 = vector.broadcast %cst_183 : f32 to vector<2x1xf32>
    %cst_184 = arith.constant 0.000000e+00 : f32
    %1504 = vector.broadcast %cst_184 : f32 to vector<2x1xf32>
    %1505 = vector.extract_strided_slice %1502 {offsets = [0, 0], sizes = [2, 4], strides = [1, 1]} : vector<4x4xf32> to vector<2x4xf32>
    %1506 = vector.broadcast %1503 : vector<2x1xf32> to vector<2x4xf32>
    %1507 = vector.broadcast %1498 : vector<1x4xf32> to vector<2x4xf32>
    %1508 = arith.mulf %1506, %1507 : vector<2x4xf32>
    %1509 = arith.addf %1505, %1508 : vector<2x4xf32>
    %1510 = vector.extract_strided_slice %1509 {offsets = [0, 0], sizes = [2, 3], strides = [1, 1]} : vector<2x4xf32> to vector<2x3xf32>
    %1511 = arith.negf %1510 : vector<2x3xf32>
    %1512 = math.exp %1511 : vector<2x3xf32>
    %cst_185 = arith.constant 1.000000e+00 : f32
    %1513 = vector.broadcast %cst_185 : f32 to vector<2x3xf32>
    %1514 = arith.addf %1513, %1512 : vector<2x3xf32>
    %1515 = arith.divf %1513, %1514 : vector<2x3xf32>
    %1516 = vector.extract_strided_slice %1515 {offsets = [0, 0], sizes = [2, 1], strides = [1, 1]} : vector<2x3xf32> to vector<2x1xf32>
    %1517 = vector.extract_strided_slice %1515 {offsets = [0, 1], sizes = [2, 1], strides = [1, 1]} : vector<2x3xf32> to vector<2x1xf32>
    %1518 = vector.extract_strided_slice %1515 {offsets = [0, 2], sizes = [2, 1], strides = [1, 1]} : vector<2x3xf32> to vector<2x1xf32>
    %1519 = vector.extract_strided_slice %1509 {offsets = [0, 3], sizes = [2, 1], strides = [1, 1]} : vector<2x4xf32> to vector<2x1xf32>
    %1520 = math.tanh %1519 : vector<2x1xf32>
    %1521 = arith.mulf %1517, %1504 : vector<2x1xf32>
    %1522 = arith.mulf %1516, %1520 : vector<2x1xf32>
    %1523 = arith.addf %1521, %1522 : vector<2x1xf32>
    %1524 = math.tanh %1523 : vector<2x1xf32>
    %1525 = arith.mulf %1518, %1524 : vector<2x1xf32>
    %1526 = vector.extract_strided_slice %1502 {offsets = [2, 0], sizes = [2, 4], strides = [1, 1]} : vector<4x4xf32> to vector<2x4xf32>
    %1527 = vector.broadcast %1525 : vector<2x1xf32> to vector<2x4xf32>
    %1528 = vector.broadcast %1498 : vector<1x4xf32> to vector<2x4xf32>
    %1529 = arith.mulf %1527, %1528 : vector<2x4xf32>
    %1530 = arith.addf %1526, %1529 : vector<2x4xf32>
    %1531 = vector.extract_strided_slice %1530 {offsets = [0, 0], sizes = [2, 3], strides = [1, 1]} : vector<2x4xf32> to vector<2x3xf32>
    %1532 = arith.negf %1531 : vector<2x3xf32>
    %1533 = math.exp %1532 : vector<2x3xf32>
    %cst_186 = arith.constant 1.000000e+00 : f32
    %1534 = vector.broadcast %cst_186 : f32 to vector<2x3xf32>
    %1535 = arith.addf %1534, %1533 : vector<2x3xf32>
    %1536 = arith.divf %1534, %1535 : vector<2x3xf32>
    %1537 = vector.extract_strided_slice %1536 {offsets = [0, 0], sizes = [2, 1], strides = [1, 1]} : vector<2x3xf32> to vector<2x1xf32>
    %1538 = vector.extract_strided_slice %1536 {offsets = [0, 1], sizes = [2, 1], strides = [1, 1]} : vector<2x3xf32> to vector<2x1xf32>
    %1539 = vector.extract_strided_slice %1536 {offsets = [0, 2], sizes = [2, 1], strides = [1, 1]} : vector<2x3xf32> to vector<2x1xf32>
    %1540 = vector.extract_strided_slice %1530 {offsets = [0, 3], sizes = [2, 1], strides = [1, 1]} : vector<2x4xf32> to vector<2x1xf32>
    %1541 = math.tanh %1540 : vector<2x1xf32>
    %1542 = arith.mulf %1538, %1523 : vector<2x1xf32>
    %1543 = arith.mulf %1537, %1541 : vector<2x1xf32>
    %1544 = arith.addf %1542, %1543 : vector<2x1xf32>
    %1545 = math.tanh %1544 : vector<2x1xf32>
    %1546 = arith.mulf %1539, %1545 : vector<2x1xf32>
    %1547 = tpu.concatenate %1525, %1546 in 0 : vector<2x1xf32>, vector<2x1xf32> -> vector<4x1xf32>
    %c0_187 = arith.constant 0 : index
    %c0_188 = arith.constant 0 : index
    %1548 = vector.load %arg20[%c0_187, %c0_188] : memref<1x4xf32, #tpu.memory_space<vmem>>, vector<1x4xf32>
    %c0_189 = arith.constant 0 : index
    %c0_190 = arith.constant 0 : index
    %1549 = vector.load %arg21[%c0_189, %c0_190] : memref<1x4xf32, #tpu.memory_space<vmem>>, vector<1x4xf32>
    %c0_191 = arith.constant 0 : index
    %c0_192 = arith.constant 0 : index
    %1550 = vector.load %arg22[%c0_191, %c0_192] : memref<1x4xf32, #tpu.memory_space<vmem>>, vector<1x4xf32>
    %1551 = vector.broadcast %1547 : vector<4x1xf32> to vector<4x4xf32>
    %1552 = vector.broadcast %1548 : vector<1x4xf32> to vector<4x4xf32>
    %1553 = arith.mulf %1551, %1552 : vector<4x4xf32>
    %1554 = vector.broadcast %1550 : vector<1x4xf32> to vector<4x4xf32>
    %1555 = arith.addf %1553, %1554 : vector<4x4xf32>
    %cst_193 = arith.constant 0.000000e+00 : f32
    %1556 = vector.broadcast %cst_193 : f32 to vector<2x1xf32>
    %cst_194 = arith.constant 0.000000e+00 : f32
    %1557 = vector.broadcast %cst_194 : f32 to vector<2x1xf32>
    %1558 = vector.extract_strided_slice %1555 {offsets = [0, 0], sizes = [2, 4], strides = [1, 1]} : vector<4x4xf32> to vector<2x4xf32>
    %1559 = vector.broadcast %1556 : vector<2x1xf32> to vector<2x4xf32>
    %1560 = vector.broadcast %1549 : vector<1x4xf32> to vector<2x4xf32>
    %1561 = arith.mulf %1559, %1560 : vector<2x4xf32>
    %1562 = arith.addf %1558, %1561 : vector<2x4xf32>
    %1563 = vector.extract_strided_slice %1562 {offsets = [0, 0], sizes = [2, 3], strides = [1, 1]} : vector<2x4xf32> to vector<2x3xf32>
    %1564 = arith.negf %1563 : vector<2x3xf32>
    %1565 = math.exp %1564 : vector<2x3xf32>
    %cst_195 = arith.constant 1.000000e+00 : f32
    %1566 = vector.broadcast %cst_195 : f32 to vector<2x3xf32>
    %1567 = arith.addf %1566, %1565 : vector<2x3xf32>
    %1568 = arith.divf %1566, %1567 : vector<2x3xf32>
    %1569 = vector.extract_strided_slice %1568 {offsets = [0, 0], sizes = [2, 1], strides = [1, 1]} : vector<2x3xf32> to vector<2x1xf32>
    %1570 = vector.extract_strided_slice %1568 {offsets = [0, 1], sizes = [2, 1], strides = [1, 1]} : vector<2x3xf32> to vector<2x1xf32>
    %1571 = vector.extract_strided_slice %1568 {offsets = [0, 2], sizes = [2, 1], strides = [1, 1]} : vector<2x3xf32> to vector<2x1xf32>
    %1572 = vector.extract_strided_slice %1562 {offsets = [0, 3], sizes = [2, 1], strides = [1, 1]} : vector<2x4xf32> to vector<2x1xf32>
    %1573 = math.tanh %1572 : vector<2x1xf32>
    %1574 = arith.mulf %1570, %1557 : vector<2x1xf32>
    %1575 = arith.mulf %1569, %1573 : vector<2x1xf32>
    %1576 = arith.addf %1574, %1575 : vector<2x1xf32>
    %1577 = math.tanh %1576 : vector<2x1xf32>
    %1578 = arith.mulf %1571, %1577 : vector<2x1xf32>
    %1579 = vector.extract_strided_slice %1555 {offsets = [2, 0], sizes = [2, 4], strides = [1, 1]} : vector<4x4xf32> to vector<2x4xf32>
    %1580 = vector.broadcast %1578 : vector<2x1xf32> to vector<2x4xf32>
    %1581 = vector.broadcast %1549 : vector<1x4xf32> to vector<2x4xf32>
    %1582 = arith.mulf %1580, %1581 : vector<2x4xf32>
    %1583 = arith.addf %1579, %1582 : vector<2x4xf32>
    %1584 = vector.extract_strided_slice %1583 {offsets = [0, 0], sizes = [2, 3], strides = [1, 1]} : vector<2x4xf32> to vector<2x3xf32>
    %1585 = arith.negf %1584 : vector<2x3xf32>
    %1586 = math.exp %1585 : vector<2x3xf32>
    %cst_196 = arith.constant 1.000000e+00 : f32
    %1587 = vector.broadcast %cst_196 : f32 to vector<2x3xf32>
    %1588 = arith.addf %1587, %1586 : vector<2x3xf32>
    %1589 = arith.divf %1587, %1588 : vector<2x3xf32>
    %1590 = vector.extract_strided_slice %1589 {offsets = [0, 0], sizes = [2, 1], strides = [1, 1]} : vector<2x3xf32> to vector<2x1xf32>
    %1591 = vector.extract_strided_slice %1589 {offsets = [0, 1], sizes = [2, 1], strides = [1, 1]} : vector<2x3xf32> to vector<2x1xf32>
    %1592 = vector.extract_strided_slice %1589 {offsets = [0, 2], sizes = [2, 1], strides = [1, 1]} : vector<2x3xf32> to vector<2x1xf32>
    %1593 = vector.extract_strided_slice %1583 {offsets = [0, 3], sizes = [2, 1], strides = [1, 1]} : vector<2x4xf32> to vector<2x1xf32>
    %1594 = math.tanh %1593 : vector<2x1xf32>
    %1595 = arith.mulf %1591, %1576 : vector<2x1xf32>
    %1596 = arith.mulf %1590, %1594 : vector<2x1xf32>
    %1597 = arith.addf %1595, %1596 : vector<2x1xf32>
    %1598 = math.tanh %1597 : vector<2x1xf32>
    %1599 = arith.mulf %1592, %1598 : vector<2x1xf32>
    %1600 = tpu.concatenate %1578, %1599 in 0 : vector<2x1xf32>, vector<2x1xf32> -> vector<4x1xf32>
    %c0_197 = arith.constant 0 : index
    %c0_198 = arith.constant 0 : index
    %1601 = vector.load %arg23[%c0_197, %c0_198] : memref<1x4xf32, #tpu.memory_space<vmem>>, vector<1x4xf32>
    %c0_199 = arith.constant 0 : index
    %c0_200 = arith.constant 0 : index
    %1602 = vector.load %arg24[%c0_199, %c0_200] : memref<1x4xf32, #tpu.memory_space<vmem>>, vector<1x4xf32>
    %c0_201 = arith.constant 0 : index
    %c0_202 = arith.constant 0 : index
    %1603 = vector.load %arg25[%c0_201, %c0_202] : memref<1x4xf32, #tpu.memory_space<vmem>>, vector<1x4xf32>
    %1604 = vector.broadcast %1600 : vector<4x1xf32> to vector<4x4xf32>
    %1605 = vector.broadcast %1601 : vector<1x4xf32> to vector<4x4xf32>
    %1606 = arith.mulf %1604, %1605 : vector<4x4xf32>
    %1607 = vector.broadcast %1603 : vector<1x4xf32> to vector<4x4xf32>
    %1608 = arith.addf %1606, %1607 : vector<4x4xf32>
    %cst_203 = arith.constant 0.000000e+00 : f32
    %1609 = vector.broadcast %cst_203 : f32 to vector<2x1xf32>
    %cst_204 = arith.constant 0.000000e+00 : f32
    %1610 = vector.broadcast %cst_204 : f32 to vector<2x1xf32>
    %1611 = vector.extract_strided_slice %1608 {offsets = [0, 0], sizes = [2, 4], strides = [1, 1]} : vector<4x4xf32> to vector<2x4xf32>
    %1612 = vector.broadcast %1609 : vector<2x1xf32> to vector<2x4xf32>
    %1613 = vector.broadcast %1602 : vector<1x4xf32> to vector<2x4xf32>
    %1614 = arith.mulf %1612, %1613 : vector<2x4xf32>
    %1615 = arith.addf %1611, %1614 : vector<2x4xf32>
    %1616 = vector.extract_strided_slice %1615 {offsets = [0, 0], sizes = [2, 3], strides = [1, 1]} : vector<2x4xf32> to vector<2x3xf32>
    %1617 = arith.negf %1616 : vector<2x3xf32>
    %1618 = math.exp %1617 : vector<2x3xf32>
    %cst_205 = arith.constant 1.000000e+00 : f32
    %1619 = vector.broadcast %cst_205 : f32 to vector<2x3xf32>
    %1620 = arith.addf %1619, %1618 : vector<2x3xf32>
    %1621 = arith.divf %1619, %1620 : vector<2x3xf32>
    %1622 = vector.extract_strided_slice %1621 {offsets = [0, 0], sizes = [2, 1], strides = [1, 1]} : vector<2x3xf32> to vector<2x1xf32>
    %1623 = vector.extract_strided_slice %1621 {offsets = [0, 1], sizes = [2, 1], strides = [1, 1]} : vector<2x3xf32> to vector<2x1xf32>
    %1624 = vector.extract_strided_slice %1621 {offsets = [0, 2], sizes = [2, 1], strides = [1, 1]} : vector<2x3xf32> to vector<2x1xf32>
    %1625 = vector.extract_strided_slice %1615 {offsets = [0, 3], sizes = [2, 1], strides = [1, 1]} : vector<2x4xf32> to vector<2x1xf32>
    %1626 = math.tanh %1625 : vector<2x1xf32>
    %1627 = arith.mulf %1623, %1610 : vector<2x1xf32>
    %1628 = arith.mulf %1622, %1626 : vector<2x1xf32>
    %1629 = arith.addf %1627, %1628 : vector<2x1xf32>
    %1630 = math.tanh %1629 : vector<2x1xf32>
    %1631 = arith.mulf %1624, %1630 : vector<2x1xf32>
    %1632 = vector.extract_strided_slice %1608 {offsets = [2, 0], sizes = [2, 4], strides = [1, 1]} : vector<4x4xf32> to vector<2x4xf32>
    %1633 = vector.broadcast %1631 : vector<2x1xf32> to vector<2x4xf32>
    %1634 = vector.broadcast %1602 : vector<1x4xf32> to vector<2x4xf32>
    %1635 = arith.mulf %1633, %1634 : vector<2x4xf32>
    %1636 = arith.addf %1632, %1635 : vector<2x4xf32>
    %1637 = vector.extract_strided_slice %1636 {offsets = [0, 0], sizes = [2, 3], strides = [1, 1]} : vector<2x4xf32> to vector<2x3xf32>
    %1638 = arith.negf %1637 : vector<2x3xf32>
    %1639 = math.exp %1638 : vector<2x3xf32>
    %cst_206 = arith.constant 1.000000e+00 : f32
    %1640 = vector.broadcast %cst_206 : f32 to vector<2x3xf32>
    %1641 = arith.addf %1640, %1639 : vector<2x3xf32>
    %1642 = arith.divf %1640, %1641 : vector<2x3xf32>
    %1643 = vector.extract_strided_slice %1642 {offsets = [0, 0], sizes = [2, 1], strides = [1, 1]} : vector<2x3xf32> to vector<2x1xf32>
    %1644 = vector.extract_strided_slice %1642 {offsets = [0, 1], sizes = [2, 1], strides = [1, 1]} : vector<2x3xf32> to vector<2x1xf32>
    %1645 = vector.extract_strided_slice %1642 {offsets = [0, 2], sizes = [2, 1], strides = [1, 1]} : vector<2x3xf32> to vector<2x1xf32>
    %1646 = vector.extract_strided_slice %1636 {offsets = [0, 3], sizes = [2, 1], strides = [1, 1]} : vector<2x4xf32> to vector<2x1xf32>
    %1647 = math.tanh %1646 : vector<2x1xf32>
    %1648 = arith.mulf %1644, %1629 : vector<2x1xf32>
    %1649 = arith.mulf %1643, %1647 : vector<2x1xf32>
    %1650 = arith.addf %1648, %1649 : vector<2x1xf32>
    %1651 = math.tanh %1650 : vector<2x1xf32>
    %1652 = arith.mulf %1645, %1651 : vector<2x1xf32>
    %1653 = tpu.concatenate %1631, %1652 in 0 : vector<2x1xf32>, vector<2x1xf32> -> vector<4x1xf32>
    %c0_207 = arith.constant 0 : index
    %c0_208 = arith.constant 0 : index
    %1654 = vector.load %arg26[%c0_207, %c0_208] : memref<1x4xf32, #tpu.memory_space<vmem>>, vector<1x4xf32>
    %c0_209 = arith.constant 0 : index
    %c0_210 = arith.constant 0 : index
    %1655 = vector.load %arg27[%c0_209, %c0_210] : memref<1x4xf32, #tpu.memory_space<vmem>>, vector<1x4xf32>
    %c0_211 = arith.constant 0 : index
    %c0_212 = arith.constant 0 : index
    %1656 = vector.load %arg28[%c0_211, %c0_212] : memref<1x4xf32, #tpu.memory_space<vmem>>, vector<1x4xf32>
    %1657 = vector.broadcast %1653 : vector<4x1xf32> to vector<4x4xf32>
    %1658 = vector.broadcast %1654 : vector<1x4xf32> to vector<4x4xf32>
    %1659 = arith.mulf %1657, %1658 : vector<4x4xf32>
    %1660 = vector.broadcast %1656 : vector<1x4xf32> to vector<4x4xf32>
    %1661 = arith.addf %1659, %1660 : vector<4x4xf32>
    %cst_213 = arith.constant 0.000000e+00 : f32
    %1662 = vector.broadcast %cst_213 : f32 to vector<2x1xf32>
    %cst_214 = arith.constant 0.000000e+00 : f32
    %1663 = vector.broadcast %cst_214 : f32 to vector<2x1xf32>
    %1664 = vector.extract_strided_slice %1661 {offsets = [0, 0], sizes = [2, 4], strides = [1, 1]} : vector<4x4xf32> to vector<2x4xf32>
    %1665 = vector.broadcast %1662 : vector<2x1xf32> to vector<2x4xf32>
    %1666 = vector.broadcast %1655 : vector<1x4xf32> to vector<2x4xf32>
    %1667 = arith.mulf %1665, %1666 : vector<2x4xf32>
    %1668 = arith.addf %1664, %1667 : vector<2x4xf32>
    %1669 = vector.extract_strided_slice %1668 {offsets = [0, 0], sizes = [2, 3], strides = [1, 1]} : vector<2x4xf32> to vector<2x3xf32>
    %1670 = arith.negf %1669 : vector<2x3xf32>
    %1671 = math.exp %1670 : vector<2x3xf32>
    %cst_215 = arith.constant 1.000000e+00 : f32
    %1672 = vector.broadcast %cst_215 : f32 to vector<2x3xf32>
    %1673 = arith.addf %1672, %1671 : vector<2x3xf32>
    %1674 = arith.divf %1672, %1673 : vector<2x3xf32>
    %1675 = vector.extract_strided_slice %1674 {offsets = [0, 0], sizes = [2, 1], strides = [1, 1]} : vector<2x3xf32> to vector<2x1xf32>
    %1676 = vector.extract_strided_slice %1674 {offsets = [0, 1], sizes = [2, 1], strides = [1, 1]} : vector<2x3xf32> to vector<2x1xf32>
    %1677 = vector.extract_strided_slice %1674 {offsets = [0, 2], sizes = [2, 1], strides = [1, 1]} : vector<2x3xf32> to vector<2x1xf32>
    %1678 = vector.extract_strided_slice %1668 {offsets = [0, 3], sizes = [2, 1], strides = [1, 1]} : vector<2x4xf32> to vector<2x1xf32>
    %1679 = math.tanh %1678 : vector<2x1xf32>
    %1680 = arith.mulf %1676, %1663 : vector<2x1xf32>
    %1681 = arith.mulf %1675, %1679 : vector<2x1xf32>
    %1682 = arith.addf %1680, %1681 : vector<2x1xf32>
    %1683 = math.tanh %1682 : vector<2x1xf32>
    %1684 = arith.mulf %1677, %1683 : vector<2x1xf32>
    %1685 = vector.extract_strided_slice %1661 {offsets = [2, 0], sizes = [2, 4], strides = [1, 1]} : vector<4x4xf32> to vector<2x4xf32>
    %1686 = vector.broadcast %1684 : vector<2x1xf32> to vector<2x4xf32>
    %1687 = vector.broadcast %1655 : vector<1x4xf32> to vector<2x4xf32>
    %1688 = arith.mulf %1686, %1687 : vector<2x4xf32>
    %1689 = arith.addf %1685, %1688 : vector<2x4xf32>
    %1690 = vector.extract_strided_slice %1689 {offsets = [0, 0], sizes = [2, 3], strides = [1, 1]} : vector<2x4xf32> to vector<2x3xf32>
    %1691 = arith.negf %1690 : vector<2x3xf32>
    %1692 = math.exp %1691 : vector<2x3xf32>
    %cst_216 = arith.constant 1.000000e+00 : f32
    %1693 = vector.broadcast %cst_216 : f32 to vector<2x3xf32>
    %1694 = arith.addf %1693, %1692 : vector<2x3xf32>
    %1695 = arith.divf %1693, %1694 : vector<2x3xf32>
    %1696 = vector.extract_strided_slice %1695 {offsets = [0, 0], sizes = [2, 1], strides = [1, 1]} : vector<2x3xf32> to vector<2x1xf32>
    %1697 = vector.extract_strided_slice %1695 {offsets = [0, 1], sizes = [2, 1], strides = [1, 1]} : vector<2x3xf32> to vector<2x1xf32>
    %1698 = vector.extract_strided_slice %1695 {offsets = [0, 2], sizes = [2, 1], strides = [1, 1]} : vector<2x3xf32> to vector<2x1xf32>
    %1699 = vector.extract_strided_slice %1689 {offsets = [0, 3], sizes = [2, 1], strides = [1, 1]} : vector<2x4xf32> to vector<2x1xf32>
    %1700 = math.tanh %1699 : vector<2x1xf32>
    %1701 = arith.mulf %1697, %1682 : vector<2x1xf32>
    %1702 = arith.mulf %1696, %1700 : vector<2x1xf32>
    %1703 = arith.addf %1701, %1702 : vector<2x1xf32>
    %1704 = math.tanh %1703 : vector<2x1xf32>
    %1705 = arith.mulf %1698, %1704 : vector<2x1xf32>
    %1706 = tpu.concatenate %1684, %1705 in 1 : vector<2x1xf32>, vector<2x1xf32> -> vector<2x2xf32>
    %c0_217 = arith.constant 0 : index
    %c0_218 = arith.constant 0 : index
    %1707 = vector.load %arg29[%c0_217, %c0_218] : memref<2x2xf32, #tpu.memory_space<vmem>>, vector<2x2xf32>
    tpu.vector_store %arg29[%c0_217, %c0_218], %1706 {strides = array<i32>} : memref<2x2xf32, #tpu.memory_space<vmem>>, vector<2x2xf32>,
    return
  }
}

</mosaic_0001>

<bundles_post_ra>
// kernel: pitch_predictor_pallas.1
= control target key start
LH: loop header
LB: loop body
LE: loop exit
PB: predicated region body
PF: predicated region fallthrough
CT: control target
= control target key end

     0   :  { %s6977_s6 = smov 1   ;;  %s6978_s10 = smov 2   ;;  %s8403_s0 = inlined_call_operand.smem [shape: u32[30], index: -1, kind: input, shape index: {}] }
   0x1   :  { %s7034_s5 = sld [smem:[%s8403_s0]]   ;;  %s6979_s14 = smov 3  }
   0x2   :  { %s7039_s9 = sld [smem:[%s8403_s0 + %s6977_s6]]   ;;  %s6980_s18 = smov 4  }
   0x3   :  { %s7044_s13 = sld [smem:[%s8403_s0 + %s6978_s10]]   ;;  %s6981_s22 = smov 5  }
   0x4   :  { %s7049_s17 = sld [smem:[%s8403_s0 + %s6979_s14]]   ;;  %s6982_s26 = smov 6  }
   0x5   :  { %s7054_s21 = sld [smem:[%s8403_s0 + %s6980_s18]]   ;;  %s6983_s30 = smov 7  }
   0x6   :  { %s7059_s25 = sld [smem:[%s8403_s0 + %s6981_s22]]   ;;  %s6984_s4 = smov 8  }
   0x7   :  { %s7064_s29 = sld [smem:[%s8403_s0 + %s6982_s26]]   ;;  %s6985_s10 = smov 9  }
   0x8   :  { %s7069_s3 = sld [smem:[%s8403_s0 + %s6983_s30]]   ;;  %s6986_s15 = smov 10  }
   0x9   :  { %s7074_s8 = sld [smem:[%s8403_s0 + %s6984_s4]]   ;;  %s6987_s20 = smov 11  }
   0xa   :  { %s7079_s14 = sld [smem:[%s8403_s0 + %s6985_s10]]   ;;  %s6988_s26 = smov 12  }
   0xb   :  { %s7084_s19 = sld [smem:[%s8403_s0 + %s6986_s15]]   ;;  %s6989_s1 = smov 13  }
   0xc   :  { %s7089_s24 = sld [smem:[%s8403_s0 + %s6987_s20]]   ;;  %s6990_s7 = smov 14  }
   0xd   :  { %s7094_s30 = sld [smem:[%s8403_s0 + %s6988_s26]]   ;;  %s6991_s15 = smov 15  }
   0xe   :  { %s7099_s6 = sld [smem:[%s8403_s0 + %s6989_s1]]   ;;  %s6992_s22 = smov 16  }
   0xf   :  { %8405 = sst [smem:[#allocation24_spill]] %s7074_s8  ;;  %s6993_s28 = smov 17  }
  0x10   :  { %s7104_s12 = sld [smem:[%s8403_s0 + %s6990_s7]]   ;;  %s6994_s7 = smov 18  }
  0x11   :  { %s7109_s20 = sld [smem:[%s8403_s0 + %s6991_s15]]   ;;  %s6995_s15 = smov 19  }
  0x12   :  { %s7114_s27 = sld [smem:[%s8403_s0 + %s6992_s22]]   ;;  %s6996_s22 = smov 20  }
  0x13   :  { %8406 = sst [smem:[#allocation25_spill]] %s7094_s30 }
  0x14   :  { %s7119_s4 = sld [smem:[%s8403_s0 + %s6993_s28]]   ;;  %s6997_s28 = smov 21  }
  0x15   :  { %s7124_s30 = sld [smem:[%s8403_s0 + %s6994_s7]]   ;;  %s6998_s7 = smov 22  }
  0x16   :  { %s7129_s8 = sld [smem:[%s8403_s0 + %s6995_s15]]   ;;  %s6999_s15 = smov 23  }
  0x18   :  { %8407 = sst [smem:[#allocation26_spill]] %s7114_s27 }
  0x19   :  { %s7134_s27 = sld [smem:[%s8403_s0 + %s6996_s22]]   ;;  %s7000_s22 = smov 24  }
  0x1a   :  { %8408 = sst [smem:[#allocation27_spill]] %s7119_s4 }
  0x1b   :  { %8409 = sst [smem:[#allocation28_spill]] %s7124_s30 }
  0x1c   :  { %8410 = sst [smem:[#allocation29_spill]] %s7129_s8 }
  0x1d   :  { %s7139_s4 = sld [smem:[%s8403_s0 + %s6997_s28]]   ;;  %s7001_s28 = smov 25  }
  0x1e   :  { %s7144_s30 = sld [smem:[%s8403_s0 + %s6998_s7]]   ;;  %s7002_s7 = smov 26  }
  0x1f   :  { %8411 = sst [smem:[#allocation30_spill]] %s7134_s27 }
  0x20   :  { %s7149_s8 = sld [smem:[%s8403_s0 + %s6999_s15]]   ;;  %s7003_s15 = smov 27  }
  0x21   :  { %s7154_s27 = sld [smem:[%s8403_s0 + %s7000_s22]]   ;;  %s7004_s22 = smov 28  }
  0x23   :  { %8412 = sst [smem:[#allocation31_spill]] %s7139_s4 }
  0x24   :  { %8413 = sst [smem:[#allocation32_spill]] %s7144_s30 }
  0x25   :  { %s7159_s4 = sld [smem:[%s8403_s0 + %s7001_s28]]   ;;  %s7005_s28 = smov 29  }
  0x26   :  { %8414 = sst [smem:[#allocation33_spill]] %s7149_s8 }
  0x27   :  { %8415 = sst [smem:[#allocation34_spill]] %s7154_s27 }
  0x28   :  { %s7164_s30 = sld [smem:[%s8403_s0 + %s7002_s7]]  }
  0x29   :  { %s7169_s8 = sld [smem:[%s8403_s0 + %s7003_s15]]  }
  0x2a   :  { %s7174_s27 = sld [smem:[%s8403_s0 + %s7004_s22]]  }
  0x2b   :  { %8416 = sst [smem:[#allocation35_spill]] %s7159_s4 }
  0x2c   :  { %s7179_s4 = sld [smem:[%s8403_s0 + %s7005_s28]]  }
  0x2d   :  { %64 = vsyncpa [#allocation3], 0 }
  0x2e   :  { %65 = vsyncpa [#allocation6], 0 }
  0x2f   :  { %66 = vsyncpa [#allocation9], 0 }
  0x30   :  { %67 = vsyncpa [#allocation12], 0 }
  0x31   :  { %68 = vsyncpa [#allocation15], 0 }
  0x32   :  { %69 = vsyncpa [#allocation4], 0  ;;  %s89_s7 = sshll.u32 %s7044_s13, 4  ;;  %s7006_s10 = smov [#allocation5]   ;;  %s90_s7 = int_to_ptr.hbm [resolvable:$true] %s89_s7 }
  0x33   :  { %s91_s11 = sshll.u32 %s7006_s10, 4  ;;  %s125_s15 = sshll.u32 %s7079_s14, 4  ;;  %s92_s11 = int_to_ptr.vmem [resolvable:$true] %s91_s11  ;;  %s126_s15 = int_to_ptr.hbm [resolvable:$true] %s125_s15 }
  0x34   :  { %s6725_s16 = sshra.s32 %s90_s7, 4  ;;  %s6729_s18 = scalar_lea.hbm %s7044_s13, 24  ;;  %s6726_s16 = int_to_ptr.hbm [resolvable:$true] %s6725_s16 }
  0x35   :  { %s6727_s0 = scalar_lea.hbm %s6726_s16, 24  ;;  %p6730_p1 = scmp.lt.s32.totalorder %s6726_s16, %s7044_s13 }
  0x36   :  { %p6728_p0 = scmp.ne.s32.totalorder %s6726_s16, %s6727_s0  ;;  %p6731_p2 = scmp.lt.s32.totalorder %s6729_s18, %s6727_s0 }
  0x38   :  { %p6732_p3 = por %p6731_p2, %p6730_p1 }
  0x3a   :  { %p6733_p4 = pnand %p6732_p3, %p6728_p0 }
  0x3c   :  { %6736 = shalt.err (!%p6733_p4)
}
  0x3d   :  { %s7007_s22 = smov 128   ;;  %s7008_s23 = smov 8  }
  0x3e   :  { %97 = dma.hbm_to_vmem [thread:$0]  %s90_s7, 384, %s92_s11, [#allocation6], %s7007_s22, %s7007_s22, %s7008_s23  }
  0x3f   :  { %s7009_s26 = smov [#allocation8]   ;;  %s151_s1 = sshll.u32 %s7089_s24, 4  ;;  %s7189_s1 = int_to_ptr.hbm [resolvable:$true] %s151_s1 }
  0x40   :  { %s127_s28 = sshll.u32 %s7009_s26, 4  ;;  %s6749_s13 = sshra.s32 %s126_s15, 4  ;;  %s128_s28 = int_to_ptr.vmem [resolvable:$true] %s127_s28  ;;  %s6750_s13 = int_to_ptr.hbm [resolvable:$true] %s6749_s13 }
  0x41   :  { %s6751_s2 = scalar_lea.hbm %s6750_s13, 32  ;;  %s6753_s10 = scalar_lea.hbm %s7079_s14, 32 }
  0x42   :  { %p6752_p5 = scmp.ne.s32.totalorder %s6750_s13, %s6751_s2  ;;  %p6754_p6 = scmp.lt.s32.totalorder %s6750_s13, %s7079_s14 }
  0x43   :  { %p6755_p7 = scmp.lt.s32.totalorder %s6753_s10, %s6751_s2 }
  0x45   :  { %p6756_p8 = por %p6755_p7, %p6754_p6 }
  0x47   :  { %p6757_p9 = pnand %p6756_p8, %p6752_p5 }
  0x49   :  { %6760 = shalt.err (!%p6757_p9)
}
  0x4a   :  { %133 = dma.hbm_to_vmem [thread:$0]  %s126_s15, 512, %s128_s28, [#allocation9], %s7007_s22, %s7007_s22, %s7008_s23  }
  0x4b   :  { %s179_s7 = sshll.u32 %s7104_s12, 4  ;;  %s7010_s11 = smov [#allocation11]   ;;  %s7197_s7 = int_to_ptr.hbm [resolvable:$true] %s179_s7 }
  0x4c   :  { %s153_s16 = sshll.u32 %s7010_s11, 4  ;;  %s6773_s0 = sshra.s32 %s7189_s1, 4  ;;  %s154_s16 = int_to_ptr.vmem [resolvable:$true] %s153_s16  ;;  %s6774_s0 = int_to_ptr.hbm [resolvable:$true] %s6773_s0 }
  0x4d   :  { %s6775_s14 = scalar_lea.hbm %s6774_s0, 32  ;;  %s6777_s18 = scalar_lea.hbm %s7089_s24, 32 }
  0x4e   :  { %p6776_p10 = scmp.ne.s32.totalorder %s6774_s0, %s6775_s14  ;;  %p6778_p11 = scmp.lt.s32.totalorder %s6774_s0, %s7089_s24 }
  0x4f   :  { %p6779_p12 = scmp.lt.s32.totalorder %s6777_s18, %s6775_s14 }
  0x51   :  { %p6780_p13 = por %p6779_p12, %p6778_p11 }
  0x53   :  { %p6781_p0 = pnand %p6780_p13, %p6776_p10 }
  0x55   :  { %6784 = shalt.err (!%p6781_p0)
}
  0x56   :  { %159 = dma.hbm_to_vmem [thread:$0]  %s7189_s1, 512, %s154_s16, [#allocation12], %s7007_s22, %s7007_s22, %s7008_s23  }
  0x57   :  { %s7011_s15 = smov [#allocation14]   ;;  %s76_s28 = sshll.u32 %s7039_s9, 4  ;;  %s7207_s28 = int_to_ptr.hbm [resolvable:$true] %s76_s28 }
  0x58   :  { %s181_s26 = sshll.u32 %s7011_s15, 4  ;;  %s6797_s24 = sshra.s32 %s7197_s7, 4  ;;  %s182_s26 = int_to_ptr.vmem [resolvable:$true] %s181_s26  ;;  %s6798_s24 = int_to_ptr.hbm [resolvable:$true] %s6797_s24 }
  0x59   :  { %s6799_s13 = scalar_lea.hbm %s6798_s24, 32  ;;  %s6801_s2 = scalar_lea.hbm %s7104_s12, 32 }
  0x5a   :  { %p6800_p1 = scmp.ne.s32.totalorder %s6798_s24, %s6799_s13  ;;  %p6802_p2 = scmp.lt.s32.totalorder %s6798_s24, %s7104_s12 }
  0x5b   :  { %p6803_p3 = scmp.lt.s32.totalorder %s6801_s2, %s6799_s13 }
  0x5d   :  { %p6804_p4 = por %p6803_p3, %p6802_p2 }
  0x5f   :  { %p6805_p5 = pnand %p6804_p4, %p6800_p1 }
  0x61   :  { %6808 = shalt.err (!%p6805_p5)
}
  0x62   :  { %187 = dma.hbm_to_vmem [thread:$0]  %s7197_s7, 512, %s182_s26, [#allocation15], %s7007_s22, %s7007_s22, %s7008_s23  }
  0x63   :  { %s110_s1 = sshll.u32 %s7069_s3, 4  ;;  %s7012_s10 = smov [#allocation2]   ;;  %s7217_s1 = int_to_ptr.hbm [resolvable:$true] %s110_s1 }
  0x64   :  { %s78_s11 = sshll.u32 %s7012_s10, 4  ;;  %s6821_s12 = sshra.s32 %s7207_s28, 4  ;;  %s79_s11 = int_to_ptr.vmem [resolvable:$true] %s78_s11  ;;  %s6822_s12 = int_to_ptr.hbm [resolvable:$true] %s6821_s12 }
  0x65   :  { %s6823_s16 = scalar_lea.hbm %s6822_s12, 24  ;;  %s6825_s0 = scalar_lea.hbm %s7039_s9, 24 }
  0x66   :  { %p6824_p6 = scmp.ne.s32.totalorder %s6822_s12, %s6823_s16  ;;  %p6826_p7 = scmp.lt.s32.totalorder %s6822_s12, %s7039_s9 }
  0x67   :  { %p6827_p8 = scmp.lt.s32.totalorder %s6825_s0, %s6823_s16 }
  0x69   :  { %p6828_p9 = por %p6827_p8, %p6826_p7 }
  0x6b   :  { %p6829_p10 = pnand %p6828_p9, %p6824_p6 }
  0x6d   :  { %6832 = shalt.err (!%p6829_p10)
}
  0x6e   :  { %84 = dma.hbm_to_vmem [thread:$0]  %s7207_s28, 384, %s79_s11, [#allocation3], %s7007_s22, %s7007_s22, %s7008_s23  }
  0x6f   :  { %s7013_s7 = smov [#allocation7]   ;;  %s138_s18 = sshll.u32 %s7084_s19, 4  ;;  %s7227_s18 = int_to_ptr.hbm [resolvable:$true] %s138_s18 }
  0x70   :  { %s112_s14 = sshll.u32 %s7013_s7, 4  ;;  %s6845_s9 = sshra.s32 %s7217_s1, 4  ;;  %s113_s14 = int_to_ptr.vmem [resolvable:$true] %s112_s14  ;;  %s6846_s9 = int_to_ptr.hbm [resolvable:$true] %s6845_s9 }
  0x71   :  { %s6847_s15 = scalar_lea.hbm %s6846_s9, 32  ;;  %s6849_s26 = scalar_lea.hbm %s7069_s3, 32 }
  0x72   :  { %p6848_p11 = scmp.ne.s32.totalorder %s6846_s9, %s6847_s15  ;;  %p6850_p12 = scmp.lt.s32.totalorder %s6846_s9, %s7069_s3 }
  0x73   :  { %p6851_p13 = scmp.lt.s32.totalorder %s6849_s26, %s6847_s15 }
  0x75   :  { %p6852_p0 = por %p6851_p13, %p6850_p12 }
  0x77   :  { %p6853_p1 = pnand %p6852_p0, %p6848_p11 }
  0x79   :  { %6856 = shalt.err (!%p6853_p1)
}
  0x7a   :  { %118 = dma.hbm_to_vmem [thread:$0]  %s7217_s1, 512, %s113_s14, [#allocation6], %s7007_s22, %s7007_s22, %s7008_s23  }
  0x7b   :  { %s166_s28 = sshll.u32 %s7099_s6, 4  ;;  %s7014_s24 = smov [#allocation10]   ;;  %s7237_s28 = int_to_ptr.hbm [resolvable:$true] %s166_s28 }
  0x7c   :  { %s140_s13 = sshll.u32 %s7014_s24, 4  ;;  %s6869_s3 = sshra.s32 %s7227_s18, 4  ;;  %s141_s13 = int_to_ptr.vmem [resolvable:$true] %s140_s13  ;;  %s6870_s3 = int_to_ptr.hbm [resolvable:$true] %s6869_s3 }
  0x7d   :  { %s6871_s2 = scalar_lea.hbm %s6870_s3, 32  ;;  %s6873_s10 = scalar_lea.hbm %s7084_s19, 32 }
  0x7e   :  { %p6872_p2 = scmp.ne.s32.totalorder %s6870_s3, %s6871_s2  ;;  %p6874_p3 = scmp.lt.s32.totalorder %s6870_s3, %s7084_s19 }
  0x7f   :  { %p6875_p4 = scmp.lt.s32.totalorder %s6873_s10, %s6871_s2 }
  0x81   :  { %p6876_p5 = por %p6875_p4, %p6874_p3 }
  0x83   :  { %p6877_p6 = pnand %p6876_p5, %p6872_p2 }
  0x85   :  { %6880 = shalt.err (!%p6877_p6)
}
  0x86   :  { %146 = dma.hbm_to_vmem [thread:$0]  %s7227_s18, 512, %s141_s13, [#allocation9], %s7007_s22, %s7007_s22, %s7008_s23  }
  0x87   :  { %s7015_s1 = smov [#allocation13]   ;;  %s192_s12 = sshll.u32 %s7109_s20, 4  ;;  %s193_s12 = int_to_ptr.hbm [resolvable:$true] %s192_s12 }
  0x88   :  { %s168_s11 = sshll.u32 %s7015_s1, 4  ;;  %s6893_s16 = sshra.s32 %s7237_s28, 4  ;;  %s169_s11 = int_to_ptr.vmem [resolvable:$true] %s168_s11  ;;  %s6894_s16 = int_to_ptr.hbm [resolvable:$true] %s6893_s16 }
  0x89   :  { %s6895_s19 = scalar_lea.hbm %s6894_s16, 32  ;;  %s6897_s0 = scalar_lea.hbm %s7099_s6, 32 }
  0x8a   :  { %p6896_p7 = scmp.ne.s32.totalorder %s6894_s16, %s6895_s19  ;;  %p6898_p8 = scmp.lt.s32.totalorder %s6894_s16, %s7099_s6 }
  0x8b   :  { %p6899_p9 = scmp.lt.s32.totalorder %s6897_s0, %s6895_s19 }
  0x8d   :  { %p6900_p10 = por %p6899_p9, %p6898_p8 }
  0x8f   :  { %p6901_p11 = pnand %p6900_p10, %p6896_p7 }
  0x91   :  { %6904 = shalt.err (!%p6901_p11)
}
  0x92   :  { %174 = dma.hbm_to_vmem [thread:$0]  %s7237_s28, 512, %s169_s11, [#allocation12], %s7007_s22, %s7007_s22, %s7008_s23  }
  0x93   :  { %s7016_s7 = smov [#allocation16]   ;;  %s6917_s18 = sshra.s32 %s193_s12, 4  ;;  %s6918_s18 = int_to_ptr.hbm [resolvable:$true] %s6917_s18 }
  0x94   :  { %s194_s14 = sshll.u32 %s7016_s7, 4  ;;  %s6919_s9 = scalar_lea.hbm %s6918_s18, 32  ;;  %s195_s14 = int_to_ptr.vmem [resolvable:$true] %s194_s14 }
  0x95   :  { %p6920_p12 = scmp.ne.s32.totalorder %s6918_s18, %s6919_s9  ;;  %s6921_s6 = scalar_lea.hbm %s7109_s20, 32 }
  0x96   :  { %p6922_p13 = scmp.lt.s32.totalorder %s6918_s18, %s7109_s20  ;;  %p6923_p0 = scmp.lt.s32.totalorder %s6921_s6, %s6919_s9 }
  0x98   :  { %p6924_p1 = por %p6923_p0, %p6922_p13 }
  0x9a   :  { %p6925_p2 = pnand %p6924_p1, %p6920_p12 }
  0x9c   :  { %6928 = shalt.err (!%p6925_p2)
}
  0x9d   :  { %200 = dma.hbm_to_vmem [thread:$0]  %s193_s12, 512, %s195_s14, [#allocation15], %s7007_s22, %s7007_s22, %s7008_s23  }
  0x9e   :  { %6965 = dma.done.wait [#allocation3], 384  }
  0x9f   :  { %6966 = vsyncadd [#allocation3], 4294966912 }
  0xa0   :  { %6967 = dma.done.wait [#allocation6], 896  }
  0xa1   :  { %6968 = vsyncadd [#allocation6], 4294966400 }
  0xa2   :  { %6969 = dma.done.wait [#allocation9], 1024  }
  0xa3   :  { %6970 = vsyncadd [#allocation9], 4294966272 }
  0xa4   :  { %6971 = dma.done.wait [#allocation12], 1024  }
  0xa5   :  { %6972 = vsyncadd [#allocation12], 4294966272 }
  0xa6   :  { %6973 = dma.done.wait [#allocation15], 1024  }
  0xa7   :  { %6974 = vsyncadd [#allocation15], 4294966272  ;;  %v269_v0 = vld [vmem:[#allocation2 + $0x10] sm:$0xff]  ;;  %v272_v1 = vld [vmem:[#allocation5 + $0x10] sm:$0xff]  ;;  %vm281_vm0 = vcmask 195584   ;;  %v7017_v12 = vmov 0.0  }
  0xa8   :  { %v268_v2 = vld [vmem:[#allocation2 + $0x8] sm:$0xff]  ;;  %307 = vmatpush.msra.mxu0 %v269_v0  ;;  %336 = vmatpush.msra.mxu1 %v272_v1  ;;  %v271_v3 = vld [vmem:[#allocation5 + $0x8] sm:$0xff]  ;;  %v270_v5 = vld [vmem:[#allocation5] sm:$0xff]  ;;  %vm356_vm5 = vcmask 261120   ;;  %vm1479_vm14 = vcmask 1041408   ;;  %vm1481_vm15 = vcmask 1043456  }
  0xa9   :  { %v267_v4 = vld [vmem:[#allocation2] sm:$0xff]  ;;  %v7260_v6 = vld [vmem:[%s7049_s17 + $0x18] sm:$0xff]  ;;  %v7265_v8 = vld [vmem:[%s7049_s17 + $0x10] sm:$0xff]  ;;  %s8420_s20 = sld [smem:[#allocation27_spill]]  ;;  %s7020_s15 = smov 125  }
  0xaa   :  { %308 = vmatpush.msra.mxu0 %v268_v2  ;;  %337 = vmatpush.msra.mxu1 %v271_v3  ;;  %v263_v7 = vld [vmem:[%s7034_s5] sm:$0xff]  ;;  %v7269_v9 = vld [vmem:[%s7049_s17 + $0x8] sm:$0xff]  ;;  %v265_v13 = vld [vmem:[%s7034_s5 + $0x10] sm:$0xff]  ;;  %s8421_s22 = sld [smem:[#allocation28_spill]]  ;;  %s7021_s26 = smov 1  }
  0xab   :  { %372 = vmatpush.msra.mxu2 %v7260_v6  ;;  %438 = vmatpush.msra.mxu3 %v7260_v6  ;;  %v7274_v10 = vld [vmem:[%s7049_s17] sm:$0xff]  ;;  %v264_v11 = vld [vmem:[%s7034_s5 + $0x8] sm:$0xff]  ;;  %v266_v14 = vld [vmem:[%s7034_s5 + $0x18] sm:$0xff]  ;;  %s7018_s5 = smov 32   ;;  %s7019_s17 = smov 64  }
  0xac   :  { %309 = vmatpush.msra.mxu0 %v267_v4  ;;  %338 = vmatpush.msra.mxu1 %v270_v5  ;;  %v6134_v19 = vld [vmem:[%s7054_s21] ss:$0 sm:$0xff]  ;;  %s8417_s21 = sld [smem:[#allocation24_spill]]  ;;  %s5874_s11 = sshll.u32 %s7179_s4, 4  ;;  %s5875_s11 = int_to_ptr.hbm [resolvable:$true] %s5874_s11 }
  0xad   :  { %5917 = vmatmul.msk.f32.vlgmr.msra.gmra.mxu0 %vm281_vm0, %v263_v7  ;;  %5921 = vmatmul.msk.f32.vlgmr.msra.gmra.mxu1 %vm281_vm0, %v263_v7  ;;  %s8422_s23 = sld [smem:[#allocation29_spill]]  ;;  %s6953_s12 = sshra.s32 %s5875_s11, 4  ;;  %s6954_s12 = int_to_ptr.hbm [resolvable:$true] %s6953_s12 }
  0xae   :  { %373 = vmatpush.msra.mxu2 %v7265_v8  ;;  %439 = vmatpush.msra.mxu3 %v7265_v8  ;;  %s8423_s28 = sld [smem:[#allocation30_spill]]  ;;  %s6955_s16 = scalar_lea.hbm %s6954_s12, 2 }
  0xaf   :  { %935 = vmatpush.msrb.mxu0 %v7260_v6  ;;  %1004 = vmatpush.msrb.mxu1 %v7260_v6  ;;  %s8424_s24 = sld [smem:[#allocation31_spill]]  ;;  %p6956_p3 = scmp.ne.s32.totalorder %s6954_s12, %s6955_s16 }
  0xb0   :  { %374 = vmatpush.msra.mxu2 %v7269_v9  ;;  %440 = vmatpush.msra.mxu3 %v7269_v9  ;;  %s8425_s13 = sld [smem:[#allocation32_spill]]  ;;  %s6957_s19 = scalar_lea.hbm %s7179_s4, 2 }
  0xb1   :  { %936 = vmatpush.msrb.mxu0 %v7265_v8  ;;  %1005 = vmatpush.msrb.mxu1 %v7265_v8  ;;  %s8426_s3 = sld [smem:[#allocation33_spill]]  ;;  %p6958_p4 = scmp.lt.s32.totalorder %s6954_s12, %s7179_s4 }
  0xb2   :  { %375 = vmatpush.msra.mxu2 %v7274_v10  ;;  %441 = vmatpush.msra.mxu3 %v7274_v10  ;;  %s8427_s2 = sld [smem:[#allocation34_spill]]  ;;  %p6959_p5 = scmp.lt.s32.totalorder %s6957_s19, %s6955_s16 }
  0xb3   :  { %376 = vmatmul.f32.vlgmr.msra.gmra.mxu2 %v7017_v12  ;;  %937 = vmatpush.msrb.mxu0 %v7269_v9  ;;  %s8428_s10 = sld [smem:[#allocation35_spill]] }
  0xb4   :  { %578 = vmatpush.msrb.mxu3 %v7260_v6  ;;  %508 = vmatpush.msrb.mxu2 %v7260_v6  ;;  %p6960_p6 = por %p6959_p5, %p6958_p4 }
  0xb5   :  { %5918 = vmatmul.msk.f32.gmra.mxu0 %vm281_vm0, %v264_v11  ;;  %5922 = vmatmul.msk.f32.gmra.mxu1 %vm281_vm0, %v264_v11 }
  0xb6   :  { %509 = vmatpush.msrb.mxu2 %v7265_v8  ;;  %579 = vmatpush.msrb.mxu3 %v7265_v8  ;;  %p6961_p7 = pnand %p6960_p6, %p6956_p3 }
  0xb7   :  { %938 = vmatpush.msrb.mxu0 %v7274_v10  ;;  %1006 = vmatpush.msrb.mxu1 %v7269_v9 }
  0xb8   :  { %510 = vmatpush.msrb.mxu2 %v7269_v9  ;;  %580 = vmatpush.msrb.mxu3 %v7269_v9 }
  0xb9   :  { %1007 = vmatpush.msrb.mxu1 %v7274_v10  ;;  %1218 = vmatpush.msra.mxu0 %v7260_v6 }
  0xba   :  { %511 = vmatpush.msrb.mxu2 %v7274_v10  ;;  %581 = vmatpush.msrb.mxu3 %v7274_v10 }
  0xbb   :  { %1219 = vmatpush.msra.mxu0 %v7265_v8  ;;  %1287 = vmatpush.msra.mxu1 %v7260_v6 }
  0xbc   :  { %652 = vmatpush.msra.mxu2 %v7260_v6 }
  0xbd   :  { %5919 = vmatmul.msk.f32.gmra.mxu0 %vm281_vm0, %v265_v13  ;;  %5923 = vmatmul.msk.f32.gmra.mxu1 %vm281_vm0, %v265_v13 }
  0xbe   :  { %653 = vmatpush.msra.mxu2 %v7265_v8  ;;  %1220 = vmatpush.msra.mxu0 %v7269_v9 }
  0xbf   :  { %1288 = vmatpush.msra.mxu1 %v7265_v8 }
  0xc0   :  { %654 = vmatpush.msra.mxu2 %v7269_v9  ;;  %1221 = vmatpush.msra.mxu0 %v7274_v10 }
  0xc1   :  { %1289 = vmatpush.msra.mxu1 %v7269_v9 }
  0xc2   :  { %655 = vmatpush.msra.mxu2 %v7274_v10 }
  0xc3   :  { %1290 = vmatpush.msra.mxu1 %v7274_v10 }
  0xc5   :  { %5920 = vmatmul.msk.f32.gmra.mxu0 %vm281_vm0, %v266_v14  ;;  %5924 = vmatmul.msk.f32.gmra.mxu1 %vm281_vm0, %v266_v14 }
 0x12a   :  { %v311_v15 = vpop.f32.mrf.mxu0  ;;  %v340_v16 = vpop.f32.mrf.mxu1 }
 0x12b   :  { %v312_v32 = vadd.f32 %v6134_v19, %v311_v15  ;;  %v1197_v35 = vrot.slane %v340_v16, 6  ;;  %v1267_v36 = vrot.slane %v340_v16, 2 }
 0x132   :  { %v314_v17 = vpop.f32.mrf.mxu0  ;;  %v343_v18 = vpop.f32.mrf.mxu1 }
 0x133   :  { %v315_v20 = vadd.f32 %v6134_v19, %v314_v17  ;;  %v914_v21 = vrot.slane %v343_v18, 6  ;;  %v984_v24 = vrot.slane %v343_v18, 2 }
 0x136   :  { %v377_v39 = vpop.f32.mrf.mxu2 }
 0x13a   :  { %v317_v22 = vpop.f32.mrf.mxu0  ;;  %v346_v23 = vpop.f32.mrf.mxu1 }
 0x13b   :  { %v318_v25 = vadd.f32 %v6134_v19, %v317_v22  ;;  %v631_v26 = vrot.slane %v346_v23, 6  ;;  %v701_v27 = vrot.slane %v346_v23, 2 }
 0x13d   :  { %v7321_v28 = vadd.f32 %v984_v24, %v318_v25  ;;  %v7323_v29 = vadd.f32 %v701_v27, %v315_v20  ;;  %v7325_v30 = vadd.f32 %v631_v26, %v315_v20  ;;  %v7327_v31 = vadd.f32 %v914_v21, %v318_v25 }
 0x142   :  { %v320_v33 = vpop.f32.mrf.mxu0  ;;  %v349_v34 = vpop.f32.mrf.mxu1 }
 0x143   :  { %v321_v37 = vadd.f32 %v6134_v19, %v320_v33  ;;  %v353_v38 = vrot.slane %v349_v34, 6  ;;  %v418_v3 = vrot.slane %v349_v34, 2 }
 0x145   :  { %v7329_v40 = vadd.f32 %v1267_v36, %v321_v37  ;;  %v7331_v41 = vadd.f32 %v353_v38, %v312_v32  ;;  %v7333_v42 = vadd.f32 %v1197_v35, %v321_v37  ;;  %v7348_v5 = vadd.f32 %v418_v3, %v312_v32 }
 0x147   :  { %v380_v43 = vadd.f32 %v377_v39, %v7331_v41 }
 0x149   :  { %6149 = vtanh.f32 %v380_v43  ;;  %v5925_v45 = vmul.f32 -1.442695, %v380_v43 }
 0x14b   :  { %6151 = vpow2.f32 %v5925_v45 }
 0x14f   :  { %v6150_v44 = vpop.eup %6149 }
 0x150   :  { %403 = vrot.lane.b32.xlu0 %v6150_v44, %s7018_s5 }
 0x151   :  { %v6152_v46 = vpop.eup %6151 }
 0x152   :  { %v384_v47 = vadd.f32 1.0, %v6152_v46 }
 0x154   :  { %6153 = vrcp.f32 %v384_v47  ;;  %v396_v53 = vand.u32 2147483648, %v384_v47  ;;  %vm390_vm2 = vweird.f32 %v384_v47  ;;  %v394_v54 = vand.u32 2147483647, %v384_v47 }
 0x156   :  { %v397_v56 = vor.u32 1.1754944e-38, %v396_v53  ;;  %vm395_vm4 = vcmp.eq.f32.partialorder %v394_v54, 8.507059e+37 }
 0x15a   :  { %v6154_v48 = vpop.eup %6153 }
 0x15b   :  { %v386_v49 = vmul.f32 %v6154_v48, %v384_v47  ;;  %vm391_vm1 = vweird.f32 %v6154_v48 }
 0x15c   :  { %vm392_vm3 = vmor %vm390_vm2, %vm391_vm1 }
 0x15d   :  { %v387_v50 = vsub.f32 1.0, %v386_v49 }
 0x15f   :  { %v388_v51 = vmul.f32 %v6154_v48, %v387_v50 }
 0x161   :  { %v389_v52 = vadd.f32 %v6154_v48, %v388_v51 }
 0x163   :  { %v393_v55 = vsel %vm392_vm3, %v6154_v48, %v389_v52 }
 0x164   :  { %v398_v58 = vsel %vm395_vm4, %v397_v56, %v393_v55  ;;  %vm1483_vm4 = vcmask 1045504  }
 0x165   :  { %v401_v60 = vmul.f32 0.0, %v398_v58 }
 0x1c2   :  { %v404_v57 = vpop.permute.xlu0 %403 }
 0x1c3   :  { %v406_v59 = vmul.f32 %v404_v57, %v398_v58 }
 0x1c5   :  { %408 = vrot.lane.b32.xlu0 %v406_v59, %s7018_s5 }
 0x237   :  { %v409_v61 = vpop.permute.xlu0 %408 }
 0x238   :  { %v411_v62 = vadd.f32 %v409_v61, %v401_v60 }
 0x23a   :  { %6155 = vtanh.f32 %v411_v62  ;;  %v471_v33 = vrot.slane %v411_v62, 6 }
 0x240   :  { %v6156_v63 = vpop.eup %6155 }
 0x241   :  { %414 = vrot.lane.b32.xlu1 %v6156_v63, %s7018_s5 }
 0x2b3   :  { %v415_v0 = vpop.permute.xlu1 %414 }
 0x2b4   :  { %v7339_v1 = vmul.f32 %v415_v0, %v398_v58 }
 0x2b6   :  { %422 = vrot.lane.b32.xlu1 %v7339_v1, %s7019_s17 }
 0x328   :  { %v423_v2 = vpop.permute.xlu1 %422 }
 0x329   :  { %5926 = vmatmul.msk.f32.vlgmr.msra.gmra.mxu3 %vm356_vm5, %v423_v2 }
 0x32a   :  { %721 = vmatpush.msra.mxu3 %v7260_v6 }
 0x32c   :  { %722 = vmatpush.msra.mxu3 %v7265_v8 }
 0x32e   :  { %723 = vmatpush.msra.mxu3 %v7269_v9 }
 0x330   :  { %724 = vmatpush.msra.mxu3 %v7274_v10 }
 0x3ac   :  { %v443_v4 = vpop.f32.mrf.mxu3 }
 0x3ad   :  { %v447_v7 = vrot.slane %v443_v4, 6 }
 0x3af   :  { %v449_v11 = vadd.f32 %v447_v7, %v7348_v5 }
 0x3b1   :  { %6157 = vtanh.f32 %v449_v11  ;;  %v5927_v14 = vmul.f32 -1.442695, %v449_v11 }
 0x3b3   :  { %6159 = vpow2.f32 %v5927_v14 }
 0x3b7   :  { %v6158_v13 = vpop.eup %6157 }
 0x3b8   :  { %475 = vrot.lane.b32.xlu2 %v6158_v13, %s7018_s5 }
 0x3b9   :  { %v6160_v15 = vpop.eup %6159 }
 0x3ba   :  { %v453_v16 = vadd.f32 1.0, %v6160_v15 }
 0x3bc   :  { %6161 = vrcp.f32 %v453_v16  ;;  %v465_v22 = vand.u32 2147483648, %v453_v16  ;;  %vm459_vm7 = vweird.f32 %v453_v16  ;;  %v463_v23 = vand.u32 2147483647, %v453_v16 }
 0x3be   :  { %v466_v25 = vor.u32 1.1754944e-38, %v465_v22  ;;  %vm464_vm9 = vcmp.eq.f32.partialorder %v463_v23, 8.507059e+37 }
 0x3c2   :  { %v6162_v17 = vpop.eup %6161 }
 0x3c3   :  { %v455_v18 = vmul.f32 %v6162_v17, %v453_v16  ;;  %vm460_vm6 = vweird.f32 %v6162_v17 }
 0x3c4   :  { %vm461_vm8 = vmor %vm459_vm7, %vm460_vm6 }
 0x3c5   :  { %v456_v19 = vsub.f32 1.0, %v455_v18 }
 0x3c7   :  { %v457_v20 = vmul.f32 %v6162_v17, %v456_v19 }
 0x3c9   :  { %v458_v21 = vadd.f32 %v6162_v17, %v457_v20 }
 0x3cb   :  { %v462_v24 = vsel %vm461_vm8, %v6162_v17, %v458_v21 }
 0x3cc   :  { %v467_v27 = vsel %vm464_vm9, %v466_v25, %v462_v24 }
 0x3cd   :  { %v473_v34 = vmul.f32 %v471_v33, %v467_v27 }
 0x412   :  { %v476_v26 = vpop.permute.xlu2 %475 }
 0x413   :  { %v478_v32 = vmul.f32 %v476_v26, %v467_v27 }
 0x415   :  { %480 = vrot.lane.b32.xlu2 %v478_v32, %s7018_s5 }
 0x46f   :  { %v481_v35 = vpop.permute.xlu2 %480 }
 0x470   :  { %v483_v36 = vadd.f32 %v481_v35, %v473_v34 }
 0x472   :  { %6163 = vtanh.f32 %v483_v36  ;;  %v541_v63 = vrot.slane %v483_v36, 6 }
 0x478   :  { %v6164_v37 = vpop.eup %6163 }
 0x479   :  { %486 = vrot.lane.b32.xlu0 %v6164_v37, %s7018_s5 }
 0x4eb   :  { %v487_v38 = vpop.permute.xlu0 %486 }
 0x4ec   :  { %v7354_v39 = vmul.f32 %v487_v38, %v467_v27 }
 0x4ee   :  { %v491_v43 = vrot.slane %v7354_v39, 2  ;;  %v1480_v13 = vsel %vm1479_vm14, %v7339_v1, %v7354_v39 }
 0x4f0   :  { %492 = vrot.lane.b32.xlu1 %v491_v43, %s7019_s17 }
 0x562   :  { %v493_v44 = vpop.permute.xlu1 %492 }
 0x563   :  { %5928 = vmatmul.msk.f32.vlgmr.msrb.gmra.mxu2 %vm356_vm5, %v493_v44 }
 0x564   :  { %791 = vmatpush.msrb.mxu2 %v7260_v6 }
 0x566   :  { %792 = vmatpush.msrb.mxu2 %v7265_v8 }
 0x568   :  { %793 = vmatpush.msrb.mxu2 %v7269_v9 }
 0x56a   :  { %794 = vmatpush.msrb.mxu2 %v7274_v10 }
 0x5e6   :  { %v513_v45 = vpop.f32.mrf.mxu2 }
 0x5e7   :  { %v517_v46 = vrot.slane %v513_v45, 4 }
 0x5e9   :  { %v519_v47 = vadd.f32 %v517_v46, %v7331_v41 }
 0x5eb   :  { %6165 = vtanh.f32 %v519_v47  ;;  %v5929_v49 = vmul.f32 -1.442695, %v519_v47 }
 0x5ed   :  { %6167 = vpow2.f32 %v5929_v49 }
 0x5f1   :  { %v6166_v48 = vpop.eup %6165 }
 0x5f2   :  { %545 = vrot.lane.b32.xlu2 %v6166_v48, %s7018_s5 }
 0x5f3   :  { %v6168_v50 = vpop.eup %6167 }
 0x5f4   :  { %v523_v51 = vadd.f32 1.0, %v6168_v50 }
 0x5f6   :  { %6169 = vrcp.f32 %v523_v51  ;;  %v535_v57 = vand.u32 2147483648, %v523_v51  ;;  %vm529_vm11 = vweird.f32 %v523_v51  ;;  %v533_v58 = vand.u32 2147483647, %v523_v51 }
 0x5f8   :  { %v536_v59 = vor.u32 1.1754944e-38, %v535_v57  ;;  %vm534_vm13 = vcmp.eq.f32.partialorder %v533_v58, 8.507059e+37 }
 0x5fc   :  { %v6170_v52 = vpop.eup %6169 }
 0x5fd   :  { %v525_v53 = vmul.f32 %v6170_v52, %v523_v51  ;;  %vm530_vm10 = vweird.f32 %v6170_v52 }
 0x5fe   :  { %vm531_vm12 = vmor %vm529_vm11, %vm530_vm10 }
 0x5ff   :  { %v526_v54 = vsub.f32 1.0, %v525_v53  ;;  %v1520_v53 = vrot.slane %v7354_v39, 6 }
 0x601   :  { %v527_v55 = vmul.f32 %v6170_v52, %v526_v54 }
 0x603   :  { %v528_v56 = vadd.f32 %v6170_v52, %v527_v55 }
 0x605   :  { %v532_v41 = vsel %vm531_vm12, %v6170_v52, %v528_v56 }
 0x606   :  { %v537_v61 = vsel %vm534_vm13, %v536_v59, %v532_v41 }
 0x607   :  { %v543_v0 = vmul.f32 %v541_v63, %v537_v61 }
 0x64c   :  { %v546_v60 = vpop.permute.xlu2 %545 }
 0x64d   :  { %v548_v62 = vmul.f32 %v546_v60, %v537_v61 }
 0x64f   :  { %550 = vrot.lane.b32.xlu0 %v548_v62, %s7018_s5 }
 0x6c1   :  { %v551_v2 = vpop.permute.xlu0 %550 }
 0x6c2   :  { %v553_v3 = vadd.f32 %v551_v2, %v543_v0 }
 0x6c4   :  { %6171 = vtanh.f32 %v553_v3  ;;  %v611_v43 = vrot.slane %v553_v3, 6 }
 0x6ca   :  { %v6172_v4 = vpop.eup %6171 }
 0x6cb   :  { %556 = vrot.lane.b32.xlu1 %v6172_v4, %s7018_s5 }
 0x73d   :  { %v557_v7 = vpop.permute.xlu1 %556 }
 0x73e   :  { %v559_v11 = vmul.f32 %v557_v7, %v537_v61 }
 0x740   :  { %v561_v14 = vrot.slane %v559_v11, 4  ;;  %v1482_v15 = vsel %vm1481_vm15, %v1480_v13, %v559_v11  ;;  %v1518_v50 = vrot.slane %v559_v11, 2 }
 0x742   :  { %562 = vrot.lane.b32.xlu2 %v561_v14, %s7019_s17 }
 0x79c   :  { %v563_v16 = vpop.permute.xlu2 %562 }
 0x79d   :  { %5930 = vmatmul.msk.f32.vlgmr.msrb.gmra.mxu3 %vm356_vm5, %v563_v16 }
 0x79e   :  { %861 = vmatpush.msrb.mxu3 %v7260_v6 }
 0x7a0   :  { %862 = vmatpush.msrb.mxu3 %v7265_v8 }
 0x7a2   :  { %863 = vmatpush.msrb.mxu3 %v7269_v9 }
 0x7a4   :  { %864 = vmatpush.msrb.mxu3 %v7274_v10 }
 0x820   :  { %v583_v17 = vpop.f32.mrf.mxu3 }
 0x821   :  { %v587_v18 = vrot.slane %v583_v17, 2 }
 0x823   :  { %v589_v19 = vadd.f32 %v587_v18, %v7348_v5 }
 0x825   :  { %6173 = vtanh.f32 %v589_v19  ;;  %v5931_v21 = vmul.f32 -1.442695, %v589_v19 }
 0x827   :  { %6175 = vpow2.f32 %v5931_v21 }
 0x82b   :  { %v6174_v20 = vpop.eup %6173 }
 0x82c   :  { %615 = vrot.lane.b32.xlu0 %v6174_v20, %s7018_s5 }
 0x82d   :  { %v6176_v22 = vpop.eup %6175 }
 0x82e   :  { %v593_v23 = vadd.f32 1.0, %v6176_v22 }
 0x830   :  { %6177 = vrcp.f32 %v593_v23  ;;  %v605_v33 = vand.u32 2147483648, %v593_v23  ;;  %vm599_vm1 = vweird.f32 %v593_v23  ;;  %v603_v34 = vand.u32 2147483647, %v593_v23 }
 0x832   :  { %v606_v35 = vor.u32 1.1754944e-38, %v605_v33  ;;  %vm604_vm3 = vcmp.eq.f32.partialorder %v603_v34, 8.507059e+37 }
 0x836   :  { %v6178_v24 = vpop.eup %6177 }
 0x837   :  { %v595_v25 = vmul.f32 %v6178_v24, %v593_v23  ;;  %vm600_vm0 = vweird.f32 %v6178_v24 }
 0x838   :  { %vm601_vm2 = vmor %vm599_vm1, %vm600_vm0 }
 0x839   :  { %v596_v26 = vsub.f32 1.0, %v595_v25 }
 0x83b   :  { %v597_v27 = vmul.f32 %v6178_v24, %v596_v26 }
 0x83d   :  { %v598_v32 = vadd.f32 %v6178_v24, %v597_v27 }
 0x83f   :  { %v602_v5 = vsel %vm601_vm2, %v6178_v24, %v598_v32 }
 0x840   :  { %v607_v37 = vsel %vm604_vm3, %v606_v35, %v602_v5 }
 0x841   :  { %v613_v44 = vmul.f32 %v611_v43, %v607_v37 }
 0x89e   :  { %v616_v36 = vpop.permute.xlu0 %615 }
 0x89f   :  { %v618_v38 = vmul.f32 %v616_v36, %v607_v37 }
 0x8a1   :  { %620 = vrot.lane.b32.xlu1 %v618_v38, %s7018_s5 }
 0x913   :  { %v621_v45 = vpop.permute.xlu1 %620 }
 0x914   :  { %v623_v46 = vadd.f32 %v621_v45, %v613_v44 }
 0x916   :  { %6179 = vtanh.f32 %v623_v46  ;;  %v682_v16 = vrot.slane %v623_v46, 6 }
 0x91c   :  { %v6180_v47 = vpop.eup %6179 }
 0x91d   :  { %626 = vrot.lane.b32.xlu2 %v6180_v47, %s7018_s5 }
 0x977   :  { %v627_v48 = vpop.permute.xlu2 %626 }
 0x978   :  { %v629_v49 = vmul.f32 %v627_v48, %v607_v37 }
 0x97a   :  { %v635_v51 = vrot.slane %v629_v49, 6  ;;  %v7382_v52 = vsel %vm1483_vm4, %v1482_v15, %v629_v49 }
 0x97c   :  { %636 = vrot.lane.b32.xlu0 %v635_v51, %s7019_s17  ;;  %v1533_v54 = vsel %vm1479_vm14, %v635_v51, %v1518_v50 }
 0x97d   :  { %v7388_v55 = vsel %vm1481_vm15, %v1533_v54, %v1520_v53 }
 0x9ee   :  { %v637_v56 = vpop.permute.xlu0 %636 }
 0x9ef   :  { %5932 = vmatmul.msk.f32.vlgmr.msra.gmra.mxu2 %vm356_vm5, %v637_v56 }
 0x9f0   :  { %1074 = vmatpush.msra.mxu2 %v7260_v6 }
 0x9f2   :  { %1075 = vmatpush.msra.mxu2 %v7265_v8 }
 0x9f4   :  { %1076 = vmatpush.msra.mxu2 %v7269_v9 }
 0x9f6   :  { %1077 = vmatpush.msra.mxu2 %v7274_v10 }
 0xa72   :  { %v657_v57 = vpop.f32.mrf.mxu2 }
 0xa73   :  { %v660_v39 = vadd.f32 %v657_v57, %v7325_v30 }
 0xa75   :  { %6181 = vtanh.f32 %v660_v39  ;;  %v5933_v41 = vmul.f32 -1.442695, %v660_v39 }
 0xa77   :  { %6183 = vpow2.f32 %v5933_v41 }
 0xa7b   :  { %v6182_v58 = vpop.eup %6181 }
 0xa7c   :  { %686 = vrot.lane.b32.xlu1 %v6182_v58, %s7018_s5 }
 0xa7d   :  { %v6184_v59 = vpop.eup %6183 }
 0xa7e   :  { %v664_v60 = vadd.f32 1.0, %v6184_v59 }
 0xa80   :  { %6185 = vrcp.f32 %v664_v60  ;;  %v676_v3 = vand.u32 2147483648, %v664_v60  ;;  %vm670_vm7 = vweird.f32 %v664_v60  ;;  %v674_v4 = vand.u32 2147483647, %v664_v60 }
 0xa82   :  { %v677_v11 = vor.u32 1.1754944e-38, %v676_v3  ;;  %vm675_vm9 = vcmp.eq.f32.partialorder %v674_v4, 8.507059e+37 }
 0xa86   :  { %v6186_v61 = vpop.eup %6185 }
 0xa87   :  { %v666_v62 = vmul.f32 %v6186_v61, %v664_v60  ;;  %vm671_vm6 = vweird.f32 %v6186_v61 }
 0xa88   :  { %vm672_vm8 = vmor %vm670_vm7, %vm671_vm6 }
 0xa89   :  { %v667_v63 = vsub.f32 1.0, %v666_v62 }
 0xa8b   :  { %v668_v0 = vmul.f32 %v6186_v61, %v667_v63 }
 0xa8d   :  { %v669_v2 = vadd.f32 %v6186_v61, %v668_v0 }
 0xa8f   :  { %v673_v7 = vsel %vm672_vm8, %v6186_v61, %v669_v2 }
 0xa90   :  { %v678_v14 = vsel %vm675_vm9, %v677_v11, %v673_v7 }
 0xa91   :  { %v684_v17 = vmul.f32 %v682_v16, %v678_v14 }
 0xaee   :  { %v687_v13 = vpop.permute.xlu1 %686 }
 0xaef   :  { %v689_v15 = vmul.f32 %v687_v13, %v678_v14 }
 0xaf1   :  { %691 = vrot.lane.b32.xlu2 %v689_v15, %s7018_s5 }
 0xb4b   :  { %v692_v18 = vpop.permute.xlu2 %691 }
 0xb4c   :  { %v694_v19 = vadd.f32 %v692_v18, %v684_v17 }
 0xb4e   :  { %6187 = vtanh.f32 %v694_v19  ;;  %v754_v50 = vrot.slane %v694_v19, 6 }
 0xb54   :  { %v6188_v20 = vpop.eup %6187 }
 0xb55   :  { %697 = vrot.lane.b32.xlu0 %v6188_v20, %s7018_s5 }
 0xbc7   :  { %v698_v21 = vpop.permute.xlu0 %697 }
 0xbc8   :  { %v7399_v22 = vmul.f32 %v698_v21, %v678_v14 }
 0xbca   :  { %705 = vrot.lane.b32.xlu1 %v7399_v22, %s7019_s17 }
 0xc3c   :  { %v706_v23 = vpop.permute.xlu1 %705 }
 0xc3d   :  { %5934 = vmatmul.msk.f32.vlgmr.msra.gmra.mxu3 %vm356_vm5, %v706_v23 }
 0xc3e   :  { %1144 = vmatpush.msra.mxu3 %v7260_v6 }
 0xc40   :  { %1145 = vmatpush.msra.mxu3 %v7265_v8 }
 0xc42   :  { %1146 = vmatpush.msra.mxu3 %v7269_v9 }
 0xc44   :  { %1147 = vmatpush.msra.mxu3 %v7274_v10 }
 0xcc0   :  { %v726_v24 = vpop.f32.mrf.mxu3 }
 0xcc1   :  { %v730_v25 = vrot.slane %v726_v24, 6 }
 0xcc3   :  { %v732_v26 = vadd.f32 %v730_v25, %v7323_v29 }
 0xcc5   :  { %6189 = vtanh.f32 %v732_v26  ;;  %v5935_v32 = vmul.f32 -1.442695, %v732_v26 }
 0xcc7   :  { %6191 = vpow2.f32 %v5935_v32 }
 0xccb   :  { %v6190_v27 = vpop.eup %6189 }
 0xccc   :  { %758 = vrot.lane.b32.xlu2 %v6190_v27, %s7018_s5 }
 0xccd   :  { %v6192_v33 = vpop.eup %6191 }
 0xcce   :  { %v736_v34 = vadd.f32 1.0, %v6192_v33 }
 0xcd0   :  { %6193 = vrcp.f32 %v736_v34  ;;  %v748_v43 = vand.u32 2147483648, %v736_v34  ;;  %vm742_vm11 = vweird.f32 %v736_v34  ;;  %v746_v44 = vand.u32 2147483647, %v736_v34 }
 0xcd2   :  { %v749_v46 = vor.u32 1.1754944e-38, %v748_v43  ;;  %vm747_vm13 = vcmp.eq.f32.partialorder %v746_v44, 8.507059e+37 }
 0xcd6   :  { %v6194_v5 = vpop.eup %6193 }
 0xcd7   :  { %v738_v35 = vmul.f32 %v6194_v5, %v736_v34  ;;  %vm743_vm10 = vweird.f32 %v6194_v5 }
 0xcd8   :  { %vm744_vm12 = vmor %vm742_vm11, %vm743_vm10 }
 0xcd9   :  { %v739_v36 = vsub.f32 1.0, %v738_v35 }
 0xcdb   :  { %v740_v37 = vmul.f32 %v6194_v5, %v739_v36 }
 0xcdd   :  { %v741_v38 = vadd.f32 %v6194_v5, %v740_v37 }
 0xcdf   :  { %v745_v45 = vsel %vm744_vm12, %v6194_v5, %v741_v38 }
 0xce0   :  { %v750_v48 = vsel %vm747_vm13, %v749_v46, %v745_v45 }
 0xce1   :  { %v756_v51 = vmul.f32 %v754_v50, %v750_v48 }
 0xd26   :  { %v759_v47 = vpop.permute.xlu2 %758 }
 0xd27   :  { %v761_v49 = vmul.f32 %v759_v47, %v750_v48 }
 0xd29   :  { %763 = vrot.lane.b32.xlu0 %v761_v49, %s7018_s5 }
 0xd9b   :  { %v764_v53 = vpop.permute.xlu0 %763 }
 0xd9c   :  { %v766_v54 = vadd.f32 %v764_v53, %v756_v51 }
 0xd9e   :  { %6195 = vtanh.f32 %v766_v54  ;;  %v824_v20 = vrot.slane %v766_v54, 6 }
 0xda4   :  { %v6196_v56 = vpop.eup %6195 }
 0xda5   :  { %769 = vrot.lane.b32.xlu1 %v6196_v56, %s7018_s5 }
 0xe17   :  { %v770_v57 = vpop.permute.xlu1 %769 }
 0xe18   :  { %v7412_v39 = vmul.f32 %v770_v57, %v750_v48 }
 0xe1a   :  { %v774_v58 = vrot.slane %v7412_v39, 2  ;;  %v1485_v32 = vsel %vm1479_vm14, %v7399_v22, %v7412_v39 }
 0xe1c   :  { %775 = vrot.lane.b32.xlu2 %v774_v58, %s7019_s17 }
 0xe76   :  { %v776_v41 = vpop.permute.xlu2 %775 }
 0xe77   :  { %5936 = vmatmul.msk.f32.vlgmr.msrb.gmra.mxu2 %vm356_vm5, %v776_v41 }
 0xe78   :  { %1357 = vmatpush.msrb.mxu2 %v7260_v6 }
 0xe7a   :  { %1358 = vmatpush.msrb.mxu2 %v7265_v8 }
 0xe7c   :  { %1359 = vmatpush.msrb.mxu2 %v7269_v9 }
 0xe7e   :  { %1360 = vmatpush.msrb.mxu2 %v7274_v10 }
 0xefa   :  { %v796_v59 = vpop.f32.mrf.mxu2 }
 0xefb   :  { %v800_v60 = vrot.slane %v796_v59, 4 }
 0xefd   :  { %v802_v61 = vadd.f32 %v800_v60, %v7325_v30 }
 0xeff   :  { %6197 = vtanh.f32 %v802_v61  ;;  %v5937_v63 = vmul.f32 -1.442695, %v802_v61 }
 0xf01   :  { %6199 = vpow2.f32 %v5937_v63 }
 0xf05   :  { %v6198_v62 = vpop.eup %6197 }
 0xf06   :  { %828 = vrot.lane.b32.xlu0 %v6198_v62, %s7018_s5 }
 0xf07   :  { %v6200_v0 = vpop.eup %6199 }
 0xf08   :  { %v806_v2 = vadd.f32 1.0, %v6200_v0  ;;  %v1513_v0 = vrot.slane %v7412_v39, 6 }
 0xf0a   :  { %6201 = vrcp.f32 %v806_v2  ;;  %v818_v14 = vand.u32 2147483648, %v806_v2  ;;  %vm812_vm1 = vweird.f32 %v806_v2  ;;  %v816_v15 = vand.u32 2147483647, %v806_v2 }
 0xf0c   :  { %v819_v16 = vor.u32 1.1754944e-38, %v818_v14  ;;  %vm817_vm3 = vcmp.eq.f32.partialorder %v816_v15, 8.507059e+37 }
 0xf10   :  { %v6202_v3 = vpop.eup %6201 }
 0xf11   :  { %v808_v4 = vmul.f32 %v6202_v3, %v806_v2  ;;  %vm813_vm0 = vweird.f32 %v6202_v3 }
 0xf12   :  { %vm814_vm2 = vmor %vm812_vm1, %vm813_vm0 }
 0xf13   :  { %v809_v7 = vsub.f32 1.0, %v808_v4 }
 0xf15   :  { %v810_v11 = vmul.f32 %v6202_v3, %v809_v7 }
 0xf17   :  { %v811_v13 = vadd.f32 %v6202_v3, %v810_v11 }
 0xf19   :  { %v815_v30 = vsel %vm814_vm2, %v6202_v3, %v811_v13 }
 0xf1a   :  { %v820_v18 = vsel %vm817_vm3, %v819_v16, %v815_v30 }
 0xf1b   :  { %v826_v21 = vmul.f32 %v824_v20, %v820_v18 }
 0xf78   :  { %v829_v17 = vpop.permute.xlu0 %828 }
 0xf79   :  { %v831_v19 = vmul.f32 %v829_v17, %v820_v18 }
 0xf7b   :  { %833 = vrot.lane.b32.xlu1 %v831_v19, %s7018_s5 }
 0xfed   :  { %v834_v23 = vpop.permute.xlu1 %833 }
 0xfee   :  { %v836_v24 = vadd.f32 %v834_v23, %v826_v21 }
 0xff0   :  { %6203 = vtanh.f32 %v836_v24  ;;  %v894_v54 = vrot.slane %v836_v24, 6 }
 0xff6   :  { %v6204_v25 = vpop.eup %6203 }
 0xff7   :  { %839 = vrot.lane.b32.xlu2 %v6204_v25, %s7018_s5 }
0x1051   :  { %v840_v26 = vpop.permute.xlu2 %839 }
0x1052   :  { %v842_v27 = vmul.f32 %v840_v26, %v820_v18 }
0x1054   :  { %v844_v33 = vrot.slane %v842_v27, 4  ;;  %v1486_v34 = vsel %vm1481_vm15, %v1485_v32, %v842_v27  ;;  %v1511_v61 = vrot.slane %v842_v27, 2 }
0x1056   :  { %845 = vrot.lane.b32.xlu0 %v844_v33, %s7019_s17 }
0x10c8   :  { %v846_v5 = vpop.permute.xlu0 %845 }
0x10c9   :  { %5938 = vmatmul.msk.f32.vlgmr.msrb.gmra.mxu3 %vm356_vm5, %v846_v5 }
0x10ca   :  { %1427 = vmatpush.msrb.mxu3 %v7260_v6 }
0x10cc   :  { %1428 = vmatpush.msrb.mxu3 %v7265_v8 }
0x10ce   :  { %1429 = vmatpush.msrb.mxu3 %v7269_v9 }
0x10d0   :  { %1430 = vmatpush.msrb.mxu3 %v7274_v10 }
0x114c   :  { %v866_v35 = vpop.f32.mrf.mxu3 }
0x114d   :  { %v870_v36 = vrot.slane %v866_v35, 2 }
0x114f   :  { %v872_v37 = vadd.f32 %v870_v36, %v7323_v29 }
0x1151   :  { %6205 = vtanh.f32 %v872_v37  ;;  %v5939_v43 = vmul.f32 -1.442695, %v872_v37 }
0x1153   :  { %6207 = vpow2.f32 %v5939_v43 }
0x1157   :  { %v6206_v38 = vpop.eup %6205 }
0x1158   :  { %898 = vrot.lane.b32.xlu1 %v6206_v38, %s7018_s5 }
0x1159   :  { %v6208_v44 = vpop.eup %6207 }
0x115a   :  { %v876_v45 = vadd.f32 1.0, %v6208_v44 }
0x115c   :  { %6209 = vrcp.f32 %v876_v45  ;;  %v888_v10 = vand.u32 2147483648, %v876_v45  ;;  %vm882_vm7 = vweird.f32 %v876_v45  ;;  %v886_v48 = vand.u32 2147483647, %v876_v45 }
0x115e   :  { %v889_v49 = vor.u32 1.1754944e-38, %v888_v10  ;;  %vm887_vm9 = vcmp.eq.f32.partialorder %v886_v48, 8.507059e+37 }
0x1162   :  { %v6210_v6 = vpop.eup %6209 }
0x1163   :  { %v878_v46 = vmul.f32 %v6210_v6, %v876_v45  ;;  %vm883_vm6 = vweird.f32 %v6210_v6 }
0x1164   :  { %vm884_vm8 = vmor %vm882_vm7, %vm883_vm6 }
0x1165   :  { %v879_v8 = vsub.f32 1.0, %v878_v46 }
0x1167   :  { %v880_v47 = vmul.f32 %v6210_v6, %v879_v8 }
0x1169   :  { %v881_v9 = vadd.f32 %v6210_v6, %v880_v47 }
0x116b   :  { %v885_v29 = vsel %vm884_vm8, %v6210_v6, %v881_v9 }
0x116c   :  { %v890_v51 = vsel %vm887_vm9, %v889_v49, %v885_v29 }
0x116d   :  { %v896_v56 = vmul.f32 %v894_v54, %v890_v51 }
0x11ca   :  { %v899_v50 = vpop.permute.xlu1 %898 }
0x11cb   :  { %v901_v53 = vmul.f32 %v899_v50, %v890_v51 }
0x11cd   :  { %903 = vrot.lane.b32.xlu2 %v901_v53, %s7018_s5 }
0x1227   :  { %v904_v57 = vpop.permute.xlu2 %903 }
0x1228   :  { %v906_v58 = vadd.f32 %v904_v57, %v896_v56 }
0x122a   :  { %6211 = vtanh.f32 %v906_v58  ;;  %v965_v32 = vrot.slane %v906_v58, 6 }
0x1230   :  { %v6212_v41 = vpop.eup %6211 }
0x1231   :  { %909 = vrot.lane.b32.xlu0 %v6212_v41, %s7018_s5 }
0x12a3   :  { %v910_v59 = vpop.permute.xlu0 %909 }
0x12a4   :  { %v912_v60 = vmul.f32 %v910_v59, %v890_v51 }
0x12a6   :  { %v918_v62 = vrot.slane %v912_v60, 6  ;;  %v7440_v63 = vsel %vm1483_vm4, %v1486_v34, %v912_v60 }
0x12a8   :  { %919 = vrot.lane.b32.xlu1 %v918_v62, %s7019_s17  ;;  %v1530_v2 = vsel %vm1479_vm14, %v918_v62, %v1511_v61 }
0x12a9   :  { %v7446_v3 = vsel %vm1481_vm15, %v1530_v2, %v1513_v0 }
0x131a   :  { %v920_v4 = vpop.permute.xlu1 %919 }
0x131b   :  { %5940 = vmatmul.msk.f32.vlgmr.msrb.gmra.mxu0 %vm356_vm5, %v920_v4 }
0x1398   :  { %v940_v7 = vpop.f32.mrf.mxu0 }
0x1399   :  { %v943_v11 = vadd.f32 %v940_v7, %v7327_v31 }
0x139b   :  { %6213 = vtanh.f32 %v943_v11  ;;  %v5941_v14 = vmul.f32 -1.442695, %v943_v11 }
0x139d   :  { %6215 = vpow2.f32 %v5941_v14 }
0x13a1   :  { %v6214_v13 = vpop.eup %6213 }
0x13a2   :  { %969 = vrot.lane.b32.xlu2 %v6214_v13, %s7018_s5 }
0x13a3   :  { %v6216_v39 = vpop.eup %6215 }
0x13a4   :  { %v947_v15 = vadd.f32 1.0, %v6216_v39 }
0x13a6   :  { %6217 = vrcp.f32 %v947_v15  ;;  %v959_v20 = vand.u32 2147483648, %v947_v15  ;;  %vm953_vm11 = vweird.f32 %v947_v15  ;;  %v957_v21 = vand.u32 2147483647, %v947_v15 }
0x13a8   :  { %v960_v24 = vor.u32 1.1754944e-38, %v959_v20  ;;  %vm958_vm13 = vcmp.eq.f32.partialorder %v957_v21, 8.507059e+37 }
0x13ac   :  { %v6218_v30 = vpop.eup %6217 }
0x13ad   :  { %v949_v16 = vmul.f32 %v6218_v30, %v947_v15  ;;  %vm954_vm10 = vweird.f32 %v6218_v30 }
0x13ae   :  { %vm955_vm12 = vmor %vm953_vm11, %vm954_vm10 }
0x13af   :  { %v950_v17 = vsub.f32 1.0, %v949_v16 }
0x13b1   :  { %v951_v18 = vmul.f32 %v6218_v30, %v950_v17 }
0x13b3   :  { %v952_v19 = vadd.f32 %v6218_v30, %v951_v18 }
0x13b5   :  { %v956_v23 = vsel %vm955_vm12, %v6218_v30, %v952_v19 }
0x13b6   :  { %v961_v26 = vsel %vm958_vm13, %v960_v24, %v956_v23 }
0x13b7   :  { %v967_v33 = vmul.f32 %v965_v32, %v961_v26 }
0x13fc   :  { %v970_v25 = vpop.permute.xlu2 %969 }
0x13fd   :  { %v972_v27 = vmul.f32 %v970_v25, %v961_v26 }
0x13ff   :  { %974 = vrot.lane.b32.xlu0 %v972_v27, %s7018_s5 }
0x1471   :  { %v975_v34 = vpop.permute.xlu0 %974 }
0x1472   :  { %v977_v5 = vadd.f32 %v975_v34, %v967_v33 }
0x1474   :  { %6219 = vtanh.f32 %v977_v5  ;;  %v1037_v41 = vrot.slane %v977_v5, 6 }
0x147a   :  { %v6220_v35 = vpop.eup %6219 }
0x147b   :  { %980 = vrot.lane.b32.xlu1 %v6220_v35, %s7018_s5 }
0x14ed   :  { %v981_v36 = vpop.permute.xlu1 %980 }
0x14ee   :  { %v7453_v37 = vmul.f32 %v981_v36, %v961_v26 }
0x14f0   :  { %988 = vrot.lane.b32.xlu2 %v7453_v37, %s7019_s17 }
0x154a   :  { %v989_v38 = vpop.permute.xlu2 %988 }
0x154b   :  { %5942 = vmatmul.msk.f32.vlgmr.msrb.gmra.mxu1 %vm356_vm5, %v989_v38 }
0x15c8   :  { %v1009_v43 = vpop.f32.mrf.mxu1 }
0x15c9   :  { %v1013_v44 = vrot.slane %v1009_v43, 6 }
0x15cb   :  { %v1015_v45 = vadd.f32 %v1013_v44, %v7321_v28 }
0x15cd   :  { %6221 = vtanh.f32 %v1015_v45  ;;  %v5943_v46 = vmul.f32 -1.442695, %v1015_v45 }
0x15cf   :  { %6223 = vpow2.f32 %v5943_v46 }
0x15d3   :  { %v6222_v6 = vpop.eup %6221 }
0x15d4   :  { %1041 = vrot.lane.b32.xlu0 %v6222_v6, %s7018_s5 }
0x15d5   :  { %v6224_v8 = vpop.eup %6223 }
0x15d6   :  { %v1019_v47 = vadd.f32 1.0, %v6224_v8 }
0x15d8   :  { %6225 = vrcp.f32 %v1019_v47  ;;  %v1031_v50 = vand.u32 2147483648, %v1019_v47  ;;  %vm1025_vm1 = vweird.f32 %v1019_v47  ;;  %v1029_v51 = vand.u32 2147483647, %v1019_v47 }
0x15da   :  { %v1032_v54 = vor.u32 1.1754944e-38, %v1031_v50  ;;  %vm1030_vm3 = vcmp.eq.f32.partialorder %v1029_v51, 8.507059e+37 }
0x15de   :  { %v6226_v9 = vpop.eup %6225 }
0x15df   :  { %v1021_v10 = vmul.f32 %v6226_v9, %v1019_v47  ;;  %vm1026_vm0 = vweird.f32 %v6226_v9 }
0x15e0   :  { %vm1027_vm2 = vmor %vm1025_vm1, %vm1026_vm0 }
0x15e1   :  { %v1022_v48 = vsub.f32 1.0, %v1021_v10 }
0x15e3   :  { %v1023_v29 = vmul.f32 %v6226_v9, %v1022_v48 }
0x15e5   :  { %v1024_v49 = vadd.f32 %v6226_v9, %v1023_v29 }
0x15e7   :  { %v1028_v53 = vsel %vm1027_vm2, %v6226_v9, %v1024_v49 }
0x15e8   :  { %v1033_v57 = vsel %vm1030_vm3, %v1032_v54, %v1028_v53 }
0x15e9   :  { %v1039_v59 = vmul.f32 %v1037_v41, %v1033_v57 }
0x1646   :  { %v1042_v56 = vpop.permute.xlu0 %1041 }
0x1647   :  { %v1044_v58 = vmul.f32 %v1042_v56, %v1033_v57 }
0x1649   :  { %1046 = vrot.lane.b32.xlu1 %v1044_v58, %s7018_s5 }
0x16bb   :  { %v1047_v60 = vpop.permute.xlu1 %1046 }
0x16bc   :  { %v1049_v61 = vadd.f32 %v1047_v60, %v1039_v59 }
0x16be   :  { %6227 = vtanh.f32 %v1049_v61  ;;  %v1107_v33 = vrot.slane %v1049_v61, 6 }
0x16c4   :  { %v6228_v62 = vpop.eup %6227 }
0x16c5   :  { %1052 = vrot.lane.b32.xlu2 %v6228_v62, %s7018_s5 }
0x171f   :  { %v1053_v0 = vpop.permute.xlu2 %1052 }
0x1720   :  { %v7462_v2 = vmul.f32 %v1053_v0, %v1033_v57 }
0x1722   :  { %v1057_v4 = vrot.slane %v7462_v2, 2  ;;  %v1488_v44 = vsel %vm1479_vm14, %v7453_v37, %v7462_v2 }
0x1724   :  { %1058 = vrot.lane.b32.xlu0 %v1057_v4, %s7019_s17 }
0x1796   :  { %v1059_v7 = vpop.permute.xlu0 %1058 }
0x1797   :  { %5944 = vmatmul.msk.f32.vlgmr.msra.gmra.mxu2 %vm356_vm5, %v1059_v7 }
0x181a   :  { %v1079_v11 = vpop.f32.mrf.mxu2 }
0x181b   :  { %v1083_v13 = vrot.slane %v1079_v11, 4 }
0x181d   :  { %v1085_v14 = vadd.f32 %v1083_v13, %v7327_v31 }
0x181f   :  { %6229 = vtanh.f32 %v1085_v14  ;;  %v5945_v15 = vmul.f32 -1.442695, %v1085_v14 }
0x1821   :  { %6231 = vpow2.f32 %v5945_v15 }
0x1825   :  { %v6230_v39 = vpop.eup %6229 }
0x1826   :  { %1111 = vrot.lane.b32.xlu1 %v6230_v39, %s7018_s5 }
0x1827   :  { %v6232_v30 = vpop.eup %6231 }
0x1828   :  { %v1089_v16 = vadd.f32 1.0, %v6232_v30 }
0x182a   :  { %6233 = vrcp.f32 %v1089_v16  ;;  %v1101_v23 = vand.u32 2147483648, %v1089_v16  ;;  %vm1095_vm7 = vweird.f32 %v1089_v16  ;;  %v1099_v24 = vand.u32 2147483647, %v1089_v16 }
0x182c   :  { %v1102_v25 = vor.u32 1.1754944e-38, %v1101_v23  ;;  %vm1100_vm9 = vcmp.eq.f32.partialorder %v1099_v24, 8.507059e+37 }
0x1830   :  { %v6234_v17 = vpop.eup %6233 }
0x1831   :  { %v1091_v18 = vmul.f32 %v6234_v17, %v1089_v16  ;;  %vm1096_vm6 = vweird.f32 %v6234_v17  ;;  %v1506_v16 = vrot.slane %v7462_v2, 6 }
0x1832   :  { %vm1097_vm8 = vmor %vm1095_vm7, %vm1096_vm6 }
0x1833   :  { %v1092_v19 = vsub.f32 1.0, %v1091_v18 }
0x1835   :  { %v1093_v20 = vmul.f32 %v6234_v17, %v1092_v19 }
0x1837   :  { %v1094_v21 = vadd.f32 %v6234_v17, %v1093_v20 }
0x1839   :  { %v1098_v31 = vsel %vm1097_vm8, %v6234_v17, %v1094_v21 }
0x183a   :  { %v1103_v27 = vsel %vm1100_vm9, %v1102_v25, %v1098_v31 }
0x183b   :  { %v1109_v34 = vmul.f32 %v1107_v33, %v1103_v27 }
0x1898   :  { %v1112_v26 = vpop.permute.xlu1 %1111 }
0x1899   :  { %v1114_v32 = vmul.f32 %v1112_v26, %v1103_v27 }
0x189b   :  { %1116 = vrot.lane.b32.xlu2 %v1114_v32, %s7018_s5 }
0x18f5   :  { %v1117_v5 = vpop.permute.xlu2 %1116 }
0x18f6   :  { %v1119_v35 = vadd.f32 %v1117_v5, %v1109_v34 }
0x18f8   :  { %6235 = vtanh.f32 %v1119_v35  ;;  %v1177_v62 = vrot.slane %v1119_v35, 6 }
0x18fe   :  { %v6236_v36 = vpop.eup %6235 }
0x18ff   :  { %1122 = vrot.lane.b32.xlu0 %v6236_v36, %s7018_s5 }
0x1971   :  { %v1123_v38 = vpop.permute.xlu0 %1122 }
0x1972   :  { %v1125_v43 = vmul.f32 %v1123_v38, %v1103_v27 }
0x1974   :  { %v1127_v45 = vrot.slane %v1125_v43, 4  ;;  %v1489_v6 = vsel %vm1481_vm15, %v1488_v44, %v1125_v43  ;;  %v1504_v39 = vrot.slane %v1125_v43, 2 }
0x1976   :  { %1128 = vrot.lane.b32.xlu1 %v1127_v45, %s7019_s17 }
0x19e8   :  { %v1129_v46 = vpop.permute.xlu1 %1128 }
0x19e9   :  { %5946 = vmatmul.msk.f32.vlgmr.msra.gmra.mxu3 %vm356_vm5, %v1129_v46 }
0x1a6c   :  { %v1149_v8 = vpop.f32.mrf.mxu3 }
0x1a6d   :  { %v1153_v47 = vrot.slane %v1149_v8, 2 }
0x1a6f   :  { %v1155_v9 = vadd.f32 %v1153_v47, %v7321_v28 }
0x1a71   :  { %6237 = vtanh.f32 %v1155_v9  ;;  %v5947_v48 = vmul.f32 -1.442695, %v1155_v9 }
0x1a73   :  { %6239 = vpow2.f32 %v5947_v48 }
0x1a77   :  { %v6238_v10 = vpop.eup %6237 }
0x1a78   :  { %1181 = vrot.lane.b32.xlu2 %v6238_v10, %s7018_s5 }
0x1a79   :  { %v6240_v29 = vpop.eup %6239 }
0x1a7a   :  { %v1159_v49 = vadd.f32 1.0, %v6240_v29 }
0x1a7c   :  { %6241 = vrcp.f32 %v1159_v49  ;;  %v1171_v57 = vand.u32 2147483648, %v1159_v49  ;;  %vm1165_vm11 = vweird.f32 %v1159_v49  ;;  %v1169_v58 = vand.u32 2147483647, %v1159_v49 }
0x1a7e   :  { %v1172_v41 = vor.u32 1.1754944e-38, %v1171_v57  ;;  %vm1170_vm13 = vcmp.eq.f32.partialorder %v1169_v58, 8.507059e+37 }
0x1a82   :  { %v6242_v50 = vpop.eup %6241 }
0x1a83   :  { %v1161_v51 = vmul.f32 %v6242_v50, %v1159_v49  ;;  %vm1166_vm10 = vweird.f32 %v6242_v50 }
0x1a84   :  { %vm1167_vm12 = vmor %vm1165_vm11, %vm1166_vm10 }
0x1a85   :  { %v1162_v53 = vsub.f32 1.0, %v1161_v51 }
0x1a87   :  { %v1163_v54 = vmul.f32 %v6242_v50, %v1162_v53 }
0x1a89   :  { %v1164_v56 = vadd.f32 %v6242_v50, %v1163_v54 }
0x1a8b   :  { %v1168_v28 = vsel %vm1167_vm12, %v6242_v50, %v1164_v56 }
0x1a8c   :  { %v1173_v60 = vsel %vm1170_vm13, %v1172_v41, %v1168_v28 }
0x1a8d   :  { %v1179_v0 = vmul.f32 %v1177_v62, %v1173_v60 }
0x1ad2   :  { %v1182_v59 = vpop.permute.xlu2 %1181 }
0x1ad3   :  { %v1184_v61 = vmul.f32 %v1182_v59, %v1173_v60 }
0x1ad5   :  { %1186 = vrot.lane.b32.xlu0 %v1184_v61, %s7018_s5 }
0x1b47   :  { %v1187_v4 = vpop.permute.xlu0 %1186 }
0x1b48   :  { %v1189_v7 = vadd.f32 %v1187_v4, %v1179_v0 }
0x1b4a   :  { %6243 = vtanh.f32 %v1189_v7  ;;  %v1248_v45 = vrot.slane %v1189_v7, 6 }
0x1b50   :  { %v6244_v11 = vpop.eup %6243 }
0x1b51   :  { %1192 = vrot.lane.b32.xlu1 %v6244_v11, %s7018_s5 }
0x1bc3   :  { %v1193_v13 = vpop.permute.xlu1 %1192 }
0x1bc4   :  { %v1195_v14 = vmul.f32 %v1193_v13, %v1173_v60 }
0x1bc6   :  { %v1201_v15 = vrot.slane %v1195_v14, 6  ;;  %v7482_v30 = vsel %vm1483_vm4, %v1489_v6, %v1195_v14 }
0x1bc8   :  { %1202 = vrot.lane.b32.xlu2 %v1201_v15, %s7019_s17  ;;  %v1527_v17 = vsel %vm1479_vm14, %v1201_v15, %v1504_v39 }
0x1bc9   :  { %v7488_v18 = vsel %vm1481_vm15, %v1527_v17, %v1506_v16 }
0x1c22   :  { %v1203_v19 = vpop.permute.xlu2 %1202 }
0x1c23   :  { %5948 = vmatmul.msk.f32.vlgmr.msra.gmra.mxu0 %vm356_vm5, %v1203_v19 }
0x1ca0   :  { %v1223_v20 = vpop.f32.mrf.mxu0 }
0x1ca1   :  { %v1226_v21 = vadd.f32 %v1223_v20, %v7333_v42 }
0x1ca3   :  { %6245 = vtanh.f32 %v1226_v21  ;;  %v5949_v24 = vmul.f32 -1.442695, %v1226_v21 }
0x1ca5   :  { %6247 = vpow2.f32 %v5949_v24 }
0x1ca9   :  { %v6246_v23 = vpop.eup %6245 }
0x1caa   :  { %1252 = vrot.lane.b32.xlu0 %v6246_v23, %s7018_s5 }
0x1cab   :  { %v6248_v2 = vpop.eup %6247 }
0x1cac   :  { %v1230_v31 = vadd.f32 1.0, %v6248_v2 }
0x1cae   :  { %6249 = vrcp.f32 %v1230_v31  ;;  %v1242_v34 = vand.u32 2147483648, %v1230_v31  ;;  %vm1236_vm1 = vweird.f32 %v1230_v31  ;;  %v1240_v5 = vand.u32 2147483647, %v1230_v31 }
0x1cb0   :  { %v1243_v36 = vor.u32 1.1754944e-38, %v1242_v34  ;;  %vm1241_vm3 = vcmp.eq.f32.partialorder %v1240_v5, 8.507059e+37 }
0x1cb4   :  { %v6250_v25 = vpop.eup %6249 }
0x1cb5   :  { %v1232_v26 = vmul.f32 %v6250_v25, %v1230_v31  ;;  %vm1237_vm0 = vweird.f32 %v6250_v25 }
0x1cb6   :  { %vm1238_vm2 = vmor %vm1236_vm1, %vm1237_vm0 }
0x1cb7   :  { %v1233_v27 = vsub.f32 1.0, %v1232_v26 }
0x1cb9   :  { %v1234_v32 = vmul.f32 %v6250_v25, %v1233_v27 }
0x1cbb   :  { %v1235_v33 = vadd.f32 %v6250_v25, %v1234_v32 }
0x1cbd   :  { %v1239_v35 = vsel %vm1238_vm2, %v6250_v25, %v1235_v33 }
0x1cbe   :  { %v1244_v43 = vsel %vm1241_vm3, %v1243_v36, %v1239_v35 }
0x1cbf   :  { %v1250_v6 = vmul.f32 %v1248_v45, %v1244_v43 }
0x1d1c   :  { %v1253_v38 = vpop.permute.xlu0 %1252 }
0x1d1d   :  { %v1255_v44 = vmul.f32 %v1253_v38, %v1244_v43 }
0x1d1f   :  { %1257 = vrot.lane.b32.xlu1 %v1255_v44, %s7018_s5 }
0x1d91   :  { %v1258_v46 = vpop.permute.xlu1 %1257 }
0x1d92   :  { %v1260_v8 = vadd.f32 %v1258_v46, %v1250_v6 }
0x1d94   :  { %6251 = vtanh.f32 %v1260_v8  ;;  %v1320_v13 = vrot.slane %v1260_v8, 6 }
0x1d9a   :  { %v6252_v47 = vpop.eup %6251 }
0x1d9b   :  { %1263 = vrot.lane.b32.xlu2 %v6252_v47, %s7018_s5 }
0x1df5   :  { %v1264_v9 = vpop.permute.xlu2 %1263 }
0x1df6   :  { %v7495_v10 = vmul.f32 %v1264_v9, %v1244_v43 }
0x1df8   :  { %1271 = vrot.lane.b32.xlu0 %v7495_v10, %s7019_s17 }
0x1e6a   :  { %v1272_v48 = vpop.permute.xlu0 %1271 }
0x1e6b   :  { %5950 = vmatmul.msk.f32.vlgmr.msra.gmra.mxu1 %vm356_vm5, %v1272_v48 }
0x1ee8   :  { %v1292_v29 = vpop.f32.mrf.mxu1 }
0x1ee9   :  { %v1296_v49 = vrot.slane %v1292_v29, 6 }
0x1eeb   :  { %v1298_v50 = vadd.f32 %v1296_v49, %v7329_v40 }
0x1eed   :  { %6253 = vtanh.f32 %v1298_v50  ;;  %v5951_v53 = vmul.f32 -1.442695, %v1298_v50 }
0x1eef   :  { %6255 = vpow2.f32 %v5951_v53 }
0x1ef3   :  { %v6254_v51 = vpop.eup %6253 }
0x1ef4   :  { %1324 = vrot.lane.b32.xlu1 %v6254_v51, %s7018_s5 }
0x1ef5   :  { %v6256_v54 = vpop.eup %6255 }
0x1ef6   :  { %v1302_v56 = vadd.f32 1.0, %v6256_v54 }
0x1ef8   :  { %6257 = vrcp.f32 %v1302_v56  ;;  %v1314_v60 = vand.u32 2147483648, %v1302_v56  ;;  %vm1308_vm7 = vweird.f32 %v1302_v56  ;;  %v1312_v61 = vand.u32 2147483647, %v1302_v56 }
0x1efa   :  { %v1315_v0 = vor.u32 1.1754944e-38, %v1314_v60  ;;  %vm1313_vm9 = vcmp.eq.f32.partialorder %v1312_v61, 8.507059e+37 }
0x1efe   :  { %v6258_v57 = vpop.eup %6257 }
0x1eff   :  { %v1304_v58 = vmul.f32 %v6258_v57, %v1302_v56  ;;  %vm1309_vm6 = vweird.f32 %v6258_v57 }
0x1f00   :  { %vm1310_vm8 = vmor %vm1308_vm7, %vm1309_vm6  ;;  %vm1568_vm6 = vcmask 130048  }
0x1f01   :  { %v1305_v28 = vsub.f32 1.0, %v1304_v58 }
0x1f03   :  { %v1306_v41 = vmul.f32 %v6258_v57, %v1305_v28 }
0x1f05   :  { %v1307_v59 = vadd.f32 %v6258_v57, %v1306_v41  ;;  %v1508_v41 = vrot.slane %v7453_v37, 2 }
0x1f07   :  { %v1311_v62 = vsel %vm1310_vm8, %v6258_v57, %v1307_v59  ;;  %v1529_v59 = vsel %vm1483_vm4, %v7488_v18, %v1508_v41 }
0x1f08   :  { %v1316_v7 = vsel %vm1313_vm9, %v1315_v0, %v1311_v62 }
0x1f09   :  { %v1322_v14 = vmul.f32 %v1320_v13, %v1316_v7 }
0x1f66   :  { %v1325_v4 = vpop.permute.xlu1 %1324 }
0x1f67   :  { %v1327_v11 = vmul.f32 %v1325_v4, %v1316_v7 }
0x1f69   :  { %1329 = vrot.lane.b32.xlu2 %v1327_v11, %s7018_s5 }
0x1fc3   :  { %v1330_v39 = vpop.permute.xlu2 %1329 }
0x1fc4   :  { %v1332_v15 = vadd.f32 %v1330_v39, %v1322_v14 }
0x1fc6   :  { %6259 = vtanh.f32 %v1332_v15  ;;  %v1390_v46 = vrot.slane %v1332_v15, 6 }
0x1fcc   :  { %v6260_v16 = vpop.eup %6259 }
0x1fcd   :  { %1335 = vrot.lane.b32.xlu0 %v6260_v16, %s7018_s5 }
0x203f   :  { %v1336_v17 = vpop.permute.xlu0 %1335 }
0x2040   :  { %v7504_v19 = vmul.f32 %v1336_v17, %v1316_v7 }
0x2042   :  { %v1340_v20 = vrot.slane %v7504_v19, 2  ;;  %v1491_v50 = vsel %vm1479_vm14, %v7495_v10, %v7504_v19 }
0x2044   :  { %1341 = vrot.lane.b32.xlu1 %v1340_v20, %s7019_s17 }
0x20b6   :  { %v1342_v21 = vpop.permute.xlu1 %1341 }
0x20b7   :  { %5952 = vmatmul.msk.f32.vlgmr.msrb.gmra.mxu2 %vm356_vm5, %v1342_v21 }
0x213a   :  { %v1362_v23 = vpop.f32.mrf.mxu2 }
0x213b   :  { %v1366_v24 = vrot.slane %v1362_v23, 4 }
0x213d   :  { %v1368_v2 = vadd.f32 %v1366_v24, %v7333_v42  ;;  %v1515_v24 = vrot.slane %v7399_v22, 2 }
0x213f   :  { %6261 = vtanh.f32 %v1368_v2  ;;  %v5953_v25 = vmul.f32 -1.442695, %v1368_v2  ;;  %v1532_v2 = vsel %vm1483_vm4, %v7446_v3, %v1515_v24  ;;  %v1499_v3 = vrot.slane %v7504_v19, 6 }
0x2141   :  { %6263 = vpow2.f32 %v5953_v25  ;;  %v1576_v25 = vld [vmem:[%s7059_s25 + $0x18] sm:$0xff] }
0x2142   :  { %1613 = vmatpush.msrb.mxu0 %v1576_v25 }
0x2145   :  { %v6262_v31 = vpop.eup %6261 }
0x2146   :  { %1394 = vrot.lane.b32.xlu2 %v6262_v31, %s7018_s5  ;;  %v1580_v31 = vld [vmem:[%s7064_s29 + $0x18] sm:$0xff] }
0x2147   :  { %v6264_v26 = vpop.eup %6263  ;;  %1642 = vmatpush.msrb.mxu1 %v1580_v31 }
0x2148   :  { %v1372_v27 = vadd.f32 1.0, %v6264_v26  ;;  %v1579_v26 = vld [vmem:[%s7064_s29 + $0x10] sm:$0xff] }
0x2149   :  { %1643 = vmatpush.msrb.mxu1 %v1579_v26 }
0x214a   :  { %6265 = vrcp.f32 %v1372_v27  ;;  %v1384_v36 = vand.u32 2147483648, %v1372_v27  ;;  %vm1378_vm11 = vweird.f32 %v1372_v27  ;;  %v1382_v38 = vand.u32 2147483647, %v1372_v27 }
0x214c   :  { %v1385_v43 = vor.u32 1.1754944e-38, %v1384_v36  ;;  %vm1383_vm13 = vcmp.eq.f32.partialorder %v1382_v38, 8.507059e+37  ;;  %v1522_v38 = vrot.slane %v7339_v1, 2  ;;  %v7568_v1 = vld [vmem:[#allocation7 + $0x10] sm:$0xff] }
0x214e   :  { %v1535_v19 = vsel %vm1483_vm4, %v7388_v55, %v1522_v38  ;;  %v7570_v55 = vld [vmem:[#allocation7 + $0x8] sm:$0xff] }
0x2150   :  { %v6266_v32 = vpop.eup %6265 }
0x2151   :  { %v1374_v33 = vmul.f32 %v6266_v32, %v1372_v27  ;;  %vm1379_vm10 = vweird.f32 %v6266_v32 }
0x2152   :  { %vm1380_vm12 = vmor %vm1378_vm11, %vm1379_vm10 }
0x2153   :  { %v1375_v34 = vsub.f32 1.0, %v1374_v33 }
0x2155   :  { %v1376_v5 = vmul.f32 %v6266_v32, %v1375_v34  ;;  %v1501_v34 = vrot.slane %v7495_v10, 2  ;;  %v1575_v10 = vld [vmem:[%s7059_s25 + $0x10] sm:$0xff] }
0x2156   :  { %1614 = vmatpush.msrb.mxu0 %v1575_v10 }
0x2157   :  { %v1377_v35 = vadd.f32 %v6266_v32, %v1376_v5 }
0x2159   :  { %v1381_v42 = vsel %vm1380_vm12, %v6266_v32, %v1377_v35 }
0x215a   :  { %v1386_v45 = vsel %vm1383_vm13, %v1385_v43, %v1381_v42  ;;  %v1578_v42 = vld [vmem:[%s7064_s29 + $0x8] sm:$0xff] }
0x215b   :  { %v1392_v8 = vmul.f32 %v1390_v46, %v1386_v45  ;;  %v1574_v43 = vld [vmem:[%s7059_s25 + $0x8] sm:$0xff]  ;;  %1644 = vmatpush.msrb.mxu1 %v1578_v42 }
0x215c   :  { %1615 = vmatpush.msrb.mxu0 %v1574_v43 }
0x21a0   :  { %v1395_v44 = vpop.permute.xlu2 %1394 }
0x21a1   :  { %v1397_v6 = vmul.f32 %v1395_v44, %v1386_v45  ;;  %v1577_v44 = vld [vmem:[%s7064_s29] sm:$0xff]  ;;  %s8419_s29 = sld [smem:[#allocation26_spill]] }
0x21a2   :  { %1645 = vmatpush.msrb.mxu1 %v1577_v44 }
0x21a3   :  { %1399 = vrot.lane.b32.xlu0 %v1397_v6, %s7018_s5  ;;  %v7562_v6 = vld [vmem:[#allocation7 + $0x18] sm:$0xff] }
0x21a4   :  { %1675 = vmatpush.msra.mxu2 %v7562_v6  ;;  %1741 = vmatpush.msra.mxu3 %v7562_v6 }
0x21a5   :  { %2307 = vmatpush.msra.mxu1 %v7562_v6 }
0x21a6   :  { %1676 = vmatpush.msra.mxu2 %v7568_v1  ;;  %1742 = vmatpush.msra.mxu3 %v7568_v1 }
0x21a7   :  { %2308 = vmatpush.msra.mxu1 %v7568_v1 }
0x21a8   :  { %1677 = vmatpush.msra.mxu2 %v7570_v55  ;;  %1743 = vmatpush.msra.mxu3 %v7570_v55 }
0x21a9   :  { %2309 = vmatpush.msra.mxu1 %v7570_v55 }
0x2215   :  { %v1400_v47 = vpop.permute.xlu0 %1399 }
0x2216   :  { %v1402_v9 = vadd.f32 %v1400_v47, %v1392_v8 }
0x2218   :  { %6267 = vtanh.f32 %v1402_v9  ;;  %v1460_v16 = vrot.slane %v1402_v9, 6 }
0x221e   :  { %v6268_v48 = vpop.eup %6267 }
0x221f   :  { %1405 = vrot.lane.b32.xlu1 %v6268_v48, %s7018_s5 }
0x2291   :  { %v1406_v29 = vpop.permute.xlu1 %1405 }
0x2292   :  { %v7513_v49 = vmul.f32 %v1406_v29, %v1386_v45  ;;  %v1573_v45 = vld [vmem:[%s7059_s25] sm:$0xff]  ;;  %s8418_s25 = sld [smem:[#allocation25_spill]] }
0x2293   :  { %1616 = vmatpush.msrb.mxu0 %v1573_v45 }
0x2294   :  { %v1410_v51 = vrot.slane %v7513_v49, 4  ;;  %v1492_v53 = vsel %vm1481_vm15, %v1491_v50, %v7513_v49  ;;  %v1497_v33 = vrot.slane %v7513_v49, 2 }
0x2295   :  { %2238 = vmatpush.msra.mxu0 %v7562_v6 }
0x2296   :  { %1411 = vrot.lane.b32.xlu2 %v1410_v51, %s7019_s17 }
0x2297   :  { %2239 = vmatpush.msra.mxu0 %v7568_v1 }
0x2299   :  { %2240 = vmatpush.msra.mxu0 %v7570_v55 }
0x22f0   :  { %v1412_v54 = vpop.permute.xlu2 %1411 }
0x22f1   :  { %5954 = vmatmul.msk.f32.vlgmr.msrb.gmra.mxu3 %vm356_vm5, %v1412_v54 }
0x2374   :  { %v1432_v56 = vpop.f32.mrf.mxu3 }
0x2375   :  { %v1436_v57 = vrot.slane %v1432_v56, 2 }
0x2377   :  { %v1438_v58 = vadd.f32 %v1436_v57, %v7329_v40 }
0x2379   :  { %6269 = vtanh.f32 %v1438_v58  ;;  %v5955_v60 = vmul.f32 -1.442695, %v1438_v58 }
0x237b   :  { %6271 = vpow2.f32 %v5955_v60 }
0x237f   :  { %v6270_v28 = vpop.eup %6269 }
0x2380   :  { %1464 = vrot.lane.b32.xlu0 %v6270_v28, %s7018_s5 }
0x2381   :  { %v6272_v61 = vpop.eup %6271 }
0x2382   :  { %v1442_v62 = vadd.f32 1.0, %v6272_v61 }
0x2384   :  { %6273 = vrcp.f32 %v1442_v62  ;;  %v1454_v13 = vand.u32 2147483648, %v1442_v62  ;;  %vm1448_vm1 = vweird.f32 %v1442_v62 }
0x2386   :  { %v1455_v14 = vor.u32 1.1754944e-38, %v1454_v13 }
0x2388   :  { %1540 = vrot.lane.b32.xlu0 %v7382_v52, %s7019_s17  ;;  %v1452_v52 = vand.u32 2147483647, %v1442_v62 }
0x238a   :  { %v6274_v40 = vpop.eup %6273  ;;  %vm1453_vm3 = vcmp.eq.f32.partialorder %v1452_v52, 8.507059e+37 }
0x238b   :  { %v1444_v0 = vmul.f32 %v6274_v40, %v1442_v62  ;;  %vm1449_vm0 = vweird.f32 %v6274_v40 }
0x238c   :  { %vm1450_vm2 = vmor %vm1448_vm1, %vm1449_vm0 }
0x238d   :  { %v1445_v4 = vsub.f32 1.0, %v1444_v0 }
0x238f   :  { %v1446_v7 = vmul.f32 %v6274_v40, %v1445_v4 }
0x2390   :  { %1558 = vrot.lane.b32.xlu0 %v1529_v59, %s7019_s17  ;;  %v6135_v59 = vld [vmem:[%s8417_s21] ss:$0 sm:$0xff] }
0x2391   :  { %v1447_v11 = vadd.f32 %v6274_v40, %v1446_v7 }
0x2393   :  { %v1451_v37 = vsel %vm1450_vm2, %v6274_v40, %v1447_v11 }
0x2394   :  { %v1456_v39 = vsel %vm1453_vm3, %v1455_v14, %v1451_v37 }
0x2395   :  { %v1462_v17 = vmul.f32 %v1460_v16, %v1456_v39 }
0x23f2   :  { %v1465_v18 = vpop.permute.xlu0 %1464 }
0x23f3   :  { %v1467_v15 = vmul.f32 %v1465_v18, %v1456_v39 }
0x23f5   :  { %1469 = vrot.lane.b32.xlu1 %v1467_v15, %s7018_s5 }
0x23fa   :  { %v1541_v46 = vpop.permute.xlu0 %1540 }
0x2402   :  { %v1559_v48 = vpop.permute.xlu0 %1558 }
0x2467   :  { %v1470_v20 = vpop.permute.xlu1 %1469 }
0x2468   :  { %v1472_v21 = vadd.f32 %v1470_v20, %v1462_v17 }
0x246a   :  { %6275 = vtanh.f32 %v1472_v21 }
0x2470   :  { %v6276_v23 = vpop.eup %6275 }
0x2471   :  { %1475 = vrot.lane.b32.xlu2 %v6276_v23, %s7018_s5 }
0x2479   :  { %1542 = vrot.lane.b32.xlu2 %v7440_v63, %s7019_s17 }
0x2481   :  { %1560 = vrot.lane.b32.xlu2 %v1532_v2, %s7019_s17 }
0x24cb   :  { %v1476_v27 = vpop.permute.xlu2 %1475 }
0x24cc   :  { %v1478_v32 = vmul.f32 %v1476_v27, %v1456_v39 }
0x24ce   :  { %v1495_v63 = vrot.slane %v1478_v32, 6  ;;  %v1493_v22 = vsel %vm1483_vm4, %v1492_v53, %v1478_v32 }
0x24cf   :  { %1546 = vrot.lane.b32.xlu0 %v1493_v22, %s7019_s17 }
0x24d0   :  { %v1524_v5 = vsel %vm1479_vm14, %v1495_v63, %v1497_v33 }
0x24d1   :  { %v1525_v35 = vsel %vm1481_vm15, %v1524_v5, %v1499_v3 }
0x24d2   :  { %v1526_v36 = vsel %vm1483_vm4, %v1525_v35, %v1501_v34 }
0x24d3   :  { %1556 = vrot.lane.b32.xlu1 %v1526_v36, %s7019_s17  ;;  %v1543_v9 = vpop.permute.xlu2 %1542 }
0x24d4   :  { %v1570_v29 = vsel %vm1568_vm6, %v1543_v9, %v1559_v48 }
0x24db   :  { %1544 = vrot.lane.b32.xlu1 %v7482_v30, %s7019_s17  ;;  %v7574_v30 = vld [vmem:[#allocation7] sm:$0xff]  ;;  %v1561_v50 = vpop.permute.xlu2 %1560 }
0x24dc   :  { %1678 = vmatpush.msra.mxu2 %v7574_v30  ;;  %1744 = vmatpush.msra.mxu3 %v7574_v30 }
0x24dd   :  { %1679 = vmatmul.f32.vlgmr.msra.gmra.mxu2 %v7017_v12  ;;  %2241 = vmatpush.msra.mxu0 %v7574_v30 }
0x24de   :  { %1881 = vmatpush.msrb.mxu3 %v7562_v6  ;;  %1811 = vmatpush.msrb.mxu2 %v7562_v6 }
0x24df   :  { %2310 = vmatpush.msra.mxu1 %v7574_v30 }
0x24e0   :  { %1882 = vmatpush.msrb.mxu3 %v7568_v1  ;;  %1812 = vmatpush.msrb.mxu2 %v7568_v1 }
0x24e2   :  { %1883 = vmatpush.msrb.mxu3 %v7570_v55  ;;  %1813 = vmatpush.msrb.mxu2 %v7570_v55 }
0x24e3   :  { %1562 = vrot.lane.b32.xlu1 %v1535_v19, %s7019_s17 }
0x24e4   :  { %1884 = vmatpush.msrb.mxu3 %v7574_v30  ;;  %1814 = vmatpush.msrb.mxu2 %v7574_v30 }
0x24e6   :  { %1955 = vmatpush.msra.mxu2 %v7562_v6 }
0x24e8   :  { %1956 = vmatpush.msra.mxu2 %v7568_v1 }
0x24ea   :  { %1957 = vmatpush.msra.mxu2 %v7570_v55 }
0x24ec   :  { %1958 = vmatpush.msra.mxu2 %v7574_v30 }
0x2541   :  { %v1547_v54 = vpop.permute.xlu0 %1546 }
0x2545   :  { %v1557_v8 = vpop.permute.xlu1 %1556 }
0x2546   :  { %v1569_v47 = vsel %vm1568_vm6, %v1541_v46, %v1557_v8 }
0x2547   :  { %5956 = vmatmul.msk.f32.vlgmr.msrb.gmra.mxu0 %vm356_vm5, %v1569_v47  ;;  %5960 = vmatmul.msk.f32.vlgmr.msrb.gmra.mxu1 %vm356_vm5, %v1569_v47 }
0x2548   :  { %2521 = vmatpush.msrb.mxu0 %v7562_v6  ;;  %2590 = vmatpush.msrb.mxu1 %v7562_v6 }
0x254a   :  { %2522 = vmatpush.msrb.mxu0 %v7568_v1  ;;  %2591 = vmatpush.msrb.mxu1 %v7568_v1 }
0x254c   :  { %2523 = vmatpush.msrb.mxu0 %v7570_v55  ;;  %2592 = vmatpush.msrb.mxu1 %v7570_v55 }
0x254d   :  { %v1545_v49 = vpop.permute.xlu1 %1544 }
0x254e   :  { %2524 = vmatpush.msrb.mxu0 %v7574_v30  ;;  %2593 = vmatpush.msrb.mxu1 %v7574_v30  ;;  %v1571_v51 = vsel %vm1568_vm6, %v1545_v49, %v1561_v50 }
0x254f   :  { %5957 = vmatmul.msk.f32.gmra.mxu0 %vm356_vm5, %v1570_v29  ;;  %5961 = vmatmul.msk.f32.gmra.mxu1 %vm356_vm5, %v1570_v29 }
0x2555   :  { %v1563_v53 = vpop.permute.xlu1 %1562 }
0x2556   :  { %v1572_v56 = vsel %vm1568_vm6, %v1547_v54, %v1563_v53 }
0x2557   :  { %5958 = vmatmul.msk.f32.gmra.mxu0 %vm356_vm5, %v1571_v51  ;;  %5962 = vmatmul.msk.f32.gmra.mxu1 %vm356_vm5, %v1571_v51 }
0x255f   :  { %5959 = vmatmul.msk.f32.gmra.mxu0 %vm356_vm5, %v1572_v56  ;;  %5963 = vmatmul.msk.f32.gmra.mxu1 %vm356_vm5, %v1572_v56 }
0x2560   :  { %v1680_v23 = vpop.f32.mrf.mxu2 }
0x25c4   :  { %v1618_v57 = vpop.f32.mrf.mxu0  ;;  %v1647_v58 = vpop.f32.mrf.mxu1 }
0x25c5   :  { %v1619_v18 = vadd.f32 %v6135_v59, %v1618_v57  ;;  %v2500_v16 = vrot.slane %v1647_v58, 6  ;;  %v2570_v17 = vrot.slane %v1647_v58, 2 }
0x25cc   :  { %v1621_v28 = vpop.f32.mrf.mxu0  ;;  %v1650_v41 = vpop.f32.mrf.mxu1 }
0x25cd   :  { %v1622_v60 = vadd.f32 %v6135_v59, %v1621_v28  ;;  %v2217_v61 = vrot.slane %v1650_v41, 6  ;;  %v2287_v0 = vrot.slane %v1650_v41, 2 }
0x25d4   :  { %v1624_v62 = vpop.f32.mrf.mxu0  ;;  %v1653_v40 = vpop.f32.mrf.mxu1 }
0x25d5   :  { %v1625_v4 = vadd.f32 %v6135_v59, %v1624_v62  ;;  %v1934_v7 = vrot.slane %v1653_v40, 6  ;;  %v2004_v11 = vrot.slane %v1653_v40, 2 }
0x25d7   :  { %v7620_v13 = vadd.f32 %v2287_v0, %v1625_v4  ;;  %v7622_v52 = vadd.f32 %v2004_v11, %v1622_v60  ;;  %v7624_v37 = vadd.f32 %v1934_v7, %v1622_v60  ;;  %v7626_v14 = vadd.f32 %v2217_v61, %v1625_v4 }
0x25dc   :  { %v1627_v39 = vpop.f32.mrf.mxu0  ;;  %v1656_v15 = vpop.f32.mrf.mxu1 }
0x25dd   :  { %v1628_v20 = vadd.f32 %v6135_v59, %v1627_v39  ;;  %v1660_v21 = vrot.slane %v1656_v15, 6  ;;  %v1721_v29 = vrot.slane %v1656_v15, 2 }
0x25df   :  { %v7628_v24 = vadd.f32 %v2570_v17, %v1628_v20  ;;  %v7630_v2 = vadd.f32 %v1660_v21, %v1619_v18  ;;  %v7632_v31 = vadd.f32 %v2500_v16, %v1628_v20  ;;  %v7647_v50 = vadd.f32 %v1721_v29, %v1619_v18 }
0x25e1   :  { %v1683_v25 = vadd.f32 %v1680_v23, %v7630_v2 }
0x25e3   :  { %6277 = vtanh.f32 %v1683_v25  ;;  %v5964_v27 = vmul.f32 -1.442695, %v1683_v25 }
0x25e5   :  { %6279 = vpow2.f32 %v5964_v27 }
0x25e9   :  { %v6278_v26 = vpop.eup %6277 }
0x25ea   :  { %1706 = vrot.lane.b32.xlu2 %v6278_v26, %s7018_s5 }
0x25eb   :  { %v6280_v32 = vpop.eup %6279 }
0x25ec   :  { %v1687_v33 = vadd.f32 1.0, %v6280_v32 }
0x25ee   :  { %6281 = vrcp.f32 %v1687_v33  ;;  %v1699_v35 = vand.u32 2147483648, %v1687_v33  ;;  %vm1693_vm8 = vweird.f32 %v1687_v33  ;;  %v1697_v36 = vand.u32 2147483647, %v1687_v33 }
0x25f0   :  { %v1700_v19 = vor.u32 1.1754944e-38, %v1699_v35  ;;  %vm1698_vm10 = vcmp.eq.f32.partialorder %v1697_v36, 8.507059e+37 }
0x25f4   :  { %v6282_v63 = vpop.eup %6281 }
0x25f5   :  { %v1689_v22 = vmul.f32 %v6282_v63, %v1687_v33  ;;  %vm1694_vm7 = vweird.f32 %v6282_v63 }
0x25f6   :  { %vm1695_vm9 = vmor %vm1693_vm8, %vm1694_vm7 }
0x25f7   :  { %v1690_v3 = vsub.f32 1.0, %v1689_v22 }
0x25f9   :  { %v1691_v34 = vmul.f32 %v6282_v63, %v1690_v3 }
0x25fb   :  { %v1692_v5 = vadd.f32 %v6282_v63, %v1691_v34 }
0x25fd   :  { %v1696_v38 = vsel %vm1695_vm9, %v6282_v63, %v1692_v5 }
0x25fe   :  { %v1701_v42 = vsel %vm1698_vm10, %v1700_v19, %v1696_v38 }
0x25ff   :  { %v1704_v44 = vmul.f32 0.0, %v1701_v42 }
0x2644   :  { %v1707_v10 = vpop.permute.xlu2 %1706 }
0x2645   :  { %v1709_v43 = vmul.f32 %v1707_v10, %v1701_v42 }
0x2647   :  { %1711 = vrot.lane.b32.xlu0 %v1709_v43, %s7018_s5 }
0x26b9   :  { %v1712_v45 = vpop.permute.xlu0 %1711 }
0x26ba   :  { %v1714_v46 = vadd.f32 %v1712_v45, %v1704_v44 }
0x26bc   :  { %6283 = vtanh.f32 %v1714_v46  ;;  %v1774_v39 = vrot.slane %v1714_v46, 6 }
0x26c2   :  { %v6284_v8 = vpop.eup %6283 }
0x26c3   :  { %1717 = vrot.lane.b32.xlu1 %v6284_v8, %s7018_s5 }
0x2735   :  { %v1718_v47 = vpop.permute.xlu1 %1717 }
0x2736   :  { %v7638_v9 = vmul.f32 %v1718_v47, %v1701_v42 }
0x2738   :  { %1725 = vrot.lane.b32.xlu2 %v7638_v9, %s7019_s17 }
0x2792   :  { %v1726_v48 = vpop.permute.xlu2 %1725 }
0x2793   :  { %5965 = vmatmul.msk.f32.vlgmr.msra.gmra.mxu3 %vm356_vm5, %v1726_v48 }
0x2794   :  { %2024 = vmatpush.msra.mxu3 %v7562_v6 }
0x2796   :  { %2025 = vmatpush.msra.mxu3 %v7568_v1 }
0x2798   :  { %2026 = vmatpush.msra.mxu3 %v7570_v55 }
0x279a   :  { %2027 = vmatpush.msra.mxu3 %v7574_v30 }
0x2816   :  { %v1746_v49 = vpop.f32.mrf.mxu3 }
0x2817   :  { %v1750_v51 = vrot.slane %v1746_v49, 6 }
0x2819   :  { %v1752_v53 = vadd.f32 %v1750_v51, %v7647_v50 }
0x281b   :  { %6285 = vtanh.f32 %v1752_v53  ;;  %v5966_v56 = vmul.f32 -1.442695, %v1752_v53 }
0x281d   :  { %6287 = vpow2.f32 %v5966_v56 }
0x2821   :  { %v6286_v54 = vpop.eup %6285 }
0x2822   :  { %1778 = vrot.lane.b32.xlu0 %v6286_v54, %s7018_s5 }
0x2823   :  { %v6288_v57 = vpop.eup %6287 }
0x2824   :  { %v1756_v58 = vadd.f32 1.0, %v6288_v57 }
0x2826   :  { %6289 = vrcp.f32 %v1756_v58  ;;  %v1768_v62 = vand.u32 2147483648, %v1756_v58  ;;  %vm1762_vm12 = vweird.f32 %v1756_v58  ;;  %v1766_v40 = vand.u32 2147483647, %v1756_v58 }
0x2828   :  { %v1769_v4 = vor.u32 1.1754944e-38, %v1768_v62  ;;  %vm1767_vm0 = vcmp.eq.f32.partialorder %v1766_v40, 8.507059e+37 }
0x282c   :  { %v6290_v28 = vpop.eup %6289 }
0x282d   :  { %v1758_v41 = vmul.f32 %v6290_v28, %v1756_v58  ;;  %vm1763_vm11 = vweird.f32 %v6290_v28 }
0x282e   :  { %vm1764_vm13 = vmor %vm1762_vm12, %vm1763_vm11 }
0x282f   :  { %v1759_v59 = vsub.f32 1.0, %v1758_v41 }
0x2831   :  { %v1760_v60 = vmul.f32 %v6290_v28, %v1759_v59 }
0x2833   :  { %v1761_v61 = vadd.f32 %v6290_v28, %v1760_v60 }
0x2835   :  { %v1765_v0 = vsel %vm1764_vm13, %v6290_v28, %v1761_v61 }
0x2836   :  { %v1770_v11 = vsel %vm1767_vm0, %v1769_v4, %v1765_v0 }
0x2837   :  { %v1776_v15 = vmul.f32 %v1774_v39, %v1770_v11 }
0x2894   :  { %v1779_v7 = vpop.permute.xlu0 %1778 }
0x2895   :  { %v1781_v18 = vmul.f32 %v1779_v7, %v1770_v11 }
0x2897   :  { %1783 = vrot.lane.b32.xlu1 %v1781_v18, %s7018_s5 }
0x2909   :  { %v1784_v16 = vpop.permute.xlu1 %1783 }
0x290a   :  { %v1786_v17 = vadd.f32 %v1784_v16, %v1776_v15 }
0x290c   :  { %6291 = vtanh.f32 %v1786_v17  ;;  %v1844_v8 = vrot.slane %v1786_v17, 6 }
0x2912   :  { %v6292_v20 = vpop.eup %6291 }
0x2913   :  { %1789 = vrot.lane.b32.xlu2 %v6292_v20, %s7018_s5 }
0x296d   :  { %v1790_v21 = vpop.permute.xlu2 %1789 }
0x296e   :  { %v7653_v23 = vmul.f32 %v1790_v21, %v1770_v11 }
0x2970   :  { %v1794_v25 = vrot.slane %v7653_v23, 2  ;;  %v2782_v54 = vsel %vm1479_vm14, %v7638_v9, %v7653_v23 }
0x2972   :  { %1795 = vrot.lane.b32.xlu0 %v1794_v25, %s7019_s17 }
0x29e4   :  { %v1796_v26 = vpop.permute.xlu0 %1795 }
0x29e5   :  { %5967 = vmatmul.msk.f32.vlgmr.msrb.gmra.mxu2 %vm356_vm5, %v1796_v26 }
0x29e6   :  { %2094 = vmatpush.msrb.mxu2 %v7562_v6 }
0x29e8   :  { %2095 = vmatpush.msrb.mxu2 %v7568_v1 }
0x29ea   :  { %2096 = vmatpush.msrb.mxu2 %v7570_v55 }
0x29ec   :  { %2097 = vmatpush.msrb.mxu2 %v7574_v30 }
0x2a68   :  { %v1816_v27 = vpop.f32.mrf.mxu2 }
0x2a69   :  { %v1820_v32 = vrot.slane %v1816_v27, 4 }
0x2a6b   :  { %v1822_v33 = vadd.f32 %v1820_v32, %v7630_v2 }
0x2a6d   :  { %6293 = vtanh.f32 %v1822_v33  ;;  %v5968_v22 = vmul.f32 -1.442695, %v1822_v33 }
0x2a6f   :  { %6295 = vpow2.f32 %v5968_v22 }
0x2a73   :  { %v6294_v63 = vpop.eup %6293 }
0x2a74   :  { %1848 = vrot.lane.b32.xlu1 %v6294_v63, %s7018_s5 }
0x2a75   :  { %v6296_v3 = vpop.eup %6295 }
0x2a76   :  { %v1826_v34 = vadd.f32 1.0, %v6296_v3 }
0x2a78   :  { %6297 = vrcp.f32 %v1826_v34  ;;  %v1838_v10 = vand.u32 2147483648, %v1826_v34  ;;  %vm1832_vm2 = vweird.f32 %v1826_v34  ;;  %v1836_v42 = vand.u32 2147483647, %v1826_v34 }
0x2a7a   :  { %v1839_v43 = vor.u32 1.1754944e-38, %v1838_v10  ;;  %vm1837_vm7 = vcmp.eq.f32.partialorder %v1836_v42, 8.507059e+37 }
0x2a7e   :  { %v6298_v5 = vpop.eup %6297 }
0x2a7f   :  { %v1828_v35 = vmul.f32 %v6298_v5, %v1826_v34  ;;  %vm1833_vm1 = vweird.f32 %v6298_v5 }
0x2a80   :  { %vm1834_vm3 = vmor %vm1832_vm2, %vm1833_vm1 }
0x2a81   :  { %v1829_v36 = vsub.f32 1.0, %v1828_v35  ;;  %v2820_v35 = vrot.slane %v7653_v23, 6 }
0x2a83   :  { %v1830_v38 = vmul.f32 %v6298_v5, %v1829_v36 }
0x2a85   :  { %v1831_v19 = vadd.f32 %v6298_v5, %v1830_v38 }
0x2a87   :  { %v1835_v2 = vsel %vm1834_vm3, %v6298_v5, %v1831_v19 }
0x2a88   :  { %v1840_v45 = vsel %vm1837_vm7, %v1839_v43, %v1835_v2 }
0x2a89   :  { %v1846_v47 = vmul.f32 %v1844_v8, %v1840_v45 }
0x2ae6   :  { %v1849_v44 = vpop.permute.xlu1 %1848 }
0x2ae7   :  { %v1851_v46 = vmul.f32 %v1849_v44, %v1840_v45 }
0x2ae9   :  { %1853 = vrot.lane.b32.xlu2 %v1851_v46, %s7018_s5 }
0x2b43   :  { %v1854_v48 = vpop.permute.xlu2 %1853 }
0x2b44   :  { %v1856_v29 = vadd.f32 %v1854_v48, %v1846_v47 }
0x2b46   :  { %6299 = vtanh.f32 %v1856_v29  ;;  %v1914_v25 = vrot.slane %v1856_v29, 6 }
0x2b4c   :  { %v6300_v49 = vpop.eup %6299 }
0x2b4d   :  { %1859 = vrot.lane.b32.xlu0 %v6300_v49, %s7018_s5 }
0x2bbf   :  { %v1860_v51 = vpop.permute.xlu0 %1859 }
0x2bc0   :  { %v1862_v53 = vmul.f32 %v1860_v51, %v1840_v45 }
0x2bc2   :  { %v1864_v56 = vrot.slane %v1862_v53, 4  ;;  %v2783_v57 = vsel %vm1481_vm15, %v2782_v54, %v1862_v53  ;;  %v2818_v3 = vrot.slane %v1862_v53, 2 }
0x2bc4   :  { %1865 = vrot.lane.b32.xlu1 %v1864_v56, %s7019_s17 }
0x2c36   :  { %v1866_v58 = vpop.permute.xlu1 %1865 }
0x2c37   :  { %5969 = vmatmul.msk.f32.vlgmr.msrb.gmra.mxu3 %vm356_vm5, %v1866_v58 }
0x2c38   :  { %2164 = vmatpush.msrb.mxu3 %v7562_v6 }
0x2c3a   :  { %2165 = vmatpush.msrb.mxu3 %v7568_v1 }
0x2c3c   :  { %2166 = vmatpush.msrb.mxu3 %v7570_v55 }
0x2c3e   :  { %2167 = vmatpush.msrb.mxu3 %v7574_v30 }
0x2cba   :  { %v1886_v28 = vpop.f32.mrf.mxu3 }
0x2cbb   :  { %v1890_v41 = vrot.slane %v1886_v28, 2 }
0x2cbd   :  { %v1892_v59 = vadd.f32 %v1890_v41, %v7647_v50 }
0x2cbf   :  { %6301 = vtanh.f32 %v1892_v59  ;;  %v5970_v61 = vmul.f32 -1.442695, %v1892_v59 }
0x2cc1   :  { %6303 = vpow2.f32 %v5970_v61 }
0x2cc5   :  { %v6302_v60 = vpop.eup %6301 }
0x2cc6   :  { %1918 = vrot.lane.b32.xlu2 %v6302_v60, %s7018_s5 }
0x2cc7   :  { %v6304_v62 = vpop.eup %6303 }
0x2cc8   :  { %v1896_v40 = vadd.f32 1.0, %v6304_v62 }
0x2cca   :  { %6305 = vrcp.f32 %v1896_v40  ;;  %v1908_v39 = vand.u32 2147483648, %v1896_v40  ;;  %vm1902_vm9 = vweird.f32 %v1896_v40  ;;  %v1906_v15 = vand.u32 2147483647, %v1896_v40 }
0x2ccc   :  { %v1909_v16 = vor.u32 1.1754944e-38, %v1908_v39  ;;  %vm1907_vm11 = vcmp.eq.f32.partialorder %v1906_v15, 8.507059e+37 }
0x2cd0   :  { %v6306_v0 = vpop.eup %6305 }
0x2cd1   :  { %v1898_v4 = vmul.f32 %v6306_v0, %v1896_v40  ;;  %vm1903_vm8 = vweird.f32 %v6306_v0 }
0x2cd2   :  { %vm1904_vm10 = vmor %vm1902_vm9, %vm1903_vm8 }
0x2cd3   :  { %v1899_v7 = vsub.f32 1.0, %v1898_v4 }
0x2cd5   :  { %v1900_v11 = vmul.f32 %v6306_v0, %v1899_v7 }
0x2cd7   :  { %v1901_v18 = vadd.f32 %v6306_v0, %v1900_v11 }
0x2cd9   :  { %v1905_v50 = vsel %vm1904_vm10, %v6306_v0, %v1901_v18 }
0x2cda   :  { %v1910_v20 = vsel %vm1907_vm11, %v1909_v16, %v1905_v50 }
0x2cdb   :  { %v1916_v26 = vmul.f32 %v1914_v25, %v1910_v20 }
0x2d20   :  { %v1919_v17 = vpop.permute.xlu2 %1918 }
0x2d21   :  { %v1921_v21 = vmul.f32 %v1919_v17, %v1910_v20 }
0x2d23   :  { %1923 = vrot.lane.b32.xlu0 %v1921_v21, %s7018_s5 }
0x2d95   :  { %v1924_v27 = vpop.permute.xlu0 %1923 }
0x2d96   :  { %v1926_v32 = vadd.f32 %v1924_v27, %v1916_v26 }
0x2d98   :  { %6307 = vtanh.f32 %v1926_v32  ;;  %v1985_v58 = vrot.slane %v1926_v32, 6 }
0x2d9e   :  { %v6308_v33 = vpop.eup %6307 }
0x2d9f   :  { %1929 = vrot.lane.b32.xlu1 %v6308_v33, %s7018_s5 }
0x2e11   :  { %v1930_v63 = vpop.permute.xlu1 %1929 }
0x2e12   :  { %v1932_v22 = vmul.f32 %v1930_v63, %v1910_v20 }
0x2e14   :  { %v1938_v34 = vrot.slane %v1932_v22, 6  ;;  %v7681_v5 = vsel %vm1483_vm4, %v2783_v57, %v1932_v22 }
0x2e16   :  { %1939 = vrot.lane.b32.xlu2 %v1938_v34, %s7019_s17  ;;  %v2833_v36 = vsel %vm1479_vm14, %v1938_v34, %v2818_v3 }
0x2e17   :  { %v7687_v38 = vsel %vm1481_vm15, %v2833_v36, %v2820_v35 }
0x2e70   :  { %v1940_v19 = vpop.permute.xlu2 %1939 }
0x2e71   :  { %5971 = vmatmul.msk.f32.vlgmr.msra.gmra.mxu2 %vm356_vm5, %v1940_v19 }
0x2e72   :  { %2377 = vmatpush.msra.mxu2 %v7562_v6 }
0x2e74   :  { %2378 = vmatpush.msra.mxu2 %v7568_v1 }
0x2e76   :  { %2379 = vmatpush.msra.mxu2 %v7570_v55 }
0x2e78   :  { %2380 = vmatpush.msra.mxu2 %v7574_v30 }
0x2ef4   :  { %v1960_v10 = vpop.f32.mrf.mxu2 }
0x2ef5   :  { %v1963_v23 = vadd.f32 %v1960_v10, %v7624_v37 }
0x2ef7   :  { %6309 = vtanh.f32 %v1963_v23  ;;  %v5972_v2 = vmul.f32 -1.442695, %v1963_v23 }
0x2ef9   :  { %6311 = vpow2.f32 %v5972_v2 }
0x2efd   :  { %v6310_v42 = vpop.eup %6309 }
0x2efe   :  { %1989 = vrot.lane.b32.xlu0 %v6310_v42, %s7018_s5 }
0x2eff   :  { %v6312_v43 = vpop.eup %6311 }
0x2f00   :  { %v1967_v44 = vadd.f32 1.0, %v6312_v43 }
0x2f02   :  { %6313 = vrcp.f32 %v1967_v44  ;;  %v1979_v29 = vand.u32 2147483648, %v1967_v44  ;;  %vm1973_vm13 = vweird.f32 %v1967_v44  ;;  %v1977_v49 = vand.u32 2147483647, %v1967_v44 }
0x2f04   :  { %v1980_v53 = vor.u32 1.1754944e-38, %v1979_v29  ;;  %vm1978_vm1 = vcmp.eq.f32.partialorder %v1977_v49, 8.507059e+37 }
0x2f08   :  { %v6314_v45 = vpop.eup %6313 }
0x2f09   :  { %v1969_v46 = vmul.f32 %v6314_v45, %v1967_v44  ;;  %vm1974_vm12 = vweird.f32 %v6314_v45 }
0x2f0a   :  { %vm1975_vm0 = vmor %vm1973_vm13, %vm1974_vm12 }
0x2f0b   :  { %v1970_v8 = vsub.f32 1.0, %v1969_v46 }
0x2f0d   :  { %v1971_v47 = vmul.f32 %v6314_v45, %v1970_v8 }
0x2f0f   :  { %v1972_v48 = vadd.f32 %v6314_v45, %v1971_v47 }
0x2f11   :  { %v1976_v51 = vsel %vm1975_vm0, %v6314_v45, %v1972_v48 }
0x2f12   :  { %v1981_v56 = vsel %vm1978_vm1, %v1980_v53, %v1976_v51 }
0x2f13   :  { %v1987_v28 = vmul.f32 %v1985_v58, %v1981_v56 }
0x2f70   :  { %v1990_v54 = vpop.permute.xlu0 %1989 }
0x2f71   :  { %v1992_v57 = vmul.f32 %v1990_v54, %v1981_v56 }
0x2f73   :  { %1994 = vrot.lane.b32.xlu1 %v1992_v57, %s7018_s5 }
0x2fe5   :  { %v1995_v41 = vpop.permute.xlu1 %1994 }
0x2fe6   :  { %v1997_v59 = vadd.f32 %v1995_v41, %v1987_v28 }
0x2fe8   :  { %6315 = vtanh.f32 %v1997_v59  ;;  %v2057_v3 = vrot.slane %v1997_v59, 6 }
0x2fee   :  { %v6316_v60 = vpop.eup %6315 }
0x2fef   :  { %2000 = vrot.lane.b32.xlu2 %v6316_v60, %s7018_s5 }
0x3049   :  { %v2001_v61 = vpop.permute.xlu2 %2000 }
0x304a   :  { %v7698_v62 = vmul.f32 %v2001_v61, %v1981_v56 }
0x304c   :  { %2008 = vrot.lane.b32.xlu0 %v7698_v62, %s7019_s17 }
0x30be   :  { %v2009_v40 = vpop.permute.xlu0 %2008 }
0x30bf   :  { %5973 = vmatmul.msk.f32.vlgmr.msra.gmra.mxu3 %vm356_vm5, %v2009_v40 }
0x30c0   :  { %2447 = vmatpush.msra.mxu3 %v7562_v6 }
0x30c2   :  { %2448 = vmatpush.msra.mxu3 %v7568_v1 }
0x30c4   :  { %2449 = vmatpush.msra.mxu3 %v7570_v55 }
0x30c6   :  { %2450 = vmatpush.msra.mxu3 %v7574_v30 }
0x3142   :  { %v2029_v0 = vpop.f32.mrf.mxu3 }
0x3143   :  { %v2033_v4 = vrot.slane %v2029_v0, 6 }
0x3145   :  { %v2035_v7 = vadd.f32 %v2033_v4, %v7622_v52 }
0x3147   :  { %6317 = vtanh.f32 %v2035_v7  ;;  %v5974_v18 = vmul.f32 -1.442695, %v2035_v7 }
0x3149   :  { %6319 = vpow2.f32 %v5974_v18 }
0x314d   :  { %v6318_v11 = vpop.eup %6317 }
0x314e   :  { %2061 = vrot.lane.b32.xlu1 %v6318_v11, %s7018_s5 }
0x314f   :  { %v6320_v39 = vpop.eup %6319 }
0x3150   :  { %v2039_v15 = vadd.f32 1.0, %v6320_v39 }
0x3152   :  { %6321 = vrcp.f32 %v2039_v15  ;;  %v2051_v25 = vand.u32 2147483648, %v2039_v15  ;;  %vm2045_vm3 = vweird.f32 %v2039_v15  ;;  %v2049_v26 = vand.u32 2147483647, %v2039_v15 }
0x3154   :  { %v2052_v32 = vor.u32 1.1754944e-38, %v2051_v25  ;;  %vm2050_vm8 = vcmp.eq.f32.partialorder %v2049_v26, 8.507059e+37 }
0x3158   :  { %v6322_v50 = vpop.eup %6321 }
0x3159   :  { %v2041_v16 = vmul.f32 %v6322_v50, %v2039_v15  ;;  %vm2046_vm2 = vweird.f32 %v6322_v50 }
0x315a   :  { %vm2047_vm7 = vmor %vm2045_vm3, %vm2046_vm2 }
0x315b   :  { %v2042_v17 = vsub.f32 1.0, %v2041_v16 }
0x315d   :  { %v2043_v20 = vmul.f32 %v6322_v50, %v2042_v17 }
0x315f   :  { %v2044_v21 = vadd.f32 %v6322_v50, %v2043_v20 }
0x3161   :  { %v2048_v27 = vsel %vm2047_vm7, %v6322_v50, %v2044_v21 }
0x3162   :  { %v2053_v63 = vsel %vm2050_vm8, %v2052_v32, %v2048_v27 }
0x3163   :  { %v2059_v34 = vmul.f32 %v2057_v3, %v2053_v63 }
0x31c0   :  { %v2062_v33 = vpop.permute.xlu1 %2061 }
0x31c1   :  { %v2064_v22 = vmul.f32 %v2062_v33, %v2053_v63 }
0x31c3   :  { %2066 = vrot.lane.b32.xlu2 %v2064_v22, %s7018_s5 }
0x321d   :  { %v2067_v35 = vpop.permute.xlu2 %2066 }
0x321e   :  { %v2069_v36 = vadd.f32 %v2067_v35, %v2059_v34 }
0x3220   :  { %6323 = vtanh.f32 %v2069_v36  ;;  %v2127_v60 = vrot.slane %v2069_v36, 6 }
0x3226   :  { %v6324_v19 = vpop.eup %6323 }
0x3227   :  { %2072 = vrot.lane.b32.xlu0 %v6324_v19, %s7018_s5 }
0x3299   :  { %v2073_v10 = vpop.permute.xlu0 %2072 }
0x329a   :  { %v7711_v23 = vmul.f32 %v2073_v10, %v2053_v63 }
0x329c   :  { %v2077_v42 = vrot.slane %v7711_v23, 2  ;;  %v2785_v18 = vsel %vm1479_vm14, %v7698_v62, %v7711_v23 }
0x329e   :  { %2078 = vrot.lane.b32.xlu1 %v2077_v42, %s7019_s17 }
0x3310   :  { %v2079_v2 = vpop.permute.xlu1 %2078 }
0x3311   :  { %5975 = vmatmul.msk.f32.vlgmr.msrb.gmra.mxu2 %vm356_vm5, %v2079_v2 }
0x3312   :  { %2660 = vmatpush.msrb.mxu2 %v7562_v6 }
0x3314   :  { %2661 = vmatpush.msrb.mxu2 %v7568_v1 }
0x3316   :  { %2662 = vmatpush.msrb.mxu2 %v7570_v55 }
0x3318   :  { %2663 = vmatpush.msrb.mxu2 %v7574_v30 }
0x3394   :  { %v2099_v43 = vpop.f32.mrf.mxu2 }
0x3395   :  { %v2103_v44 = vrot.slane %v2099_v43, 4 }
0x3397   :  { %v2105_v45 = vadd.f32 %v2103_v44, %v7624_v37 }
0x3399   :  { %6325 = vtanh.f32 %v2105_v45  ;;  %v5976_v8 = vmul.f32 -1.442695, %v2105_v45 }
0x339b   :  { %6327 = vpow2.f32 %v5976_v8 }
0x339f   :  { %v6326_v46 = vpop.eup %6325 }
0x33a0   :  { %2131 = vrot.lane.b32.xlu2 %v6326_v46, %s7018_s5 }
0x33a1   :  { %v6328_v47 = vpop.eup %6327 }
0x33a2   :  { %v2109_v48 = vadd.f32 1.0, %v6328_v47  ;;  %v2813_v47 = vrot.slane %v7711_v23, 6 }
0x33a4   :  { %6329 = vrcp.f32 %v2109_v48  ;;  %v2121_v56 = vand.u32 2147483648, %v2109_v48  ;;  %vm2115_vm10 = vweird.f32 %v2109_v48  ;;  %v2119_v57 = vand.u32 2147483647, %v2109_v48 }
0x33a6   :  { %v2122_v58 = vor.u32 1.1754944e-38, %v2121_v56  ;;  %vm2120_vm12 = vcmp.eq.f32.partialorder %v2119_v57, 8.507059e+37 }
0x33aa   :  { %v6330_v29 = vpop.eup %6329 }
0x33ab   :  { %v2111_v49 = vmul.f32 %v6330_v29, %v2109_v48  ;;  %vm2116_vm9 = vweird.f32 %v6330_v29 }
0x33ac   :  { %vm2117_vm11 = vmor %vm2115_vm10, %vm2116_vm9 }
0x33ad   :  { %v2112_v51 = vsub.f32 1.0, %v2111_v49 }
0x33af   :  { %v2113_v53 = vmul.f32 %v6330_v29, %v2112_v51 }
0x33b1   :  { %v2114_v54 = vadd.f32 %v6330_v29, %v2113_v53 }
0x33b3   :  { %v2118_v37 = vsel %vm2117_vm11, %v6330_v29, %v2114_v54 }
0x33b4   :  { %v2123_v41 = vsel %vm2120_vm12, %v2122_v58, %v2118_v37 }
0x33b5   :  { %v2129_v61 = vmul.f32 %v2127_v60, %v2123_v41 }
0x33fa   :  { %v2132_v28 = vpop.permute.xlu2 %2131 }
0x33fb   :  { %v2134_v59 = vmul.f32 %v2132_v28, %v2123_v41 }
0x33fd   :  { %2136 = vrot.lane.b32.xlu0 %v2134_v59, %s7018_s5 }
0x346f   :  { %v2137_v40 = vpop.permute.xlu0 %2136 }
0x3470   :  { %v2139_v0 = vadd.f32 %v2137_v40, %v2129_v61 }
0x3472   :  { %6331 = vtanh.f32 %v2139_v0  ;;  %v2197_v36 = vrot.slane %v2139_v0, 6 }
0x3478   :  { %v6332_v4 = vpop.eup %6331 }
0x3479   :  { %2142 = vrot.lane.b32.xlu1 %v6332_v4, %s7018_s5 }
0x34eb   :  { %v2143_v7 = vpop.permute.xlu1 %2142 }
0x34ec   :  { %v2145_v11 = vmul.f32 %v2143_v7, %v2123_v41 }
0x34ee   :  { %v2147_v39 = vrot.slane %v2145_v11, 4  ;;  %v2786_v15 = vsel %vm1481_vm15, %v2785_v18, %v2145_v11  ;;  %v2811_v45 = vrot.slane %v2145_v11, 2 }
0x34f0   :  { %2148 = vrot.lane.b32.xlu2 %v2147_v39, %s7019_s17 }
0x354a   :  { %v2149_v50 = vpop.permute.xlu2 %2148 }
0x354b   :  { %5977 = vmatmul.msk.f32.vlgmr.msrb.gmra.mxu3 %vm356_vm5, %v2149_v50 }
0x354c   :  { %2730 = vmatpush.msrb.mxu3 %v7562_v6 }
0x354e   :  { %2731 = vmatpush.msrb.mxu3 %v7568_v1 }
0x3550   :  { %2732 = vmatpush.msrb.mxu3 %v7570_v55 }
0x3552   :  { %2733 = vmatpush.msrb.mxu3 %v7574_v30 }
0x35ce   :  { %v2169_v16 = vpop.f32.mrf.mxu3 }
0x35cf   :  { %v2173_v17 = vrot.slane %v2169_v16, 2 }
0x35d1   :  { %v2175_v20 = vadd.f32 %v2173_v17, %v7622_v52 }
0x35d3   :  { %6333 = vtanh.f32 %v2175_v20  ;;  %v5978_v25 = vmul.f32 -1.442695, %v2175_v20 }
0x35d5   :  { %6335 = vpow2.f32 %v5978_v25 }
0x35d9   :  { %v6334_v21 = vpop.eup %6333 }
0x35da   :  { %2201 = vrot.lane.b32.xlu0 %v6334_v21, %s7018_s5 }
0x35db   :  { %v6336_v26 = vpop.eup %6335 }
0x35dc   :  { %v2179_v27 = vadd.f32 1.0, %v6336_v26 }
0x35de   :  { %6337 = vrcp.f32 %v2179_v27  ;;  %v2191_v30 = vand.u32 2147483648, %v2179_v27  ;;  %vm2185_vm0 = vweird.f32 %v2179_v27  ;;  %v2189_v63 = vand.u32 2147483647, %v2179_v27 }
0x35e0   :  { %v2192_v22 = vor.u32 1.1754944e-38, %v2191_v30  ;;  %vm2190_vm2 = vcmp.eq.f32.partialorder %v2189_v63, 8.507059e+37 }
0x35e4   :  { %v6338_v6 = vpop.eup %6337 }
0x35e5   :  { %v2181_v32 = vmul.f32 %v6338_v6, %v2179_v27  ;;  %vm2186_vm13 = vweird.f32 %v6338_v6 }
0x35e6   :  { %vm2187_vm1 = vmor %vm2185_vm0, %vm2186_vm13 }
0x35e7   :  { %v2182_v1 = vsub.f32 1.0, %v2181_v32 }
0x35e9   :  { %v2183_v33 = vmul.f32 %v6338_v6, %v2182_v1 }
0x35eb   :  { %v2184_v55 = vadd.f32 %v6338_v6, %v2183_v33 }
0x35ed   :  { %v2188_v52 = vsel %vm2187_vm1, %v6338_v6, %v2184_v55 }
0x35ee   :  { %v2193_v34 = vsel %vm2190_vm2, %v2192_v22, %v2188_v52 }
0x35ef   :  { %v2199_v19 = vmul.f32 %v2197_v36, %v2193_v34 }
0x364c   :  { %v2202_v3 = vpop.permute.xlu0 %2201 }
0x364d   :  { %v2204_v35 = vmul.f32 %v2202_v3, %v2193_v34 }
0x364f   :  { %2206 = vrot.lane.b32.xlu1 %v2204_v35, %s7018_s5 }
0x36c1   :  { %v2207_v10 = vpop.permute.xlu1 %2206 }
0x36c2   :  { %v2209_v42 = vadd.f32 %v2207_v10, %v2199_v19 }
0x36c4   :  { %6339 = vtanh.f32 %v2209_v42  ;;  %v2268_v18 = vrot.slane %v2209_v42, 6 }
0x36ca   :  { %v6340_v2 = vpop.eup %6339 }
0x36cb   :  { %2212 = vrot.lane.b32.xlu2 %v6340_v2, %s7018_s5 }
0x3725   :  { %v2213_v43 = vpop.permute.xlu2 %2212 }
0x3726   :  { %v2215_v44 = vmul.f32 %v2213_v43, %v2193_v34 }
0x3728   :  { %v2221_v46 = vrot.slane %v2215_v44, 6  ;;  %v7739_v8 = vsel %vm1483_vm4, %v2786_v15, %v2215_v44 }
0x372a   :  { %2222 = vrot.lane.b32.xlu0 %v2221_v46, %s7019_s17  ;;  %v2830_v48 = vsel %vm1479_vm14, %v2221_v46, %v2811_v45 }
0x372b   :  { %v7745_v29 = vsel %vm1481_vm15, %v2830_v48, %v2813_v47 }
0x379c   :  { %v2223_v49 = vpop.permute.xlu0 %2222 }
0x379d   :  { %5979 = vmatmul.msk.f32.vlgmr.msra.gmra.mxu0 %vm356_vm5, %v2223_v49 }
0x381a   :  { %v2243_v51 = vpop.f32.mrf.mxu0 }
0x381b   :  { %v2246_v53 = vadd.f32 %v2243_v51, %v7626_v14 }
0x381d   :  { %6341 = vtanh.f32 %v2246_v53  ;;  %v5980_v56 = vmul.f32 -1.442695, %v2246_v53 }
0x381f   :  { %6343 = vpow2.f32 %v5980_v56 }
0x3823   :  { %v6342_v54 = vpop.eup %6341 }
0x3824   :  { %2272 = vrot.lane.b32.xlu1 %v6342_v54, %s7018_s5 }
0x3825   :  { %v6344_v23 = vpop.eup %6343 }
0x3826   :  { %v2250_v57 = vadd.f32 1.0, %v6344_v23 }
0x3828   :  { %6345 = vrcp.f32 %v2250_v57  ;;  %v2262_v60 = vand.u32 2147483648, %v2250_v57  ;;  %vm2256_vm7 = vweird.f32 %v2250_v57  ;;  %v2260_v61 = vand.u32 2147483647, %v2250_v57 }
0x382a   :  { %v2263_v0 = vor.u32 1.1754944e-38, %v2262_v60  ;;  %vm2261_vm9 = vcmp.eq.f32.partialorder %v2260_v61, 8.507059e+37 }
0x382e   :  { %v6346_v37 = vpop.eup %6345 }
0x382f   :  { %v2252_v58 = vmul.f32 %v6346_v37, %v2250_v57  ;;  %vm2257_vm3 = vweird.f32 %v6346_v37 }
0x3830   :  { %vm2258_vm8 = vmor %vm2256_vm7, %vm2257_vm3 }
0x3831   :  { %v2253_v28 = vsub.f32 1.0, %v2252_v58 }
0x3833   :  { %v2254_v41 = vmul.f32 %v6346_v37, %v2253_v28 }
0x3835   :  { %v2255_v59 = vadd.f32 %v6346_v37, %v2254_v41 }
0x3837   :  { %v2259_v40 = vsel %vm2258_vm8, %v6346_v37, %v2255_v59 }
0x3838   :  { %v2264_v7 = vsel %vm2261_vm9, %v2263_v0, %v2259_v40 }
0x3839   :  { %v2270_v39 = vmul.f32 %v2268_v18, %v2264_v7 }
0x3896   :  { %v2273_v4 = vpop.permute.xlu1 %2272 }
0x3897   :  { %v2275_v11 = vmul.f32 %v2273_v4, %v2264_v7 }
0x3899   :  { %2277 = vrot.lane.b32.xlu2 %v2275_v11, %s7018_s5 }
0x38f3   :  { %v2278_v15 = vpop.permute.xlu2 %2277 }
0x38f4   :  { %v2280_v50 = vadd.f32 %v2278_v15, %v2270_v39 }
0x38f6   :  { %6347 = vtanh.f32 %v2280_v50  ;;  %v2340_v2 = vrot.slane %v2280_v50, 6 }
0x38fc   :  { %v6348_v16 = vpop.eup %6347 }
0x38fd   :  { %2283 = vrot.lane.b32.xlu0 %v6348_v16, %s7018_s5 }
0x396f   :  { %v2284_v17 = vpop.permute.xlu0 %2283 }
0x3970   :  { %v7752_v20 = vmul.f32 %v2284_v17, %v2264_v7 }
0x3972   :  { %2291 = vrot.lane.b32.xlu1 %v7752_v20, %s7019_s17 }
0x39e4   :  { %v2292_v21 = vpop.permute.xlu1 %2291 }
0x39e5   :  { %5981 = vmatmul.msk.f32.vlgmr.msra.gmra.mxu1 %vm356_vm5, %v2292_v21 }
0x3a62   :  { %v2312_v25 = vpop.f32.mrf.mxu1 }
0x3a63   :  { %v2316_v26 = vrot.slane %v2312_v25, 6 }
0x3a65   :  { %v2318_v27 = vadd.f32 %v2316_v26, %v7620_v13 }
0x3a67   :  { %6349 = vtanh.f32 %v2318_v27  ;;  %v5982_v32 = vmul.f32 -1.442695, %v2318_v27 }
0x3a69   :  { %6351 = vpow2.f32 %v5982_v32 }
0x3a6d   :  { %v6350_v6 = vpop.eup %6349 }
0x3a6e   :  { %2344 = vrot.lane.b32.xlu2 %v6350_v6, %s7018_s5 }
0x3a6f   :  { %v6352_v1 = vpop.eup %6351 }
0x3a70   :  { %v2322_v33 = vadd.f32 1.0, %v6352_v1 }
0x3a72   :  { %6353 = vrcp.f32 %v2322_v33  ;;  %v2334_v3 = vand.u32 2147483648, %v2322_v33  ;;  %vm2328_vm11 = vweird.f32 %v2322_v33  ;;  %v2332_v34 = vand.u32 2147483647, %v2322_v33 }
0x3a74   :  { %v2335_v36 = vor.u32 1.1754944e-38, %v2334_v3  ;;  %vm2333_vm13 = vcmp.eq.f32.partialorder %v2332_v34, 8.507059e+37 }
0x3a78   :  { %v6354_v55 = vpop.eup %6353 }
0x3a79   :  { %v2324_v30 = vmul.f32 %v6354_v55, %v2322_v33  ;;  %vm2329_vm10 = vweird.f32 %v6354_v55 }
0x3a7a   :  { %vm2330_vm12 = vmor %vm2328_vm11, %vm2329_vm10 }
0x3a7b   :  { %v2325_v63 = vsub.f32 1.0, %v2324_v30 }
0x3a7d   :  { %v2326_v52 = vmul.f32 %v6354_v55, %v2325_v63 }
0x3a7f   :  { %v2327_v22 = vadd.f32 %v6354_v55, %v2326_v52 }
0x3a81   :  { %v2331_v35 = vsel %vm2330_vm12, %v6354_v55, %v2327_v22 }
0x3a82   :  { %v2336_v10 = vsel %vm2333_vm13, %v2335_v36, %v2331_v35 }
0x3a83   :  { %v2342_v43 = vmul.f32 %v2340_v2, %v2336_v10 }
0x3ac8   :  { %v2345_v19 = vpop.permute.xlu2 %2344 }
0x3ac9   :  { %v2347_v42 = vmul.f32 %v2345_v19, %v2336_v10 }
0x3acb   :  { %2349 = vrot.lane.b32.xlu0 %v2347_v42, %s7018_s5 }
0x3b3d   :  { %v2350_v44 = vpop.permute.xlu0 %2349 }
0x3b3e   :  { %v2352_v45 = vadd.f32 %v2350_v44, %v2342_v43 }
0x3b40   :  { %6355 = vtanh.f32 %v2352_v45  ;;  %v2410_v39 = vrot.slane %v2352_v45, 6 }
0x3b46   :  { %v6356_v46 = vpop.eup %6355 }
0x3b47   :  { %2355 = vrot.lane.b32.xlu1 %v6356_v46, %s7018_s5 }
0x3bb9   :  { %v2356_v47 = vpop.permute.xlu1 %2355 }
0x3bba   :  { %v7761_v48 = vmul.f32 %v2356_v47, %v2336_v10 }
0x3bbc   :  { %v2360_v49 = vrot.slane %v7761_v48, 2  ;;  %v2788_v26 = vsel %vm1479_vm14, %v7752_v20, %v7761_v48 }
0x3bbe   :  { %2361 = vrot.lane.b32.xlu2 %v2360_v49, %s7019_s17 }
0x3c18   :  { %v2362_v51 = vpop.permute.xlu2 %2361 }
0x3c19   :  { %5983 = vmatmul.msk.f32.vlgmr.msra.gmra.mxu2 %vm356_vm5, %v2362_v51 }
0x3c9c   :  { %v2382_v53 = vpop.f32.mrf.mxu2 }
0x3c9d   :  { %v2386_v54 = vrot.slane %v2382_v53, 4 }
0x3c9f   :  { %v2388_v56 = vadd.f32 %v2386_v54, %v7626_v14 }
0x3ca1   :  { %6357 = vtanh.f32 %v2388_v56  ;;  %v5984_v57 = vmul.f32 -1.442695, %v2388_v56 }
0x3ca3   :  { %6359 = vpow2.f32 %v5984_v57 }
0x3ca7   :  { %v6358_v23 = vpop.eup %6357 }
0x3ca8   :  { %2414 = vrot.lane.b32.xlu0 %v6358_v23, %s7018_s5 }
0x3ca9   :  { %v6360_v37 = vpop.eup %6359 }
0x3caa   :  { %v2392_v58 = vadd.f32 1.0, %v6360_v37 }
0x3cac   :  { %6361 = vrcp.f32 %v2392_v58  ;;  %v2404_v40 = vand.u32 2147483648, %v2392_v58  ;;  %vm2398_vm1 = vweird.f32 %v2392_v58  ;;  %v2402_v0 = vand.u32 2147483647, %v2392_v58 }
0x3cae   :  { %v2405_v4 = vor.u32 1.1754944e-38, %v2404_v40  ;;  %vm2403_vm3 = vcmp.eq.f32.partialorder %v2402_v0, 8.507059e+37 }
0x3cb2   :  { %v6362_v28 = vpop.eup %6361 }
0x3cb3   :  { %v2394_v41 = vmul.f32 %v6362_v28, %v2392_v58  ;;  %vm2399_vm0 = vweird.f32 %v6362_v28  ;;  %v2806_v58 = vrot.slane %v7761_v48, 6 }
0x3cb4   :  { %vm2400_vm2 = vmor %vm2398_vm1, %vm2399_vm0 }
0x3cb5   :  { %v2395_v59 = vsub.f32 1.0, %v2394_v41 }
0x3cb7   :  { %v2396_v60 = vmul.f32 %v6362_v28, %v2395_v59 }
0x3cb9   :  { %v2397_v61 = vadd.f32 %v6362_v28, %v2396_v60 }
0x3cbb   :  { %v2401_v14 = vsel %vm2400_vm2, %v6362_v28, %v2397_v61 }
0x3cbc   :  { %v2406_v11 = vsel %vm2403_vm3, %v2405_v4, %v2401_v14 }
0x3cbd   :  { %v2412_v15 = vmul.f32 %v2410_v39, %v2406_v11 }
0x3d1a   :  { %v2415_v7 = vpop.permute.xlu0 %2414 }
0x3d1b   :  { %v2417_v18 = vmul.f32 %v2415_v7, %v2406_v11 }
0x3d1d   :  { %2419 = vrot.lane.b32.xlu1 %v2417_v18, %s7018_s5 }
0x3d8f   :  { %v2420_v50 = vpop.permute.xlu1 %2419 }
0x3d90   :  { %v2422_v16 = vadd.f32 %v2420_v50, %v2412_v15 }
0x3d92   :  { %6363 = vtanh.f32 %v2422_v16  ;;  %v2480_v46 = vrot.slane %v2422_v16, 6 }
0x3d98   :  { %v6364_v17 = vpop.eup %6363 }
0x3d99   :  { %2425 = vrot.lane.b32.xlu2 %v6364_v17, %s7018_s5 }
0x3df3   :  { %v2426_v21 = vpop.permute.xlu2 %2425 }
0x3df4   :  { %v2428_v25 = vmul.f32 %v2426_v21, %v2406_v11 }
0x3df6   :  { %v2430_v27 = vrot.slane %v2428_v25, 4  ;;  %v2789_v6 = vsel %vm1481_vm15, %v2788_v26, %v2428_v25  ;;  %v2804_v23 = vrot.slane %v2428_v25, 2 }
0x3df8   :  { %2431 = vrot.lane.b32.xlu0 %v2430_v27, %s7019_s17 }
0x3e6a   :  { %v2432_v32 = vpop.permute.xlu0 %2431 }
0x3e6b   :  { %5985 = vmatmul.msk.f32.vlgmr.msra.gmra.mxu3 %vm356_vm5, %v2432_v32 }
0x3eee   :  { %v2452_v1 = vpop.f32.mrf.mxu3 }
0x3eef   :  { %v2456_v33 = vrot.slane %v2452_v1, 2 }
0x3ef1   :  { %v2458_v55 = vadd.f32 %v2456_v33, %v7620_v13 }
0x3ef3   :  { %6365 = vtanh.f32 %v2458_v55  ;;  %v5986_v63 = vmul.f32 -1.442695, %v2458_v55 }
0x3ef5   :  { %6367 = vpow2.f32 %v5986_v63 }
0x3ef9   :  { %v6366_v30 = vpop.eup %6365 }
0x3efa   :  { %2484 = vrot.lane.b32.xlu1 %v6366_v30, %s7018_s5 }
0x3efb   :  { %v6368_v52 = vpop.eup %6367 }
0x3efc   :  { %v2462_v22 = vadd.f32 1.0, %v6368_v52 }
0x3efe   :  { %6369 = vrcp.f32 %v2462_v22  ;;  %v2474_v10 = vand.u32 2147483648, %v2462_v22  ;;  %vm2468_vm8 = vweird.f32 %v2462_v22  ;;  %v2472_v42 = vand.u32 2147483647, %v2462_v22 }
0x3f00   :  { %v2475_v2 = vor.u32 1.1754944e-38, %v2474_v10  ;;  %vm2473_vm10 = vcmp.eq.f32.partialorder %v2472_v42, 8.507059e+37 }
0x3f04   :  { %v6370_v3 = vpop.eup %6369 }
0x3f05   :  { %v2464_v34 = vmul.f32 %v6370_v3, %v2462_v22  ;;  %vm2469_vm7 = vweird.f32 %v6370_v3 }
0x3f06   :  { %vm2470_vm9 = vmor %vm2468_vm8, %vm2469_vm7 }
0x3f07   :  { %v2465_v35 = vsub.f32 1.0, %v2464_v34 }
0x3f09   :  { %v2466_v36 = vmul.f32 %v6370_v3, %v2465_v35 }
0x3f0b   :  { %v2467_v19 = vadd.f32 %v6370_v3, %v2466_v36 }
0x3f0d   :  { %v2471_v13 = vsel %vm2470_vm9, %v6370_v3, %v2467_v19 }
0x3f0e   :  { %v2476_v44 = vsel %vm2473_vm10, %v2475_v2, %v2471_v13 }
0x3f0f   :  { %v2482_v47 = vmul.f32 %v2480_v46, %v2476_v44 }
0x3f6c   :  { %v2485_v43 = vpop.permute.xlu1 %2484 }
0x3f6d   :  { %v2487_v45 = vmul.f32 %v2485_v43, %v2476_v44 }
0x3f6f   :  { %2489 = vrot.lane.b32.xlu2 %v2487_v45, %s7018_s5 }
0x3fc9   :  { %v2490_v49 = vpop.permute.xlu2 %2489 }
0x3fca   :  { %v2492_v51 = vadd.f32 %v2490_v49, %v2482_v47 }
0x3fcc   :  { %6371 = vtanh.f32 %v2492_v51  ;;  %v2551_v27 = vrot.slane %v2492_v51, 6 }
0x3fd2   :  { %v6372_v53 = vpop.eup %6371 }
0x3fd3   :  { %2495 = vrot.lane.b32.xlu0 %v6372_v53, %s7018_s5 }
0x4045   :  { %v2496_v54 = vpop.permute.xlu0 %2495 }
0x4046   :  { %v2498_v56 = vmul.f32 %v2496_v54, %v2476_v44 }
0x4048   :  { %v2504_v57 = vrot.slane %v2498_v56, 6  ;;  %v7781_v37 = vsel %vm1483_vm4, %v2789_v6, %v2498_v56 }
0x404a   :  { %2505 = vrot.lane.b32.xlu1 %v2504_v57, %s7019_s17  ;;  %v2827_v28 = vsel %vm1479_vm14, %v2504_v57, %v2804_v23 }
0x404b   :  { %v7787_v41 = vsel %vm1481_vm15, %v2827_v28, %v2806_v58 }
0x40bc   :  { %v2506_v59 = vpop.permute.xlu1 %2505 }
0x40bd   :  { %5987 = vmatmul.msk.f32.vlgmr.msrb.gmra.mxu0 %vm356_vm5, %v2506_v59 }
0x413a   :  { %v2526_v60 = vpop.f32.mrf.mxu0 }
0x413b   :  { %v2529_v61 = vadd.f32 %v2526_v60, %v7632_v31 }
0x413d   :  { %6373 = vtanh.f32 %v2529_v61  ;;  %v5988_v0 = vmul.f32 -1.442695, %v2529_v61 }
0x413f   :  { %6375 = vpow2.f32 %v5988_v0 }
0x4143   :  { %v6374_v40 = vpop.eup %6373 }
0x4144   :  { %2555 = vrot.lane.b32.xlu2 %v6374_v40, %s7018_s5 }
0x4145   :  { %v6376_v48 = vpop.eup %6375 }
0x4146   :  { %v2533_v14 = vadd.f32 1.0, %v6376_v48 }
0x4148   :  { %6377 = vrcp.f32 %v2533_v14  ;;  %v2545_v15 = vand.u32 2147483648, %v2533_v14  ;;  %vm2539_vm12 = vweird.f32 %v2533_v14  ;;  %v2543_v50 = vand.u32 2147483647, %v2533_v14 }
0x414a   :  { %v2546_v17 = vor.u32 1.1754944e-38, %v2545_v15  ;;  %vm2544_vm0 = vcmp.eq.f32.partialorder %v2543_v50, 8.507059e+37 }
0x414e   :  { %v6378_v4 = vpop.eup %6377 }
0x414f   :  { %v2535_v7 = vmul.f32 %v6378_v4, %v2533_v14  ;;  %vm2540_vm11 = vweird.f32 %v6378_v4 }
0x4150   :  { %vm2541_vm13 = vmor %vm2539_vm12, %vm2540_vm11 }
0x4151   :  { %v2536_v11 = vsub.f32 1.0, %v2535_v7 }
0x4153   :  { %v2537_v18 = vmul.f32 %v6378_v4, %v2536_v11 }
0x4155   :  { %v2538_v39 = vadd.f32 %v6378_v4, %v2537_v18 }
0x4157   :  { %v2542_v16 = vsel %vm2541_vm13, %v6378_v4, %v2538_v39 }
0x4158   :  { %v2547_v25 = vsel %vm2544_vm0, %v2546_v17, %v2542_v16 }
0x4159   :  { %v2553_v6 = vmul.f32 %v2551_v27, %v2547_v25 }
0x419e   :  { %v2556_v21 = vpop.permute.xlu2 %2555 }
0x419f   :  { %v2558_v26 = vmul.f32 %v2556_v21, %v2547_v25 }
0x41a1   :  { %2560 = vrot.lane.b32.xlu0 %v2558_v26, %s7018_s5 }
0x4213   :  { %v2561_v32 = vpop.permute.xlu0 %2560 }
0x4214   :  { %v2563_v1 = vadd.f32 %v2561_v32, %v2553_v6 }
0x4216   :  { %6379 = vtanh.f32 %v2563_v1  ;;  %v2623_v54 = vrot.slane %v2563_v1, 6 }
0x421c   :  { %v6380_v33 = vpop.eup %6379 }
0x421d   :  { %2566 = vrot.lane.b32.xlu1 %v6380_v33, %s7018_s5 }
0x428f   :  { %v2567_v55 = vpop.permute.xlu1 %2566 }
0x4290   :  { %v7794_v30 = vmul.f32 %v2567_v55, %v2547_v25 }
0x4292   :  { %2574 = vrot.lane.b32.xlu2 %v7794_v30, %s7019_s17 }
0x42ec   :  { %v2575_v63 = vpop.permute.xlu2 %2574 }
0x42ed   :  { %5989 = vmatmul.msk.f32.vlgmr.msrb.gmra.mxu1 %vm356_vm5, %v2575_v63 }
0x436a   :  { %v2595_v52 = vpop.f32.mrf.mxu1 }
0x436b   :  { %v2599_v22 = vrot.slane %v2595_v52, 6 }
0x436d   :  { %v2601_v3 = vadd.f32 %v2599_v22, %v7628_v24 }
0x436f   :  { %6381 = vtanh.f32 %v2601_v3  ;;  %v5990_v35 = vmul.f32 -1.442695, %v2601_v3 }
0x4371   :  { %6383 = vpow2.f32 %v5990_v35 }
0x4375   :  { %v6382_v34 = vpop.eup %6381 }
0x4376   :  { %2627 = vrot.lane.b32.xlu0 %v6382_v34, %s7018_s5 }
0x4377   :  { %v6384_v36 = vpop.eup %6383 }
0x4378   :  { %v2605_v19 = vadd.f32 1.0, %v6384_v36 }
0x437a   :  { %6385 = vrcp.f32 %v2605_v19  ;;  %v2617_v44 = vand.u32 2147483648, %v2605_v19  ;;  %vm2611_vm2 = vweird.f32 %v2605_v19  ;;  %v2615_v45 = vand.u32 2147483647, %v2605_v19 }
0x437c   :  { %v2618_v47 = vor.u32 1.1754944e-38, %v2617_v44  ;;  %vm2616_vm7 = vcmp.eq.f32.partialorder %v2615_v45, 8.507059e+37 }
0x4380   :  { %v6386_v10 = vpop.eup %6385 }
0x4381   :  { %v2607_v42 = vmul.f32 %v6386_v10, %v2605_v19  ;;  %vm2612_vm1 = vweird.f32 %v6386_v10 }
0x4382   :  { %vm2613_vm3 = vmor %vm2611_vm2, %vm2612_vm1 }
0x4383   :  { %v2608_v13 = vsub.f32 1.0, %v2607_v42 }
0x4385   :  { %v2609_v2 = vmul.f32 %v6386_v10, %v2608_v13 }
0x4387   :  { %v2610_v43 = vadd.f32 %v6386_v10, %v2609_v2  ;;  %v2808_v2 = vrot.slane %v7752_v20, 2 }
0x4389   :  { %v2614_v46 = vsel %vm2613_vm3, %v6386_v10, %v2610_v43  ;;  %v2829_v43 = vsel %vm1483_vm4, %v7787_v41, %v2808_v2 }
0x438a   :  { %v2619_v51 = vsel %vm2616_vm7, %v2618_v47, %v2614_v46 }
0x438b   :  { %v2625_v56 = vmul.f32 %v2623_v54, %v2619_v51 }
0x43e8   :  { %v2628_v49 = vpop.permute.xlu0 %2627 }
0x43e9   :  { %v2630_v53 = vmul.f32 %v2628_v49, %v2619_v51 }
0x43eb   :  { %2632 = vrot.lane.b32.xlu1 %v2630_v53, %s7018_s5 }
0x445d   :  { %v2633_v23 = vpop.permute.xlu1 %2632 }
0x445e   :  { %v2635_v57 = vadd.f32 %v2633_v23, %v2625_v56 }
0x4460   :  { %6387 = vtanh.f32 %v2635_v57  ;;  %v2693_v32 = vrot.slane %v2635_v57, 6 }
0x4466   :  { %v6388_v58 = vpop.eup %6387 }
0x4467   :  { %2638 = vrot.lane.b32.xlu2 %v6388_v58, %s7018_s5 }
0x44c1   :  { %v2639_v28 = vpop.permute.xlu2 %2638 }
0x44c2   :  { %v7803_v59 = vmul.f32 %v2639_v28, %v2619_v51 }
0x44c4   :  { %v2643_v60 = vrot.slane %v7803_v59, 2  ;;  %v2791_v3 = vsel %vm1479_vm14, %v7794_v30, %v7803_v59 }
0x44c6   :  { %2644 = vrot.lane.b32.xlu0 %v2643_v60, %s7019_s17 }
0x4538   :  { %v2645_v61 = vpop.permute.xlu0 %2644 }
0x4539   :  { %5991 = vmatmul.msk.f32.vlgmr.msrb.gmra.mxu2 %vm356_vm5, %v2645_v61 }
0x45bc   :  { %v2665_v40 = vpop.f32.mrf.mxu2 }
0x45bd   :  { %v2669_v0 = vrot.slane %v2665_v40, 4 }
0x45bf   :  { %v2671_v48 = vadd.f32 %v2669_v0, %v7632_v31  ;;  %v2815_v0 = vrot.slane %v7698_v62, 2 }
0x45c1   :  { %6389 = vtanh.f32 %v2671_v48  ;;  %v5992_v4 = vmul.f32 -1.442695, %v2671_v48  ;;  %v2832_v48 = vsel %vm1483_vm4, %v7745_v29, %v2815_v0 }
0x45c3   :  { %6391 = vpow2.f32 %v5992_v4 }
0x45c7   :  { %v6390_v14 = vpop.eup %6389 }
0x45c8   :  { %2697 = vrot.lane.b32.xlu1 %v6390_v14, %s7018_s5 }
0x45c9   :  { %v6392_v7 = vpop.eup %6391 }
0x45ca   :  { %v2675_v11 = vadd.f32 1.0, %v6392_v7 }
0x45cc   :  { %6393 = vrcp.f32 %v2675_v11  ;;  %v2687_v17 = vand.u32 2147483648, %v2675_v11  ;;  %vm2681_vm9 = vweird.f32 %v2675_v11  ;;  %v2685_v21 = vand.u32 2147483647, %v2675_v11 }
0x45ce   :  { %v2688_v25 = vor.u32 1.1754944e-38, %v2687_v17  ;;  %vm2686_vm11 = vcmp.eq.f32.partialorder %v2685_v21, 8.507059e+37  ;;  %v2878_v17 = vld [vmem:[#allocation10 + $0x10] sm:$0xff] }
0x45cf   :  { %v2874_v21 = vld [vmem:[#allocation8 + $0x10] sm:$0xff] }
0x45d2   :  { %v6394_v18 = vpop.eup %6393 }
0x45d3   :  { %v2677_v39 = vmul.f32 %v6394_v18, %v2675_v11  ;;  %vm2682_vm8 = vweird.f32 %v6394_v18 }
0x45d4   :  { %vm2683_vm10 = vmor %vm2681_vm9, %vm2682_vm8 }
0x45d5   :  { %v2678_v15 = vsub.f32 1.0, %v2677_v39  ;;  %v2799_v39 = vrot.slane %v7803_v59, 6 }
0x45d7   :  { %v2679_v50 = vmul.f32 %v6394_v18, %v2678_v15  ;;  %v2801_v15 = vrot.slane %v7794_v30, 2  ;;  %v2875_v30 = vld [vmem:[#allocation8 + $0x18] sm:$0xff] }
0x45d8   :  { %2912 = vmatpush.msra.mxu0 %v2875_v30 }
0x45d9   :  { %v2680_v16 = vadd.f32 %v6394_v18, %v2679_v50  ;;  %v2822_v50 = vrot.slane %v7638_v9, 2  ;;  %v2872_v9 = vld [vmem:[#allocation8] sm:$0xff] }
0x45da   :  { %2913 = vmatpush.msra.mxu0 %v2874_v21 }
0x45db   :  { %v2684_v31 = vsel %vm2683_vm10, %v6394_v18, %v2680_v16  ;;  %v2835_v59 = vsel %vm1483_vm4, %v7687_v38, %v2822_v50  ;;  %v2879_v16 = vld [vmem:[#allocation10 + $0x18] sm:$0xff]  ;;  %v7854_v38 = vld [vmem:[#allocation11 + $0x10] sm:$0xff] }
0x45dc   :  { %v2689_v27 = vsel %vm2686_vm11, %v2688_v25, %v2684_v31  ;;  %2941 = vmatpush.msra.mxu1 %v2879_v16  ;;  %v2877_v31 = vld [vmem:[#allocation10 + $0x8] sm:$0xff] }
0x45dd   :  { %v2695_v1 = vmul.f32 %v2693_v32, %v2689_v27  ;;  %v2873_v25 = vld [vmem:[#allocation8 + $0x8] sm:$0xff] }
0x45de   :  { %2942 = vmatpush.msra.mxu1 %v2878_v17  ;;  %2914 = vmatpush.msra.mxu0 %v2873_v25 }
0x45e0   :  { %2943 = vmatpush.msra.mxu1 %v2877_v31  ;;  %2915 = vmatpush.msra.mxu0 %v2872_v9 }
0x463a   :  { %v2698_v26 = vpop.permute.xlu1 %2697 }
0x463b   :  { %v2700_v6 = vmul.f32 %v2698_v26, %v2689_v27  ;;  %v2876_v26 = vld [vmem:[#allocation10] sm:$0xff] }
0x463c   :  { %2944 = vmatpush.msra.mxu1 %v2876_v26 }
0x463d   :  { %2702 = vrot.lane.b32.xlu2 %v2700_v6, %s7018_s5  ;;  %v7860_v6 = vld [vmem:[#allocation11] sm:$0xff] }
0x4697   :  { %v2703_v33 = vpop.permute.xlu2 %2702 }
0x4698   :  { %v2705_v55 = vadd.f32 %v2703_v33, %v2695_v1 }
0x469a   :  { %6395 = vtanh.f32 %v2705_v55  ;;  %v2763_v58 = vrot.slane %v2705_v55, 6 }
0x46a0   :  { %v6396_v63 = vpop.eup %6395 }
0x46a1   :  { %2708 = vrot.lane.b32.xlu0 %v6396_v63, %s7018_s5 }
0x4713   :  { %v2709_v52 = vpop.permute.xlu0 %2708 }
0x4714   :  { %v2711_v22 = vmul.f32 %v2709_v52, %v2689_v27  ;;  %v7856_v27 = vld [vmem:[#allocation11 + $0x8] sm:$0xff] }
0x4716   :  { %v2713_v34 = vrot.slane %v2711_v22, 4  ;;  %v2792_v35 = vsel %vm1481_vm15, %v2791_v3, %v2711_v22  ;;  %v2797_v7 = vrot.slane %v2711_v22, 2 }
0x4718   :  { %2714 = vrot.lane.b32.xlu1 %v2713_v34, %s7019_s17 }
0x478a   :  { %v2715_v36 = vpop.permute.xlu1 %2714 }
0x478b   :  { %5993 = vmatmul.msk.f32.vlgmr.msrb.gmra.mxu3 %vm356_vm5, %v2715_v36 }
0x480e   :  { %v2735_v19 = vpop.f32.mrf.mxu3 }
0x480f   :  { %v2739_v10 = vrot.slane %v2735_v19, 2 }
0x4811   :  { %v2741_v42 = vadd.f32 %v2739_v10, %v7628_v24 }
0x4813   :  { %6397 = vtanh.f32 %v2741_v42  ;;  %v5994_v44 = vmul.f32 -1.442695, %v2741_v42 }
0x4815   :  { %6399 = vpow2.f32 %v5994_v44 }
0x4819   :  { %v6398_v13 = vpop.eup %6397 }
0x481a   :  { %2767 = vrot.lane.b32.xlu2 %v6398_v13, %s7018_s5 }
0x481b   :  { %v6400_v45 = vpop.eup %6399 }
0x481c   :  { %v2745_v46 = vadd.f32 1.0, %v6400_v45 }
0x481e   :  { %6401 = vrcp.f32 %v2745_v46  ;;  %v2757_v54 = vand.u32 2147483648, %v2745_v46  ;;  %vm2751_vm13 = vweird.f32 %v2745_v46 }
0x4820   :  { %v2758_v56 = vor.u32 1.1754944e-38, %v2757_v54 }
0x4822   :  { %2840 = vrot.lane.b32.xlu2 %v7681_v5, %s7019_s17  ;;  %v2755_v5 = vand.u32 2147483647, %v2745_v46 }
0x4824   :  { %v6402_v24 = vpop.eup %6401  ;;  %vm2756_vm1 = vcmp.eq.f32.partialorder %v2755_v5, 8.507059e+37 }
0x4825   :  { %v2747_v47 = vmul.f32 %v6402_v24, %v2745_v46  ;;  %vm2752_vm12 = vweird.f32 %v6402_v24 }
0x4826   :  { %vm2753_vm0 = vmor %vm2751_vm13, %vm2752_vm12 }
0x4827   :  { %v2748_v49 = vsub.f32 1.0, %v2747_v47 }
0x4829   :  { %v2749_v51 = vmul.f32 %v6402_v24, %v2748_v49 }
0x482a   :  { %2858 = vrot.lane.b32.xlu2 %v2829_v43, %s7019_s17  ;;  %v6136_v43 = vld [vmem:[%s8418_s25] ss:$0 sm:$0xff] }
0x482b   :  { %v2750_v53 = vadd.f32 %v6402_v24, %v2749_v51 }
0x482d   :  { %v2754_v20 = vsel %vm2753_vm0, %v6402_v24, %v2750_v53 }
0x482e   :  { %v2759_v23 = vsel %vm2756_vm1, %v2758_v56, %v2754_v20 }
0x482f   :  { %v2765_v28 = vmul.f32 %v2763_v58, %v2759_v23 }
0x4874   :  { %v2768_v41 = vpop.permute.xlu2 %2767 }
0x4875   :  { %v2770_v57 = vmul.f32 %v2768_v41, %v2759_v23 }
0x4877   :  { %2772 = vrot.lane.b32.xlu0 %v2770_v57, %s7018_s5 }
0x487c   :  { %v2841_v32 = vpop.permute.xlu2 %2840 }
0x4884   :  { %v2859_v63 = vpop.permute.xlu2 %2858 }
0x48e9   :  { %v2773_v60 = vpop.permute.xlu0 %2772 }
0x48ea   :  { %v2775_v61 = vadd.f32 %v2773_v60, %v2765_v28 }
0x48ec   :  { %6403 = vtanh.f32 %v2775_v61 }
0x48f2   :  { %v6404_v40 = vpop.eup %6403 }
0x48f3   :  { %2778 = vrot.lane.b32.xlu1 %v6404_v40, %s7018_s5 }
0x48fb   :  { %2842 = vrot.lane.b32.xlu1 %v7739_v8, %s7019_s17 }
0x4903   :  { %2860 = vrot.lane.b32.xlu1 %v2832_v48, %s7019_s17 }
0x4965   :  { %v2779_v14 = vpop.permute.xlu1 %2778 }
0x4966   :  { %v2781_v4 = vmul.f32 %v2779_v14, %v2759_v23 }
0x4968   :  { %v2795_v11 = vrot.slane %v2781_v4, 6  ;;  %v2793_v18 = vsel %vm1483_vm4, %v2792_v35, %v2781_v4 }
0x4969   :  { %2846 = vrot.lane.b32.xlu2 %v2793_v18, %s7019_s17 }
0x496a   :  { %v2824_v8 = vsel %vm1479_vm14, %v2795_v11, %v2797_v7 }
0x496b   :  { %v2825_v62 = vsel %vm1481_vm15, %v2824_v8, %v2799_v39 }
0x496c   :  { %v2826_v29 = vsel %vm1483_vm4, %v2825_v62, %v2801_v15 }
0x496d   :  { %2856 = vrot.lane.b32.xlu0 %v2826_v29, %s7019_s17  ;;  %v2843_v55 = vpop.permute.xlu1 %2842 }
0x496e   :  { %v2869_v52 = vsel %vm1568_vm6, %v2843_v55, %v2859_v63 }
0x4975   :  { %2844 = vrot.lane.b32.xlu0 %v7781_v37, %s7019_s17  ;;  %v7848_v37 = vld [vmem:[#allocation11 + $0x18] sm:$0xff]  ;;  %v2861_v3 = vpop.permute.xlu1 %2860 }
0x4976   :  { %2974 = vmatpush.msra.mxu2 %v7848_v37  ;;  %3040 = vmatpush.msra.mxu3 %v7848_v37 }
0x4977   :  { %3537 = vmatpush.msrb.mxu0 %v7848_v37  ;;  %3606 = vmatpush.msrb.mxu1 %v7848_v37 }
0x4978   :  { %2975 = vmatpush.msra.mxu2 %v7854_v38  ;;  %3041 = vmatpush.msra.mxu3 %v7854_v38 }
0x4979   :  { %3538 = vmatpush.msrb.mxu0 %v7854_v38  ;;  %3607 = vmatpush.msrb.mxu1 %v7854_v38 }
0x497a   :  { %2976 = vmatpush.msra.mxu2 %v7856_v27  ;;  %3042 = vmatpush.msra.mxu3 %v7856_v27 }
0x497b   :  { %3539 = vmatpush.msrb.mxu0 %v7856_v27  ;;  %3608 = vmatpush.msrb.mxu1 %v7856_v27 }
0x497c   :  { %2977 = vmatpush.msra.mxu2 %v7860_v6  ;;  %3043 = vmatpush.msra.mxu3 %v7860_v6 }
0x497d   :  { %2862 = vrot.lane.b32.xlu0 %v2835_v59, %s7019_s17  ;;  %2978 = vmatmul.f32.vlgmr.msra.gmra.mxu2 %v7017_v12 }
0x497e   :  { %3180 = vmatpush.msrb.mxu3 %v7848_v37  ;;  %3110 = vmatpush.msrb.mxu2 %v7848_v37 }
0x497f   :  { %3540 = vmatpush.msrb.mxu0 %v7860_v6  ;;  %3609 = vmatpush.msrb.mxu1 %v7860_v6 }
0x4980   :  { %3181 = vmatpush.msrb.mxu3 %v7854_v38  ;;  %3111 = vmatpush.msrb.mxu2 %v7854_v38 }
0x4982   :  { %3182 = vmatpush.msrb.mxu3 %v7856_v27  ;;  %3112 = vmatpush.msrb.mxu2 %v7856_v27 }
0x4984   :  { %3183 = vmatpush.msrb.mxu3 %v7860_v6  ;;  %3113 = vmatpush.msrb.mxu2 %v7860_v6 }
0x4986   :  { %3254 = vmatpush.msra.mxu2 %v7848_v37 }
0x4988   :  { %3255 = vmatpush.msra.mxu2 %v7854_v38 }
0x498a   :  { %3256 = vmatpush.msra.mxu2 %v7856_v27 }
0x498c   :  { %3257 = vmatpush.msra.mxu2 %v7860_v6 }
0x49c3   :  { %v2847_v36 = vpop.permute.xlu2 %2846 }
0x49df   :  { %v2857_v1 = vpop.permute.xlu0 %2856 }
0x49e0   :  { %v2868_v33 = vsel %vm1568_vm6, %v2841_v32, %v2857_v1 }
0x49e1   :  { %5995 = vmatmul.msk.f32.vlgmr.msra.gmra.mxu0 %vm356_vm5, %v2868_v33  ;;  %5999 = vmatmul.msk.f32.vlgmr.msra.gmra.mxu1 %vm356_vm5, %v2868_v33 }
0x49e2   :  { %3820 = vmatpush.msra.mxu0 %v7848_v37  ;;  %3889 = vmatpush.msra.mxu1 %v7848_v37 }
0x49e4   :  { %3821 = vmatpush.msra.mxu0 %v7854_v38  ;;  %3890 = vmatpush.msra.mxu1 %v7854_v38 }
0x49e6   :  { %3822 = vmatpush.msra.mxu0 %v7856_v27  ;;  %3891 = vmatpush.msra.mxu1 %v7856_v27 }
0x49e7   :  { %v2845_v22 = vpop.permute.xlu0 %2844 }
0x49e8   :  { %3823 = vmatpush.msra.mxu0 %v7860_v6  ;;  %3892 = vmatpush.msra.mxu1 %v7860_v6  ;;  %v2870_v34 = vsel %vm1568_vm6, %v2845_v22, %v2861_v3 }
0x49e9   :  { %5996 = vmatmul.msk.f32.gmra.mxu0 %vm356_vm5, %v2869_v52  ;;  %6000 = vmatmul.msk.f32.gmra.mxu1 %vm356_vm5, %v2869_v52 }
0x49ef   :  { %v2863_v35 = vpop.permute.xlu0 %2862 }
0x49f0   :  { %v2871_v19 = vsel %vm1568_vm6, %v2847_v36, %v2863_v35 }
0x49f1   :  { %5997 = vmatmul.msk.f32.gmra.mxu0 %vm356_vm5, %v2870_v34  ;;  %6001 = vmatmul.msk.f32.gmra.mxu1 %vm356_vm5, %v2870_v34 }
0x49f9   :  { %5998 = vmatmul.msk.f32.gmra.mxu0 %vm356_vm5, %v2871_v19  ;;  %6002 = vmatmul.msk.f32.gmra.mxu1 %vm356_vm5, %v2871_v19 }
0x4a00   :  { %v2979_v40 = vpop.f32.mrf.mxu2 }
0x4a5e   :  { %v2917_v10 = vpop.f32.mrf.mxu0  ;;  %v2946_v42 = vpop.f32.mrf.mxu1 }
0x4a5f   :  { %v2918_v41 = vadd.f32 %v6136_v43, %v2917_v10  ;;  %v3799_v58 = vrot.slane %v2946_v42, 6  ;;  %v3869_v28 = vrot.slane %v2946_v42, 2 }
0x4a66   :  { %v2920_v13 = vpop.f32.mrf.mxu0  ;;  %v2949_v2 = vpop.f32.mrf.mxu1 }
0x4a67   :  { %v2921_v44 = vadd.f32 %v6136_v43, %v2920_v13  ;;  %v3516_v45 = vrot.slane %v2949_v2, 6  ;;  %v3586_v47 = vrot.slane %v2949_v2, 2 }
0x4a6e   :  { %v2923_v46 = vpop.f32.mrf.mxu0  ;;  %v2952_v24 = vpop.f32.mrf.mxu1 }
0x4a6f   :  { %v2924_v49 = vadd.f32 %v6136_v43, %v2923_v46  ;;  %v3233_v51 = vrot.slane %v2952_v24, 6  ;;  %v3303_v53 = vrot.slane %v2952_v24, 2 }
0x4a71   :  { %v7906_v54 = vadd.f32 %v3586_v47, %v2924_v49  ;;  %v7908_v5 = vadd.f32 %v3303_v53, %v2921_v44  ;;  %v7910_v20 = vadd.f32 %v3233_v51, %v2921_v44  ;;  %v7912_v56 = vadd.f32 %v3516_v45, %v2924_v49 }
0x4a76   :  { %v2926_v23 = vpop.f32.mrf.mxu0  ;;  %v2955_v57 = vpop.f32.mrf.mxu1 }
0x4a77   :  { %v2927_v60 = vadd.f32 %v6136_v43, %v2926_v23  ;;  %v2959_v61 = vrot.slane %v2955_v57, 6  ;;  %v3020_v52 = vrot.slane %v2955_v57, 2 }
0x4a79   :  { %v7914_v0 = vadd.f32 %v3869_v28, %v2927_v60  ;;  %v7916_v48 = vadd.f32 %v2959_v61, %v2918_v41  ;;  %v7918_v14 = vadd.f32 %v3799_v58, %v2927_v60  ;;  %v7933_v3 = vadd.f32 %v3020_v52, %v2918_v41 }
0x4a7b   :  { %v2982_v4 = vadd.f32 %v2979_v40, %v7916_v48 }
0x4a7d   :  { %6405 = vtanh.f32 %v2982_v4  ;;  %v6003_v11 = vmul.f32 -1.442695, %v2982_v4 }
0x4a7f   :  { %6407 = vpow2.f32 %v6003_v11 }
0x4a83   :  { %v6406_v7 = vpop.eup %6405 }
0x4a84   :  { %3005 = vrot.lane.b32.xlu1 %v6406_v7, %s7018_s5 }
0x4a85   :  { %v6408_v18 = vpop.eup %6407 }
0x4a86   :  { %v2986_v39 = vadd.f32 1.0, %v6408_v18 }
0x4a88   :  { %6409 = vrcp.f32 %v2986_v39  ;;  %v2998_v59 = vand.u32 2147483648, %v2986_v39  ;;  %vm2992_vm3 = vweird.f32 %v2986_v39  ;;  %v2996_v16 = vand.u32 2147483647, %v2986_v39 }
0x4a8a   :  { %v2999_v17 = vor.u32 1.1754944e-38, %v2998_v59  ;;  %vm2997_vm8 = vcmp.eq.f32.partialorder %v2996_v16, 8.507059e+37 }
0x4a8e   :  { %v6410_v15 = vpop.eup %6409 }
0x4a8f   :  { %v2988_v8 = vmul.f32 %v6410_v15, %v2986_v39  ;;  %vm2993_vm2 = vweird.f32 %v6410_v15 }
0x4a90   :  { %vm2994_vm7 = vmor %vm2992_vm3, %vm2993_vm2 }
0x4a91   :  { %v2989_v62 = vsub.f32 1.0, %v2988_v8 }
0x4a93   :  { %v2990_v29 = vmul.f32 %v6410_v15, %v2989_v62 }
0x4a95   :  { %v2991_v50 = vadd.f32 %v6410_v15, %v2990_v29 }
0x4a97   :  { %v2995_v30 = vsel %vm2994_vm7, %v6410_v15, %v2991_v50 }
0x4a98   :  { %v3000_v31 = vsel %vm2997_vm8, %v2999_v17, %v2995_v30 }
0x4a99   :  { %v3003_v26 = vmul.f32 0.0, %v3000_v31 }
0x4af6   :  { %v3006_v21 = vpop.permute.xlu1 %3005 }
0x4af7   :  { %v3008_v25 = vmul.f32 %v3006_v21, %v3000_v31 }
0x4af9   :  { %3010 = vrot.lane.b32.xlu2 %v3008_v25, %s7018_s5 }
0x4b53   :  { %v3011_v9 = vpop.permute.xlu2 %3010 }
0x4b54   :  { %v3013_v32 = vadd.f32 %v3011_v9, %v3003_v26 }
0x4b56   :  { %6411 = vtanh.f32 %v3013_v32  ;;  %v3073_v23 = vrot.slane %v3013_v32, 6 }
0x4b5c   :  { %v6412_v1 = vpop.eup %6411 }
0x4b5d   :  { %3016 = vrot.lane.b32.xlu0 %v6412_v1, %s7018_s5 }
0x4bcf   :  { %v3017_v33 = vpop.permute.xlu0 %3016 }
0x4bd0   :  { %v7924_v55 = vmul.f32 %v3017_v33, %v3000_v31 }
0x4bd2   :  { %3024 = vrot.lane.b32.xlu1 %v7924_v55, %s7019_s17 }
0x4c44   :  { %v3025_v63 = vpop.permute.xlu1 %3024 }
0x4c45   :  { %6004 = vmatmul.msk.f32.vlgmr.msra.gmra.mxu3 %vm356_vm5, %v3025_v63 }
0x4c46   :  { %3323 = vmatpush.msra.mxu3 %v7848_v37 }
0x4c48   :  { %3324 = vmatpush.msra.mxu3 %v7854_v38 }
0x4c4a   :  { %3325 = vmatpush.msra.mxu3 %v7856_v27 }
0x4c4c   :  { %3326 = vmatpush.msra.mxu3 %v7860_v6 }
0x4cc8   :  { %v3045_v22 = vpop.f32.mrf.mxu3 }
0x4cc9   :  { %v3049_v34 = vrot.slane %v3045_v22, 6 }
0x4ccb   :  { %v3051_v35 = vadd.f32 %v3049_v34, %v7933_v3 }
0x4ccd   :  { %6413 = vtanh.f32 %v3051_v35  ;;  %v6005_v19 = vmul.f32 -1.442695, %v3051_v35 }
0x4ccf   :  { %6415 = vpow2.f32 %v6005_v19 }
0x4cd3   :  { %v6414_v36 = vpop.eup %6413 }
0x4cd4   :  { %3077 = vrot.lane.b32.xlu2 %v6414_v36, %s7018_s5 }
0x4cd5   :  { %v6416_v10 = vpop.eup %6415 }
0x4cd6   :  { %v3055_v42 = vadd.f32 1.0, %v6416_v10 }
0x4cd8   :  { %6417 = vrcp.f32 %v3055_v42  ;;  %v3067_v46 = vand.u32 2147483648, %v3055_v42  ;;  %vm3061_vm10 = vweird.f32 %v3055_v42  ;;  %v3065_v24 = vand.u32 2147483647, %v3055_v42 }
0x4cda   :  { %v3068_v49 = vor.u32 1.1754944e-38, %v3067_v46  ;;  %vm3066_vm12 = vcmp.eq.f32.partialorder %v3065_v24, 8.507059e+37 }
0x4cde   :  { %v6418_v13 = vpop.eup %6417 }
0x4cdf   :  { %v3057_v2 = vmul.f32 %v6418_v13, %v3055_v42  ;;  %vm3062_vm9 = vweird.f32 %v6418_v13 }
0x4ce0   :  { %vm3063_vm11 = vmor %vm3061_vm10, %vm3062_vm9 }
0x4ce1   :  { %v3058_v43 = vsub.f32 1.0, %v3057_v2 }
0x4ce3   :  { %v3059_v44 = vmul.f32 %v6418_v13, %v3058_v43 }
0x4ce5   :  { %v3060_v45 = vadd.f32 %v6418_v13, %v3059_v44 }
0x4ce7   :  { %v3064_v47 = vsel %vm3063_vm11, %v6418_v13, %v3060_v45 }
0x4ce8   :  { %v3069_v53 = vsel %vm3066_vm12, %v3068_v49, %v3064_v47 }
0x4ce9   :  { %v3075_v57 = vmul.f32 %v3073_v23, %v3069_v53 }
0x4d2e   :  { %v3078_v51 = vpop.permute.xlu2 %3077 }
0x4d2f   :  { %v3080_v41 = vmul.f32 %v3078_v51, %v3069_v53 }
0x4d31   :  { %3082 = vrot.lane.b32.xlu0 %v3080_v41, %s7018_s5 }
0x4da3   :  { %v3083_v58 = vpop.permute.xlu0 %3082 }
0x4da4   :  { %v3085_v28 = vadd.f32 %v3083_v58, %v3075_v57 }
0x4da6   :  { %6419 = vtanh.f32 %v3085_v28  ;;  %v3143_v1 = vrot.slane %v3085_v28, 6 }
0x4dac   :  { %v6420_v60 = vpop.eup %6419 }
0x4dad   :  { %3088 = vrot.lane.b32.xlu1 %v6420_v60, %s7018_s5 }
0x4e1f   :  { %v3089_v61 = vpop.permute.xlu1 %3088 }
0x4e20   :  { %v7939_v40 = vmul.f32 %v3089_v61, %v3069_v53 }
0x4e22   :  { %v3093_v4 = vrot.slane %v7939_v40, 2  ;;  %v4081_v36 = vsel %vm1479_vm14, %v7924_v55, %v7939_v40 }
0x4e24   :  { %3094 = vrot.lane.b32.xlu2 %v3093_v4, %s7019_s17 }
0x4e7e   :  { %v3095_v7 = vpop.permute.xlu2 %3094 }
0x4e7f   :  { %6006 = vmatmul.msk.f32.vlgmr.msrb.gmra.mxu2 %vm356_vm5, %v3095_v7 }
0x4e80   :  { %3393 = vmatpush.msrb.mxu2 %v7848_v37 }
0x4e82   :  { %3394 = vmatpush.msrb.mxu2 %v7854_v38 }
0x4e84   :  { %3395 = vmatpush.msrb.mxu2 %v7856_v27 }
0x4e86   :  { %3396 = vmatpush.msrb.mxu2 %v7860_v6 }
0x4f02   :  { %v3115_v11 = vpop.f32.mrf.mxu2 }
0x4f03   :  { %v3119_v18 = vrot.slane %v3115_v11, 4 }
0x4f05   :  { %v3121_v39 = vadd.f32 %v3119_v18, %v7916_v48 }
0x4f07   :  { %6421 = vtanh.f32 %v3121_v39  ;;  %v6007_v8 = vmul.f32 -1.442695, %v3121_v39 }
0x4f09   :  { %6423 = vpow2.f32 %v6007_v8 }
0x4f0d   :  { %v6422_v15 = vpop.eup %6421 }
0x4f0e   :  { %3147 = vrot.lane.b32.xlu0 %v6422_v15, %s7018_s5 }
0x4f0f   :  { %v6424_v62 = vpop.eup %6423 }
0x4f10   :  { %v3125_v29 = vadd.f32 1.0, %v6424_v62 }
0x4f12   :  { %6425 = vrcp.f32 %v3125_v29  ;;  %v3137_v21 = vand.u32 2147483648, %v3125_v29  ;;  %vm3131_vm0 = vweird.f32 %v3125_v29  ;;  %v3135_v31 = vand.u32 2147483647, %v3125_v29 }
0x4f14   :  { %v3138_v25 = vor.u32 1.1754944e-38, %v3137_v21  ;;  %vm3136_vm2 = vcmp.eq.f32.partialorder %v3135_v31, 8.507059e+37 }
0x4f18   :  { %v6426_v50 = vpop.eup %6425 }
0x4f19   :  { %v3127_v59 = vmul.f32 %v6426_v50, %v3125_v29  ;;  %vm3132_vm13 = vweird.f32 %v6426_v50 }
0x4f1a   :  { %vm3133_vm1 = vmor %vm3131_vm0, %vm3132_vm13 }
0x4f1b   :  { %v3128_v16 = vsub.f32 1.0, %v3127_v59  ;;  %v4119_v59 = vrot.slane %v7939_v40, 6 }
0x4f1d   :  { %v3129_v30 = vmul.f32 %v6426_v50, %v3128_v16 }
0x4f1f   :  { %v3130_v17 = vadd.f32 %v6426_v50, %v3129_v30 }
0x4f21   :  { %v3134_v48 = vsel %vm3133_vm1, %v6426_v50, %v3130_v17 }
0x4f22   :  { %v3139_v9 = vsel %vm3136_vm2, %v3138_v25, %v3134_v48 }
0x4f23   :  { %v3145_v33 = vmul.f32 %v3143_v1, %v3139_v9 }
0x4f80   :  { %v3148_v26 = vpop.permute.xlu0 %3147 }
0x4f81   :  { %v3150_v32 = vmul.f32 %v3148_v26, %v3139_v9 }
0x4f83   :  { %3152 = vrot.lane.b32.xlu1 %v3150_v32, %s7018_s5 }
0x4ff5   :  { %v3153_v63 = vpop.permute.xlu1 %3152 }
0x4ff6   :  { %v3155_v52 = vadd.f32 %v3153_v63, %v3145_v33 }
0x4ff8   :  { %6427 = vtanh.f32 %v3155_v52  ;;  %v3213_v4 = vrot.slane %v3155_v52, 6 }
0x4ffe   :  { %v6428_v22 = vpop.eup %6427 }
0x4fff   :  { %3158 = vrot.lane.b32.xlu2 %v6428_v22, %s7018_s5 }
0x5059   :  { %v3159_v34 = vpop.permute.xlu2 %3158 }
0x505a   :  { %v3161_v35 = vmul.f32 %v3159_v34, %v3139_v9 }
0x505c   :  { %v3163_v19 = vrot.slane %v3161_v35, 4  ;;  %v4082_v10 = vsel %vm1481_vm15, %v4081_v36, %v3161_v35  ;;  %v4117_v62 = vrot.slane %v3161_v35, 2 }
0x505e   :  { %3164 = vrot.lane.b32.xlu0 %v3163_v19, %s7019_s17 }
0x50d0   :  { %v3165_v42 = vpop.permute.xlu0 %3164 }
0x50d1   :  { %6008 = vmatmul.msk.f32.vlgmr.msrb.gmra.mxu3 %vm356_vm5, %v3165_v42 }
0x50d2   :  { %3463 = vmatpush.msrb.mxu3 %v7848_v37 }
0x50d4   :  { %3464 = vmatpush.msrb.mxu3 %v7854_v38 }
0x50d6   :  { %3465 = vmatpush.msrb.mxu3 %v7856_v27 }
0x50d8   :  { %3466 = vmatpush.msrb.mxu3 %v7860_v6 }
0x5154   :  { %v3185_v13 = vpop.f32.mrf.mxu3 }
0x5155   :  { %v3189_v2 = vrot.slane %v3185_v13, 2 }
0x5157   :  { %v3191_v43 = vadd.f32 %v3189_v2, %v7933_v3 }
0x5159   :  { %6429 = vtanh.f32 %v3191_v43  ;;  %v6009_v45 = vmul.f32 -1.442695, %v3191_v43 }
0x515b   :  { %6431 = vpow2.f32 %v6009_v45 }
0x515f   :  { %v6430_v44 = vpop.eup %6429 }
0x5160   :  { %3217 = vrot.lane.b32.xlu1 %v6430_v44, %s7018_s5 }
0x5161   :  { %v6432_v46 = vpop.eup %6431 }
0x5162   :  { %v3195_v24 = vadd.f32 1.0, %v6432_v46 }
0x5164   :  { %6433 = vrcp.f32 %v3195_v24  ;;  %v3207_v23 = vand.u32 2147483648, %v3195_v24  ;;  %vm3201_vm7 = vweird.f32 %v3195_v24  ;;  %v3205_v57 = vand.u32 2147483647, %v3195_v24 }
0x5166   :  { %v3208_v58 = vor.u32 1.1754944e-38, %v3207_v23  ;;  %vm3206_vm9 = vcmp.eq.f32.partialorder %v3205_v57, 8.507059e+37 }
0x516a   :  { %v6434_v47 = vpop.eup %6433 }
0x516b   :  { %v3197_v49 = vmul.f32 %v6434_v47, %v3195_v24  ;;  %vm3202_vm3 = vweird.f32 %v6434_v47 }
0x516c   :  { %vm3203_vm8 = vmor %vm3201_vm7, %vm3202_vm3 }
0x516d   :  { %v3198_v51 = vsub.f32 1.0, %v3197_v49 }
0x516f   :  { %v3199_v53 = vmul.f32 %v6434_v47, %v3198_v51 }
0x5171   :  { %v3200_v41 = vadd.f32 %v6434_v47, %v3199_v53 }
0x5173   :  { %v3204_v3 = vsel %vm3203_vm8, %v6434_v47, %v3200_v41 }
0x5174   :  { %v3209_v60 = vsel %vm3206_vm9, %v3208_v58, %v3204_v3 }
0x5175   :  { %v3215_v7 = vmul.f32 %v3213_v4, %v3209_v60 }
0x51d2   :  { %v3218_v28 = vpop.permute.xlu1 %3217 }
0x51d3   :  { %v3220_v61 = vmul.f32 %v3218_v28, %v3209_v60 }
0x51d5   :  { %3222 = vrot.lane.b32.xlu2 %v3220_v61, %s7018_s5 }
0x522f   :  { %v3223_v11 = vpop.permute.xlu2 %3222 }
0x5230   :  { %v3225_v18 = vadd.f32 %v3223_v11, %v3215_v7 }
0x5232   :  { %6435 = vtanh.f32 %v3225_v18  ;;  %v3284_v42 = vrot.slane %v3225_v18, 6 }
0x5238   :  { %v6436_v39 = vpop.eup %6435 }
0x5239   :  { %3228 = vrot.lane.b32.xlu0 %v6436_v39, %s7018_s5 }
0x52ab   :  { %v3229_v15 = vpop.permute.xlu0 %3228 }
0x52ac   :  { %v3231_v8 = vmul.f32 %v3229_v15, %v3209_v60 }
0x52ae   :  { %v3237_v29 = vrot.slane %v3231_v8, 6  ;;  %v7967_v50 = vsel %vm1483_vm4, %v4082_v10, %v3231_v8 }
0x52b0   :  { %3238 = vrot.lane.b32.xlu1 %v3237_v29, %s7019_s17  ;;  %v4132_v16 = vsel %vm1479_vm14, %v3237_v29, %v4117_v62 }
0x52b1   :  { %v7973_v30 = vsel %vm1481_vm15, %v4132_v16, %v4119_v59 }
0x5322   :  { %v3239_v17 = vpop.permute.xlu1 %3238 }
0x5323   :  { %6010 = vmatmul.msk.f32.vlgmr.msra.gmra.mxu2 %vm356_vm5, %v3239_v17 }
0x5324   :  { %3676 = vmatpush.msra.mxu2 %v7848_v37 }
0x5326   :  { %3677 = vmatpush.msra.mxu2 %v7854_v38 }
0x5328   :  { %3678 = vmatpush.msra.mxu2 %v7856_v27 }
0x532a   :  { %3679 = vmatpush.msra.mxu2 %v7860_v6 }
0x53a6   :  { %v3259_v21 = vpop.f32.mrf.mxu2 }
0x53a7   :  { %v3262_v40 = vadd.f32 %v3259_v21, %v7910_v20 }
0x53a9   :  { %6437 = vtanh.f32 %v3262_v40  ;;  %v6011_v48 = vmul.f32 -1.442695, %v3262_v40 }
0x53ab   :  { %6439 = vpow2.f32 %v6011_v48 }
0x53af   :  { %v6438_v31 = vpop.eup %6437 }
0x53b0   :  { %3288 = vrot.lane.b32.xlu2 %v6438_v31, %s7018_s5 }
0x53b1   :  { %v6440_v25 = vpop.eup %6439 }
0x53b2   :  { %v3266_v26 = vadd.f32 1.0, %v6440_v25 }
0x53b4   :  { %6441 = vrcp.f32 %v3266_v26  ;;  %v3278_v52 = vand.u32 2147483648, %v3266_v26  ;;  %vm3272_vm11 = vweird.f32 %v3266_v26  ;;  %v3276_v22 = vand.u32 2147483647, %v3266_v26 }
0x53b6   :  { %v3279_v35 = vor.u32 1.1754944e-38, %v3278_v52  ;;  %vm3277_vm13 = vcmp.eq.f32.partialorder %v3276_v22, 8.507059e+37 }
0x53ba   :  { %v6442_v9 = vpop.eup %6441 }
0x53bb   :  { %v3268_v32 = vmul.f32 %v6442_v9, %v3266_v26  ;;  %vm3273_vm10 = vweird.f32 %v6442_v9 }
0x53bc   :  { %vm3274_vm12 = vmor %vm3272_vm11, %vm3273_vm10 }
0x53bd   :  { %v3269_v1 = vsub.f32 1.0, %v3268_v32 }
0x53bf   :  { %v3270_v33 = vmul.f32 %v6442_v9, %v3269_v1 }
0x53c1   :  { %v3271_v63 = vadd.f32 %v6442_v9, %v3270_v33 }
0x53c3   :  { %v3275_v34 = vsel %vm3274_vm12, %v6442_v9, %v3271_v63 }
0x53c4   :  { %v3280_v19 = vsel %vm3277_vm13, %v3279_v35, %v3275_v34 }
0x53c5   :  { %v3286_v13 = vmul.f32 %v3284_v42, %v3280_v19 }
0x540a   :  { %v3289_v36 = vpop.permute.xlu2 %3288 }
0x540b   :  { %v3291_v10 = vmul.f32 %v3289_v36, %v3280_v19 }
0x540d   :  { %3293 = vrot.lane.b32.xlu0 %v3291_v10, %s7018_s5 }
0x547f   :  { %v3294_v2 = vpop.permute.xlu0 %3293 }
0x5480   :  { %v3296_v43 = vadd.f32 %v3294_v2, %v3286_v13 }
0x5482   :  { %6443 = vtanh.f32 %v3296_v43  ;;  %v3356_v62 = vrot.slane %v3296_v43, 6 }
0x5488   :  { %v6444_v44 = vpop.eup %6443 }
0x5489   :  { %3299 = vrot.lane.b32.xlu1 %v6444_v44, %s7018_s5 }
0x54fb   :  { %v3300_v45 = vpop.permute.xlu1 %3299 }
0x54fc   :  { %v7984_v46 = vmul.f32 %v3300_v45, %v3280_v19 }
0x54fe   :  { %3307 = vrot.lane.b32.xlu2 %v7984_v46, %s7019_s17 }
0x5558   :  { %v3308_v24 = vpop.permute.xlu2 %3307 }
0x5559   :  { %6012 = vmatmul.msk.f32.vlgmr.msra.gmra.mxu3 %vm356_vm5, %v3308_v24 }
0x555a   :  { %3746 = vmatpush.msra.mxu3 %v7848_v37 }
0x555c   :  { %3747 = vmatpush.msra.mxu3 %v7854_v38 }
0x555e   :  { %3748 = vmatpush.msra.mxu3 %v7856_v27 }
0x5560   :  { %3749 = vmatpush.msra.mxu3 %v7860_v6 }
0x55dc   :  { %v3328_v47 = vpop.f32.mrf.mxu3 }
0x55dd   :  { %v3332_v49 = vrot.slane %v3328_v47, 6 }
0x55df   :  { %v3334_v51 = vadd.f32 %v3332_v49, %v7908_v5 }
0x55e1   :  { %6445 = vtanh.f32 %v3334_v51  ;;  %v6013_v41 = vmul.f32 -1.442695, %v3334_v51 }
0x55e3   :  { %6447 = vpow2.f32 %v6013_v41 }
0x55e7   :  { %v6446_v53 = vpop.eup %6445 }
0x55e8   :  { %3360 = vrot.lane.b32.xlu0 %v6446_v53, %s7018_s5 }
0x55e9   :  { %v6448_v23 = vpop.eup %6447 }
0x55ea   :  { %v3338_v57 = vadd.f32 1.0, %v6448_v23 }
0x55ec   :  { %6449 = vrcp.f32 %v3338_v57  ;;  %v3350_v4 = vand.u32 2147483648, %v3338_v57  ;;  %vm3344_vm1 = vweird.f32 %v3338_v57  ;;  %v3348_v7 = vand.u32 2147483647, %v3338_v57 }
0x55ee   :  { %v3351_v18 = vor.u32 1.1754944e-38, %v3350_v4  ;;  %vm3349_vm3 = vcmp.eq.f32.partialorder %v3348_v7, 8.507059e+37 }
0x55f2   :  { %v6450_v3 = vpop.eup %6449 }
0x55f3   :  { %v3340_v58 = vmul.f32 %v6450_v3, %v3338_v57  ;;  %vm3345_vm0 = vweird.f32 %v6450_v3 }
0x55f4   :  { %vm3346_vm2 = vmor %vm3344_vm1, %vm3345_vm0 }
0x55f5   :  { %v3341_v28 = vsub.f32 1.0, %v3340_v58 }
0x55f7   :  { %v3342_v60 = vmul.f32 %v6450_v3, %v3341_v28 }
0x55f9   :  { %v3343_v61 = vadd.f32 %v6450_v3, %v3342_v60 }
0x55fb   :  { %v3347_v11 = vsel %vm3346_vm2, %v6450_v3, %v3343_v61 }
0x55fc   :  { %v3352_v15 = vsel %vm3349_vm3, %v3351_v18, %v3347_v11 }
0x55fd   :  { %v3358_v29 = vmul.f32 %v3356_v62, %v3352_v15 }
0x565a   :  { %v3361_v39 = vpop.permute.xlu0 %3360 }
0x565b   :  { %v3363_v8 = vmul.f32 %v3361_v39, %v3352_v15 }
0x565d   :  { %3365 = vrot.lane.b32.xlu1 %v3363_v8, %s7018_s5 }
0x56cf   :  { %v3366_v59 = vpop.permute.xlu1 %3365 }
0x56d0   :  { %v3368_v16 = vadd.f32 %v3366_v59, %v3358_v29 }
0x56d2   :  { %6451 = vtanh.f32 %v3368_v16  ;;  %v3426_v44 = vrot.slane %v3368_v16, 6 }
0x56d8   :  { %v6452_v17 = vpop.eup %6451 }
0x56d9   :  { %3371 = vrot.lane.b32.xlu2 %v6452_v17, %s7018_s5 }
0x5733   :  { %v3372_v21 = vpop.permute.xlu2 %3371 }
0x5734   :  { %v7997_v40 = vmul.f32 %v3372_v21, %v3352_v15 }
0x5736   :  { %v3376_v31 = vrot.slane %v7997_v40, 2  ;;  %v4084_v41 = vsel %vm1479_vm14, %v7984_v46, %v7997_v40 }
0x5738   :  { %3377 = vrot.lane.b32.xlu0 %v3376_v31, %s7019_s17 }
0x57aa   :  { %v3378_v48 = vpop.permute.xlu0 %3377 }
0x57ab   :  { %6014 = vmatmul.msk.f32.vlgmr.msrb.gmra.mxu2 %vm356_vm5, %v3378_v48 }
0x57ac   :  { %3959 = vmatpush.msrb.mxu2 %v7848_v37 }
0x57ae   :  { %3960 = vmatpush.msrb.mxu2 %v7854_v38 }
0x57b0   :  { %3961 = vmatpush.msrb.mxu2 %v7856_v27 }
0x57b2   :  { %3962 = vmatpush.msrb.mxu2 %v7860_v6 }
0x582e   :  { %v3398_v25 = vpop.f32.mrf.mxu2 }
0x582f   :  { %v3402_v26 = vrot.slane %v3398_v25, 4 }
0x5831   :  { %v3404_v9 = vadd.f32 %v3402_v26, %v7910_v20 }
0x5833   :  { %6453 = vtanh.f32 %v3404_v9  ;;  %v6015_v1 = vmul.f32 -1.442695, %v3404_v9 }
0x5835   :  { %6455 = vpow2.f32 %v6015_v1 }
0x5839   :  { %v6454_v32 = vpop.eup %6453 }
0x583a   :  { %3430 = vrot.lane.b32.xlu1 %v6454_v32, %s7018_s5 }
0x583b   :  { %v6456_v33 = vpop.eup %6455 }
0x583c   :  { %v3408_v63 = vadd.f32 1.0, %v6456_v33  ;;  %v4112_v33 = vrot.slane %v7997_v40, 6 }
0x583e   :  { %6457 = vrcp.f32 %v3408_v63  ;;  %v3420_v19 = vand.u32 2147483648, %v3408_v63  ;;  %vm3414_vm8 = vweird.f32 %v3408_v63  ;;  %v3418_v10 = vand.u32 2147483647, %v3408_v63 }
0x5840   :  { %v3421_v42 = vor.u32 1.1754944e-38, %v3420_v19  ;;  %vm3419_vm10 = vcmp.eq.f32.partialorder %v3418_v10, 8.507059e+37 }
0x5844   :  { %v6458_v52 = vpop.eup %6457 }
0x5845   :  { %v3410_v22 = vmul.f32 %v6458_v52, %v3408_v63  ;;  %vm3415_vm7 = vweird.f32 %v6458_v52 }
0x5846   :  { %vm3416_vm9 = vmor %vm3414_vm8, %vm3415_vm7 }
0x5847   :  { %v3411_v34 = vsub.f32 1.0, %v3410_v22 }
0x5849   :  { %v3412_v35 = vmul.f32 %v6458_v52, %v3411_v34 }
0x584b   :  { %v3413_v36 = vadd.f32 %v6458_v52, %v3412_v35 }
0x584d   :  { %v3417_v20 = vsel %vm3416_vm9, %v6458_v52, %v3413_v36 }
0x584e   :  { %v3422_v2 = vsel %vm3419_vm10, %v3421_v42, %v3417_v20 }
0x584f   :  { %v3428_v45 = vmul.f32 %v3426_v44, %v3422_v2 }
0x58ac   :  { %v3431_v13 = vpop.permute.xlu1 %3430 }
0x58ad   :  { %v3433_v43 = vmul.f32 %v3431_v13, %v3422_v2 }
0x58af   :  { %3435 = vrot.lane.b32.xlu2 %v3433_v43, %s7018_s5 }
0x5909   :  { %v3436_v24 = vpop.permute.xlu2 %3435 }
0x590a   :  { %v3438_v47 = vadd.f32 %v3436_v24, %v3428_v45 }
0x590c   :  { %6459 = vtanh.f32 %v3438_v47  ;;  %v3496_v16 = vrot.slane %v3438_v47, 6 }
0x5912   :  { %v6460_v49 = vpop.eup %6459 }
0x5913   :  { %3441 = vrot.lane.b32.xlu0 %v6460_v49, %s7018_s5 }
0x5985   :  { %v3442_v51 = vpop.permute.xlu0 %3441 }
0x5986   :  { %v3444_v53 = vmul.f32 %v3442_v51, %v3422_v2 }
0x5988   :  { %v3446_v23 = vrot.slane %v3444_v53, 4  ;;  %v4085_v57 = vsel %vm1481_vm15, %v4084_v41, %v3444_v53  ;;  %v4110_v9 = vrot.slane %v3444_v53, 2 }
0x598a   :  { %3447 = vrot.lane.b32.xlu1 %v3446_v23, %s7019_s17 }
0x59fc   :  { %v3448_v3 = vpop.permute.xlu1 %3447 }
0x59fd   :  { %6016 = vmatmul.msk.f32.vlgmr.msrb.gmra.mxu3 %vm356_vm5, %v3448_v3 }
0x59fe   :  { %4029 = vmatpush.msrb.mxu3 %v7848_v37 }
0x5a00   :  { %4030 = vmatpush.msrb.mxu3 %v7854_v38 }
0x5a02   :  { %4031 = vmatpush.msrb.mxu3 %v7856_v27 }
0x5a04   :  { %4032 = vmatpush.msrb.mxu3 %v7860_v6 }
0x5a80   :  { %v3468_v58 = vpop.f32.mrf.mxu3 }
0x5a81   :  { %v3472_v28 = vrot.slane %v3468_v58, 2 }
0x5a83   :  { %v3474_v60 = vadd.f32 %v3472_v28, %v7908_v5 }
0x5a85   :  { %6461 = vtanh.f32 %v3474_v60  ;;  %v6017_v4 = vmul.f32 -1.442695, %v3474_v60 }
0x5a87   :  { %6463 = vpow2.f32 %v6017_v4 }
0x5a8b   :  { %v6462_v61 = vpop.eup %6461 }
0x5a8c   :  { %3500 = vrot.lane.b32.xlu2 %v6462_v61, %s7018_s5 }
0x5a8d   :  { %v6464_v7 = vpop.eup %6463 }
0x5a8e   :  { %v3478_v11 = vadd.f32 1.0, %v6464_v7 }
0x5a90   :  { %6465 = vrcp.f32 %v3478_v11  ;;  %v3490_v6 = vand.u32 2147483648, %v3478_v11  ;;  %vm3484_vm12 = vweird.f32 %v3478_v11  ;;  %v3488_v15 = vand.u32 2147483647, %v3478_v11 }
0x5a92   :  { %v3491_v8 = vor.u32 1.1754944e-38, %v3490_v6  ;;  %vm3489_vm0 = vcmp.eq.f32.partialorder %v3488_v15, 8.507059e+37 }
0x5a96   :  { %v6466_v37 = vpop.eup %6465 }
0x5a97   :  { %v3480_v18 = vmul.f32 %v6466_v37, %v3478_v11  ;;  %vm3485_vm11 = vweird.f32 %v6466_v37 }
0x5a98   :  { %vm3486_vm13 = vmor %vm3484_vm12, %vm3485_vm11 }
0x5a99   :  { %v3481_v38 = vsub.f32 1.0, %v3480_v18 }
0x5a9b   :  { %v3482_v39 = vmul.f32 %v6466_v37, %v3481_v38 }
0x5a9d   :  { %v3483_v27 = vadd.f32 %v6466_v37, %v3482_v39 }
0x5a9f   :  { %v3487_v5 = vsel %vm3486_vm13, %v6466_v37, %v3483_v27 }
0x5aa0   :  { %v3492_v29 = vsel %vm3489_vm0, %v3491_v8, %v3487_v5 }
0x5aa1   :  { %v3498_v17 = vmul.f32 %v3496_v16, %v3492_v29 }
0x5ae6   :  { %v3501_v62 = vpop.permute.xlu2 %3500 }
0x5ae7   :  { %v3503_v59 = vmul.f32 %v3501_v62, %v3492_v29 }
0x5ae9   :  { %3505 = vrot.lane.b32.xlu0 %v3503_v59, %s7018_s5 }
0x5b5b   :  { %v3506_v21 = vpop.permute.xlu0 %3505 }
0x5b5c   :  { %v3508_v31 = vadd.f32 %v3506_v21, %v3498_v17 }
0x5b5e   :  { %6467 = vtanh.f32 %v3508_v31  ;;  %v3567_v41 = vrot.slane %v3508_v31, 6 }
0x5b64   :  { %v6468_v48 = vpop.eup %6467 }
0x5b65   :  { %3511 = vrot.lane.b32.xlu1 %v6468_v48, %s7018_s5 }
0x5bd7   :  { %v3512_v25 = vpop.permute.xlu1 %3511 }
0x5bd8   :  { %v3514_v26 = vmul.f32 %v3512_v25, %v3492_v29 }
0x5bda   :  { %v3520_v32 = vrot.slane %v3514_v26, 6  ;;  %v8025_v1 = vsel %vm1483_vm4, %v4085_v57, %v3514_v26 }
0x5bdc   :  { %v4129_v63 = vsel %vm1479_vm14, %v3520_v32, %v4110_v9  ;;  %3521 = vrot.lane.b32.xlu2 %v3520_v32, %s7019_s17 }
0x5bdd   :  { %v8031_v52 = vsel %vm1481_vm15, %v4129_v63, %v4112_v33 }
0x5c36   :  { %v3522_v22 = vpop.permute.xlu2 %3521 }
0x5c37   :  { %6018 = vmatmul.msk.f32.vlgmr.msrb.gmra.mxu0 %vm356_vm5, %v3522_v22 }
0x5cb4   :  { %v3542_v34 = vpop.f32.mrf.mxu0 }
0x5cb5   :  { %v3545_v35 = vadd.f32 %v3542_v34, %v7912_v56 }
0x5cb7   :  { %6469 = vtanh.f32 %v3545_v35  ;;  %v6019_v19 = vmul.f32 -1.442695, %v3545_v35 }
0x5cb9   :  { %6471 = vpow2.f32 %v6019_v19 }
0x5cbd   :  { %v6470_v36 = vpop.eup %6469 }
0x5cbe   :  { %3571 = vrot.lane.b32.xlu0 %v6470_v36, %s7018_s5 }
0x5cbf   :  { %v6472_v40 = vpop.eup %6471 }
0x5cc0   :  { %v3549_v10 = vadd.f32 1.0, %v6472_v40 }
0x5cc2   :  { %6473 = vrcp.f32 %v3549_v10  ;;  %v3561_v44 = vand.u32 2147483648, %v3549_v10  ;;  %vm3555_vm2 = vweird.f32 %v3549_v10  ;;  %v3559_v45 = vand.u32 2147483647, %v3549_v10 }
0x5cc4   :  { %v3562_v47 = vor.u32 1.1754944e-38, %v3561_v44  ;;  %vm3560_vm7 = vcmp.eq.f32.partialorder %v3559_v45, 8.507059e+37 }
0x5cc8   :  { %v6474_v20 = vpop.eup %6473 }
0x5cc9   :  { %v3551_v42 = vmul.f32 %v6474_v20, %v3549_v10  ;;  %vm3556_vm1 = vweird.f32 %v6474_v20 }
0x5cca   :  { %vm3557_vm3 = vmor %vm3555_vm2, %vm3556_vm1 }
0x5ccb   :  { %v3552_v13 = vsub.f32 1.0, %v3551_v42 }
0x5ccd   :  { %v3553_v2 = vmul.f32 %v6474_v20, %v3552_v13 }
0x5ccf   :  { %v3554_v43 = vadd.f32 %v6474_v20, %v3553_v2 }
0x5cd1   :  { %v3558_v24 = vsel %vm3557_vm3, %v6474_v20, %v3554_v43 }
0x5cd2   :  { %v3563_v51 = vsel %vm3560_vm7, %v3562_v47, %v3558_v24 }
0x5cd3   :  { %v3569_v23 = vmul.f32 %v3567_v41, %v3563_v51 }
0x5d30   :  { %v3572_v49 = vpop.permute.xlu0 %3571 }
0x5d31   :  { %v3574_v53 = vmul.f32 %v3572_v49, %v3563_v51 }
0x5d33   :  { %3576 = vrot.lane.b32.xlu1 %v3574_v53, %s7018_s5 }
0x5da5   :  { %v3577_v57 = vpop.permute.xlu1 %3576 }
0x5da6   :  { %v3579_v3 = vadd.f32 %v3577_v57, %v3569_v23 }
0x5da8   :  { %6475 = vtanh.f32 %v3579_v3  ;;  %v3639_v48 = vrot.slane %v3579_v3, 6 }
0x5dae   :  { %v6476_v58 = vpop.eup %6475 }
0x5daf   :  { %3582 = vrot.lane.b32.xlu2 %v6476_v58, %s7018_s5 }
0x5e09   :  { %v3583_v28 = vpop.permute.xlu2 %3582 }
0x5e0a   :  { %v8038_v60 = vmul.f32 %v3583_v28, %v3563_v51 }
0x5e0c   :  { %3590 = vrot.lane.b32.xlu0 %v8038_v60, %s7019_s17 }
0x5e7e   :  { %v3591_v61 = vpop.permute.xlu0 %3590 }
0x5e7f   :  { %6020 = vmatmul.msk.f32.vlgmr.msrb.gmra.mxu1 %vm356_vm5, %v3591_v61 }
0x5efc   :  { %v3611_v4 = vpop.f32.mrf.mxu1 }
0x5efd   :  { %v3615_v7 = vrot.slane %v3611_v4, 6 }
0x5eff   :  { %v3617_v11 = vadd.f32 %v3615_v7, %v7906_v54 }
0x5f01   :  { %6477 = vtanh.f32 %v3617_v11  ;;  %v6021_v18 = vmul.f32 -1.442695, %v3617_v11 }
0x5f03   :  { %6479 = vpow2.f32 %v6021_v18 }
0x5f07   :  { %v6478_v37 = vpop.eup %6477 }
0x5f08   :  { %3643 = vrot.lane.b32.xlu1 %v6478_v37, %s7018_s5 }
0x5f09   :  { %v6480_v38 = vpop.eup %6479 }
0x5f0a   :  { %v3621_v39 = vadd.f32 1.0, %v6480_v38 }
0x5f0c   :  { %6481 = vrcp.f32 %v3621_v39  ;;  %v3633_v62 = vand.u32 2147483648, %v3621_v39  ;;  %vm3627_vm9 = vweird.f32 %v3621_v39  ;;  %v3631_v29 = vand.u32 2147483647, %v3621_v39 }
0x5f0e   :  { %v3634_v16 = vor.u32 1.1754944e-38, %v3633_v62  ;;  %vm3632_vm11 = vcmp.eq.f32.partialorder %v3631_v29, 8.507059e+37 }
0x5f12   :  { %v6482_v27 = vpop.eup %6481 }
0x5f13   :  { %v3623_v6 = vmul.f32 %v6482_v27, %v3621_v39  ;;  %vm3628_vm8 = vweird.f32 %v6482_v27 }
0x5f14   :  { %vm3629_vm10 = vmor %vm3627_vm9, %vm3628_vm8 }
0x5f15   :  { %v3624_v15 = vsub.f32 1.0, %v3623_v6 }
0x5f17   :  { %v3625_v5 = vmul.f32 %v6482_v27, %v3624_v15 }
0x5f19   :  { %v3626_v8 = vadd.f32 %v6482_v27, %v3625_v5 }
0x5f1b   :  { %v3630_v59 = vsel %vm3629_vm10, %v6482_v27, %v3626_v8 }
0x5f1c   :  { %v3635_v21 = vsel %vm3632_vm11, %v3634_v16, %v3630_v59 }
0x5f1d   :  { %v3641_v25 = vmul.f32 %v3639_v48, %v3635_v21 }
0x5f7a   :  { %v3644_v17 = vpop.permute.xlu1 %3643 }
0x5f7b   :  { %v3646_v31 = vmul.f32 %v3644_v17, %v3635_v21 }
0x5f7d   :  { %3648 = vrot.lane.b32.xlu2 %v3646_v31, %s7018_s5 }
0x5fd7   :  { %v3649_v26 = vpop.permute.xlu2 %3648 }
0x5fd8   :  { %v3651_v9 = vadd.f32 %v3649_v26, %v3641_v25 }
0x5fda   :  { %6483 = vtanh.f32 %v3651_v9  ;;  %v3709_v23 = vrot.slane %v3651_v9, 6 }
0x5fe0   :  { %v6484_v32 = vpop.eup %6483 }
0x5fe1   :  { %3654 = vrot.lane.b32.xlu0 %v6484_v32, %s7018_s5 }
0x6053   :  { %v3655_v33 = vpop.permute.xlu0 %3654 }
0x6054   :  { %v8047_v63 = vmul.f32 %v3655_v33, %v3635_v21 }
0x6056   :  { %v3659_v22 = vrot.slane %v8047_v63, 2  ;;  %v4087_v7 = vsel %vm1479_vm14, %v8038_v60, %v8047_v63 }
0x6058   :  { %3660 = vrot.lane.b32.xlu1 %v3659_v22, %s7019_s17 }
0x60ca   :  { %v3661_v34 = vpop.permute.xlu1 %3660 }
0x60cb   :  { %6022 = vmatmul.msk.f32.vlgmr.msra.gmra.mxu2 %vm356_vm5, %v3661_v34 }
0x614e   :  { %v3681_v35 = vpop.f32.mrf.mxu2 }
0x614f   :  { %v3685_v36 = vrot.slane %v3681_v35, 4 }
0x6151   :  { %v3687_v19 = vadd.f32 %v3685_v36, %v7912_v56 }
0x6153   :  { %6485 = vtanh.f32 %v3687_v19  ;;  %v6023_v10 = vmul.f32 -1.442695, %v3687_v19 }
0x6155   :  { %6487 = vpow2.f32 %v6023_v10 }
0x6159   :  { %v6486_v40 = vpop.eup %6485 }
0x615a   :  { %3713 = vrot.lane.b32.xlu2 %v6486_v40, %s7018_s5 }
0x615b   :  { %v6488_v20 = vpop.eup %6487 }
0x615c   :  { %v3691_v42 = vadd.f32 1.0, %v6488_v20 }
0x615e   :  { %6489 = vrcp.f32 %v3691_v42  ;;  %v3703_v24 = vand.u32 2147483648, %v3691_v42  ;;  %vm3697_vm13 = vweird.f32 %v3691_v42  ;;  %v3701_v47 = vand.u32 2147483647, %v3691_v42 }
0x6160   :  { %v3704_v49 = vor.u32 1.1754944e-38, %v3703_v24  ;;  %vm3702_vm1 = vcmp.eq.f32.partialorder %v3701_v47, 8.507059e+37 }
0x6164   :  { %v6490_v13 = vpop.eup %6489 }
0x6165   :  { %v3693_v2 = vmul.f32 %v6490_v13, %v3691_v42  ;;  %vm3698_vm12 = vweird.f32 %v6490_v13  ;;  %v4105_v42 = vrot.slane %v8047_v63, 6 }
0x6166   :  { %vm3699_vm0 = vmor %vm3697_vm13, %vm3698_vm12 }
0x6167   :  { %v3694_v43 = vsub.f32 1.0, %v3693_v2 }
0x6169   :  { %v3695_v44 = vmul.f32 %v6490_v13, %v3694_v43 }
0x616b   :  { %v3696_v45 = vadd.f32 %v6490_v13, %v3695_v44 }
0x616d   :  { %v3700_v56 = vsel %vm3699_vm0, %v6490_v13, %v3696_v45 }
0x616e   :  { %v3705_v53 = vsel %vm3702_vm1, %v3704_v49, %v3700_v56 }
0x616f   :  { %v3711_v57 = vmul.f32 %v3709_v23, %v3705_v53 }
0x61b4   :  { %v3714_v51 = vpop.permute.xlu2 %3713 }
0x61b5   :  { %v3716_v41 = vmul.f32 %v3714_v51, %v3705_v53 }
0x61b7   :  { %3718 = vrot.lane.b32.xlu0 %v3716_v41, %s7018_s5 }
0x6229   :  { %v3719_v3 = vpop.permute.xlu0 %3718 }
0x622a   :  { %v3721_v58 = vadd.f32 %v3719_v3, %v3711_v57 }
0x622c   :  { %6491 = vtanh.f32 %v3721_v58  ;;  %v3779_v32 = vrot.slane %v3721_v58, 6 }
0x6232   :  { %v6492_v28 = vpop.eup %6491 }
0x6233   :  { %3724 = vrot.lane.b32.xlu1 %v6492_v28, %s7018_s5 }
0x62a5   :  { %v3725_v61 = vpop.permute.xlu1 %3724 }
0x62a6   :  { %v3727_v4 = vmul.f32 %v3725_v61, %v3705_v53 }
0x62a8   :  { %v3729_v11 = vrot.slane %v3727_v4, 4  ;;  %v4088_v37 = vsel %vm1481_vm15, %v4087_v7, %v3727_v4  ;;  %v4103_v40 = vrot.slane %v3727_v4, 2 }
0x62aa   :  { %3730 = vrot.lane.b32.xlu2 %v3729_v11, %s7019_s17 }
0x6304   :  { %v3731_v18 = vpop.permute.xlu2 %3730 }
0x6305   :  { %6024 = vmatmul.msk.f32.vlgmr.msra.gmra.mxu3 %vm356_vm5, %v3731_v18 }
0x6388   :  { %v3751_v38 = vpop.f32.mrf.mxu3 }
0x6389   :  { %v3755_v39 = vrot.slane %v3751_v38, 2 }
0x638b   :  { %v3757_v27 = vadd.f32 %v3755_v39, %v7906_v54 }
0x638d   :  { %6493 = vtanh.f32 %v3757_v27  ;;  %v6025_v15 = vmul.f32 -1.442695, %v3757_v27 }
0x638f   :  { %6495 = vpow2.f32 %v6025_v15 }
0x6393   :  { %v6494_v6 = vpop.eup %6493 }
0x6394   :  { %3783 = vrot.lane.b32.xlu0 %v6494_v6, %s7018_s5 }
0x6395   :  { %v6496_v5 = vpop.eup %6495 }
0x6396   :  { %v3761_v8 = vadd.f32 1.0, %v6496_v5 }
0x6398   :  { %6497 = vrcp.f32 %v3761_v8  ;;  %v3773_v21 = vand.u32 2147483648, %v3761_v8  ;;  %vm3767_vm3 = vweird.f32 %v3761_v8  ;;  %v3771_v31 = vand.u32 2147483647, %v3761_v8 }
0x639a   :  { %v3774_v48 = vor.u32 1.1754944e-38, %v3773_v21  ;;  %vm3772_vm8 = vcmp.eq.f32.partialorder %v3771_v31, 8.507059e+37 }
0x639e   :  { %v6498_v62 = vpop.eup %6497 }
0x639f   :  { %v3763_v29 = vmul.f32 %v6498_v62, %v3761_v8  ;;  %vm3768_vm2 = vweird.f32 %v6498_v62 }
0x63a0   :  { %vm3769_vm7 = vmor %vm3767_vm3, %vm3768_vm2 }
0x63a1   :  { %v3764_v59 = vsub.f32 1.0, %v3763_v29 }
0x63a3   :  { %v3765_v16 = vmul.f32 %v6498_v62, %v3764_v59 }
0x63a5   :  { %v3766_v17 = vadd.f32 %v6498_v62, %v3765_v16 }
0x63a7   :  { %v3770_v54 = vsel %vm3769_vm7, %v6498_v62, %v3766_v17 }
0x63a8   :  { %v3775_v26 = vsel %vm3772_vm8, %v3774_v48, %v3770_v54 }
0x63a9   :  { %v3781_v33 = vmul.f32 %v3779_v32, %v3775_v26 }
0x6406   :  { %v3784_v25 = vpop.permute.xlu0 %3783 }
0x6407   :  { %v3786_v9 = vmul.f32 %v3784_v25, %v3775_v26 }
0x6409   :  { %3788 = vrot.lane.b32.xlu1 %v3786_v9, %s7018_s5 }
0x647b   :  { %v3789_v22 = vpop.permute.xlu1 %3788 }
0x647c   :  { %v3791_v34 = vadd.f32 %v3789_v22, %v3781_v33 }
0x647e   :  { %6499 = vtanh.f32 %v3791_v34  ;;  %v3850_v11 = vrot.slane %v3791_v34, 6 }
0x6484   :  { %v6500_v35 = vpop.eup %6499 }
0x6485   :  { %3794 = vrot.lane.b32.xlu2 %v6500_v35, %s7018_s5 }
0x64df   :  { %v3795_v36 = vpop.permute.xlu2 %3794 }
0x64e0   :  { %v3797_v19 = vmul.f32 %v3795_v36, %v3775_v26 }
0x64e2   :  { %v3803_v10 = vrot.slane %v3797_v19, 6  ;;  %v8067_v20 = vsel %vm1483_vm4, %v4088_v37, %v3797_v19 }
0x64e4   :  { %v4126_v13 = vsel %vm1479_vm14, %v3803_v10, %v4103_v40  ;;  %3804 = vrot.lane.b32.xlu0 %v3803_v10, %s7019_s17 }
0x64e5   :  { %v8073_v2 = vsel %vm1481_vm15, %v4126_v13, %v4105_v42 }
0x6556   :  { %v3805_v43 = vpop.permute.xlu0 %3804 }
0x6557   :  { %6026 = vmatmul.msk.f32.vlgmr.msra.gmra.mxu0 %vm356_vm5, %v3805_v43 }
0x65d4   :  { %v3825_v44 = vpop.f32.mrf.mxu0 }
0x65d5   :  { %v3828_v45 = vadd.f32 %v3825_v44, %v7918_v14 }
0x65d7   :  { %6501 = vtanh.f32 %v3828_v45  ;;  %v6027_v47 = vmul.f32 -1.442695, %v3828_v45 }
0x65d9   :  { %6503 = vpow2.f32 %v6027_v47 }
0x65dd   :  { %v6502_v24 = vpop.eup %6501 }
0x65de   :  { %3854 = vrot.lane.b32.xlu1 %v6502_v24, %s7018_s5 }
0x65df   :  { %v6504_v63 = vpop.eup %6503 }
0x65e0   :  { %v3832_v56 = vadd.f32 1.0, %v6504_v63 }
0x65e2   :  { %6505 = vrcp.f32 %v3832_v56  ;;  %v3844_v57 = vand.u32 2147483648, %v3832_v56  ;;  %vm3838_vm10 = vweird.f32 %v3832_v56  ;;  %v3842_v3 = vand.u32 2147483647, %v3832_v56 }
0x65e4   :  { %v3845_v28 = vor.u32 1.1754944e-38, %v3844_v57  ;;  %vm3843_vm12 = vcmp.eq.f32.partialorder %v3842_v3, 8.507059e+37 }
0x65e8   :  { %v6506_v49 = vpop.eup %6505 }
0x65e9   :  { %v3834_v51 = vmul.f32 %v6506_v49, %v3832_v56  ;;  %vm3839_vm9 = vweird.f32 %v6506_v49 }
0x65ea   :  { %vm3840_vm11 = vmor %vm3838_vm10, %vm3839_vm9 }
0x65eb   :  { %v3835_v53 = vsub.f32 1.0, %v3834_v51 }
0x65ed   :  { %v3836_v41 = vmul.f32 %v6506_v49, %v3835_v53 }
0x65ef   :  { %v3837_v23 = vadd.f32 %v6506_v49, %v3836_v41 }
0x65f1   :  { %v3841_v58 = vsel %vm3840_vm11, %v6506_v49, %v3837_v23 }
0x65f2   :  { %v3846_v4 = vsel %vm3843_vm12, %v3845_v28, %v3841_v58 }
0x65f3   :  { %v3852_v37 = vmul.f32 %v3850_v11, %v3846_v4 }
0x6650   :  { %v3855_v61 = vpop.permute.xlu1 %3854 }
0x6651   :  { %v3857_v7 = vmul.f32 %v3855_v61, %v3846_v4 }
0x6653   :  { %3859 = vrot.lane.b32.xlu2 %v3857_v7, %s7018_s5 }
0x66ad   :  { %v3860_v18 = vpop.permute.xlu2 %3859 }
0x66ae   :  { %v3862_v38 = vadd.f32 %v3860_v18, %v3852_v37 }
0x66b0   :  { %6507 = vtanh.f32 %v3862_v38  ;;  %v3922_v36 = vrot.slane %v3862_v38, 6 }
0x66b6   :  { %v6508_v39 = vpop.eup %6507 }
0x66b7   :  { %3865 = vrot.lane.b32.xlu0 %v6508_v39, %s7018_s5 }
0x6729   :  { %v3866_v27 = vpop.permute.xlu0 %3865 }
0x672a   :  { %v8080_v6 = vmul.f32 %v3866_v27, %v3846_v4 }
0x672c   :  { %3873 = vrot.lane.b32.xlu1 %v8080_v6, %s7019_s17 }
0x679e   :  { %v3874_v15 = vpop.permute.xlu1 %3873 }
0x679f   :  { %6028 = vmatmul.msk.f32.vlgmr.msra.gmra.mxu1 %vm356_vm5, %v3874_v15 }
0x681c   :  { %v3894_v5 = vpop.f32.mrf.mxu1 }
0x681d   :  { %v3898_v8 = vrot.slane %v3894_v5, 6 }
0x681f   :  { %v3900_v62 = vadd.f32 %v3898_v8, %v7914_v0 }
0x6821   :  { %6509 = vtanh.f32 %v3900_v62  ;;  %v6029_v59 = vmul.f32 -1.442695, %v3900_v62 }
0x6823   :  { %6511 = vpow2.f32 %v6029_v59 }
0x6827   :  { %v6510_v29 = vpop.eup %6509 }
0x6828   :  { %3926 = vrot.lane.b32.xlu2 %v6510_v29, %s7018_s5 }
0x6829   :  { %v6512_v16 = vpop.eup %6511 }
0x682a   :  { %v3904_v17 = vadd.f32 1.0, %v6512_v16 }
0x682c   :  { %6513 = vrcp.f32 %v3904_v17  ;;  %v3916_v26 = vand.u32 2147483648, %v3904_v17  ;;  %vm3910_vm0 = vweird.f32 %v3904_v17  ;;  %v3914_v9 = vand.u32 2147483647, %v3904_v17 }
0x682e   :  { %v3917_v33 = vor.u32 1.1754944e-38, %v3916_v26  ;;  %vm3915_vm2 = vcmp.eq.f32.partialorder %v3914_v9, 8.507059e+37 }
0x6832   :  { %v6514_v21 = vpop.eup %6513 }
0x6833   :  { %v3906_v31 = vmul.f32 %v6514_v21, %v3904_v17  ;;  %vm3911_vm13 = vweird.f32 %v6514_v21 }
0x6834   :  { %vm3912_vm1 = vmor %vm3910_vm0, %vm3911_vm13 }
0x6835   :  { %v3907_v54 = vsub.f32 1.0, %v3906_v31 }
0x6837   :  { %v3908_v48 = vmul.f32 %v6514_v21, %v3907_v54 }
0x6839   :  { %v3909_v25 = vadd.f32 %v6514_v21, %v3908_v48  ;;  %v4107_v48 = vrot.slane %v8038_v60, 2 }
0x683b   :  { %v3913_v32 = vsel %vm3912_vm1, %v6514_v21, %v3909_v25  ;;  %v4128_v25 = vsel %vm1483_vm4, %v8073_v2, %v4107_v48  ;;  %v6137_v48 = vld [vmem:[%s8419_s29] ss:$0 sm:$0xff] }
0x683c   :  { %v3918_v34 = vsel %vm3915_vm2, %v3917_v33, %v3913_v32 }
0x683d   :  { %v3924_v19 = vmul.f32 %v3922_v36, %v3918_v34 }
0x6882   :  { %v3927_v22 = vpop.permute.xlu2 %3926 }
0x6883   :  { %v3929_v35 = vmul.f32 %v3927_v22, %v3918_v34 }
0x6885   :  { %3931 = vrot.lane.b32.xlu0 %v3929_v35, %s7018_s5 }
0x68f7   :  { %v3932_v40 = vpop.permute.xlu0 %3931 }
0x68f8   :  { %v3934_v10 = vadd.f32 %v3932_v40, %v3924_v19 }
0x68fa   :  { %6515 = vtanh.f32 %v3934_v10  ;;  %v3992_v18 = vrot.slane %v3934_v10, 6 }
0x6900   :  { %v6516_v42 = vpop.eup %6515 }
0x6901   :  { %3937 = vrot.lane.b32.xlu1 %v6516_v42, %s7018_s5 }
0x6973   :  { %v3938_v13 = vpop.permute.xlu1 %3937 }
0x6974   :  { %v8089_v43 = vmul.f32 %v3938_v13, %v3918_v34 }
0x6976   :  { %v3942_v44 = vrot.slane %v8089_v43, 2  ;;  %v4090_v62 = vsel %vm1479_vm14, %v8080_v6, %v8089_v43 }
0x6978   :  { %3943 = vrot.lane.b32.xlu2 %v3942_v44, %s7019_s17 }
0x69d2   :  { %v3944_v45 = vpop.permute.xlu2 %3943 }
0x69d3   :  { %6030 = vmatmul.msk.f32.vlgmr.msrb.gmra.mxu2 %vm356_vm5, %v3944_v45 }
0x6a56   :  { %v3964_v24 = vpop.f32.mrf.mxu2 }
0x6a57   :  { %v3968_v47 = vrot.slane %v3964_v24, 4 }
0x6a59   :  { %v3970_v63 = vadd.f32 %v3968_v47, %v7918_v14  ;;  %v4114_v47 = vrot.slane %v7984_v46, 2 }
0x6a5b   :  { %6517 = vtanh.f32 %v3970_v63  ;;  %v6031_v49 = vmul.f32 -1.442695, %v3970_v63  ;;  %v4131_v63 = vsel %vm1483_vm4, %v8031_v52, %v4114_v47 }
0x6a5d   :  { %6519 = vpow2.f32 %v6031_v49  ;;  %v4174_v49 = vld [vmem:[#allocation13 + $0x18] sm:$0xff] }
0x6a5e   :  { %4211 = vmatpush.msrb.mxu0 %v4174_v49 }
0x6a61   :  { %v6518_v56 = vpop.eup %6517 }
0x6a62   :  { %3996 = vrot.lane.b32.xlu0 %v6518_v56, %s7018_s5  ;;  %v4178_v56 = vld [vmem:[#allocation14 + $0x18] sm:$0xff] }
0x6a63   :  { %v6520_v51 = vpop.eup %6519  ;;  %4240 = vmatpush.msrb.mxu1 %v4178_v56 }
0x6a64   :  { %v3974_v53 = vadd.f32 1.0, %v6520_v51  ;;  %v4177_v51 = vld [vmem:[#allocation14 + $0x10] sm:$0xff] }
0x6a65   :  { %4241 = vmatpush.msrb.mxu1 %v4177_v51 }
0x6a66   :  { %6521 = vrcp.f32 %v3974_v53  ;;  %v3986_v28 = vand.u32 2147483648, %v3974_v53  ;;  %vm3980_vm7 = vweird.f32 %v3974_v53  ;;  %v3984_v61 = vand.u32 2147483647, %v3974_v53 }
0x6a68   :  { %v3987_v4 = vor.u32 1.1754944e-38, %v3986_v28  ;;  %vm3985_vm9 = vcmp.eq.f32.partialorder %v3984_v61, 8.507059e+37  ;;  %v4098_v28 = vrot.slane %v8089_v43, 6  ;;  %v4100_v61 = vrot.slane %v8080_v6, 2  ;;  %v8142_v6 = vld [vmem:[#allocation16 + $0x18] sm:$0xff] }
0x6a69   :  { %4273 = vmatpush.msra.mxu2 %v8142_v6  ;;  %4339 = vmatpush.msra.mxu3 %v8142_v6 }
0x6a6c   :  { %v6522_v41 = vpop.eup %6521 }
0x6a6d   :  { %v3976_v23 = vmul.f32 %v6522_v41, %v3974_v53  ;;  %vm3981_vm3 = vweird.f32 %v6522_v41  ;;  %v4173_v53 = vld [vmem:[#allocation13 + $0x10] sm:$0xff] }
0x6a6e   :  { %vm3982_vm8 = vmor %vm3980_vm7, %vm3981_vm3  ;;  %4212 = vmatpush.msrb.mxu0 %v4173_v53 }
0x6a6f   :  { %v3977_v57 = vsub.f32 1.0, %v3976_v23  ;;  %v4172_v23 = vld [vmem:[#allocation13 + $0x8] sm:$0xff] }
0x6a70   :  { %4213 = vmatpush.msrb.mxu0 %v4172_v23 }
0x6a71   :  { %v3978_v3 = vmul.f32 %v6522_v41, %v3977_v57  ;;  %v4175_v57 = vld [vmem:[#allocation14] sm:$0xff] }
0x6a73   :  { %v3979_v58 = vadd.f32 %v6522_v41, %v3978_v3 }
0x6a75   :  { %v3983_v14 = vsel %vm3982_vm8, %v6522_v41, %v3979_v58  ;;  %v4176_v41 = vld [vmem:[#allocation14 + $0x8] sm:$0xff] }
0x6a76   :  { %v3988_v11 = vsel %vm3985_vm9, %v3987_v4, %v3983_v14  ;;  %4242 = vmatpush.msrb.mxu1 %v4176_v41 }
0x6a77   :  { %v3994_v38 = vmul.f32 %v3992_v18, %v3988_v11 }
0x6a78   :  { %4243 = vmatpush.msrb.mxu1 %v4175_v57 }
0x6a7a   :  { %4905 = vmatpush.msra.mxu1 %v8142_v6 }
0x6ad4   :  { %v3997_v7 = vpop.permute.xlu0 %3996 }
0x6ad5   :  { %v3999_v37 = vmul.f32 %v3997_v7, %v3988_v11 }
0x6ad7   :  { %4001 = vrot.lane.b32.xlu1 %v3999_v37, %s7018_s5  ;;  %v4171_v37 = vld [vmem:[#allocation13] sm:$0xff] }
0x6ad8   :  { %4214 = vmatpush.msrb.mxu0 %v4171_v37 }
0x6ada   :  { %4836 = vmatpush.msra.mxu0 %v8142_v6 }
0x6b49   :  { %v4002_v39 = vpop.permute.xlu1 %4001 }
0x6b4a   :  { %v4004_v27 = vadd.f32 %v4002_v39, %v3994_v38 }
0x6b4c   :  { %6523 = vtanh.f32 %v4004_v27  ;;  %v4062_v42 = vrot.slane %v4004_v27, 6 }
0x6b52   :  { %v6524_v15 = vpop.eup %6523 }
0x6b53   :  { %4007 = vrot.lane.b32.xlu2 %v6524_v15, %s7018_s5 }
0x6bad   :  { %v4008_v5 = vpop.permute.xlu2 %4007 }
0x6bae   :  { %v8098_v8 = vmul.f32 %v4008_v5, %v3988_v11  ;;  %v4121_v11 = vrot.slane %v7924_v55, 2  ;;  %v8150_v55 = vld [vmem:[#allocation16 + $0x8] sm:$0xff] }
0x6bb0   :  { %v4012_v29 = vrot.slane %v8098_v8, 4  ;;  %v8106_v59 = vsel %vm1481_vm15, %v4090_v62, %v8098_v8  ;;  %v4096_v52 = vrot.slane %v8098_v8, 2  ;;  %v4134_v43 = vsel %vm1483_vm4, %v7973_v30, %v4121_v11  ;;  %v8154_v30 = vld [vmem:[#allocation16] sm:$0xff] }
0x6bb2   :  { %4013 = vrot.lane.b32.xlu0 %v4012_v29, %s7019_s17 }
0x6c24   :  { %v4014_v16 = vpop.permute.xlu0 %4013 }
0x6c25   :  { %6032 = vmatmul.msk.f32.vlgmr.msrb.gmra.mxu3 %vm356_vm5, %v4014_v16 }
0x6ca8   :  { %v4034_v17 = vpop.f32.mrf.mxu3 }
0x6ca9   :  { %v4038_v21 = vrot.slane %v4034_v17, 2 }
0x6cab   :  { %v4040_v31 = vadd.f32 %v4038_v21, %v7914_v0 }
0x6cad   :  { %6525 = vtanh.f32 %v4040_v31  ;;  %v6033_v26 = vmul.f32 -1.442695, %v4040_v31 }
0x6caf   :  { %6527 = vpow2.f32 %v6033_v26 }
0x6cb3   :  { %v6526_v54 = vpop.eup %6525 }
0x6cb4   :  { %4066 = vrot.lane.b32.xlu1 %v6526_v54, %s7018_s5 }
0x6cb5   :  { %v6528_v9 = vpop.eup %6527 }
0x6cb6   :  { %v4044_v32 = vadd.f32 1.0, %v6528_v9 }
0x6cb8   :  { %6529 = vrcp.f32 %v4044_v32  ;;  %v4056_v36 = vand.u32 2147483648, %v4044_v32  ;;  %vm4050_vm11 = vweird.f32 %v4044_v32 }
0x6cba   :  { %v4057_v19 = vor.u32 1.1754944e-38, %v4056_v36 }
0x6cbc   :  { %4139 = vrot.lane.b32.xlu1 %v7967_v50, %s7019_s17  ;;  %v4054_v50 = vand.u32 2147483647, %v4044_v32 }
0x6cbe   :  { %v6530_v0 = vpop.eup %6529  ;;  %vm4055_vm13 = vcmp.eq.f32.partialorder %v4054_v50, 8.507059e+37 }
0x6cbf   :  { %v4046_v33 = vmul.f32 %v6530_v0, %v4044_v32  ;;  %vm4051_vm10 = vweird.f32 %v6530_v0 }
0x6cc0   :  { %vm4052_vm12 = vmor %vm4050_vm11, %vm4051_vm10 }
0x6cc1   :  { %v4047_v22 = vsub.f32 1.0, %v4046_v33 }
0x6cc3   :  { %v4048_v34 = vmul.f32 %v6530_v0, %v4047_v22 }
0x6cc4   :  { %4157 = vrot.lane.b32.xlu1 %v4128_v25, %s7019_s17 }
0x6cc5   :  { %v4049_v35 = vadd.f32 %v6530_v0, %v4048_v34 }
0x6cc7   :  { %v4053_v60 = vsel %vm4052_vm12, %v6530_v0, %v4049_v35 }
0x6cc8   :  { %v4058_v40 = vsel %vm4055_vm13, %v4057_v19, %v4053_v60 }
0x6cc9   :  { %v4064_v13 = vmul.f32 %v4062_v42, %v4058_v40 }
0x6d26   :  { %v4067_v2 = vpop.permute.xlu1 %4066 }
0x6d27   :  { %v4069_v10 = vmul.f32 %v4067_v2, %v4058_v40 }
0x6d29   :  { %4071 = vrot.lane.b32.xlu2 %v4069_v10, %s7018_s5 }
0x6d2e   :  { %v4140_v18 = vpop.permute.xlu1 %4139 }
0x6d36   :  { %v4158_v27 = vpop.permute.xlu1 %4157 }
0x6d83   :  { %v4072_v44 = vpop.permute.xlu2 %4071 }
0x6d84   :  { %v4074_v45 = vadd.f32 %v4072_v44, %v4064_v13 }
0x6d86   :  { %6531 = vtanh.f32 %v4074_v45 }
0x6d8c   :  { %v6532_v24 = vpop.eup %6531 }
0x6d8d   :  { %4077 = vrot.lane.b32.xlu0 %v6532_v24, %s7018_s5 }
0x6d95   :  { %4141 = vrot.lane.b32.xlu0 %v8025_v1, %s7019_s17 }
0x6d9d   :  { %4159 = vrot.lane.b32.xlu0 %v4131_v63, %s7019_s17 }
0x6dff   :  { %v4078_v46 = vpop.permute.xlu0 %4077 }
0x6e00   :  { %v4080_v1 = vmul.f32 %v4078_v46, %v4058_v40 }
0x6e02   :  { %v4094_v3 = vrot.slane %v4080_v1, 6  ;;  %v4092_v58 = vsel %vm1483_vm4, %v8106_v59, %v4080_v1 }
0x6e03   :  { %4145 = vrot.lane.b32.xlu1 %v4092_v58, %s7019_s17 }
0x6e04   :  { %v4123_v14 = vsel %vm1479_vm14, %v4094_v3, %v4096_v52 }
0x6e05   :  { %v4124_v4 = vsel %vm1481_vm15, %v4123_v14, %v4098_v28 }
0x6e06   :  { %v4125_v7 = vsel %vm1483_vm4, %v4124_v4, %v4100_v61 }
0x6e07   :  { %4155 = vrot.lane.b32.xlu2 %v4125_v7, %s7019_s17  ;;  %v4142_v39 = vpop.permute.xlu0 %4141 }
0x6e08   :  { %v4168_v15 = vsel %vm1568_vm6, %v4142_v39, %v4158_v27 }
0x6e0f   :  { %4143 = vrot.lane.b32.xlu2 %v8067_v20, %s7019_s17  ;;  %v8148_v20 = vld [vmem:[#allocation16 + $0x10] sm:$0xff]  ;;  %v4160_v8 = vpop.permute.xlu0 %4159 }
0x6e10   :  { %4274 = vmatpush.msra.mxu2 %v8148_v20  ;;  %4340 = vmatpush.msra.mxu3 %v8148_v20 }
0x6e11   :  { %4837 = vmatpush.msra.mxu0 %v8148_v20  ;;  %4906 = vmatpush.msra.mxu1 %v8148_v20 }
0x6e12   :  { %4275 = vmatpush.msra.mxu2 %v8150_v55  ;;  %4341 = vmatpush.msra.mxu3 %v8150_v55 }
0x6e13   :  { %4838 = vmatpush.msra.mxu0 %v8150_v55  ;;  %4907 = vmatpush.msra.mxu1 %v8150_v55 }
0x6e14   :  { %4276 = vmatpush.msra.mxu2 %v8154_v30  ;;  %4342 = vmatpush.msra.mxu3 %v8154_v30 }
0x6e15   :  { %4277 = vmatmul.f32.vlgmr.msra.gmra.mxu2 %v7017_v12  ;;  %4839 = vmatpush.msra.mxu0 %v8154_v30 }
0x6e16   :  { %4479 = vmatpush.msrb.mxu3 %v8142_v6  ;;  %4409 = vmatpush.msrb.mxu2 %v8142_v6 }
0x6e17   :  { %4161 = vrot.lane.b32.xlu2 %v4134_v43, %s7019_s17  ;;  %4908 = vmatpush.msra.mxu1 %v8154_v30 }
0x6e18   :  { %4480 = vmatpush.msrb.mxu3 %v8148_v20  ;;  %4410 = vmatpush.msrb.mxu2 %v8148_v20 }
0x6e1a   :  { %4481 = vmatpush.msrb.mxu3 %v8150_v55  ;;  %4411 = vmatpush.msrb.mxu2 %v8150_v55 }
0x6e1c   :  { %4482 = vmatpush.msrb.mxu3 %v8154_v30  ;;  %4412 = vmatpush.msrb.mxu2 %v8154_v30 }
0x6e1e   :  { %4553 = vmatpush.msra.mxu2 %v8142_v6 }
0x6e20   :  { %4554 = vmatpush.msra.mxu2 %v8148_v20 }
0x6e22   :  { %4555 = vmatpush.msra.mxu2 %v8150_v55 }
0x6e24   :  { %4556 = vmatpush.msra.mxu2 %v8154_v30 }
0x6e61   :  { %v4156_v12 = vpop.permute.xlu2 %4155 }
0x6e62   :  { %v4167_v38 = vsel %vm1568_vm6, %v4140_v18, %v4156_v12 }
0x6e63   :  { %6034 = vmatmul.msk.f32.vlgmr.msrb.gmra.mxu0 %vm356_vm5, %v4167_v38  ;;  %6038 = vmatmul.msk.f32.vlgmr.msrb.gmra.mxu1 %vm356_vm5, %v4167_v38 }
0x6e64   :  { %5119 = vmatpush.msrb.mxu0 %v8142_v6  ;;  %5188 = vmatpush.msrb.mxu1 %v8142_v6 }
0x6e66   :  { %5120 = vmatpush.msrb.mxu0 %v8148_v20  ;;  %5189 = vmatpush.msrb.mxu1 %v8148_v20 }
0x6e68   :  { %5121 = vmatpush.msrb.mxu0 %v8150_v55  ;;  %5190 = vmatpush.msrb.mxu1 %v8150_v55 }
0x6e69   :  { %v4144_v5 = vpop.permute.xlu2 %4143 }
0x6e6a   :  { %5122 = vmatpush.msrb.mxu0 %v8154_v30  ;;  %5191 = vmatpush.msrb.mxu1 %v8154_v30  ;;  %v4169_v62 = vsel %vm1568_vm6, %v4144_v5, %v4160_v8 }
0x6e6b   :  { %6035 = vmatmul.msk.f32.gmra.mxu0 %vm356_vm5, %v4168_v15  ;;  %6039 = vmatmul.msk.f32.gmra.mxu1 %vm356_vm5, %v4168_v15 }
0x6e71   :  { %v4162_v59 = vpop.permute.xlu2 %4161 }
0x6e73   :  { %6036 = vmatmul.msk.f32.gmra.mxu0 %vm356_vm5, %v4169_v62  ;;  %6040 = vmatmul.msk.f32.gmra.mxu1 %vm356_vm5, %v4169_v62 }
0x6e75   :  { %v4146_v29 = vpop.permute.xlu1 %4145 }
0x6e76   :  { %v4170_v16 = vsel %vm1568_vm6, %v4146_v29, %v4162_v59 }
0x6e7b   :  { %6037 = vmatmul.msk.f32.gmra.mxu0 %vm356_vm5, %v4170_v16  ;;  %6041 = vmatmul.msk.f32.gmra.mxu1 %vm356_vm5, %v4170_v16 }
0x6e98   :  { %v4278_v45 = vpop.f32.mrf.mxu2 }
0x6ee0   :  { %v4216_v17 = vpop.f32.mrf.mxu0  ;;  %v4245_v21 = vpop.f32.mrf.mxu1 }
0x6ee1   :  { %v4217_v19 = vadd.f32 %v6137_v48, %v4216_v17  ;;  %v5098_v10 = vrot.slane %v4245_v21, 6  ;;  %v5168_v42 = vrot.slane %v4245_v21, 2 }
0x6ee8   :  { %v4219_v31 = vpop.f32.mrf.mxu0  ;;  %v4248_v54 = vpop.f32.mrf.mxu1 }
0x6ee9   :  { %v4220_v25 = vadd.f32 %v6137_v48, %v4219_v31  ;;  %v4815_v26 = vrot.slane %v4248_v54, 6  ;;  %v4885_v0 = vrot.slane %v4248_v54, 2 }
0x6ef0   :  { %v4222_v9 = vpop.f32.mrf.mxu0  ;;  %v4251_v32 = vpop.f32.mrf.mxu1 }
0x6ef1   :  { %v4223_v33 = vadd.f32 %v6137_v48, %v4222_v9  ;;  %v4532_v22 = vrot.slane %v4251_v32, 6  ;;  %v4602_v34 = vrot.slane %v4251_v32, 2 }
0x6ef3   :  { %v8200_v35 = vadd.f32 %v4885_v0, %v4223_v33  ;;  %v8202_v36 = vadd.f32 %v4602_v34, %v4220_v25  ;;  %v8204_v50 = vadd.f32 %v4532_v22, %v4220_v25  ;;  %v8206_v60 = vadd.f32 %v4815_v26, %v4223_v33 }
0x6ef8   :  { %v4225_v2 = vpop.f32.mrf.mxu0  ;;  %v4254_v40 = vpop.f32.mrf.mxu1 }
0x6ef9   :  { %v4226_v13 = vadd.f32 %v6137_v48, %v4225_v2  ;;  %v4258_v44 = vrot.slane %v4254_v40, 6  ;;  %v4319_v27 = vrot.slane %v4254_v40, 2 }
0x6efb   :  { %v8208_v24 = vadd.f32 %v5168_v42, %v4226_v13  ;;  %v8210_v47 = vadd.f32 %v4258_v44, %v4217_v19  ;;  %v8212_v63 = vadd.f32 %v5098_v10, %v4226_v13  ;;  %v8227_v5 = vadd.f32 %v4319_v27, %v4217_v19 }
0x6efd   :  { %v4281_v56 = vadd.f32 %v4278_v45, %v8210_v47 }
0x6eff   :  { %6533 = vtanh.f32 %v4281_v56  ;;  %v6042_v51 = vmul.f32 -1.442695, %v4281_v56 }
0x6f01   :  { %6535 = vpow2.f32 %v6042_v51 }
0x6f05   :  { %v6534_v49 = vpop.eup %6533 }
0x6f06   :  { %4304 = vrot.lane.b32.xlu0 %v6534_v49, %s7018_s5 }
0x6f07   :  { %v6536_v53 = vpop.eup %6535 }
0x6f08   :  { %v4285_v41 = vadd.f32 1.0, %v6536_v53 }
0x6f0a   :  { %6537 = vrcp.f32 %v4285_v41  ;;  %v4297_v3 = vand.u32 2147483648, %v4285_v41  ;;  %vm4291_vm4 = vweird.f32 %v4285_v41  ;;  %v4295_v58 = vand.u32 2147483647, %v4285_v41 }
0x6f0c   :  { %v4298_v61 = vor.u32 1.1754944e-38, %v4297_v3  ;;  %vm4296_vm1 = vcmp.eq.f32.partialorder %v4295_v58, 8.507059e+37 }
0x6f10   :  { %v6538_v23 = vpop.eup %6537 }
0x6f11   :  { %v4287_v57 = vmul.f32 %v6538_v23, %v4285_v41  ;;  %vm4292_vm15 = vweird.f32 %v6538_v23 }
0x6f12   :  { %vm4293_vm0 = vmor %vm4291_vm4, %vm4292_vm15 }
0x6f13   :  { %v4288_v46 = vsub.f32 1.0, %v4287_v57 }
0x6f15   :  { %v4289_v1 = vmul.f32 %v6538_v23, %v4288_v46 }
0x6f17   :  { %v4290_v52 = vadd.f32 %v6538_v23, %v4289_v1 }
0x6f19   :  { %v4294_v28 = vsel %vm4293_vm0, %v6538_v23, %v4290_v52 }
0x6f1a   :  { %v4299_v4 = vsel %vm4296_vm1, %v4298_v61, %v4294_v28 }
0x6f1b   :  { %v4302_v11 = vmul.f32 0.0, %v4299_v4 }
0x6f78   :  { %v4305_v14 = vpop.permute.xlu0 %4304 }
0x6f79   :  { %v4307_v7 = vmul.f32 %v4305_v14, %v4299_v4 }
0x6f7b   :  { %4309 = vrot.lane.b32.xlu1 %v4307_v7, %s7018_s5 }
0x6fed   :  { %v4310_v43 = vpop.permute.xlu1 %4309 }
0x6fee   :  { %v4312_v37 = vadd.f32 %v4310_v43, %v4302_v11 }
0x6ff0   :  { %6539 = vtanh.f32 %v4312_v37  ;;  %v4372_v19 = vrot.slane %v4312_v37, 6 }
0x6ff6   :  { %v6540_v18 = vpop.eup %6539 }
0x6ff7   :  { %4315 = vrot.lane.b32.xlu2 %v6540_v18, %s7018_s5 }
0x7051   :  { %v4316_v12 = vpop.permute.xlu2 %4315 }
0x7052   :  { %v8218_v38 = vmul.f32 %v4316_v12, %v4299_v4 }
0x7054   :  { %4323 = vrot.lane.b32.xlu0 %v8218_v38, %s7019_s17 }
0x70c6   :  { %v4324_v39 = vpop.permute.xlu0 %4323 }
0x70c7   :  { %6043 = vmatmul.msk.f32.vlgmr.msra.gmra.mxu3 %vm356_vm5, %v4324_v39 }
0x70c8   :  { %4622 = vmatpush.msra.mxu3 %v8142_v6 }
0x70ca   :  { %4623 = vmatpush.msra.mxu3 %v8148_v20 }
0x70cc   :  { %4624 = vmatpush.msra.mxu3 %v8150_v55 }
0x70ce   :  { %4625 = vmatpush.msra.mxu3 %v8154_v30 }
0x714a   :  { %v4344_v15 = vpop.f32.mrf.mxu3 }
0x714b   :  { %v4348_v8 = vrot.slane %v4344_v15, 6 }
0x714d   :  { %v4350_v62 = vadd.f32 %v4348_v8, %v8227_v5 }
0x714f   :  { %6541 = vtanh.f32 %v4350_v62  ;;  %v6044_v59 = vmul.f32 -1.442695, %v4350_v62 }
0x7151   :  { %6543 = vpow2.f32 %v6044_v59 }
0x7155   :  { %v6542_v29 = vpop.eup %6541 }
0x7156   :  { %4376 = vrot.lane.b32.xlu1 %v6542_v29, %s7018_s5 }
0x7157   :  { %v6544_v16 = vpop.eup %6543 }
0x7158   :  { %v4354_v17 = vadd.f32 1.0, %v6544_v16 }
0x715a   :  { %6545 = vrcp.f32 %v4354_v17  ;;  %v4366_v26 = vand.u32 2147483648, %v4354_v17  ;;  %vm4360_vm3 = vweird.f32 %v4354_v17  ;;  %v4364_v9 = vand.u32 2147483647, %v4354_v17 }
0x715c   :  { %v4367_v0 = vor.u32 1.1754944e-38, %v4366_v26  ;;  %vm4365_vm8 = vcmp.eq.f32.partialorder %v4364_v9, 8.507059e+37 }
0x7160   :  { %v6546_v21 = vpop.eup %6545 }
0x7161   :  { %v4356_v31 = vmul.f32 %v6546_v21, %v4354_v17  ;;  %vm4361_vm2 = vweird.f32 %v6546_v21 }
0x7162   :  { %vm4362_vm7 = vmor %vm4360_vm3, %vm4361_vm2 }
0x7163   :  { %v4357_v54 = vsub.f32 1.0, %v4356_v31 }
0x7165   :  { %v4358_v48 = vmul.f32 %v6546_v21, %v4357_v54 }
0x7167   :  { %v4359_v25 = vadd.f32 %v6546_v21, %v4358_v48 }
0x7169   :  { %v4363_v32 = vsel %vm4362_vm7, %v6546_v21, %v4359_v25 }
0x716a   :  { %v4368_v22 = vsel %vm4365_vm8, %v4367_v0, %v4363_v32 }
0x716b   :  { %v4374_v2 = vmul.f32 %v4372_v19, %v4368_v22 }
0x71c8   :  { %v4377_v33 = vpop.permute.xlu1 %4376 }
0x71c9   :  { %v4379_v34 = vmul.f32 %v4377_v33, %v4368_v22 }
0x71cb   :  { %4381 = vrot.lane.b32.xlu2 %v4379_v34, %s7018_s5 }
0x7225   :  { %v4382_v40 = vpop.permute.xlu2 %4381 }
0x7226   :  { %v4384_v10 = vadd.f32 %v4382_v40, %v4374_v2 }
0x7228   :  { %6547 = vtanh.f32 %v4384_v10  ;;  %v4442_v37 = vrot.slane %v4384_v10, 6 }
0x722e   :  { %v6548_v42 = vpop.eup %6547 }
0x722f   :  { %4387 = vrot.lane.b32.xlu0 %v6548_v42, %s7018_s5 }
0x72a1   :  { %v4388_v13 = vpop.permute.xlu0 %4387 }
0x72a2   :  { %v4390_v44 = vmul.f32 %v4388_v13, %v4368_v22 }
0x72a4   :  { %v4392_v45 = vrot.slane %v4390_v44, 2 }
0x72a6   :  { %4393 = vrot.lane.b32.xlu1 %v4392_v45, %s7019_s17 }
0x7318   :  { %v4394_v56 = vpop.permute.xlu1 %4393 }
0x7319   :  { %6045 = vmatmul.msk.f32.vlgmr.msrb.gmra.mxu2 %vm356_vm5, %v4394_v56 }
0x731a   :  { %4692 = vmatpush.msrb.mxu2 %v8142_v6 }
0x731c   :  { %4693 = vmatpush.msrb.mxu2 %v8148_v20 }
0x731e   :  { %4694 = vmatpush.msrb.mxu2 %v8150_v55 }
0x7320   :  { %4695 = vmatpush.msrb.mxu2 %v8154_v30 }
0x739c   :  { %v4414_v49 = vpop.f32.mrf.mxu2 }
0x739d   :  { %v4418_v51 = vrot.slane %v4414_v49, 4 }
0x739f   :  { %v4420_v53 = vadd.f32 %v4418_v51, %v8210_v47 }
0x73a1   :  { %6549 = vtanh.f32 %v4420_v53  ;;  %v6046_v23 = vmul.f32 -1.442695, %v4420_v53 }
0x73a3   :  { %6551 = vpow2.f32 %v6046_v23 }
0x73a7   :  { %v6550_v41 = vpop.eup %6549 }
0x73a8   :  { %4446 = vrot.lane.b32.xlu2 %v6550_v41, %s7018_s5 }
0x73a9   :  { %v6552_v57 = vpop.eup %6551 }
0x73aa   :  { %v4424_v46 = vadd.f32 1.0, %v6552_v57 }
0x73ac   :  { %6553 = vrcp.f32 %v4424_v46  ;;  %v4436_v61 = vand.u32 2147483648, %v4424_v46  ;;  %vm4430_vm10 = vweird.f32 %v4424_v46  ;;  %v4434_v14 = vand.u32 2147483647, %v4424_v46 }
0x73ae   :  { %v4437_v4 = vor.u32 1.1754944e-38, %v4436_v61  ;;  %vm4435_vm12 = vcmp.eq.f32.partialorder %v4434_v14, 8.507059e+37 }
0x73b2   :  { %v6554_v1 = vpop.eup %6553 }
0x73b3   :  { %v4426_v52 = vmul.f32 %v6554_v1, %v4424_v46  ;;  %vm4431_vm9 = vweird.f32 %v6554_v1 }
0x73b4   :  { %vm4432_vm11 = vmor %vm4430_vm10, %vm4431_vm9 }
0x73b5   :  { %v4427_v3 = vsub.f32 1.0, %v4426_v52 }
0x73b7   :  { %v4428_v58 = vmul.f32 %v6554_v1, %v4427_v3 }
0x73b9   :  { %v4429_v28 = vadd.f32 %v6554_v1, %v4428_v58 }
0x73bb   :  { %v4433_v47 = vsel %vm4432_vm11, %v6554_v1, %v4429_v28 }
0x73bc   :  { %v4438_v11 = vsel %vm4435_vm12, %v4437_v4, %v4433_v47 }
0x73bd   :  { %v4444_v18 = vmul.f32 %v4442_v37, %v4438_v11 }
0x7402   :  { %v4447_v7 = vpop.permute.xlu2 %4446 }
0x7403   :  { %v4449_v43 = vmul.f32 %v4447_v7, %v4438_v11 }
0x7405   :  { %4451 = vrot.lane.b32.xlu0 %v4449_v43, %s7018_s5 }
0x7477   :  { %v4452_v12 = vpop.permute.xlu0 %4451 }
0x7478   :  { %v4454_v39 = vadd.f32 %v4452_v12, %v4444_v18 }
0x747a   :  { %6555 = vtanh.f32 %v4454_v39  ;;  %v4512_v10 = vrot.slane %v4454_v39, 6 }
0x7480   :  { %v6556_v27 = vpop.eup %6555 }
0x7481   :  { %4457 = vrot.lane.b32.xlu1 %v6556_v27, %s7018_s5 }
0x74f3   :  { %v4458_v15 = vpop.permute.xlu1 %4457 }
0x74f4   :  { %v4460_v8 = vmul.f32 %v4458_v15, %v4438_v11 }
0x74f6   :  { %v4462_v62 = vrot.slane %v4460_v8, 4 }
0x74f8   :  { %4463 = vrot.lane.b32.xlu2 %v4462_v62, %s7019_s17 }
0x7552   :  { %v4464_v29 = vpop.permute.xlu2 %4463 }
0x7553   :  { %6047 = vmatmul.msk.f32.vlgmr.msrb.gmra.mxu3 %vm356_vm5, %v4464_v29 }
0x7554   :  { %4762 = vmatpush.msrb.mxu3 %v8142_v6 }
0x7556   :  { %4763 = vmatpush.msrb.mxu3 %v8148_v20 }
0x7558   :  { %4764 = vmatpush.msrb.mxu3 %v8150_v55 }
0x755a   :  { %4765 = vmatpush.msrb.mxu3 %v8154_v30 }
0x75d6   :  { %v4484_v59 = vpop.f32.mrf.mxu3 }
0x75d7   :  { %v4488_v16 = vrot.slane %v4484_v59, 2 }
0x75d9   :  { %v4490_v17 = vadd.f32 %v4488_v16, %v8227_v5 }
0x75db   :  { %6557 = vtanh.f32 %v4490_v17  ;;  %v6048_v31 = vmul.f32 -1.442695, %v4490_v17 }
0x75dd   :  { %6559 = vpow2.f32 %v6048_v31 }
0x75e1   :  { %v6558_v21 = vpop.eup %6557 }
0x75e2   :  { %4516 = vrot.lane.b32.xlu0 %v6558_v21, %s7018_s5 }
0x75e3   :  { %v6560_v54 = vpop.eup %6559 }
0x75e4   :  { %v4494_v48 = vadd.f32 1.0, %v6560_v54 }
0x75e6   :  { %6561 = vrcp.f32 %v4494_v48  ;;  %v4506_v33 = vand.u32 2147483648, %v4494_v48  ;;  %vm4500_vm15 = vweird.f32 %v4494_v48  ;;  %v4504_v22 = vand.u32 2147483647, %v4494_v48 }
0x75e8   :  { %v4507_v34 = vor.u32 1.1754944e-38, %v4506_v33  ;;  %vm4505_vm0 = vcmp.eq.f32.partialorder %v4504_v22, 8.507059e+37 }
0x75ec   :  { %v6562_v25 = vpop.eup %6561 }
0x75ed   :  { %v4496_v26 = vmul.f32 %v6562_v25, %v4494_v48  ;;  %vm4501_vm13 = vweird.f32 %v6562_v25 }
0x75ee   :  { %vm4502_vm4 = vmor %vm4500_vm15, %vm4501_vm13 }
0x75ef   :  { %v4497_v9 = vsub.f32 1.0, %v4496_v26 }
0x75f1   :  { %v4498_v32 = vmul.f32 %v6562_v25, %v4497_v9 }
0x75f3   :  { %v4499_v0 = vadd.f32 %v6562_v25, %v4498_v32 }
0x75f5   :  { %v4503_v5 = vsel %vm4502_vm4, %v6562_v25, %v4499_v0 }
0x75f6   :  { %v4508_v2 = vsel %vm4505_vm0, %v4507_v34, %v4503_v5 }
0x75f7   :  { %v4514_v42 = vmul.f32 %v4512_v10, %v4508_v2 }
0x7654   :  { %v4517_v19 = vpop.permute.xlu0 %4516 }
0x7655   :  { %v4519_v40 = vmul.f32 %v4517_v19, %v4508_v2 }
0x7657   :  { %4521 = vrot.lane.b32.xlu1 %v4519_v40, %s7018_s5 }
0x76c9   :  { %v4522_v13 = vpop.permute.xlu1 %4521 }
0x76ca   :  { %v4524_v44 = vadd.f32 %v4522_v13, %v4514_v42 }
0x76cc   :  { %6563 = vtanh.f32 %v4524_v44  ;;  %v4583_v12 = vrot.slane %v4524_v44, 6 }
0x76d2   :  { %v6564_v45 = vpop.eup %6563 }
0x76d3   :  { %4527 = vrot.lane.b32.xlu2 %v6564_v45, %s7018_s5 }
0x772d   :  { %v4528_v56 = vpop.permute.xlu2 %4527 }
0x772e   :  { %v4530_v49 = vmul.f32 %v4528_v56, %v4508_v2 }
0x7730   :  { %v4536_v51 = vrot.slane %v4530_v49, 6 }
0x7732   :  { %4537 = vrot.lane.b32.xlu0 %v4536_v51, %s7019_s17 }
0x77a4   :  { %v4538_v53 = vpop.permute.xlu0 %4537 }
0x77a5   :  { %6049 = vmatmul.msk.f32.vlgmr.msra.gmra.mxu2 %vm356_vm5, %v4538_v53 }
0x77a6   :  { %4975 = vmatpush.msra.mxu2 %v8142_v6 }
0x77a8   :  { %4976 = vmatpush.msra.mxu2 %v8148_v20 }
0x77aa   :  { %4977 = vmatpush.msra.mxu2 %v8150_v55 }
0x77ac   :  { %4978 = vmatpush.msra.mxu2 %v8154_v30 }
0x7828   :  { %v4558_v41 = vpop.f32.mrf.mxu2 }
0x7829   :  { %v4561_v23 = vadd.f32 %v4558_v41, %v8204_v50 }
0x782b   :  { %6565 = vtanh.f32 %v4561_v23  ;;  %v6050_v46 = vmul.f32 -1.442695, %v4561_v23 }
0x782d   :  { %6567 = vpow2.f32 %v6050_v46 }
0x7831   :  { %v6566_v57 = vpop.eup %6565 }
0x7832   :  { %4587 = vrot.lane.b32.xlu1 %v6566_v57, %s7018_s5 }
0x7833   :  { %v6568_v1 = vpop.eup %6567 }
0x7834   :  { %v4565_v52 = vadd.f32 1.0, %v6568_v1 }
0x7836   :  { %6569 = vrcp.f32 %v4565_v52  ;;  %v4577_v47 = vand.u32 2147483648, %v4565_v52  ;;  %vm4571_vm2 = vweird.f32 %v4565_v52  ;;  %v4575_v4 = vand.u32 2147483647, %v4565_v52 }
0x7838   :  { %v4578_v11 = vor.u32 1.1754944e-38, %v4577_v47  ;;  %vm4576_vm7 = vcmp.eq.f32.partialorder %v4575_v4, 8.507059e+37 }
0x783c   :  { %v6570_v3 = vpop.eup %6569 }
0x783d   :  { %v4567_v58 = vmul.f32 %v6570_v3, %v4565_v52  ;;  %vm4572_vm1 = vweird.f32 %v6570_v3 }
0x783e   :  { %vm4573_vm3 = vmor %vm4571_vm2, %vm4572_vm1 }
0x783f   :  { %v4568_v28 = vsub.f32 1.0, %v4567_v58 }
0x7841   :  { %v4569_v61 = vmul.f32 %v6570_v3, %v4568_v28 }
0x7843   :  { %v4570_v14 = vadd.f32 %v6570_v3, %v4569_v61 }
0x7845   :  { %v4574_v7 = vsel %vm4573_vm3, %v6570_v3, %v4570_v14 }
0x7846   :  { %v4579_v37 = vsel %vm4576_vm7, %v4578_v11, %v4574_v7 }
0x7847   :  { %v4585_v39 = vmul.f32 %v4583_v12, %v4579_v37 }
0x78a4   :  { %v4588_v43 = vpop.permute.xlu1 %4587 }
0x78a5   :  { %v4590_v18 = vmul.f32 %v4588_v43, %v4579_v37 }
0x78a7   :  { %4592 = vrot.lane.b32.xlu2 %v4590_v18, %s7018_s5 }
0x7901   :  { %v4593_v27 = vpop.permute.xlu2 %4592 }
0x7902   :  { %v4595_v15 = vadd.f32 %v4593_v27, %v4585_v39 }
0x7904   :  { %6571 = vtanh.f32 %v4595_v15  ;;  %v4655_v42 = vrot.slane %v4595_v15, 6 }
0x790a   :  { %v6572_v8 = vpop.eup %6571 }
0x790b   :  { %4598 = vrot.lane.b32.xlu0 %v6572_v8, %s7018_s5 }
0x797d   :  { %v4599_v62 = vpop.permute.xlu0 %4598 }
0x797e   :  { %v4601_v29 = vmul.f32 %v4599_v62, %v4579_v37 }
0x7980   :  { %4606 = vrot.lane.b32.xlu1 %v4601_v29, %s7019_s17 }
0x79f2   :  { %v4607_v59 = vpop.permute.xlu1 %4606 }
0x79f3   :  { %6051 = vmatmul.msk.f32.vlgmr.msra.gmra.mxu3 %vm356_vm5, %v4607_v59 }
0x79f4   :  { %5045 = vmatpush.msra.mxu3 %v8142_v6 }
0x79f6   :  { %5046 = vmatpush.msra.mxu3 %v8148_v20 }
0x79f8   :  { %5047 = vmatpush.msra.mxu3 %v8150_v55 }
0x79fa   :  { %5048 = vmatpush.msra.mxu3 %v8154_v30 }
0x7a76   :  { %v4627_v16 = vpop.f32.mrf.mxu3 }
0x7a77   :  { %v4631_v17 = vrot.slane %v4627_v16, 6 }
0x7a79   :  { %v4633_v21 = vadd.f32 %v4631_v17, %v8202_v36 }
0x7a7b   :  { %6573 = vtanh.f32 %v4633_v21  ;;  %v6052_v54 = vmul.f32 -1.442695, %v4633_v21 }
0x7a7d   :  { %6575 = vpow2.f32 %v6052_v54 }
0x7a81   :  { %v6574_v31 = vpop.eup %6573 }
0x7a82   :  { %4659 = vrot.lane.b32.xlu2 %v6574_v31, %s7018_s5 }
0x7a83   :  { %v6576_v48 = vpop.eup %6575 }
0x7a84   :  { %v4637_v25 = vadd.f32 1.0, %v6576_v48 }
0x7a86   :  { %6577 = vrcp.f32 %v4637_v25  ;;  %v4649_v22 = vand.u32 2147483648, %v4637_v25  ;;  %vm4643_vm9 = vweird.f32 %v4637_v25  ;;  %v4647_v5 = vand.u32 2147483647, %v4637_v25 }
0x7a88   :  { %v4650_v19 = vor.u32 1.1754944e-38, %v4649_v22  ;;  %vm4648_vm11 = vcmp.eq.f32.partialorder %v4647_v5, 8.507059e+37 }
0x7a8c   :  { %v6578_v26 = vpop.eup %6577 }
0x7a8d   :  { %v4639_v9 = vmul.f32 %v6578_v26, %v4637_v25  ;;  %vm4644_vm8 = vweird.f32 %v6578_v26 }
0x7a8e   :  { %vm4645_vm10 = vmor %vm4643_vm9, %vm4644_vm8 }
0x7a8f   :  { %v4640_v32 = vsub.f32 1.0, %v4639_v9 }
0x7a91   :  { %v4641_v0 = vmul.f32 %v6578_v26, %v4640_v32 }
0x7a93   :  { %v4642_v33 = vadd.f32 %v6578_v26, %v4641_v0 }
0x7a95   :  { %v4646_v34 = vsel %vm4645_vm10, %v6578_v26, %v4642_v33 }
0x7a96   :  { %v4651_v40 = vsel %vm4648_vm11, %v4650_v19, %v4646_v34 }
0x7a97   :  { %v4657_v13 = vmul.f32 %v4655_v42, %v4651_v40 }
0x7adc   :  { %v4660_v2 = vpop.permute.xlu2 %4659 }
0x7add   :  { %v4662_v10 = vmul.f32 %v4660_v2, %v4651_v40 }
0x7adf   :  { %4664 = vrot.lane.b32.xlu0 %v4662_v10, %s7018_s5 }
0x7b51   :  { %v4665_v44 = vpop.permute.xlu0 %4664 }
0x7b52   :  { %v4667_v45 = vadd.f32 %v4665_v44, %v4657_v13 }
0x7b54   :  { %6579 = vtanh.f32 %v4667_v45  ;;  %v4725_v39 = vrot.slane %v4667_v45, 6 }
0x7b5a   :  { %v6580_v56 = vpop.eup %6579 }
0x7b5b   :  { %4670 = vrot.lane.b32.xlu1 %v6580_v56, %s7018_s5 }
0x7bcd   :  { %v4671_v49 = vpop.permute.xlu1 %4670 }
0x7bce   :  { %v4673_v51 = vmul.f32 %v4671_v49, %v4651_v40 }
0x7bd0   :  { %v4675_v53 = vrot.slane %v4673_v51, 2 }
0x7bd2   :  { %4676 = vrot.lane.b32.xlu2 %v4675_v53, %s7019_s17 }
0x7c2c   :  { %v4677_v41 = vpop.permute.xlu2 %4676 }
0x7c2d   :  { %6053 = vmatmul.msk.f32.vlgmr.msrb.gmra.mxu2 %vm356_vm5, %v4677_v41 }
0x7c2e   :  { %5258 = vmatpush.msrb.mxu2 %v8142_v6 }
0x7c30   :  { %5259 = vmatpush.msrb.mxu2 %v8148_v20 }
0x7c32   :  { %5260 = vmatpush.msrb.mxu2 %v8150_v55 }
0x7c34   :  { %5261 = vmatpush.msrb.mxu2 %v8154_v30 }
0x7cb0   :  { %v4697_v23 = vpop.f32.mrf.mxu2 }
0x7cb1   :  { %v4701_v57 = vrot.slane %v4697_v23, 4 }
0x7cb3   :  { %v4703_v46 = vadd.f32 %v4701_v57, %v8204_v50 }
0x7cb5   :  { %6581 = vtanh.f32 %v4703_v46  ;;  %v6054_v52 = vmul.f32 -1.442695, %v4703_v46 }
0x7cb7   :  { %6583 = vpow2.f32 %v6054_v52 }
0x7cbb   :  { %v6582_v1 = vpop.eup %6581 }
0x7cbc   :  { %4729 = vrot.lane.b32.xlu0 %v6582_v1, %s7018_s5 }
0x7cbd   :  { %v6584_v3 = vpop.eup %6583 }
0x7cbe   :  { %v4707_v58 = vadd.f32 1.0, %v6584_v3 }
0x7cc0   :  { %6585 = vrcp.f32 %v4707_v58  ;;  %v4719_v7 = vand.u32 2147483648, %v4707_v58  ;;  %vm4713_vm13 = vweird.f32 %v4707_v58  ;;  %v4717_v11 = vand.u32 2147483647, %v4707_v58 }
0x7cc2   :  { %v4720_v43 = vor.u32 1.1754944e-38, %v4719_v7  ;;  %vm4718_vm4 = vcmp.eq.f32.partialorder %v4717_v11, 8.507059e+37 }
0x7cc6   :  { %v6586_v28 = vpop.eup %6585 }
0x7cc7   :  { %v4709_v61 = vmul.f32 %v6586_v28, %v4707_v58  ;;  %vm4714_vm12 = vweird.f32 %v6586_v28 }
0x7cc8   :  { %vm4715_vm15 = vmor %vm4713_vm13, %vm4714_vm12 }
0x7cc9   :  { %v4710_v14 = vsub.f32 1.0, %v4709_v61 }
0x7ccb   :  { %v4711_v47 = vmul.f32 %v6586_v28, %v4710_v14 }
0x7ccd   :  { %v4712_v4 = vadd.f32 %v6586_v28, %v4711_v47 }
0x7ccf   :  { %v4716_v50 = vsel %vm4715_vm15, %v6586_v28, %v4712_v4 }
0x7cd0   :  { %v4721_v18 = vsel %vm4718_vm4, %v4720_v43, %v4716_v50 }
0x7cd1   :  { %v4727_v27 = vmul.f32 %v4725_v39, %v4721_v18 }
0x7d2e   :  { %v4730_v37 = vpop.permute.xlu0 %4729 }
0x7d2f   :  { %v4732_v12 = vmul.f32 %v4730_v37, %v4721_v18 }
0x7d31   :  { %4734 = vrot.lane.b32.xlu1 %v4732_v12, %s7018_s5 }
0x7da3   :  { %v4735_v15 = vpop.permute.xlu1 %4734 }
0x7da4   :  { %v4737_v8 = vadd.f32 %v4735_v15, %v4727_v27 }
0x7da6   :  { %6587 = vtanh.f32 %v4737_v8  ;;  %v4795_v2 = vrot.slane %v4737_v8, 6 }
0x7dac   :  { %v6588_v62 = vpop.eup %6587 }
0x7dad   :  { %4740 = vrot.lane.b32.xlu2 %v6588_v62, %s7018_s5 }
0x7e07   :  { %v4741_v29 = vpop.permute.xlu2 %4740 }
0x7e08   :  { %v4743_v59 = vmul.f32 %v4741_v29, %v4721_v18 }
0x7e0a   :  { %v4745_v16 = vrot.slane %v4743_v59, 4 }
0x7e0c   :  { %4746 = vrot.lane.b32.xlu0 %v4745_v16, %s7019_s17 }
0x7e7e   :  { %v4747_v17 = vpop.permute.xlu0 %4746 }
0x7e7f   :  { %6055 = vmatmul.msk.f32.vlgmr.msrb.gmra.mxu3 %vm356_vm5, %v4747_v17 }
0x7e80   :  { %5328 = vmatpush.msrb.mxu3 %v8142_v6 }
0x7e82   :  { %5329 = vmatpush.msrb.mxu3 %v8148_v20 }
0x7e84   :  { %5330 = vmatpush.msrb.mxu3 %v8150_v55 }
0x7e86   :  { %5331 = vmatpush.msrb.mxu3 %v8154_v30 }
0x7f02   :  { %v4767_v21 = vpop.f32.mrf.mxu3 }
0x7f03   :  { %v4771_v31 = vrot.slane %v4767_v21, 2 }
0x7f05   :  { %v4773_v54 = vadd.f32 %v4771_v31, %v8202_v36 }
0x7f07   :  { %6589 = vtanh.f32 %v4773_v54  ;;  %v6056_v25 = vmul.f32 -1.442695, %v4773_v54 }
0x7f09   :  { %6591 = vpow2.f32 %v6056_v25 }
0x7f0d   :  { %v6590_v48 = vpop.eup %6589 }
0x7f0e   :  { %4799 = vrot.lane.b32.xlu1 %v6590_v48, %s7018_s5 }
0x7f0f   :  { %v6592_v26 = vpop.eup %6591 }
0x7f10   :  { %v4777_v9 = vadd.f32 1.0, %v6592_v26 }
0x7f12   :  { %6593 = vrcp.f32 %v4777_v9  ;;  %v4789_v30 = vand.u32 2147483648, %v4777_v9  ;;  %vm4783_vm1 = vweird.f32 %v4777_v9  ;;  %v4787_v33 = vand.u32 2147483647, %v4777_v9 }
0x7f14   :  { %v4790_v22 = vor.u32 1.1754944e-38, %v4789_v30  ;;  %vm4788_vm3 = vcmp.eq.f32.partialorder %v4787_v33, 8.507059e+37 }
0x7f18   :  { %v6594_v6 = vpop.eup %6593 }
0x7f19   :  { %v4779_v32 = vmul.f32 %v6594_v6, %v4777_v9  ;;  %vm4784_vm0 = vweird.f32 %v6594_v6 }
0x7f1a   :  { %vm4785_vm2 = vmor %vm4783_vm1, %vm4784_vm0 }
0x7f1b   :  { %v4780_v20 = vsub.f32 1.0, %v4779_v32 }
0x7f1d   :  { %v4781_v0 = vmul.f32 %v6594_v6, %v4780_v20 }
0x7f1f   :  { %v4782_v55 = vadd.f32 %v6594_v6, %v4781_v0 }
0x7f21   :  { %v4786_v36 = vsel %vm4785_vm2, %v6594_v6, %v4782_v55 }
0x7f22   :  { %v4791_v34 = vsel %vm4788_vm3, %v4790_v22, %v4786_v36 }
0x7f23   :  { %v4797_v40 = vmul.f32 %v4795_v2, %v4791_v34 }
0x7f80   :  { %v4800_v5 = vpop.permute.xlu1 %4799 }
0x7f81   :  { %v4802_v19 = vmul.f32 %v4800_v5, %v4791_v34 }
0x7f83   :  { %4804 = vrot.lane.b32.xlu2 %v4802_v19, %s7018_s5 }
0x7fdd   :  { %v4805_v10 = vpop.permute.xlu2 %4804 }
0x7fde   :  { %v4807_v42 = vadd.f32 %v4805_v10, %v4797_v40 }
0x7fe0   :  { %6595 = vtanh.f32 %v4807_v42  ;;  %v4866_v43 = vrot.slane %v4807_v42, 6 }
0x7fe6   :  { %v6596_v13 = vpop.eup %6595 }
0x7fe7   :  { %4810 = vrot.lane.b32.xlu0 %v6596_v13, %s7018_s5 }
0x8059   :  { %v4811_v44 = vpop.permute.xlu0 %4810 }
0x805a   :  { %v8293_v45 = vmul.f32 %v4811_v44, %v4791_v34 }
0x805c   :  { %v4819_v56 = vrot.slane %v8293_v45, 6 }
0x805e   :  { %4820 = vrot.lane.b32.xlu1 %v4819_v56, %s7019_s17 }
0x80d0   :  { %v4821_v49 = vpop.permute.xlu1 %4820 }
0x80d1   :  { %6057 = vmatmul.msk.f32.vlgmr.msra.gmra.mxu0 %vm356_vm5, %v4821_v49 }
0x814e   :  { %v4841_v51 = vpop.f32.mrf.mxu0 }
0x814f   :  { %v4844_v53 = vadd.f32 %v4841_v51, %v8206_v60 }
0x8151   :  { %6597 = vtanh.f32 %v4844_v53  ;;  %v6058_v23 = vmul.f32 -1.442695, %v4844_v53 }
0x8153   :  { %6599 = vpow2.f32 %v6058_v23 }
0x8157   :  { %v6598_v41 = vpop.eup %6597 }
0x8158   :  { %4870 = vrot.lane.b32.xlu2 %v6598_v41, %s7018_s5 }
0x8159   :  { %v6600_v57 = vpop.eup %6599 }
0x815a   :  { %v4848_v46 = vadd.f32 1.0, %v6600_v57 }
0x815c   :  { %6601 = vrcp.f32 %v4848_v46  ;;  %v4860_v61 = vand.u32 2147483648, %v4848_v46  ;;  %vm4854_vm8 = vweird.f32 %v4848_v46  ;;  %v4858_v14 = vand.u32 2147483647, %v4848_v46 }
0x815e   :  { %v4861_v4 = vor.u32 1.1754944e-38, %v4860_v61  ;;  %vm4859_vm10 = vcmp.eq.f32.partialorder %v4858_v14, 8.507059e+37 }
0x8162   :  { %v6602_v1 = vpop.eup %6601 }
0x8163   :  { %v4850_v52 = vmul.f32 %v6602_v1, %v4848_v46  ;;  %vm4855_vm7 = vweird.f32 %v6602_v1 }
0x8164   :  { %vm4856_vm9 = vmor %vm4854_vm8, %vm4855_vm7 }
0x8165   :  { %v4851_v3 = vsub.f32 1.0, %v4850_v52 }
0x8167   :  { %v4852_v58 = vmul.f32 %v6602_v1, %v4851_v3 }
0x8169   :  { %v4853_v28 = vadd.f32 %v6602_v1, %v4852_v58 }
0x816b   :  { %v4857_v47 = vsel %vm4856_vm9, %v6602_v1, %v4853_v28 }
0x816c   :  { %v4862_v11 = vsel %vm4859_vm10, %v4861_v4, %v4857_v47 }
0x816d   :  { %v4868_v37 = vmul.f32 %v4866_v43, %v4862_v11 }
0x81b2   :  { %v4871_v7 = vpop.permute.xlu2 %4870 }
0x81b3   :  { %v4873_v50 = vmul.f32 %v4871_v7, %v4862_v11 }
0x81b5   :  { %4875 = vrot.lane.b32.xlu0 %v4873_v50, %s7018_s5 }
0x8227   :  { %v4876_v18 = vpop.permute.xlu0 %4875 }
0x8228   :  { %v4878_v12 = vadd.f32 %v4876_v18, %v4868_v37 }
0x822a   :  { %6603 = vtanh.f32 %v4878_v12  ;;  %v4938_v36 = vrot.slane %v4878_v12, 6 }
0x8230   :  { %v6604_v39 = vpop.eup %6603 }
0x8231   :  { %4881 = vrot.lane.b32.xlu1 %v6604_v39, %s7018_s5 }
0x82a3   :  { %v4882_v27 = vpop.permute.xlu1 %4881 }
0x82a4   :  { %v8302_v15 = vmul.f32 %v4882_v27, %v4862_v11 }
0x82a6   :  { %4889 = vrot.lane.b32.xlu2 %v8302_v15, %s7019_s17 }
0x8300   :  { %v4890_v8 = vpop.permute.xlu2 %4889 }
0x8301   :  { %6059 = vmatmul.msk.f32.vlgmr.msra.gmra.mxu1 %vm356_vm5, %v4890_v8 }
0x837e   :  { %v4910_v62 = vpop.f32.mrf.mxu1 }
0x837f   :  { %v4914_v29 = vrot.slane %v4910_v62, 6 }
0x8381   :  { %v4916_v59 = vadd.f32 %v4914_v29, %v8200_v35 }
0x8383   :  { %6605 = vtanh.f32 %v4916_v59  ;;  %v6060_v17 = vmul.f32 -1.442695, %v4916_v59 }
0x8385   :  { %6607 = vpow2.f32 %v6060_v17 }
0x8389   :  { %v6606_v16 = vpop.eup %6605 }
0x838a   :  { %4942 = vrot.lane.b32.xlu0 %v6606_v16, %s7018_s5 }
0x838b   :  { %v6608_v21 = vpop.eup %6607 }
0x838c   :  { %v4920_v31 = vadd.f32 1.0, %v6608_v21 }
0x838e   :  { %6609 = vrcp.f32 %v4920_v31  ;;  %v4932_v6 = vand.u32 2147483648, %v4920_v31  ;;  %vm4926_vm12 = vweird.f32 %v4920_v31  ;;  %v4930_v32 = vand.u32 2147483647, %v4920_v31 }
0x8390   :  { %v4933_v0 = vor.u32 1.1754944e-38, %v4932_v6  ;;  %vm4931_vm15 = vcmp.eq.f32.partialorder %v4930_v32, 8.507059e+37 }
0x8394   :  { %v6610_v54 = vpop.eup %6609 }
0x8395   :  { %v4922_v48 = vmul.f32 %v6610_v54, %v4920_v31  ;;  %vm4927_vm11 = vweird.f32 %v6610_v54 }
0x8396   :  { %vm4928_vm13 = vmor %vm4926_vm12, %vm4927_vm11 }
0x8397   :  { %v4923_v25 = vsub.f32 1.0, %v4922_v48 }
0x8399   :  { %v4924_v26 = vmul.f32 %v6610_v54, %v4923_v25 }
0x839b   :  { %v4925_v9 = vadd.f32 %v6610_v54, %v4924_v26 }
0x839d   :  { %v4929_v20 = vsel %vm4928_vm13, %v6610_v54, %v4925_v9 }
0x839e   :  { %v4934_v30 = vsel %vm4931_vm15, %v4933_v0, %v4929_v20 }
0x839f   :  { %v4940_v22 = vmul.f32 %v4938_v36, %v4934_v30 }
0x83fc   :  { %v4943_v55 = vpop.permute.xlu0 %4942 }
0x83fd   :  { %v4945_v33 = vmul.f32 %v4943_v55, %v4934_v30 }
0x83ff   :  { %4947 = vrot.lane.b32.xlu1 %v4945_v33, %s7018_s5 }
0x8471   :  { %v4948_v5 = vpop.permute.xlu1 %4947 }
0x8472   :  { %v4950_v34 = vadd.f32 %v4948_v5, %v4940_v22 }
0x8474   :  { %6611 = vtanh.f32 %v4950_v34  ;;  %v5008_v4 = vrot.slane %v4950_v34, 6 }
0x847a   :  { %v6612_v19 = vpop.eup %6611 }
0x847b   :  { %4953 = vrot.lane.b32.xlu2 %v6612_v19, %s7018_s5 }
0x84d5   :  { %v4954_v2 = vpop.permute.xlu2 %4953 }
0x84d6   :  { %v4956_v40 = vmul.f32 %v4954_v2, %v4934_v30 }
0x84d8   :  { %v4958_v10 = vrot.slane %v4956_v40, 2 }
0x84da   :  { %4959 = vrot.lane.b32.xlu0 %v4958_v10, %s7019_s17 }
0x854c   :  { %v4960_v42 = vpop.permute.xlu0 %4959 }
0x854d   :  { %6061 = vmatmul.msk.f32.vlgmr.msra.gmra.mxu2 %vm356_vm5, %v4960_v42 }
0x85d0   :  { %v4980_v13 = vpop.f32.mrf.mxu2 }
0x85d1   :  { %v4984_v44 = vrot.slane %v4980_v13, 4 }
0x85d3   :  { %v4986_v56 = vadd.f32 %v4984_v44, %v8206_v60 }
0x85d5   :  { %6613 = vtanh.f32 %v4986_v56  ;;  %v6062_v51 = vmul.f32 -1.442695, %v4986_v56 }
0x85d7   :  { %6615 = vpow2.f32 %v6062_v51 }
0x85db   :  { %v6614_v49 = vpop.eup %6613 }
0x85dc   :  { %5012 = vrot.lane.b32.xlu1 %v6614_v49, %s7018_s5 }
0x85dd   :  { %v6616_v53 = vpop.eup %6615 }
0x85de   :  { %v4990_v41 = vadd.f32 1.0, %v6616_v53 }
0x85e0   :  { %6617 = vrcp.f32 %v4990_v41  ;;  %v5002_v3 = vand.u32 2147483648, %v4990_v41  ;;  %vm4996_vm0 = vweird.f32 %v4990_v41  ;;  %v5000_v58 = vand.u32 2147483647, %v4990_v41 }
0x85e2   :  { %v5003_v28 = vor.u32 1.1754944e-38, %v5002_v3  ;;  %vm5001_vm2 = vcmp.eq.f32.partialorder %v5000_v58, 8.507059e+37 }
0x85e6   :  { %v6618_v23 = vpop.eup %6617 }
0x85e7   :  { %v4992_v57 = vmul.f32 %v6618_v23, %v4990_v41  ;;  %vm4997_vm4 = vweird.f32 %v6618_v23 }
0x85e8   :  { %vm4998_vm1 = vmor %vm4996_vm0, %vm4997_vm4 }
0x85e9   :  { %v4993_v46 = vsub.f32 1.0, %v4992_v57 }
0x85eb   :  { %v4994_v1 = vmul.f32 %v6618_v23, %v4993_v46 }
0x85ed   :  { %v4995_v52 = vadd.f32 %v6618_v23, %v4994_v1 }
0x85ef   :  { %v4999_v60 = vsel %vm4998_vm1, %v6618_v23, %v4995_v52 }
0x85f0   :  { %v5004_v14 = vsel %vm5001_vm2, %v5003_v28, %v4999_v60 }
0x85f1   :  { %v5010_v7 = vmul.f32 %v5008_v4, %v5004_v14 }
0x864e   :  { %v5013_v61 = vpop.permute.xlu1 %5012 }
0x864f   :  { %v5015_v47 = vmul.f32 %v5013_v61, %v5004_v14 }
0x8651   :  { %5017 = vrot.lane.b32.xlu2 %v5015_v47, %s7018_s5 }
0x86ab   :  { %v5018_v11 = vpop.permute.xlu2 %5017 }
0x86ac   :  { %v5020_v50 = vadd.f32 %v5018_v11, %v5010_v7 }
0x86ae   :  { %6619 = vtanh.f32 %v5020_v50  ;;  %v5078_v55 = vrot.slane %v5020_v50, 6 }
0x86b4   :  { %v6620_v43 = vpop.eup %6619 }
0x86b5   :  { %5023 = vrot.lane.b32.xlu0 %v6620_v43, %s7018_s5 }
0x8727   :  { %v5024_v37 = vpop.permute.xlu0 %5023 }
0x8728   :  { %v5026_v18 = vmul.f32 %v5024_v37, %v5004_v14 }
0x872a   :  { %v5028_v12 = vrot.slane %v5026_v18, 4 }
0x872c   :  { %5029 = vrot.lane.b32.xlu1 %v5028_v12, %s7019_s17 }
0x879e   :  { %v5030_v39 = vpop.permute.xlu1 %5029 }
0x879f   :  { %6063 = vmatmul.msk.f32.vlgmr.msra.gmra.mxu3 %vm356_vm5, %v5030_v39 }
0x8822   :  { %v5050_v27 = vpop.f32.mrf.mxu3 }
0x8823   :  { %v5054_v8 = vrot.slane %v5050_v27, 2 }
0x8825   :  { %v5056_v62 = vadd.f32 %v5054_v8, %v8200_v35 }
0x8827   :  { %6621 = vtanh.f32 %v5056_v62  ;;  %v6064_v59 = vmul.f32 -1.442695, %v5056_v62 }
0x8829   :  { %6623 = vpow2.f32 %v6064_v59 }
0x882d   :  { %v6622_v29 = vpop.eup %6621 }
0x882e   :  { %5082 = vrot.lane.b32.xlu2 %v6622_v29, %s7018_s5 }
0x882f   :  { %v6624_v16 = vpop.eup %6623 }
0x8830   :  { %v5060_v17 = vadd.f32 1.0, %v6624_v16 }
0x8832   :  { %6625 = vrcp.f32 %v5060_v17  ;;  %v5072_v26 = vand.u32 2147483648, %v5060_v17  ;;  %vm5066_vm7 = vweird.f32 %v5060_v17  ;;  %v5070_v9 = vand.u32 2147483647, %v5060_v17 }
0x8834   :  { %v5073_v6 = vor.u32 1.1754944e-38, %v5072_v26  ;;  %vm5071_vm9 = vcmp.eq.f32.partialorder %v5070_v9, 8.507059e+37 }
0x8838   :  { %v6626_v21 = vpop.eup %6625 }
0x8839   :  { %v5062_v31 = vmul.f32 %v6626_v21, %v5060_v17  ;;  %vm5067_vm3 = vweird.f32 %v6626_v21 }
0x883a   :  { %vm5068_vm8 = vmor %vm5066_vm7, %vm5067_vm3 }
0x883b   :  { %v5063_v54 = vsub.f32 1.0, %v5062_v31 }
0x883d   :  { %v5064_v48 = vmul.f32 %v6626_v21, %v5063_v54 }
0x883f   :  { %v5065_v25 = vadd.f32 %v6626_v21, %v5064_v48 }
0x8841   :  { %v5069_v35 = vsel %vm5068_vm8, %v6626_v21, %v5065_v25 }
0x8842   :  { %v5074_v20 = vsel %vm5071_vm9, %v5073_v6, %v5069_v35 }
0x8843   :  { %v5080_v30 = vmul.f32 %v5078_v55, %v5074_v20 }
0x8888   :  { %v5083_v32 = vpop.permute.xlu2 %5082 }
0x8889   :  { %v5085_v0 = vmul.f32 %v5083_v32, %v5074_v20 }
0x888b   :  { %5087 = vrot.lane.b32.xlu0 %v5085_v0, %s7018_s5 }
0x88fd   :  { %v5088_v33 = vpop.permute.xlu0 %5087 }
0x88fe   :  { %v5090_v36 = vadd.f32 %v5088_v33, %v5080_v30 }
0x8900   :  { %6627 = vtanh.f32 %v5090_v36  ;;  %v5149_v28 = vrot.slane %v5090_v36, 6 }
0x8906   :  { %v6628_v22 = vpop.eup %6627 }
0x8907   :  { %5093 = vrot.lane.b32.xlu1 %v6628_v22, %s7018_s5 }
0x8979   :  { %v5094_v5 = vpop.permute.xlu1 %5093 }
0x897a   :  { %v5096_v34 = vmul.f32 %v5094_v5, %v5074_v20 }
0x897c   :  { %v5102_v19 = vrot.slane %v5096_v34, 6 }
0x897e   :  { %5103 = vrot.lane.b32.xlu2 %v5102_v19, %s7019_s17 }
0x89d8   :  { %v5104_v2 = vpop.permute.xlu2 %5103 }
0x89d9   :  { %6065 = vmatmul.msk.f32.vlgmr.msrb.gmra.mxu0 %vm356_vm5, %v5104_v2 }
0x8a56   :  { %v5124_v40 = vpop.f32.mrf.mxu0 }
0x8a57   :  { %v5127_v10 = vadd.f32 %v5124_v40, %v8212_v63 }
0x8a59   :  { %6629 = vtanh.f32 %v5127_v10  ;;  %v6066_v13 = vmul.f32 -1.442695, %v5127_v10 }
0x8a5b   :  { %6631 = vpow2.f32 %v6066_v13 }
0x8a5f   :  { %v6630_v42 = vpop.eup %6629 }
0x8a60   :  { %5153 = vrot.lane.b32.xlu0 %v6630_v42, %s7018_s5 }
0x8a61   :  { %v6632_v44 = vpop.eup %6631 }
0x8a62   :  { %v5131_v56 = vadd.f32 1.0, %v6632_v44 }
0x8a64   :  { %6633 = vrcp.f32 %v5131_v56  ;;  %v5143_v57 = vand.u32 2147483648, %v5131_v56  ;;  %vm5137_vm11 = vweird.f32 %v5131_v56  ;;  %v5141_v46 = vand.u32 2147483647, %v5131_v56 }
0x8a66   :  { %v5144_v52 = vor.u32 1.1754944e-38, %v5143_v57  ;;  %vm5142_vm13 = vcmp.eq.f32.partialorder %v5141_v46, 8.507059e+37 }
0x8a6a   :  { %v6634_v49 = vpop.eup %6633 }
0x8a6b   :  { %v5133_v51 = vmul.f32 %v6634_v49, %v5131_v56  ;;  %vm5138_vm10 = vweird.f32 %v6634_v49 }
0x8a6c   :  { %vm5139_vm12 = vmor %vm5137_vm11, %vm5138_vm10 }
0x8a6d   :  { %v5134_v53 = vsub.f32 1.0, %v5133_v51 }
0x8a6f   :  { %v5135_v41 = vmul.f32 %v6634_v49, %v5134_v53 }
0x8a71   :  { %v5136_v23 = vadd.f32 %v6634_v49, %v5135_v41 }
0x8a73   :  { %v5140_v1 = vsel %vm5139_vm12, %v6634_v49, %v5136_v23 }
0x8a74   :  { %v5145_v58 = vsel %vm5142_vm13, %v5144_v52, %v5140_v1 }
0x8a75   :  { %v5151_v61 = vmul.f32 %v5149_v28, %v5145_v58 }
0x8ad2   :  { %v5154_v3 = vpop.permute.xlu0 %5153 }
0x8ad3   :  { %v5156_v60 = vmul.f32 %v5154_v3, %v5145_v58 }
0x8ad5   :  { %5158 = vrot.lane.b32.xlu1 %v5156_v60, %s7018_s5 }
0x8b47   :  { %v5159_v14 = vpop.permute.xlu1 %5158 }
0x8b48   :  { %v5161_v47 = vadd.f32 %v5159_v14, %v5151_v61 }
0x8b4a   :  { %6635 = vtanh.f32 %v5161_v47  ;;  %v5221_v35 = vrot.slane %v5161_v47, 6 }
0x8b50   :  { %v6636_v4 = vpop.eup %6635 }
0x8b51   :  { %5164 = vrot.lane.b32.xlu2 %v6636_v4, %s7018_s5 }
0x8bab   :  { %v5165_v7 = vpop.permute.xlu2 %5164 }
0x8bac   :  { %v5167_v11 = vmul.f32 %v5165_v7, %v5145_v58 }
0x8bae   :  { %5172 = vrot.lane.b32.xlu0 %v5167_v11, %s7019_s17 }
0x8c20   :  { %v5173_v50 = vpop.permute.xlu0 %5172 }
0x8c21   :  { %6067 = vmatmul.msk.f32.vlgmr.msrb.gmra.mxu1 %vm356_vm5, %v5173_v50 }
0x8c9e   :  { %v5193_v43 = vpop.f32.mrf.mxu1 }
0x8c9f   :  { %v5197_v37 = vrot.slane %v5193_v43, 6  ;;  %v5392_v43 = vrot.slane %v8218_v38, 2 }
0x8ca1   :  { %v5199_v18 = vadd.f32 %v5197_v37, %v8208_v24 }
0x8ca3   :  { %6637 = vtanh.f32 %v5199_v18  ;;  %v6068_v39 = vmul.f32 -1.442695, %v5199_v18 }
0x8ca5   :  { %6639 = vpow2.f32 %v6068_v39 }
0x8ca9   :  { %v6638_v12 = vpop.eup %6637 }
0x8caa   :  { %5225 = vrot.lane.b32.xlu1 %v6638_v12, %s7018_s5 }
0x8cab   :  { %v6640_v27 = vpop.eup %6639 }
0x8cac   :  { %v5203_v8 = vadd.f32 1.0, %v6640_v27 }
0x8cae   :  { %6641 = vrcp.f32 %v5203_v8  ;;  %v5215_v21 = vand.u32 2147483648, %v5203_v8  ;;  %vm5209_vm4 = vweird.f32 %v5203_v8  ;;  %v5213_v31 = vand.u32 2147483647, %v5203_v8 }
0x8cb0   :  { %v5216_v48 = vor.u32 1.1754944e-38, %v5215_v21  ;;  %vm5214_vm1 = vcmp.eq.f32.partialorder %v5213_v31, 8.507059e+37  ;;  %v5383_v31 = vrot.slane %v8302_v15, 2  ;;  %v5405_v15 = vld [vmem:[%s8420_s20 + $0x8] sm:$0xff] }
0x8cb4   :  { %v6642_v62 = vpop.eup %6641 }
0x8cb5   :  { %v5205_v29 = vmul.f32 %v6642_v62, %v5203_v8  ;;  %vm5210_vm15 = vweird.f32 %v6642_v62 }
0x8cb6   :  { %vm5211_vm0 = vmor %vm5209_vm4, %vm5210_vm15 }
0x8cb7   :  { %v5206_v59 = vsub.f32 1.0, %v5205_v29 }
0x8cb9   :  { %v5207_v16 = vmul.f32 %v6642_v62, %v5206_v59 }
0x8cbb   :  { %v5208_v17 = vadd.f32 %v6642_v62, %v5207_v16 }
0x8cbd   :  { %v5212_v54 = vsel %vm5211_vm0, %v6642_v62, %v5208_v17 }
0x8cbe   :  { %v5217_v26 = vsel %vm5214_vm1, %v5216_v48, %v5212_v54 }
0x8cbf   :  { %v5223_v6 = vmul.f32 %v5221_v35, %v5217_v26  ;;  %v5407_v35 = vld [vmem:[%s8420_s20 + $0x18] sm:$0xff] }
0x8cc0   :  { %5428 = vmatpush.msra.mxu0 %v5407_v35 }
0x8d1c   :  { %v5226_v25 = vpop.permute.xlu1 %5225 }
0x8d1d   :  { %v5228_v9 = vmul.f32 %v5226_v25, %v5217_v26 }
0x8d1f   :  { %5230 = vrot.lane.b32.xlu2 %v5228_v9, %s7018_s5 }
0x8d79   :  { %v5231_v32 = vpop.permute.xlu2 %5230 }
0x8d7a   :  { %v5233_v20 = vadd.f32 %v5231_v32, %v5223_v6  ;;  %v5406_v6 = vld [vmem:[%s8420_s20 + $0x10] sm:$0xff] }
0x8d7b   :  { %5429 = vmatpush.msra.mxu0 %v5406_v6 }
0x8d7c   :  { %6643 = vtanh.f32 %v5233_v20  ;;  %v5291_v1 = vrot.slane %v5233_v20, 6 }
0x8d7d   :  { %5430 = vmatpush.msra.mxu0 %v5405_v15 }
0x8d82   :  { %v6644_v0 = vpop.eup %6643 }
0x8d83   :  { %5236 = vrot.lane.b32.xlu0 %v6644_v0, %s7018_s5  ;;  %v5404_v0 = vld [vmem:[%s8420_s20] sm:$0xff] }
0x8d84   :  { %5431 = vmatpush.msra.mxu0 %v5404_v0 }
0x8df5   :  { %v5237_v55 = vpop.permute.xlu0 %5236 }
0x8df6   :  { %v5239_v30 = vmul.f32 %v5237_v55, %v5217_v26 }
0x8df8   :  { %v5241_v33 = vrot.slane %v5239_v30, 2 }
0x8dfa   :  { %5242 = vrot.lane.b32.xlu1 %v5241_v33, %s7019_s17 }
0x8e6c   :  { %v5243_v36 = vpop.permute.xlu1 %5242 }
0x8e6d   :  { %6069 = vmatmul.msk.f32.vlgmr.msrb.gmra.mxu2 %vm356_vm5, %v5243_v36 }
0x8ef0   :  { %v5263_v22 = vpop.f32.mrf.mxu2 }
0x8ef1   :  { %v5267_v5 = vrot.slane %v5263_v22, 4 }
0x8ef3   :  { %v5269_v34 = vadd.f32 %v5267_v5, %v8212_v63 }
0x8ef5   :  { %6645 = vtanh.f32 %v5269_v34  ;;  %v6070_v2 = vmul.f32 -1.442695, %v5269_v34 }
0x8ef7   :  { %6647 = vpow2.f32 %v6070_v2 }
0x8efb   :  { %v6646_v19 = vpop.eup %6645 }
0x8efc   :  { %5295 = vrot.lane.b32.xlu2 %v6646_v19, %s7018_s5 }
0x8efd   :  { %v6648_v40 = vpop.eup %6647 }
0x8efe   :  { %v5273_v10 = vadd.f32 1.0, %v6648_v40  ;;  %v6139_v40 = vld [vmem:[%s8421_s22] ss:$0 sm:$0xff] }
0x8f00   :  { %6649 = vrcp.f32 %v5273_v10  ;;  %v5285_v51 = vand.u32 2147483648, %v5273_v10  ;;  %vm5279_vm3 = vweird.f32 %v5273_v10  ;;  %v5283_v53 = vand.u32 2147483647, %v5273_v10 }
0x8f02   :  { %v5286_v41 = vor.u32 1.1754944e-38, %v5285_v51  ;;  %vm5284_vm8 = vcmp.eq.f32.partialorder %v5283_v53, 8.507059e+37 }
0x8f06   :  { %v6650_v42 = vpop.eup %6649 }
0x8f07   :  { %v5275_v13 = vmul.f32 %v6650_v42, %v5273_v10  ;;  %vm5280_vm2 = vweird.f32 %v6650_v42  ;;  %v6138_v10 = vld [vmem:[%s8422_s23] ss:$0 sm:$0xff] }
0x8f08   :  { %vm5281_vm7 = vmor %vm5279_vm3, %vm5280_vm2 }
0x8f09   :  { %v5276_v44 = vsub.f32 1.0, %v5275_v13 }
0x8f0b   :  { %v5277_v56 = vmul.f32 %v6650_v42, %v5276_v44 }
0x8f0d   :  { %v5278_v49 = vadd.f32 %v6650_v42, %v5277_v56 }
0x8f0f   :  { %v5282_v63 = vsel %vm5281_vm7, %v6650_v42, %v5278_v49  ;;  %v5439_v42 = vmul.f32 0.0, %v6139_v40 }
0x8f10   :  { %v5287_v57 = vsel %vm5284_vm8, %v5286_v41, %v5282_v63 }
0x8f11   :  { %v5293_v52 = vmul.f32 %v5291_v1, %v5287_v57 }
0x8f56   :  { %v5296_v23 = vpop.permute.xlu2 %5295 }
0x8f57   :  { %v5298_v46 = vmul.f32 %v5296_v23, %v5287_v57 }
0x8f59   :  { %5300 = vrot.lane.b32.xlu0 %v5298_v46, %s7018_s5 }
0x8fcb   :  { %v5301_v3 = vpop.permute.xlu0 %5300 }
0x8fcc   :  { %v5303_v58 = vadd.f32 %v5301_v3, %v5293_v52 }
0x8fce   :  { %6651 = vtanh.f32 %v5303_v58  ;;  %v5361_v54 = vrot.slane %v5303_v58, 6 }
0x8fd4   :  { %v6652_v60 = vpop.eup %6651 }
0x8fd5   :  { %5306 = vrot.lane.b32.xlu1 %v6652_v60, %s7018_s5 }
0x9047   :  { %v5307_v28 = vpop.permute.xlu1 %5306 }
0x9048   :  { %v5309_v61 = vmul.f32 %v5307_v28, %v5287_v57 }
0x904a   :  { %v5311_v14 = vrot.slane %v5309_v61, 4 }
0x904c   :  { %5312 = vrot.lane.b32.xlu2 %v5311_v14, %s7019_s17 }
0x90a6   :  { %v5313_v47 = vpop.permute.xlu2 %5312 }
0x90a7   :  { %6071 = vmatmul.msk.f32.vlgmr.msrb.gmra.mxu3 %vm356_vm5, %v5313_v47 }
0x912a   :  { %v5333_v4 = vpop.f32.mrf.mxu3 }
0x912b   :  { %v5337_v7 = vrot.slane %v5333_v4, 2 }
0x912d   :  { %v5339_v11 = vadd.f32 %v5337_v7, %v8208_v24 }
0x912f   :  { %6653 = vtanh.f32 %v5339_v11  ;;  %v6072_v37 = vmul.f32 -1.442695, %v5339_v11 }
0x9131   :  { %6655 = vpow2.f32 %v6072_v37 }
0x9135   :  { %v6654_v50 = vpop.eup %6653 }
0x9136   :  { %5365 = vrot.lane.b32.xlu0 %v6654_v50, %s7018_s5  ;;  %v7022_v50 = vmov 2  }
0x9137   :  { %v6656_v18 = vpop.eup %6655  ;;  %6131 = vset.pattern.permute.xlu1 %v7022_v50  ;;  %6132 = vset.pattern.permute.xlu2 %v7022_v50 }
0x9138   :  { %v5343_v12 = vadd.f32 1.0, %v6656_v18  ;;  %6133 = vset.pattern.permute.xlu0 %v7022_v50 }
0x913a   :  { %6657 = vrcp.f32 %v5343_v12  ;;  %v5355_v29 = vand.u32 2147483648, %v5343_v12  ;;  %vm5349_vm10 = vweird.f32 %v5343_v12  ;;  %v5353_v59 = vand.u32 2147483647, %v5343_v12 }
0x913c   :  { %v5356_v38 = vor.u32 1.1754944e-38, %v5355_v29  ;;  %vm5354_vm12 = vcmp.eq.f32.partialorder %v5353_v59, 8.507059e+37 }
0x913e   :  { %5380 = vrot.lane.b32.xlu0 %v8293_v45, %s7019_s17 }
0x9140   :  { %v6658_v39 = vpop.eup %6657 }
0x9141   :  { %v5345_v27 = vmul.f32 %v6658_v39, %v5343_v12  ;;  %vm5350_vm9 = vweird.f32 %v6658_v39 }
0x9142   :  { %vm5351_vm11 = vmor %vm5349_vm10, %vm5350_vm9 }
0x9143   :  { %v5346_v8 = vsub.f32 1.0, %v5345_v27 }
0x9145   :  { %v5347_v24 = vmul.f32 %v6658_v39, %v5346_v8 }
0x9146   :  { %5393 = vrot.lane.b32.xlu0 %v5392_v43, %s7019_s17 }
0x9147   :  { %v5348_v62 = vadd.f32 %v6658_v39, %v5347_v24 }
0x9149   :  { %v5352_v45 = vsel %vm5351_vm11, %v6658_v39, %v5348_v62 }
0x914a   :  { %v5357_v17 = vsel %vm5354_vm12, %v5356_v38, %v5352_v45 }
0x914b   :  { %v5363_v48 = vmul.f32 %v5361_v54, %v5357_v17 }
0x91a8   :  { %v5366_v16 = vpop.permute.xlu0 %5365 }
0x91a9   :  { %v5368_v21 = vmul.f32 %v5366_v16, %v5357_v17 }
0x91ab   :  { %5370 = vrot.lane.b32.xlu1 %v5368_v21, %s7018_s5 }
0x91b0   :  { %v5381_v55 = vpop.permute.xlu0 %5380 }
0x91b3   :  { %5384 = vrot.lane.b32.xlu1 %v5383_v31, %s7019_s17 }
0x91b8   :  { %v5394_v36 = vpop.permute.xlu0 %5393 }
0x921d   :  { %v5371_v25 = vpop.permute.xlu1 %5370 }
0x921e   :  { %v5373_v26 = vadd.f32 %v5371_v25, %v5363_v48 }
0x9220   :  { %6659 = vtanh.f32 %v5373_v26 }
0x9225   :  { %v5385_v30 = vpop.permute.xlu1 %5384 }
0x9226   :  { %v6660_v9 = vpop.eup %6659  ;;  %v5387_v33 = vsel %vm1568_vm6, %v5381_v55, %v5385_v30 }
0x9227   :  { %5376 = vrot.lane.b32.xlu2 %v6660_v9, %s7018_s5  ;;  %v5398_v34 = vrot.slane %v5387_v33, 6  ;;  %v6140_v33 = vld [vmem:[%s8423_s28] ss:$0 sm:$0xff] }
0x9281   :  { %v5377_v32 = vpop.permute.xlu2 %5376 }
0x9282   :  { %v5379_v20 = vmul.f32 %v5377_v32, %v5357_v17 }
0x9284   :  { %5389 = vrot.lane.b32.xlu2 %v5379_v20, %s7019_s17 }
0x92de   :  { %v5390_v22 = vpop.permute.xlu2 %5389 }
0x92df   :  { %v5396_v5 = vsel %vm1568_vm6, %v5390_v22, %v5394_v36  ;;  %v6142_v36 = vld [vmem:[%s8424_s24] ss:$0 sm:$0xff] }
0x92e0   :  { %v5401_v19 = vrot.slane %v5396_v5, 4  ;;  %v6141_v22 = vld [vmem:[%s8425_s13] ss:$0 sm:$0xff] }
0x92e2   :  { %v5403_v2 = vsel %vm1479_vm14, %v5398_v34, %v5401_v19  ;;  %v5548_v34 = vmul.f32 0.0, %v6142_v36 }
0x92e3   :  { %6073 = vmatmul.msk.f32.vlgmr.msra.gmra.mxu0 %vm356_vm5, %v5403_v2 }
0x9360   :  { %v5433_v13 = vpop.f32.mrf.mxu0 }
0x9361   :  { %v5434_v44 = vadd.f32 %v6138_v10, %v5433_v13 }
0x9363   :  { %v5440_v56 = vadd.f32 %v5439_v42, %v5434_v44 }
0x9365   :  { %6661 = vtanh.f32 %v5440_v56  ;;  %v6074_v51 = vmul.f32 -1.442695, %v5440_v56 }
0x9367   :  { %6663 = vpow2.f32 %v6074_v51 }
0x936b   :  { %v6662_v49 = vpop.eup %6661 }
0x936c   :  { %5463 = vrot.lane.b32.xlu1 %v6662_v49, %s7020_s15 }
0x936d   :  { %v6664_v53 = vpop.eup %6663 }
0x936e   :  { %v5444_v63 = vadd.f32 1.0, %v6664_v53 }
0x9370   :  { %6665 = vrcp.f32 %v5444_v63  ;;  %v5456_v52 = vand.u32 2147483648, %v5444_v63  ;;  %vm5450_vm6 = vweird.f32 %v5444_v63  ;;  %v5454_v3 = vand.u32 2147483647, %v5444_v63 }
0x9372   :  { %v5457_v60 = vor.u32 1.1754944e-38, %v5456_v52  ;;  %vm5455_vm15 = vcmp.eq.f32.partialorder %v5454_v3, 8.507059e+37 }
0x9376   :  { %v6666_v41 = vpop.eup %6665 }
0x9377   :  { %v5446_v23 = vmul.f32 %v6666_v41, %v5444_v63  ;;  %vm5451_vm5 = vweird.f32 %v6666_v41 }
0x9378   :  { %vm5452_vm13 = vmor %vm5450_vm6, %vm5451_vm5 }
0x9379   :  { %v5447_v57 = vsub.f32 1.0, %v5446_v23 }
0x937b   :  { %v5448_v46 = vmul.f32 %v6666_v41, %v5447_v57 }
0x937d   :  { %v5449_v1 = vadd.f32 %v6666_v41, %v5448_v46 }
0x937f   :  { %v5453_v58 = vsel %vm5452_vm13, %v6666_v41, %v5449_v1 }
0x9380   :  { %v5458_v61 = vsel %vm5455_vm15, %v5457_v60, %v5453_v58 }
0x9381   :  { %v5461_v47 = vmul.f32 0.0, %v5458_v61 }
0x93de   :  { %v5464_v28 = vpop.permute.xlu1 %5463 }
0x93df   :  { %v5466_v14 = vmul.f32 %v5464_v28, %v5458_v61 }
0x93e1   :  { %5468 = vrot.lane.b32.xlu2 %v5466_v14, %s7021_s26 }
0x943b   :  { %v5469_v4 = vpop.permute.xlu2 %5468 }
0x943c   :  { %v5471_v7 = vadd.f32 %v5469_v4, %v5461_v47 }
0x943e   :  { %6667 = vtanh.f32 %v5471_v7  ;;  %v5509_v35 = vrot.slane %v5471_v7, 6 }
0x9444   :  { %v6668_v11 = vpop.eup %6667 }
0x9445   :  { %5474 = vrot.lane.b32.xlu0 %v6668_v11, %s7021_s26 }
0x94b7   :  { %v5475_v43 = vpop.permute.xlu0 %5474 }
0x94b8   :  { %v5477_v37 = vmul.f32 %v5475_v43, %v5458_v61 }
0x94ba   :  { %5480 = vperm.xlu1 %6131, %v5477_v37  }
0x952c   :  { %v5481_v18 = vpop.permute.xlu1 %5480 }
0x952d   :  { %v5483_v12 = vmul.f32 %v6139_v40, %v5481_v18 }
0x952f   :  { %v5485_v39 = vrot.slane %v5483_v12, 6 }
0x9531   :  { %v5487_v27 = vadd.f32 %v5485_v39, %v5434_v44 }
0x9533   :  { %6669 = vtanh.f32 %v5487_v27  ;;  %v6075_v24 = vmul.f32 -1.442695, %v5487_v27 }
0x9535   :  { %6671 = vpow2.f32 %v6075_v24 }
0x9539   :  { %v6670_v8 = vpop.eup %6669 }
0x953a   :  { %5513 = vrot.lane.b32.xlu2 %v6670_v8, %s7020_s15 }
0x953b   :  { %v6672_v62 = vpop.eup %6671 }
0x953c   :  { %v5491_v29 = vadd.f32 1.0, %v6672_v62 }
0x953e   :  { %6673 = vrcp.f32 %v5491_v29  ;;  %v5503_v21 = vand.u32 2147483648, %v5491_v29  ;;  %vm5497_vm0 = vweird.f32 %v5491_v29  ;;  %v5501_v31 = vand.u32 2147483647, %v5491_v29 }
0x9540   :  { %v5504_v48 = vor.u32 1.1754944e-38, %v5503_v21  ;;  %vm5502_vm2 = vcmp.eq.f32.partialorder %v5501_v31, 8.507059e+37 }
0x9544   :  { %v6674_v59 = vpop.eup %6673 }
0x9545   :  { %v5493_v45 = vmul.f32 %v6674_v59, %v5491_v29  ;;  %vm5498_vm4 = vweird.f32 %v6674_v59 }
0x9546   :  { %vm5499_vm1 = vmor %vm5497_vm0, %vm5498_vm4 }
0x9547   :  { %v5494_v38 = vsub.f32 1.0, %v5493_v45 }
0x9549   :  { %v5495_v16 = vmul.f32 %v6674_v59, %v5494_v38 }
0x954b   :  { %v5496_v17 = vadd.f32 %v6674_v59, %v5495_v16 }
0x954d   :  { %v5500_v54 = vsel %vm5499_vm1, %v6674_v59, %v5496_v17 }
0x954e   :  { %v5505_v26 = vsel %vm5502_vm2, %v5504_v48, %v5500_v54 }
0x954f   :  { %v5511_v6 = vmul.f32 %v5509_v35, %v5505_v26 }
0x9594   :  { %v5514_v25 = vpop.permute.xlu2 %5513 }
0x9595   :  { %v5516_v9 = vmul.f32 %v5514_v25, %v5505_v26 }
0x9597   :  { %5518 = vrot.lane.b32.xlu0 %v5516_v9, %s7021_s26 }
0x9609   :  { %v5519_v32 = vpop.permute.xlu0 %5518 }
0x960a   :  { %v5521_v20 = vadd.f32 %v5519_v32, %v5511_v6  ;;  %v6143_v32 = vld [vmem:[%s8426_s3] ss:$0 sm:$0xff] }
0x960c   :  { %6675 = vtanh.f32 %v5521_v20  ;;  %v6145_v20 = vld [vmem:[%s8427_s2] ss:$0 sm:$0xff] }
0x9612   :  { %v6676_v15 = vpop.eup %6675 }
0x9613   :  { %5524 = vrot.lane.b32.xlu1 %v6676_v15, %s7021_s26  ;;  %v6144_v15 = vld [vmem:[%s8428_s10] ss:$0 sm:$0xff] }
0x9685   :  { %v5525_v0 = vpop.permute.xlu1 %5524 }
0x9686   :  { %v5527_v55 = vmul.f32 %v5525_v0, %v5505_v26 }
0x9688   :  { %v5528_v30 = vsel %vm1479_vm14, %v5477_v37, %v5527_v55  ;;  %v5657_v55 = vmul.f32 0.0, %v6145_v20 }
0x9689   :  { %5534 = vperm.xlu2 %6132, %v5528_v30  }
0x96e3   :  { %v5535_v5 = vpop.permute.xlu2 %5534 }
0x96e4   :  { %v5540_v19 = vmul.f32 %v6140_v33, %v5535_v5 }
0x96e6   :  { %v5544_v2 = vadd.f32 %v6141_v22, %v5540_v19 }
0x96e8   :  { %v5549_v40 = vadd.f32 %v5548_v34, %v5544_v2 }
0x96ea   :  { %6677 = vtanh.f32 %v5549_v40  ;;  %v6076_v42 = vmul.f32 -1.442695, %v5549_v40 }
0x96ec   :  { %6679 = vpow2.f32 %v6076_v42 }
0x96f0   :  { %v6678_v10 = vpop.eup %6677 }
0x96f1   :  { %5572 = vrot.lane.b32.xlu0 %v6678_v10, %s7020_s15 }
0x96f2   :  { %v6680_v13 = vpop.eup %6679 }
0x96f3   :  { %v5553_v44 = vadd.f32 1.0, %v6680_v13 }
0x96f5   :  { %6681 = vrcp.f32 %v5553_v44  ;;  %v5565_v41 = vand.u32 2147483648, %v5553_v44  ;;  %vm5559_vm7 = vweird.f32 %v5553_v44  ;;  %v5563_v23 = vand.u32 2147483647, %v5553_v44 }
0x96f7   :  { %v5566_v46 = vor.u32 1.1754944e-38, %v5565_v41  ;;  %vm5564_vm9 = vcmp.eq.f32.partialorder %v5563_v23, 8.507059e+37 }
0x96fb   :  { %v6682_v56 = vpop.eup %6681 }
0x96fc   :  { %v5555_v49 = vmul.f32 %v6682_v56, %v5553_v44  ;;  %vm5560_vm3 = vweird.f32 %v6682_v56 }
0x96fd   :  { %vm5561_vm8 = vmor %vm5559_vm7, %vm5560_vm3 }
0x96fe   :  { %v5556_v51 = vsub.f32 1.0, %v5555_v49 }
0x9700   :  { %v5557_v53 = vmul.f32 %v6682_v56, %v5556_v51 }
0x9702   :  { %v5558_v63 = vadd.f32 %v6682_v56, %v5557_v53 }
0x9704   :  { %v5562_v57 = vsel %vm5561_vm8, %v6682_v56, %v5558_v63 }
0x9705   :  { %v5567_v52 = vsel %vm5564_vm9, %v5566_v46, %v5562_v57 }
0x9706   :  { %v5570_v58 = vmul.f32 0.0, %v5567_v52 }
0x9763   :  { %v5573_v1 = vpop.permute.xlu0 %5572 }
0x9764   :  { %v5575_v3 = vmul.f32 %v5573_v1, %v5567_v52 }
0x9766   :  { %5577 = vrot.lane.b32.xlu1 %v5575_v3, %s7021_s26 }
0x97d8   :  { %v5578_v60 = vpop.permute.xlu1 %5577 }
0x97d9   :  { %v5580_v28 = vadd.f32 %v5578_v60, %v5570_v58 }
0x97db   :  { %6683 = vtanh.f32 %v5580_v28  ;;  %v5618_v31 = vrot.slane %v5580_v28, 6 }
0x97e1   :  { %v6684_v61 = vpop.eup %6683 }
0x97e2   :  { %5583 = vrot.lane.b32.xlu2 %v6684_v61, %s7021_s26 }
0x983c   :  { %v5584_v14 = vpop.permute.xlu2 %5583 }
0x983d   :  { %v5586_v47 = vmul.f32 %v5584_v14, %v5567_v52 }
0x983f   :  { %5589 = vperm.xlu0 %6133, %v5586_v47  }
0x98b1   :  { %v5590_v4 = vpop.permute.xlu0 %5589 }
0x98b2   :  { %v5592_v7 = vmul.f32 %v6142_v36, %v5590_v4 }
0x98b4   :  { %v5594_v11 = vrot.slane %v5592_v7, 6 }
0x98b6   :  { %v5596_v50 = vadd.f32 %v5594_v11, %v5544_v2 }
0x98b8   :  { %6685 = vtanh.f32 %v5596_v50  ;;  %v6077_v37 = vmul.f32 -1.442695, %v5596_v50 }
0x98ba   :  { %6687 = vpow2.f32 %v6077_v37 }
0x98be   :  { %v6686_v43 = vpop.eup %6685 }
0x98bf   :  { %5622 = vrot.lane.b32.xlu1 %v6686_v43, %s7020_s15 }
0x98c0   :  { %v6688_v18 = vpop.eup %6687 }
0x98c1   :  { %v5600_v12 = vadd.f32 1.0, %v6688_v18 }
0x98c3   :  { %6689 = vrcp.f32 %v5600_v12  ;;  %v5612_v29 = vand.u32 2147483648, %v5600_v12  ;;  %vm5606_vm11 = vweird.f32 %v5600_v12  ;;  %v5610_v59 = vand.u32 2147483647, %v5600_v12 }
0x98c5   :  { %v5613_v38 = vor.u32 1.1754944e-38, %v5612_v29  ;;  %vm5611_vm5 = vcmp.eq.f32.partialorder %v5610_v59, 8.507059e+37 }
0x98c9   :  { %v6690_v39 = vpop.eup %6689 }
0x98ca   :  { %v5602_v27 = vmul.f32 %v6690_v39, %v5600_v12  ;;  %vm5607_vm10 = vweird.f32 %v6690_v39 }
0x98cb   :  { %vm5608_vm12 = vmor %vm5606_vm11, %vm5607_vm10 }
0x98cc   :  { %v5603_v8 = vsub.f32 1.0, %v5602_v27 }
0x98ce   :  { %v5604_v24 = vmul.f32 %v6690_v39, %v5603_v8 }
0x98d0   :  { %v5605_v62 = vadd.f32 %v6690_v39, %v5604_v24 }
0x98d2   :  { %v5609_v45 = vsel %vm5608_vm12, %v6690_v39, %v5605_v62 }
0x98d3   :  { %v5614_v17 = vsel %vm5611_vm5, %v5613_v38, %v5609_v45 }
0x98d4   :  { %v5620_v54 = vmul.f32 %v5618_v31, %v5614_v17 }
0x9931   :  { %v5623_v16 = vpop.permute.xlu1 %5622 }
0x9932   :  { %v5625_v21 = vmul.f32 %v5623_v16, %v5614_v17 }
0x9934   :  { %5627 = vrot.lane.b32.xlu2 %v5625_v21, %s7021_s26 }
0x998e   :  { %v5628_v48 = vpop.permute.xlu2 %5627 }
0x998f   :  { %v5630_v25 = vadd.f32 %v5628_v48, %v5620_v54  ;;  %v6146_v48 = vld [vmem:[%s7164_s30] ss:$0 sm:$0xff]  ;;  %s7024_s30 = smov 127  }
0x9991   :  { %6691 = vtanh.f32 %v5630_v25  ;;  %v6148_v25 = vld [vmem:[%s7169_s8] ss:$0 sm:$0xff]  ;;  %s7023_s8 = smov 126  }
0x9997   :  { %v6692_v26 = vpop.eup %6691 }
0x9998   :  { %5633 = vrot.lane.b32.xlu1 %v6692_v26, %s7021_s26  ;;  %v6147_v26 = vld [vmem:[%s7174_s27] ss:$0 sm:$0xff]  ;;  %s7025_s27 = smov [#allocation17]  }
0x9999   :  { %s5872_s1 = sshll.u32 %s7025_s27, 4  ;;  %s5873_s1 = int_to_ptr.vmem [resolvable:$true] %s5872_s1 }
0x9a0a   :  { %v5634_v9 = vpop.permute.xlu1 %5633 }
0x9a0b   :  { %v5636_v35 = vmul.f32 %v5634_v9, %v5614_v17 }
0x9a0d   :  { %v5637_v6 = vsel %vm1479_vm14, %v5586_v47, %v5636_v35  ;;  %v5766_v35 = vmul.f32 0.0, %v6148_v25 }
0x9a0e   :  { %5643 = vperm.xlu2 %6132, %v5637_v6  }
0x9a68   :  { %v5644_v0 = vpop.permute.xlu2 %5643 }
0x9a69   :  { %v5649_v30 = vmul.f32 %v6143_v32, %v5644_v0 }
0x9a6b   :  { %v5653_v33 = vadd.f32 %v6144_v15, %v5649_v30 }
0x9a6d   :  { %v5658_v36 = vadd.f32 %v5657_v55, %v5653_v33 }
0x9a6f   :  { %6693 = vtanh.f32 %v5658_v36  ;;  %v6078_v5 = vmul.f32 -1.442695, %v5658_v36 }
0x9a71   :  { %6695 = vpow2.f32 %v6078_v5 }
0x9a75   :  { %v6694_v22 = vpop.eup %6693 }
0x9a76   :  { %5681 = vrot.lane.b32.xlu0 %v6694_v22, %s7020_s15 }
0x9a77   :  { %v6696_v34 = vpop.eup %6695 }
0x9a78   :  { %v5662_v19 = vadd.f32 1.0, %v6696_v34 }
0x9a7a   :  { %6697 = vrcp.f32 %v5662_v19  ;;  %v5674_v44 = vand.u32 2147483648, %v5662_v19  ;;  %vm5668_vm13 = vweird.f32 %v5662_v19  ;;  %v5672_v56 = vand.u32 2147483647, %v5662_v19 }
0x9a7c   :  { %v5675_v51 = vor.u32 1.1754944e-38, %v5674_v44  ;;  %vm5673_vm4 = vcmp.eq.f32.partialorder %v5672_v56, 8.507059e+37 }
0x9a80   :  { %v6698_v2 = vpop.eup %6697 }
0x9a81   :  { %v5664_v40 = vmul.f32 %v6698_v2, %v5662_v19  ;;  %vm5669_vm6 = vweird.f32 %v6698_v2 }
0x9a82   :  { %vm5670_vm15 = vmor %vm5668_vm13, %vm5669_vm6  ;;  %vm5863_vm6 = vcmask 7168   ;;  %vm5865_vm13 = vcmask 9216  }
0x9a83   :  { %v5665_v10 = vsub.f32 1.0, %v5664_v40 }
0x9a85   :  { %v5666_v42 = vmul.f32 %v6698_v2, %v5665_v10 }
0x9a87   :  { %v5667_v13 = vadd.f32 %v6698_v2, %v5666_v42 }
0x9a89   :  { %v5671_v49 = vsel %vm5670_vm15, %v6698_v2, %v5667_v13 }
0x9a8a   :  { %v5676_v63 = vsel %vm5673_vm4, %v5675_v51, %v5671_v49 }
0x9a8b   :  { %v5679_v23 = vmul.f32 0.0, %v5676_v63 }
0x9ae8   :  { %v5682_v53 = vpop.permute.xlu0 %5681 }
0x9ae9   :  { %v5684_v41 = vmul.f32 %v5682_v53, %v5676_v63 }
0x9aeb   :  { %5686 = vrot.lane.b32.xlu1 %v5684_v41, %s7021_s26 }
0x9b5d   :  { %v5687_v57 = vpop.permute.xlu1 %5686 }
0x9b5e   :  { %v5689_v46 = vadd.f32 %v5687_v57, %v5679_v23 }
0x9b60   :  { %6699 = vtanh.f32 %v5689_v46  ;;  %v5727_v59 = vrot.slane %v5689_v46, 6 }
0x9b66   :  { %v6700_v1 = vpop.eup %6699 }
0x9b67   :  { %5692 = vrot.lane.b32.xlu2 %v6700_v1, %s7021_s26 }
0x9bc1   :  { %v5693_v52 = vpop.permute.xlu2 %5692 }
0x9bc2   :  { %v5695_v3 = vmul.f32 %v5693_v52, %v5676_v63 }
0x9bc4   :  { %5698 = vperm.xlu0 %6133, %v5695_v3  }
0x9c36   :  { %v5699_v58 = vpop.permute.xlu0 %5698 }
0x9c37   :  { %v5701_v60 = vmul.f32 %v6145_v20, %v5699_v58 }
0x9c39   :  { %v5703_v28 = vrot.slane %v5701_v60, 6 }
0x9c3b   :  { %v5705_v61 = vadd.f32 %v5703_v28, %v5653_v33 }
0x9c3d   :  { %6701 = vtanh.f32 %v5705_v61  ;;  %v6079_v47 = vmul.f32 -1.442695, %v5705_v61 }
0x9c3f   :  { %6703 = vpow2.f32 %v6079_v47 }
0x9c43   :  { %v6702_v14 = vpop.eup %6701 }
0x9c44   :  { %5731 = vrot.lane.b32.xlu1 %v6702_v14, %s7020_s15 }
0x9c45   :  { %v6704_v4 = vpop.eup %6703 }
0x9c46   :  { %v5709_v7 = vadd.f32 1.0, %v6704_v4 }
0x9c48   :  { %6705 = vrcp.f32 %v5709_v7  ;;  %v5721_v12 = vand.u32 2147483648, %v5709_v7  ;;  %vm5715_vm1 = vweird.f32 %v5709_v7  ;;  %v5719_v39 = vand.u32 2147483647, %v5709_v7 }
0x9c4a   :  { %v5722_v8 = vor.u32 1.1754944e-38, %v5721_v12  ;;  %vm5720_vm3 = vcmp.eq.f32.partialorder %v5719_v39, 8.507059e+37 }
0x9c4e   :  { %v6706_v11 = vpop.eup %6705 }
0x9c4f   :  { %v5711_v50 = vmul.f32 %v6706_v11, %v5709_v7  ;;  %vm5716_vm0 = vweird.f32 %v6706_v11 }
0x9c50   :  { %vm5717_vm2 = vmor %vm5715_vm1, %vm5716_vm0 }
0x9c51   :  { %v5712_v43 = vsub.f32 1.0, %v5711_v50 }
0x9c53   :  { %v5713_v37 = vmul.f32 %v6706_v11, %v5712_v43 }
0x9c55   :  { %v5714_v18 = vadd.f32 %v6706_v11, %v5713_v37 }
0x9c57   :  { %v5718_v27 = vsel %vm5717_vm2, %v6706_v11, %v5714_v18 }
0x9c58   :  { %v5723_v62 = vsel %vm5720_vm3, %v5722_v8, %v5718_v27 }
0x9c59   :  { %v5729_v45 = vmul.f32 %v5727_v59, %v5723_v62 }
0x9cb6   :  { %v5732_v24 = vpop.permute.xlu1 %5731 }
0x9cb7   :  { %v5734_v29 = vmul.f32 %v5732_v24, %v5723_v62 }
0x9cb9   :  { %5736 = vrot.lane.b32.xlu2 %v5734_v29, %s7021_s26 }
0x9d13   :  { %v5737_v38 = vpop.permute.xlu2 %5736 }
0x9d14   :  { %v5739_v16 = vadd.f32 %v5737_v38, %v5729_v45 }
0x9d16   :  { %6707 = vtanh.f32 %v5739_v16 }
0x9d1c   :  { %v6708_v17 = vpop.eup %6707 }
0x9d1d   :  { %5742 = vrot.lane.b32.xlu0 %v6708_v17, %s7021_s26 }
0x9d8f   :  { %v5743_v21 = vpop.permute.xlu0 %5742 }
0x9d90   :  { %v5745_v31 = vmul.f32 %v5743_v21, %v5723_v62 }
0x9d92   :  { %v5746_v54 = vsel %vm1479_vm14, %v5695_v3, %v5745_v31 }
0x9d93   :  { %5752 = vperm.xlu1 %6131, %v5746_v54  }
0x9e05   :  { %v5753_v9 = vpop.permute.xlu1 %5752 }
0x9e06   :  { %v5758_v6 = vmul.f32 %v6146_v48, %v5753_v9 }
0x9e08   :  { %v5762_v32 = vadd.f32 %v6147_v26, %v5758_v6 }
0x9e0a   :  { %v5767_v20 = vadd.f32 %v5766_v35, %v5762_v32 }
0x9e0c   :  { %6709 = vtanh.f32 %v5767_v20  ;;  %v6080_v0 = vmul.f32 -1.442695, %v5767_v20 }
0x9e0e   :  { %6711 = vpow2.f32 %v6080_v0 }
0x9e12   :  { %v6710_v15 = vpop.eup %6709 }
0x9e13   :  { %5790 = vrot.lane.b32.xlu2 %v6710_v15, %s7020_s15 }
0x9e14   :  { %v6712_v55 = vpop.eup %6711 }
0x9e15   :  { %v5771_v30 = vadd.f32 1.0, %v6712_v55 }
0x9e17   :  { %6713 = vrcp.f32 %v5771_v30  ;;  %v5783_v19 = vand.u32 2147483648, %v5771_v30  ;;  %vm5777_vm7 = vweird.f32 %v5771_v30  ;;  %v5781_v2 = vand.u32 2147483647, %v5771_v30 }
0x9e19   :  { %v5784_v10 = vor.u32 1.1754944e-38, %v5783_v19  ;;  %vm5782_vm9 = vcmp.eq.f32.partialorder %v5781_v2, 8.507059e+37 }
0x9e1d   :  { %v6714_v33 = vpop.eup %6713 }
0x9e1e   :  { %v5773_v36 = vmul.f32 %v6714_v33, %v5771_v30  ;;  %vm5778_vm14 = vweird.f32 %v6714_v33 }
0x9e1f   :  { %vm5779_vm8 = vmor %vm5777_vm7, %vm5778_vm14 }
0x9e20   :  { %v5774_v22 = vsub.f32 1.0, %v5773_v36 }
0x9e22   :  { %v5775_v5 = vmul.f32 %v6714_v33, %v5774_v22 }
0x9e24   :  { %v5776_v34 = vadd.f32 %v6714_v33, %v5775_v5 }
0x9e26   :  { %v5780_v40 = vsel %vm5779_vm8, %v6714_v33, %v5776_v34 }
0x9e27   :  { %v5785_v13 = vsel %vm5782_vm9, %v5784_v10, %v5780_v40 }
0x9e28   :  { %v5788_v56 = vmul.f32 0.0, %v5785_v13 }
0x9e6d   :  { %v5791_v42 = vpop.permute.xlu2 %5790 }
0x9e6e   :  { %v5793_v44 = vmul.f32 %v5791_v42, %v5785_v13 }
0x9e70   :  { %5795 = vrot.lane.b32.xlu0 %v5793_v44, %s7021_s26 }
0x9ee2   :  { %v5796_v49 = vpop.permute.xlu0 %5795 }
0x9ee3   :  { %v5798_v51 = vadd.f32 %v5796_v49, %v5788_v56 }
0x9ee5   :  { %6715 = vtanh.f32 %v5798_v51  ;;  %v5836_v39 = vrot.slane %v5798_v51, 6 }
0x9eeb   :  { %v6716_v53 = vpop.eup %6715 }
0x9eec   :  { %5801 = vrot.lane.b32.xlu1 %v6716_v53, %s7021_s26 }
0x9f5e   :  { %v5802_v63 = vpop.permute.xlu1 %5801 }
0x9f5f   :  { %v5804_v41 = vmul.f32 %v5802_v63, %v5785_v13 }
0x9f61   :  { %5807 = vperm.xlu2 %6132, %v5804_v41  }
0x9fbb   :  { %v5808_v23 = vpop.permute.xlu2 %5807 }
0x9fbc   :  { %v5810_v57 = vmul.f32 %v6148_v25, %v5808_v23 }
0x9fbe   :  { %v5812_v46 = vrot.slane %v5810_v57, 6 }
0x9fc0   :  { %v5814_v1 = vadd.f32 %v5812_v46, %v5762_v32 }
0x9fc2   :  { %6717 = vtanh.f32 %v5814_v1  ;;  %v6081_v3 = vmul.f32 -1.442695, %v5814_v1 }
0x9fc4   :  { %6719 = vpow2.f32 %v6081_v3 }
0x9fc8   :  { %v6718_v52 = vpop.eup %6717 }
0x9fc9   :  { %5840 = vrot.lane.b32.xlu0 %v6718_v52, %s7020_s15 }
0x9fca   :  { %v6720_v58 = vpop.eup %6719 }
0x9fcb   :  { %v5818_v60 = vadd.f32 1.0, %v6720_v58 }
0x9fcd   :  { %6721 = vrcp.f32 %v5818_v60  ;;  %v5830_v7 = vand.u32 2147483648, %v5818_v60  ;;  %vm5824_vm11 = vweird.f32 %v5818_v60  ;;  %v5828_v11 = vand.u32 2147483647, %v5818_v60 }
0x9fcf   :  { %v5831_v43 = vor.u32 1.1754944e-38, %v5830_v7  ;;  %vm5829_vm5 = vcmp.eq.f32.partialorder %v5828_v11, 8.507059e+37 }
0x9fd1   :  { %5855 = vrot.lane.b32.xlu0 %v5804_v41, %s7023_s8 }
0x9fd3   :  { %v6722_v28 = vpop.eup %6721 }
0x9fd4   :  { %v5820_v61 = vmul.f32 %v6722_v28, %v5818_v60  ;;  %vm5825_vm10 = vweird.f32 %v6722_v28 }
0x9fd5   :  { %vm5826_vm12 = vmor %vm5824_vm11, %vm5825_vm10 }
0x9fd6   :  { %v5821_v14 = vsub.f32 1.0, %v5820_v61 }
0x9fd8   :  { %v5822_v47 = vmul.f32 %v6722_v28, %v5821_v14 }
0x9fda   :  { %v5823_v4 = vadd.f32 %v6722_v28, %v5822_v47 }
0x9fdc   :  { %v5827_v50 = vsel %vm5826_vm12, %v6722_v28, %v5823_v4 }
0x9fdd   :  { %v5832_v18 = vsel %vm5829_vm5, %v5831_v43, %v5827_v50 }
0x9fde   :  { %v5838_v27 = vmul.f32 %v5836_v39, %v5832_v18 }
0xa03b   :  { %v5841_v37 = vpop.permute.xlu0 %5840 }
0xa03c   :  { %v5843_v12 = vmul.f32 %v5841_v37, %v5832_v18 }
0xa03e   :  { %5845 = vrot.lane.b32.xlu1 %v5843_v12, %s7021_s26 }
0xa043   :  { %v5856_v38 = vpop.permute.xlu0 %5855 }
0xa0b0   :  { %v5846_v8 = vpop.permute.xlu1 %5845 }
0xa0b1   :  { %v5848_v24 = vadd.f32 %v5846_v8, %v5838_v27 }
0xa0b3   :  { %6723 = vtanh.f32 %v5848_v24 }
0xa0b9   :  { %v6724_v62 = vpop.eup %6723 }
0xa0ba   :  { %5851 = vrot.lane.b32.xlu2 %v6724_v62, %s7021_s26 }
0xa114   :  { %v5852_v29 = vpop.permute.xlu2 %5851 }
0xa115   :  { %v5854_v59 = vmul.f32 %v5852_v29, %v5832_v18 }
0xa117   :  { %v5859_v45 = vrot.slane %v5854_v59, 2 }
0xa119   :  { %5860 = vrot.lane.b32.xlu1 %v5859_v45, %s7024_s30 }
0xa18b   :  { %v5861_v16 = vpop.permute.xlu1 %5860 }
0xa18c   :  { %v5864_v17 = vsel %vm5863_vm6, %v5856_v38, %v5861_v16 }
0xa18d   :  { %5866 = vst.msk [vmem:[#allocation17] sm:$0x3] %vm5865_vm13, %v5864_v17 }
0xa18e   :  { %6964 = shalt.err (!%p6961_p7)
}
0xa18f   :  { %5877 = dma.vmem_to_hbm [thread:$0]  %s5873_s1, 32, %s5875_s11, [#allocation4]  }
0xa190   :  { %6975 = dma.done.wait [#allocation4], 32  }
0xa191   :  { %6976 = vsyncadd [#allocation4], 4294967264 }
0xa192   :  { %5882 = vsyncpa [#allocation3], 1 }
0xa193   :  { %5883 = vsyncpa [#allocation6], 1 }
0xa194   :  { %5884 = vsyncpa [#allocation9], 1 }
0xa195   :  { %5885 = vsyncpa [#allocation12], 1 }
0xa196   :  { %5886 = vsyncpa [#allocation15], 1 }
0xa197   :  { %5887 = vsyncpa [#allocation4], 1 }

</bundles_post_ra>
